<compile_context>
chip_gen: v7x
topology: tpu7x:2x2x1
jax: 0.10.0
libtpu: 0.0.40
codegen_flags: <defaults>
</compile_context>

<pallas_src>
import functools

import jax
import jax.numpy as jnp
from jax import lax
from jax.experimental import pallas as pl
from jax.experimental.pallas import tpu as pltpu


def _make_res_chain_kernel(H, W, Cf, K, num_block):
    p = (K - 1) // 2
    Hp2, Wp2 = H + 2 * p, W + 2 * p
    HW = H * W

    def zero_border(ref):
        # Only the p-wide halo needs zeros; interiors are overwritten each step.
        zr = jnp.zeros((p, Wp2, Cf), ref.dtype)
        zc = jnp.zeros((Hp2, p, Cf), ref.dtype)
        ref[0:p, :, :] = zr
        ref[p + H:, :, :] = zr
        ref[:, 0:p, :] = zc
        ref[:, p + W:, :] = zc

    def conv3x3(pad_bf, w_ref, b_ref, n):
        # 9 accumulated per-tap matmuls (bf16 operands, f32 accumulation);
        # accumulator is initialized with the broadcast bias.
        acc = jnp.broadcast_to(b_ref[n], (HW, Cf)).astype(jnp.float32)
        for ky in range(K):
            for kx in range(K):
                tap = pad_bf[ky:ky + H, kx:kx + W, :].reshape(HW, Cf)   # bf16
                acc = acc + jnp.dot(tap, w_ref[n, ky * K + kx],
                                    preferred_element_type=jnp.float32)
        return acc

    def kernel(feat_ref, w1_ref, b1_ref, w2_ref, b2_ref, out_ref,
               x32, xpad_bf, tpad_bf):
        # Halo init once per image.
        zero_border(xpad_bf)
        zero_border(tpad_bf)

        # f32 carry + bf16 shadow of the post-conv0 feature map.
        x32[...] = feat_ref[0].reshape(HW, Cf)
        xpad_bf[p:p + H, p:p + W, :] = feat_ref[0].astype(jnp.bfloat16)

        def block_body(n, carry):
            # ResidualBlockNoBN:  x = x + conv2(relu(conv1(x)))
            t = conv3x3(xpad_bf, w1_ref, b1_ref, n)
            t = jnp.maximum(t, 0.0)
            tpad_bf[p:p + H, p:p + W, :] = (
                t.reshape(H, W, Cf).astype(jnp.bfloat16))
            r = conv3x3(tpad_bf, w2_ref, b2_ref, n)
            x_new = x32[...] + r                      # residual carry stays f32
            x32[...] = x_new
            xpad_bf[p:p + H, p:p + W, :] = (
                x_new.reshape(H, W, Cf).astype(jnp.bfloat16))
            return carry

        lax.fori_loop(0, num_block, block_body, 0)
        out_ref[0] = x32[...].reshape(H, W, Cf)

    return kernel


def _first_conv_lrelu_nchw(x, w0, b0):
    """3x3 conv (pad 1) + bias + LeakyReLU(0.1) in plain XLA (NCHW).

    Hoisted out of the Pallas kernel (perf review): Cin=3/4 on the lane dim
    would be padded to 128 lanes and the (HW, 9*Cin) matmul barely uses the
    MXU.  Shared by both the kernel wrapper and the pure-JAX reference so the
    comparison is bitwise-identical for this stage.  Operands are rounded to
    bf16 to match the kernel's MXU precision.
    """
    p = (w0.shape[-1] - 1) // 2
    xb = x.astype(jnp.bfloat16).astype(jnp.float32)
    wb = w0.astype(jnp.bfloat16).astype(jnp.float32)
    y = lax.conv_general_dilated(
        xb, wb, window_strides=(1, 1), padding=[(p, p), (p, p)],
        dimension_numbers=('NCHW', 'OIHW', 'NCHW'))
    y = y + b0.reshape(1, -1, 1, 1)
    return jnp.where(y >= 0, y, 0.1 * y)


@jax.jit
def conv_residual_blocks_forward(x_nchw, w0, b0, w1s, b1s, w2s, b2s):
    """ConvResidualBlocks forward.

    x_nchw: (B, Cin, H, W)
    w0: (Cf, Cin, K, K), b0: (Cf,)
    w1s, w2s: (num_block, Cf, Cf, K, K); b1s, b2s: (num_block, Cf)
    Returns (B, Cf, H, W).
    """
    B, _, H, W = x_nchw.shape
    Cf, _, K, _ = w0.shape
    num_block = w1s.shape[0]
    p = (K - 1) // 2
    Hp2, Wp2 = H + 2 * p, W + 2 * p
    KK = K * K

    # Stage 1 (XLA): first conv + LeakyReLU, then NHWC for the kernel.
    feat0 = _first_conv_lrelu_nchw(x_nchw, w0, b0)                  # (B, Cf, H, W)
    if num_block == 0:                                              # edge case
        return feat0
    feat0_nhwc = jnp.transpose(feat0, (0, 2, 3, 1)).astype(jnp.float32)

    # Layout glue (once, outside the kernel): per-tap (I, O) weights in bf16.
    # (NB, O, I, ky, kx) -> (NB, ky, kx, I, O) -> (NB, K*K, I, O)
    w1_m = jnp.transpose(w1s, (0, 3, 4, 2, 1)).reshape(
        num_block, KK, Cf, Cf).astype(jnp.bfloat16)
    w2_m = jnp.transpose(w2s, (0, 3, 4, 2, 1)).reshape(
        num_block, KK, Cf, Cf).astype(jnp.bfloat16)
    b1_m = b1s.reshape(num_block, 1, Cf).astype(jnp.float32)
    b2_m = b2s.reshape(num_block, 1, Cf).astype(jnp.float32)

    kernel = _make_res_chain_kernel(H, W, Cf, K, num_block)

    # VMEM budget derived from the actual working set (lane-padded), + slack.
    cf_pad = ((Cf + 127) // 128) * 128
    vmem_est = (
        4 * H * W * cf_pad * 4                        # feat0 + out blocks (2x buf)
        + 2 * num_block * KK * Cf * cf_pad * 2        # resident w1 + w2 (bf16)
        + H * W * cf_pad * 4                          # f32 carry scratch
        + 2 * Hp2 * Wp2 * cf_pad * 2                  # bf16 padded act buffers
        + (2 << 20)                                   # headroom
    )
    vmem_limit = int(min(max(vmem_est, 16 * 1024 * 1024), 100 * 1024 * 1024))

    out_nhwc = pl.pallas_call(
        kernel,
        out_shape=jax.ShapeDtypeStruct((B, H, W, Cf), jnp.float32),
        grid_spec=pltpu.PrefetchScalarGridSpec(
            num_scalar_prefetch=0,
            grid=(B,),
            in_specs=[
                pl.BlockSpec((1, H, W, Cf), lambda b: (b, 0, 0, 0)),
                # Block weights/biases are VMEM-resident (constant index_map).
                pl.BlockSpec((num_block, KK, Cf, Cf), lambda b: (0, 0, 0, 0)),
                pl.BlockSpec((num_block, 1, Cf), lambda b: (0, 0, 0)),
                pl.BlockSpec((num_block, KK, Cf, Cf), lambda b: (0, 0, 0, 0)),
                pl.BlockSpec((num_block, 1, Cf), lambda b: (0, 0, 0)),
            ],
            out_specs=pl.BlockSpec((1, H, W, Cf), lambda b: (b, 0, 0, 0)),
            scratch_shapes=[
                pltpu.VMEM((H * W, Cf), jnp.float32),       # f32 residual carry
                pltpu.VMEM((Hp2, Wp2, Cf), jnp.bfloat16),   # bf16 shadow (x, padded)
                pltpu.VMEM((Hp2, Wp2, Cf), jnp.bfloat16),   # bf16 intermediate (t, padded)
            ],
        ),
        compiler_params=pltpu.CompilerParams(
            dimension_semantics=("parallel",),   # batch across TCs (v7x megacore)
            vmem_limit_bytes=vmem_limit,
        ),
    )(feat0_nhwc, w1_m, b1_m, w2_m, b2_m)

    return jnp.transpose(out_nhwc, (0, 3, 1, 2))                    # NCHW


def ref_forward(x, w0, b0, w1s, b1s, w2s, b2s):
    """Pure-JAX reference mirroring the PyTorch module (eval == train here).

    Conv operands are rounded to bf16 (as the kernel does for the MXU); the
    first conv is the exact same op as the kernel wrapper uses.
    """
    K = w0.shape[-1]
    p = (K - 1) // 2

    def conv(y, w, b):
        yb = y.astype(jnp.bfloat16).astype(jnp.float32)
        wb = w.astype(jnp.bfloat16).astype(jnp.float32)
        out = lax.conv_general_dilated(
            yb, wb, window_strides=(1, 1), padding=[(p, p), (p, p)],
            dimension_numbers=('NCHW', 'OIHW', 'NCHW'))
        return out + b.reshape(1, -1, 1, 1)

    y = _first_conv_lrelu_nchw(x, w0, b0)        # conv0 + LeakyReLU(0.1)
    for i in range(w1s.shape[0]):                # ResidualBlockNoBN chain
        t = jnp.maximum(conv(y, w1s[i], b1s[i]), 0.0)
        y = y + conv(t, w2s[i], b2s[i])
    return y


if __name__ == "__main__":
    B, Cin, Cf, H, W, K, NB = 2, 4, 64, 16, 16, 3, 2

    key = jax.random.PRNGKey(0)
    ks = jax.random.split(key, 7)
    x = jax.random.normal(ks[0], (B, Cin, H, W), dtype=jnp.float32)
    w0 = jax.random.normal(ks[1], (Cf, Cin, K, K), dtype=jnp.float32) * 0.1
    b0 = jax.random.normal(ks[2], (Cf,), dtype=jnp.float32) * 0.1
    w1s = jax.random.normal(ks[3], (NB, Cf, Cf, K, K), dtype=jnp.float32) * 0.1
    b1s = jax.random.normal(ks[4], (NB, Cf), dtype=jnp.float32) * 0.1
    w2s = jax.random.normal(ks[5], (NB, Cf, Cf, K, K), dtype=jnp.float32) * 0.1
    b2s = jax.random.normal(ks[6], (NB, Cf), dtype=jnp.float32) * 0.1

    out = conv_residual_blocks_forward(x, w0, b0, w1s, b1s, w2s, b2s)
    out = jax.block_until_ready(out)
    assert out.shape == (B, Cf, H, W), out.shape

    ref = ref_forward(x, w0, b0, w1s, b1s, w2s, b2s)
    max_err = float(jnp.max(jnp.abs(out - ref)))
    scale = float(jnp.max(jnp.abs(ref)))
    # bf16 MXU operands / f32 accumulation: magnitude-aware tolerance.
    # Structural bugs (wrong tap/weight layout, missing residual, wrong slope)
    # would produce errors O(scale); mixed-precision noise is <<1% of scale.
    assert max_err <= 2e-2 + 5e-3 * scale, (max_err, scale)

    print("KERNEL_OK")
</pallas_src>

<mosaic_0001>
module attributes {stable_mosaic.version = 11 : i64} {
  func.func @kernel(%arg0: i32, %arg1: memref<1x16x16x64xf32, #tpu.memory_space<vmem>>, %arg2: memref<2x9x64x64xbf16, #tpu.memory_space<vmem>>, %arg3: memref<2x1x64xf32, #tpu.memory_space<vmem>>, %arg4: memref<2x9x64x64xbf16, #tpu.memory_space<vmem>>, %arg5: memref<2x1x64xf32, #tpu.memory_space<vmem>>, %arg6: memref<1x16x16x64xf32, #tpu.memory_space<vmem>>, %arg7: memref<256x64xf32, #tpu.memory_space<vmem>>, %arg8: memref<18x18x64xbf16, #tpu.memory_space<vmem>>, %arg9: memref<18x18x64xbf16, #tpu.memory_space<vmem>>) attributes {dimension_semantics = [#tpu.dimension_semantics<parallel>], iteration_bounds = array<i64: 2>, scalar_prefetch = 0 : i64, scratch_operands = 3 : i64, tpu.core_type = #tpu.core_type<tc>, window_params = [{transform_indices = @transform_0, window_bounds = array<i64: 1, 16, 16, 64>}, {pipeline_mode = #tpu.pipeline_mode<synchronous>, transform_indices = @transform_1, window_bounds = array<i64: 2, 9, 64, 64>}, {pipeline_mode = #tpu.pipeline_mode<synchronous>, transform_indices = @transform_2, window_bounds = array<i64: 2, 1, 64>}, {pipeline_mode = #tpu.pipeline_mode<synchronous>, transform_indices = @transform_3, window_bounds = array<i64: 2, 9, 64, 64>}, {pipeline_mode = #tpu.pipeline_mode<synchronous>, transform_indices = @transform_4, window_bounds = array<i64: 2, 1, 64>}, {transform_indices = @transform_5, window_bounds = array<i64: 1, 16, 16, 64>}]} {
    %cst = arith.constant 0.000000e+00 : bf16
    %0 = vector.broadcast %cst : bf16 to vector<1x18x64xbf16>
    %cst_0 = arith.constant 0.000000e+00 : bf16
    %1 = vector.broadcast %cst_0 : bf16 to vector<18x1x64xbf16>
    %c0 = arith.constant 0 : index
    %c0_1 = arith.constant 0 : index
    %c0_2 = arith.constant 0 : index
    %2 = vector.load %arg8[%c0, %c0_1, %c0_2] : memref<18x18x64xbf16, #tpu.memory_space<vmem>>, vector<1x18x64xbf16>
    tpu.vector_store %arg8[%c0, %c0_1, %c0_2], %0 {strides = array<i32>} : memref<18x18x64xbf16, #tpu.memory_space<vmem>>, vector<1x18x64xbf16>,
    %c17 = arith.constant 17 : index
    %c0_3 = arith.constant 0 : index
    %c0_4 = arith.constant 0 : index
    %3 = vector.load %arg8[%c17, %c0_3, %c0_4] : memref<18x18x64xbf16, #tpu.memory_space<vmem>>, vector<1x18x64xbf16>
    tpu.vector_store %arg8[%c17, %c0_3, %c0_4], %0 {strides = array<i32>} : memref<18x18x64xbf16, #tpu.memory_space<vmem>>, vector<1x18x64xbf16>,
    %c0_5 = arith.constant 0 : index
    %c0_6 = arith.constant 0 : index
    %c0_7 = arith.constant 0 : index
    %4 = vector.load %arg8[%c0_5, %c0_6, %c0_7] : memref<18x18x64xbf16, #tpu.memory_space<vmem>>, vector<18x1x64xbf16>
    tpu.vector_store %arg8[%c0_5, %c0_6, %c0_7], %1 {strides = array<i32>} : memref<18x18x64xbf16, #tpu.memory_space<vmem>>, vector<18x1x64xbf16>,
    %c0_8 = arith.constant 0 : index
    %c17_9 = arith.constant 17 : index
    %c0_10 = arith.constant 0 : index
    %5 = vector.load %arg8[%c0_8, %c17_9, %c0_10] : memref<18x18x64xbf16, #tpu.memory_space<vmem>>, vector<18x1x64xbf16>
    tpu.vector_store %arg8[%c0_8, %c17_9, %c0_10], %1 {strides = array<i32>} : memref<18x18x64xbf16, #tpu.memory_space<vmem>>, vector<18x1x64xbf16>,
    %cst_11 = arith.constant 0.000000e+00 : bf16
    %6 = vector.broadcast %cst_11 : bf16 to vector<1x18x64xbf16>
    %cst_12 = arith.constant 0.000000e+00 : bf16
    %7 = vector.broadcast %cst_12 : bf16 to vector<18x1x64xbf16>
    %c0_13 = arith.constant 0 : index
    %c0_14 = arith.constant 0 : index
    %c0_15 = arith.constant 0 : index
    %8 = vector.load %arg9[%c0_13, %c0_14, %c0_15] : memref<18x18x64xbf16, #tpu.memory_space<vmem>>, vector<1x18x64xbf16>
    tpu.vector_store %arg9[%c0_13, %c0_14, %c0_15], %6 {strides = array<i32>} : memref<18x18x64xbf16, #tpu.memory_space<vmem>>, vector<1x18x64xbf16>,
    %c17_16 = arith.constant 17 : index
    %c0_17 = arith.constant 0 : index
    %c0_18 = arith.constant 0 : index
    %9 = vector.load %arg9[%c17_16, %c0_17, %c0_18] : memref<18x18x64xbf16, #tpu.memory_space<vmem>>, vector<1x18x64xbf16>
    tpu.vector_store %arg9[%c17_16, %c0_17, %c0_18], %6 {strides = array<i32>} : memref<18x18x64xbf16, #tpu.memory_space<vmem>>, vector<1x18x64xbf16>,
    %c0_19 = arith.constant 0 : index
    %c0_20 = arith.constant 0 : index
    %c0_21 = arith.constant 0 : index
    %10 = vector.load %arg9[%c0_19, %c0_20, %c0_21] : memref<18x18x64xbf16, #tpu.memory_space<vmem>>, vector<18x1x64xbf16>
    tpu.vector_store %arg9[%c0_19, %c0_20, %c0_21], %7 {strides = array<i32>} : memref<18x18x64xbf16, #tpu.memory_space<vmem>>, vector<18x1x64xbf16>,
    %c0_22 = arith.constant 0 : index
    %c17_23 = arith.constant 17 : index
    %c0_24 = arith.constant 0 : index
    %11 = vector.load %arg9[%c0_22, %c17_23, %c0_24] : memref<18x18x64xbf16, #tpu.memory_space<vmem>>, vector<18x1x64xbf16>
    tpu.vector_store %arg9[%c0_22, %c17_23, %c0_24], %7 {strides = array<i32>} : memref<18x18x64xbf16, #tpu.memory_space<vmem>>, vector<18x1x64xbf16>,
    %c0_25 = arith.constant 0 : index
    %c0_26 = arith.constant 0 : index
    %c0_27 = arith.constant 0 : index
    %c0_28 = arith.constant 0 : index
    %12 = vector.load %arg1[%c0_25, %c0_26, %c0_27, %c0_28] : memref<1x16x16x64xf32, #tpu.memory_space<vmem>>, vector<1x16x16x64xf32>
    %13 = vector.shape_cast %12 : vector<1x16x16x64xf32> to vector<16x16x64xf32>
    %14 = vector.shape_cast %13 : vector<16x16x64xf32> to vector<256x64xf32>
    %c0_29 = arith.constant 0 : index
    %c0_30 = arith.constant 0 : index
    %15 = vector.load %arg7[%c0_29, %c0_30] : memref<256x64xf32, #tpu.memory_space<vmem>>, vector<256x64xf32>
    tpu.vector_store %arg7[%c0_29, %c0_30], %14 {strides = array<i32>} : memref<256x64xf32, #tpu.memory_space<vmem>>, vector<256x64xf32>,
    %c0_31 = arith.constant 0 : index
    %c0_32 = arith.constant 0 : index
    %c0_33 = arith.constant 0 : index
    %c0_34 = arith.constant 0 : index
    %16 = vector.load %arg1[%c0_31, %c0_32, %c0_33, %c0_34] : memref<1x16x16x64xf32, #tpu.memory_space<vmem>>, vector<1x16x16x64xf32>
    %17 = vector.shape_cast %16 : vector<1x16x16x64xf32> to vector<16x16x64xf32>
    %18 = arith.truncf %17 : vector<16x16x64xf32> to vector<16x16x64xbf16>
    %c1 = arith.constant 1 : index
    %c1_35 = arith.constant 1 : index
    %c0_36 = arith.constant 0 : index
    %19 = vector.load %arg8[%c1, %c1_35, %c0_36] : memref<18x18x64xbf16, #tpu.memory_space<vmem>>, vector<16x16x64xbf16>
    tpu.vector_store %arg8[%c1, %c1_35, %c0_36], %18 {strides = array<i32>} : memref<18x18x64xbf16, #tpu.memory_space<vmem>>, vector<16x16x64xbf16>,
    %c0_i32 = arith.constant 0 : i32
    %c2_i32 = arith.constant 2 : i32
    %20 = arith.addi %c0_i32, %c2_i32 : i32
    %c1_i32 = arith.constant 1 : i32
    scf.for %arg10 = %c0_i32 to %20 step %c1_i32  : i32 {
      %26 = arith.index_cast %arg10 : i32 to index
      %c0_44 = arith.constant 0 : index
      %c0_45 = arith.constant 0 : index
      %27 = vector.load %arg3[%26, %c0_44, %c0_45] : memref<2x1x64xf32, #tpu.memory_space<vmem>>, vector<1x1x64xf32>
      %28 = vector.shape_cast %27 : vector<1x1x64xf32> to vector<1x64xf32>
      %29 = vector.shape_cast %28 : vector<1x64xf32> to vector<1x64xf32>
      %30 = vector.broadcast %29 : vector<1x64xf32> to vector<256x64xf32>
      %c0_46 = arith.constant 0 : index
      %c0_47 = arith.constant 0 : index
      %c0_48 = arith.constant 0 : index
      %31 = vector.load %arg8[%c0_46, %c0_47, %c0_48] : memref<18x18x64xbf16, #tpu.memory_space<vmem>>, vector<16x16x64xbf16>
      %32 = vector.shape_cast %31 : vector<16x16x64xbf16> to vector<256x64xbf16>
      %33 = arith.index_cast %arg10 : i32 to index
      %c0_49 = arith.constant 0 : index
      %c0_50 = arith.constant 0 : index
      %c0_51 = arith.constant 0 : index
      %34 = vector.load %arg2[%33, %c0_49, %c0_50, %c0_51] : memref<2x9x64x64xbf16, #tpu.memory_space<vmem>>, vector<1x1x64x64xbf16>
      %35 = vector.shape_cast %34 : vector<1x1x64x64xbf16> to vector<64x64xbf16>
      %cst_52 = arith.constant dense<0.000000e+00> : vector<256x64xf32>
      %36 = tpu.matmul %32, %35, %cst_52 {dimension_numbers = #tpu.dot_dimension_numbers<[1], [0], [0], [1], [0, 0, 1, 1], [], []>} : vector<256x64xbf16>, vector<64x64xbf16>, vector<256x64xf32> -> vector<256x64xf32>
      %37 = arith.addf %30, %36 : vector<256x64xf32>
      %c0_53 = arith.constant 0 : index
      %c1_54 = arith.constant 1 : index
      %c0_55 = arith.constant 0 : index
      %38 = vector.load %arg8[%c0_53, %c1_54, %c0_55] : memref<18x18x64xbf16, #tpu.memory_space<vmem>>, vector<16x16x64xbf16>
      %39 = vector.shape_cast %38 : vector<16x16x64xbf16> to vector<256x64xbf16>
      %40 = arith.index_cast %arg10 : i32 to index
      %c1_56 = arith.constant 1 : index
      %c0_57 = arith.constant 0 : index
      %c0_58 = arith.constant 0 : index
      %41 = vector.load %arg2[%40, %c1_56, %c0_57, %c0_58] : memref<2x9x64x64xbf16, #tpu.memory_space<vmem>>, vector<1x1x64x64xbf16>
      %42 = vector.shape_cast %41 : vector<1x1x64x64xbf16> to vector<64x64xbf16>
      %cst_59 = arith.constant dense<0.000000e+00> : vector<256x64xf32>
      %43 = tpu.matmul %39, %42, %cst_59 {dimension_numbers = #tpu.dot_dimension_numbers<[1], [0], [0], [1], [0, 0, 1, 1], [], []>} : vector<256x64xbf16>, vector<64x64xbf16>, vector<256x64xf32> -> vector<256x64xf32>
      %44 = arith.addf %37, %43 : vector<256x64xf32>
      %c0_60 = arith.constant 0 : index
      %c2 = arith.constant 2 : index
      %c0_61 = arith.constant 0 : index
      %45 = vector.load %arg8[%c0_60, %c2, %c0_61] : memref<18x18x64xbf16, #tpu.memory_space<vmem>>, vector<16x16x64xbf16>
      %46 = vector.shape_cast %45 : vector<16x16x64xbf16> to vector<256x64xbf16>
      %47 = arith.index_cast %arg10 : i32 to index
      %c2_62 = arith.constant 2 : index
      %c0_63 = arith.constant 0 : index
      %c0_64 = arith.constant 0 : index
      %48 = vector.load %arg2[%47, %c2_62, %c0_63, %c0_64] : memref<2x9x64x64xbf16, #tpu.memory_space<vmem>>, vector<1x1x64x64xbf16>
      %49 = vector.shape_cast %48 : vector<1x1x64x64xbf16> to vector<64x64xbf16>
      %cst_65 = arith.constant dense<0.000000e+00> : vector<256x64xf32>
      %50 = tpu.matmul %46, %49, %cst_65 {dimension_numbers = #tpu.dot_dimension_numbers<[1], [0], [0], [1], [0, 0, 1, 1], [], []>} : vector<256x64xbf16>, vector<64x64xbf16>, vector<256x64xf32> -> vector<256x64xf32>
      %51 = arith.addf %44, %50 : vector<256x64xf32>
      %c1_66 = arith.constant 1 : index
      %c0_67 = arith.constant 0 : index
      %c0_68 = arith.constant 0 : index
      %52 = vector.load %arg8[%c1_66, %c0_67, %c0_68] : memref<18x18x64xbf16, #tpu.memory_space<vmem>>, vector<16x16x64xbf16>
      %53 = vector.shape_cast %52 : vector<16x16x64xbf16> to vector<256x64xbf16>
      %54 = arith.index_cast %arg10 : i32 to index
      %c3 = arith.constant 3 : index
      %c0_69 = arith.constant 0 : index
      %c0_70 = arith.constant 0 : index
      %55 = vector.load %arg2[%54, %c3, %c0_69, %c0_70] : memref<2x9x64x64xbf16, #tpu.memory_space<vmem>>, vector<1x1x64x64xbf16>
      %56 = vector.shape_cast %55 : vector<1x1x64x64xbf16> to vector<64x64xbf16>
      %cst_71 = arith.constant dense<0.000000e+00> : vector<256x64xf32>
      %57 = tpu.matmul %53, %56, %cst_71 {dimension_numbers = #tpu.dot_dimension_numbers<[1], [0], [0], [1], [0, 0, 1, 1], [], []>} : vector<256x64xbf16>, vector<64x64xbf16>, vector<256x64xf32> -> vector<256x64xf32>
      %58 = arith.addf %51, %57 : vector<256x64xf32>
      %c1_72 = arith.constant 1 : index
      %c1_73 = arith.constant 1 : index
      %c0_74 = arith.constant 0 : index
      %59 = vector.load %arg8[%c1_72, %c1_73, %c0_74] : memref<18x18x64xbf16, #tpu.memory_space<vmem>>, vector<16x16x64xbf16>
      %60 = vector.shape_cast %59 : vector<16x16x64xbf16> to vector<256x64xbf16>
      %61 = arith.index_cast %arg10 : i32 to index
      %c4 = arith.constant 4 : index
      %c0_75 = arith.constant 0 : index
      %c0_76 = arith.constant 0 : index
      %62 = vector.load %arg2[%61, %c4, %c0_75, %c0_76] : memref<2x9x64x64xbf16, #tpu.memory_space<vmem>>, vector<1x1x64x64xbf16>
      %63 = vector.shape_cast %62 : vector<1x1x64x64xbf16> to vector<64x64xbf16>
      %cst_77 = arith.constant dense<0.000000e+00> : vector<256x64xf32>
      %64 = tpu.matmul %60, %63, %cst_77 {dimension_numbers = #tpu.dot_dimension_numbers<[1], [0], [0], [1], [0, 0, 1, 1], [], []>} : vector<256x64xbf16>, vector<64x64xbf16>, vector<256x64xf32> -> vector<256x64xf32>
      %65 = arith.addf %58, %64 : vector<256x64xf32>
      %c1_78 = arith.constant 1 : index
      %c2_79 = arith.constant 2 : index
      %c0_80 = arith.constant 0 : index
      %66 = vector.load %arg8[%c1_78, %c2_79, %c0_80] : memref<18x18x64xbf16, #tpu.memory_space<vmem>>, vector<16x16x64xbf16>
      %67 = vector.shape_cast %66 : vector<16x16x64xbf16> to vector<256x64xbf16>
      %68 = arith.index_cast %arg10 : i32 to index
      %c5 = arith.constant 5 : index
      %c0_81 = arith.constant 0 : index
      %c0_82 = arith.constant 0 : index
      %69 = vector.load %arg2[%68, %c5, %c0_81, %c0_82] : memref<2x9x64x64xbf16, #tpu.memory_space<vmem>>, vector<1x1x64x64xbf16>
      %70 = vector.shape_cast %69 : vector<1x1x64x64xbf16> to vector<64x64xbf16>
      %cst_83 = arith.constant dense<0.000000e+00> : vector<256x64xf32>
      %71 = tpu.matmul %67, %70, %cst_83 {dimension_numbers = #tpu.dot_dimension_numbers<[1], [0], [0], [1], [0, 0, 1, 1], [], []>} : vector<256x64xbf16>, vector<64x64xbf16>, vector<256x64xf32> -> vector<256x64xf32>
      %72 = arith.addf %65, %71 : vector<256x64xf32>
      %c2_84 = arith.constant 2 : index
      %c0_85 = arith.constant 0 : index
      %c0_86 = arith.constant 0 : index
      %73 = vector.load %arg8[%c2_84, %c0_85, %c0_86] : memref<18x18x64xbf16, #tpu.memory_space<vmem>>, vector<16x16x64xbf16>
      %74 = vector.shape_cast %73 : vector<16x16x64xbf16> to vector<256x64xbf16>
      %75 = arith.index_cast %arg10 : i32 to index
      %c6 = arith.constant 6 : index
      %c0_87 = arith.constant 0 : index
      %c0_88 = arith.constant 0 : index
      %76 = vector.load %arg2[%75, %c6, %c0_87, %c0_88] : memref<2x9x64x64xbf16, #tpu.memory_space<vmem>>, vector<1x1x64x64xbf16>
      %77 = vector.shape_cast %76 : vector<1x1x64x64xbf16> to vector<64x64xbf16>
      %cst_89 = arith.constant dense<0.000000e+00> : vector<256x64xf32>
      %78 = tpu.matmul %74, %77, %cst_89 {dimension_numbers = #tpu.dot_dimension_numbers<[1], [0], [0], [1], [0, 0, 1, 1], [], []>} : vector<256x64xbf16>, vector<64x64xbf16>, vector<256x64xf32> -> vector<256x64xf32>
      %79 = arith.addf %72, %78 : vector<256x64xf32>
      %c2_90 = arith.constant 2 : index
      %c1_91 = arith.constant 1 : index
      %c0_92 = arith.constant 0 : index
      %80 = vector.load %arg8[%c2_90, %c1_91, %c0_92] : memref<18x18x64xbf16, #tpu.memory_space<vmem>>, vector<16x16x64xbf16>
      %81 = vector.shape_cast %80 : vector<16x16x64xbf16> to vector<256x64xbf16>
      %82 = arith.index_cast %arg10 : i32 to index
      %c7 = arith.constant 7 : index
      %c0_93 = arith.constant 0 : index
      %c0_94 = arith.constant 0 : index
      %83 = vector.load %arg2[%82, %c7, %c0_93, %c0_94] : memref<2x9x64x64xbf16, #tpu.memory_space<vmem>>, vector<1x1x64x64xbf16>
      %84 = vector.shape_cast %83 : vector<1x1x64x64xbf16> to vector<64x64xbf16>
      %cst_95 = arith.constant dense<0.000000e+00> : vector<256x64xf32>
      %85 = tpu.matmul %81, %84, %cst_95 {dimension_numbers = #tpu.dot_dimension_numbers<[1], [0], [0], [1], [0, 0, 1, 1], [], []>} : vector<256x64xbf16>, vector<64x64xbf16>, vector<256x64xf32> -> vector<256x64xf32>
      %86 = arith.addf %79, %85 : vector<256x64xf32>
      %c2_96 = arith.constant 2 : index
      %c2_97 = arith.constant 2 : index
      %c0_98 = arith.constant 0 : index
      %87 = vector.load %arg8[%c2_96, %c2_97, %c0_98] : memref<18x18x64xbf16, #tpu.memory_space<vmem>>, vector<16x16x64xbf16>
      %88 = vector.shape_cast %87 : vector<16x16x64xbf16> to vector<256x64xbf16>
      %89 = arith.index_cast %arg10 : i32 to index
      %c8 = arith.constant 8 : index
      %c0_99 = arith.constant 0 : index
      %c0_100 = arith.constant 0 : index
      %90 = vector.load %arg2[%89, %c8, %c0_99, %c0_100] : memref<2x9x64x64xbf16, #tpu.memory_space<vmem>>, vector<1x1x64x64xbf16>
      %91 = vector.shape_cast %90 : vector<1x1x64x64xbf16> to vector<64x64xbf16>
      %cst_101 = arith.constant dense<0.000000e+00> : vector<256x64xf32>
      %92 = tpu.matmul %88, %91, %cst_101 {dimension_numbers = #tpu.dot_dimension_numbers<[1], [0], [0], [1], [0, 0, 1, 1], [], []>} : vector<256x64xbf16>, vector<64x64xbf16>, vector<256x64xf32> -> vector<256x64xf32>
      %93 = arith.addf %86, %92 : vector<256x64xf32>
      %cst_102 = arith.constant 0.000000e+00 : f32
      %94 = vector.broadcast %cst_102 : f32 to vector<256x64xf32>
      %95 = arith.maximumf %93, %94 : vector<256x64xf32>
      %96 = vector.shape_cast %95 : vector<256x64xf32> to vector<16x16x64xf32>
      %97 = arith.truncf %96 : vector<16x16x64xf32> to vector<16x16x64xbf16>
      %c1_103 = arith.constant 1 : index
      %c1_104 = arith.constant 1 : index
      %c0_105 = arith.constant 0 : index
      %98 = vector.load %arg9[%c1_103, %c1_104, %c0_105] : memref<18x18x64xbf16, #tpu.memory_space<vmem>>, vector<16x16x64xbf16>
      tpu.vector_store %arg9[%c1_103, %c1_104, %c0_105], %97 {strides = array<i32>} : memref<18x18x64xbf16, #tpu.memory_space<vmem>>, vector<16x16x64xbf16>,
      %99 = arith.index_cast %arg10 : i32 to index
      %c0_106 = arith.constant 0 : index
      %c0_107 = arith.constant 0 : index
      %100 = vector.load %arg5[%99, %c0_106, %c0_107] : memref<2x1x64xf32, #tpu.memory_space<vmem>>, vector<1x1x64xf32>
      %101 = vector.shape_cast %100 : vector<1x1x64xf32> to vector<1x64xf32>
      %102 = vector.shape_cast %101 : vector<1x64xf32> to vector<1x64xf32>
      %103 = vector.broadcast %102 : vector<1x64xf32> to vector<256x64xf32>
      %c0_108 = arith.constant 0 : index
      %c0_109 = arith.constant 0 : index
      %c0_110 = arith.constant 0 : index
      %104 = vector.load %arg9[%c0_108, %c0_109, %c0_110] : memref<18x18x64xbf16, #tpu.memory_space<vmem>>, vector<16x16x64xbf16>
      %105 = vector.shape_cast %104 : vector<16x16x64xbf16> to vector<256x64xbf16>
      %106 = arith.index_cast %arg10 : i32 to index
      %c0_111 = arith.constant 0 : index
      %c0_112 = arith.constant 0 : index
      %c0_113 = arith.constant 0 : index
      %107 = vector.load %arg4[%106, %c0_111, %c0_112, %c0_113] : memref<2x9x64x64xbf16, #tpu.memory_space<vmem>>, vector<1x1x64x64xbf16>
      %108 = vector.shape_cast %107 : vector<1x1x64x64xbf16> to vector<64x64xbf16>
      %cst_114 = arith.constant dense<0.000000e+00> : vector<256x64xf32>
      %109 = tpu.matmul %105, %108, %cst_114 {dimension_numbers = #tpu.dot_dimension_numbers<[1], [0], [0], [1], [0, 0, 1, 1], [], []>} : vector<256x64xbf16>, vector<64x64xbf16>, vector<256x64xf32> -> vector<256x64xf32>
      %110 = arith.addf %103, %109 : vector<256x64xf32>
      %c0_115 = arith.constant 0 : index
      %c1_116 = arith.constant 1 : index
      %c0_117 = arith.constant 0 : index
      %111 = vector.load %arg9[%c0_115, %c1_116, %c0_117] : memref<18x18x64xbf16, #tpu.memory_space<vmem>>, vector<16x16x64xbf16>
      %112 = vector.shape_cast %111 : vector<16x16x64xbf16> to vector<256x64xbf16>
      %113 = arith.index_cast %arg10 : i32 to index
      %c1_118 = arith.constant 1 : index
      %c0_119 = arith.constant 0 : index
      %c0_120 = arith.constant 0 : index
      %114 = vector.load %arg4[%113, %c1_118, %c0_119, %c0_120] : memref<2x9x64x64xbf16, #tpu.memory_space<vmem>>, vector<1x1x64x64xbf16>
      %115 = vector.shape_cast %114 : vector<1x1x64x64xbf16> to vector<64x64xbf16>
      %cst_121 = arith.constant dense<0.000000e+00> : vector<256x64xf32>
      %116 = tpu.matmul %112, %115, %cst_121 {dimension_numbers = #tpu.dot_dimension_numbers<[1], [0], [0], [1], [0, 0, 1, 1], [], []>} : vector<256x64xbf16>, vector<64x64xbf16>, vector<256x64xf32> -> vector<256x64xf32>
      %117 = arith.addf %110, %116 : vector<256x64xf32>
      %c0_122 = arith.constant 0 : index
      %c2_123 = arith.constant 2 : index
      %c0_124 = arith.constant 0 : index
      %118 = vector.load %arg9[%c0_122, %c2_123, %c0_124] : memref<18x18x64xbf16, #tpu.memory_space<vmem>>, vector<16x16x64xbf16>
      %119 = vector.shape_cast %118 : vector<16x16x64xbf16> to vector<256x64xbf16>
      %120 = arith.index_cast %arg10 : i32 to index
      %c2_125 = arith.constant 2 : index
      %c0_126 = arith.constant 0 : index
      %c0_127 = arith.constant 0 : index
      %121 = vector.load %arg4[%120, %c2_125, %c0_126, %c0_127] : memref<2x9x64x64xbf16, #tpu.memory_space<vmem>>, vector<1x1x64x64xbf16>
      %122 = vector.shape_cast %121 : vector<1x1x64x64xbf16> to vector<64x64xbf16>
      %cst_128 = arith.constant dense<0.000000e+00> : vector<256x64xf32>
      %123 = tpu.matmul %119, %122, %cst_128 {dimension_numbers = #tpu.dot_dimension_numbers<[1], [0], [0], [1], [0, 0, 1, 1], [], []>} : vector<256x64xbf16>, vector<64x64xbf16>, vector<256x64xf32> -> vector<256x64xf32>
      %124 = arith.addf %117, %123 : vector<256x64xf32>
      %c1_129 = arith.constant 1 : index
      %c0_130 = arith.constant 0 : index
      %c0_131 = arith.constant 0 : index
      %125 = vector.load %arg9[%c1_129, %c0_130, %c0_131] : memref<18x18x64xbf16, #tpu.memory_space<vmem>>, vector<16x16x64xbf16>
      %126 = vector.shape_cast %125 : vector<16x16x64xbf16> to vector<256x64xbf16>
      %127 = arith.index_cast %arg10 : i32 to index
      %c3_132 = arith.constant 3 : index
      %c0_133 = arith.constant 0 : index
      %c0_134 = arith.constant 0 : index
      %128 = vector.load %arg4[%127, %c3_132, %c0_133, %c0_134] : memref<2x9x64x64xbf16, #tpu.memory_space<vmem>>, vector<1x1x64x64xbf16>
      %129 = vector.shape_cast %128 : vector<1x1x64x64xbf16> to vector<64x64xbf16>
      %cst_135 = arith.constant dense<0.000000e+00> : vector<256x64xf32>
      %130 = tpu.matmul %126, %129, %cst_135 {dimension_numbers = #tpu.dot_dimension_numbers<[1], [0], [0], [1], [0, 0, 1, 1], [], []>} : vector<256x64xbf16>, vector<64x64xbf16>, vector<256x64xf32> -> vector<256x64xf32>
      %131 = arith.addf %124, %130 : vector<256x64xf32>
      %c1_136 = arith.constant 1 : index
      %c1_137 = arith.constant 1 : index
      %c0_138 = arith.constant 0 : index
      %132 = vector.load %arg9[%c1_136, %c1_137, %c0_138] : memref<18x18x64xbf16, #tpu.memory_space<vmem>>, vector<16x16x64xbf16>
      %133 = vector.shape_cast %132 : vector<16x16x64xbf16> to vector<256x64xbf16>
      %134 = arith.index_cast %arg10 : i32 to index
      %c4_139 = arith.constant 4 : index
      %c0_140 = arith.constant 0 : index
      %c0_141 = arith.constant 0 : index
      %135 = vector.load %arg4[%134, %c4_139, %c0_140, %c0_141] : memref<2x9x64x64xbf16, #tpu.memory_space<vmem>>, vector<1x1x64x64xbf16>
      %136 = vector.shape_cast %135 : vector<1x1x64x64xbf16> to vector<64x64xbf16>
      %cst_142 = arith.constant dense<0.000000e+00> : vector<256x64xf32>
      %137 = tpu.matmul %133, %136, %cst_142 {dimension_numbers = #tpu.dot_dimension_numbers<[1], [0], [0], [1], [0, 0, 1, 1], [], []>} : vector<256x64xbf16>, vector<64x64xbf16>, vector<256x64xf32> -> vector<256x64xf32>
      %138 = arith.addf %131, %137 : vector<256x64xf32>
      %c1_143 = arith.constant 1 : index
      %c2_144 = arith.constant 2 : index
      %c0_145 = arith.constant 0 : index
      %139 = vector.load %arg9[%c1_143, %c2_144, %c0_145] : memref<18x18x64xbf16, #tpu.memory_space<vmem>>, vector<16x16x64xbf16>
      %140 = vector.shape_cast %139 : vector<16x16x64xbf16> to vector<256x64xbf16>
      %141 = arith.index_cast %arg10 : i32 to index
      %c5_146 = arith.constant 5 : index
      %c0_147 = arith.constant 0 : index
      %c0_148 = arith.constant 0 : index
      %142 = vector.load %arg4[%141, %c5_146, %c0_147, %c0_148] : memref<2x9x64x64xbf16, #tpu.memory_space<vmem>>, vector<1x1x64x64xbf16>
      %143 = vector.shape_cast %142 : vector<1x1x64x64xbf16> to vector<64x64xbf16>
      %cst_149 = arith.constant dense<0.000000e+00> : vector<256x64xf32>
      %144 = tpu.matmul %140, %143, %cst_149 {dimension_numbers = #tpu.dot_dimension_numbers<[1], [0], [0], [1], [0, 0, 1, 1], [], []>} : vector<256x64xbf16>, vector<64x64xbf16>, vector<256x64xf32> -> vector<256x64xf32>
      %145 = arith.addf %138, %144 : vector<256x64xf32>
      %c2_150 = arith.constant 2 : index
      %c0_151 = arith.constant 0 : index
      %c0_152 = arith.constant 0 : index
      %146 = vector.load %arg9[%c2_150, %c0_151, %c0_152] : memref<18x18x64xbf16, #tpu.memory_space<vmem>>, vector<16x16x64xbf16>
      %147 = vector.shape_cast %146 : vector<16x16x64xbf16> to vector<256x64xbf16>
      %148 = arith.index_cast %arg10 : i32 to index
      %c6_153 = arith.constant 6 : index
      %c0_154 = arith.constant 0 : index
      %c0_155 = arith.constant 0 : index
      %149 = vector.load %arg4[%148, %c6_153, %c0_154, %c0_155] : memref<2x9x64x64xbf16, #tpu.memory_space<vmem>>, vector<1x1x64x64xbf16>
      %150 = vector.shape_cast %149 : vector<1x1x64x64xbf16> to vector<64x64xbf16>
      %cst_156 = arith.constant dense<0.000000e+00> : vector<256x64xf32>
      %151 = tpu.matmul %147, %150, %cst_156 {dimension_numbers = #tpu.dot_dimension_numbers<[1], [0], [0], [1], [0, 0, 1, 1], [], []>} : vector<256x64xbf16>, vector<64x64xbf16>, vector<256x64xf32> -> vector<256x64xf32>
      %152 = arith.addf %145, %151 : vector<256x64xf32>
      %c2_157 = arith.constant 2 : index
      %c1_158 = arith.constant 1 : index
      %c0_159 = arith.constant 0 : index
      %153 = vector.load %arg9[%c2_157, %c1_158, %c0_159] : memref<18x18x64xbf16, #tpu.memory_space<vmem>>, vector<16x16x64xbf16>
      %154 = vector.shape_cast %153 : vector<16x16x64xbf16> to vector<256x64xbf16>
      %155 = arith.index_cast %arg10 : i32 to index
      %c7_160 = arith.constant 7 : index
      %c0_161 = arith.constant 0 : index
      %c0_162 = arith.constant 0 : index
      %156 = vector.load %arg4[%155, %c7_160, %c0_161, %c0_162] : memref<2x9x64x64xbf16, #tpu.memory_space<vmem>>, vector<1x1x64x64xbf16>
      %157 = vector.shape_cast %156 : vector<1x1x64x64xbf16> to vector<64x64xbf16>
      %cst_163 = arith.constant dense<0.000000e+00> : vector<256x64xf32>
      %158 = tpu.matmul %154, %157, %cst_163 {dimension_numbers = #tpu.dot_dimension_numbers<[1], [0], [0], [1], [0, 0, 1, 1], [], []>} : vector<256x64xbf16>, vector<64x64xbf16>, vector<256x64xf32> -> vector<256x64xf32>
      %159 = arith.addf %152, %158 : vector<256x64xf32>
      %c2_164 = arith.constant 2 : index
      %c2_165 = arith.constant 2 : index
      %c0_166 = arith.constant 0 : index
      %160 = vector.load %arg9[%c2_164, %c2_165, %c0_166] : memref<18x18x64xbf16, #tpu.memory_space<vmem>>, vector<16x16x64xbf16>
      %161 = vector.shape_cast %160 : vector<16x16x64xbf16> to vector<256x64xbf16>
      %162 = arith.index_cast %arg10 : i32 to index
      %c8_167 = arith.constant 8 : index
      %c0_168 = arith.constant 0 : index
      %c0_169 = arith.constant 0 : index
      %163 = vector.load %arg4[%162, %c8_167, %c0_168, %c0_169] : memref<2x9x64x64xbf16, #tpu.memory_space<vmem>>, vector<1x1x64x64xbf16>
      %164 = vector.shape_cast %163 : vector<1x1x64x64xbf16> to vector<64x64xbf16>
      %cst_170 = arith.constant dense<0.000000e+00> : vector<256x64xf32>
      %165 = tpu.matmul %161, %164, %cst_170 {dimension_numbers = #tpu.dot_dimension_numbers<[1], [0], [0], [1], [0, 0, 1, 1], [], []>} : vector<256x64xbf16>, vector<64x64xbf16>, vector<256x64xf32> -> vector<256x64xf32>
      %166 = arith.addf %159, %165 : vector<256x64xf32>
      %c0_171 = arith.constant 0 : index
      %c0_172 = arith.constant 0 : index
      %167 = vector.load %arg7[%c0_171, %c0_172] : memref<256x64xf32, #tpu.memory_space<vmem>>, vector<256x64xf32>
      %168 = arith.addf %167, %166 : vector<256x64xf32>
      %c0_173 = arith.constant 0 : index
      %c0_174 = arith.constant 0 : index
      %169 = vector.load %arg7[%c0_173, %c0_174] : memref<256x64xf32, #tpu.memory_space<vmem>>, vector<256x64xf32>
      tpu.vector_store %arg7[%c0_173, %c0_174], %168 {strides = array<i32>} : memref<256x64xf32, #tpu.memory_space<vmem>>, vector<256x64xf32>,
      %170 = vector.shape_cast %168 : vector<256x64xf32> to vector<16x16x64xf32>
      %171 = arith.truncf %170 : vector<16x16x64xf32> to vector<16x16x64xbf16>
      %c1_175 = arith.constant 1 : index
      %c1_176 = arith.constant 1 : index
      %c0_177 = arith.constant 0 : index
      %172 = vector.load %arg8[%c1_175, %c1_176, %c0_177] : memref<18x18x64xbf16, #tpu.memory_space<vmem>>, vector<16x16x64xbf16>
      tpu.vector_store %arg8[%c1_175, %c1_176, %c0_177], %171 {strides = array<i32>} : memref<18x18x64xbf16, #tpu.memory_space<vmem>>, vector<16x16x64xbf16>,
    }
    %c2_i32_37 = arith.constant 2 : i32
    %c0_38 = arith.constant 0 : index
    %c0_39 = arith.constant 0 : index
    %21 = vector.load %arg7[%c0_38, %c0_39] : memref<256x64xf32, #tpu.memory_space<vmem>>, vector<256x64xf32>
    %22 = vector.shape_cast %21 : vector<256x64xf32> to vector<16x16x64xf32>
    %c0_40 = arith.constant 0 : index
    %c0_41 = arith.constant 0 : index
    %c0_42 = arith.constant 0 : index
    %c0_43 = arith.constant 0 : index
    %23 = vector.load %arg6[%c0_40, %c0_41, %c0_42, %c0_43] : memref<1x16x16x64xf32, #tpu.memory_space<vmem>>, vector<1x16x16x64xf32>
    %24 = vector.shape_cast %23 : vector<1x16x16x64xf32> to vector<16x16x64xf32>
    %25 = vector.shape_cast %22 : vector<16x16x64xf32> to vector<1x16x16x64xf32>
    tpu.vector_store %arg6[%c0_40, %c0_41, %c0_42, %c0_43], %25 {strides = array<i32>} : memref<1x16x16x64xf32, #tpu.memory_space<vmem>>, vector<1x16x16x64xf32>,
    return
  }
  func.func @transform_0(%arg0: i32) -> (i32, i32, i32, i32) {
    %c0_i32 = arith.constant 0 : i32
    %c0_i32_0 = arith.constant 0 : i32
    %c0_i32_1 = arith.constant 0 : i32
    %c0_i32_2 = arith.constant 0 : i32
    return %arg0, %c0_i32, %c0_i32_0, %c0_i32_1 : i32, i32, i32, i32
  }
  func.func @transform_1(%arg0: i32) -> (i32, i32, i32, i32) {
    %c0_i32 = arith.constant 0 : i32
    %c0_i32_0 = arith.constant 0 : i32
    %c0_i32_1 = arith.constant 0 : i32
    %c0_i32_2 = arith.constant 0 : i32
    %c0_i32_3 = arith.constant 0 : i32
    return %c0_i32, %c0_i32_0, %c0_i32_1, %c0_i32_2 : i32, i32, i32, i32
  }
  func.func @transform_2(%arg0: i32) -> (i32, i32, i32) {
    %c0_i32 = arith.constant 0 : i32
    %c0_i32_0 = arith.constant 0 : i32
    %c0_i32_1 = arith.constant 0 : i32
    %c0_i32_2 = arith.constant 0 : i32
    return %c0_i32, %c0_i32_0, %c0_i32_1 : i32, i32, i32
  }
  func.func @transform_3(%arg0: i32) -> (i32, i32, i32, i32) {
    %c0_i32 = arith.constant 0 : i32
    %c0_i32_0 = arith.constant 0 : i32
    %c0_i32_1 = arith.constant 0 : i32
    %c0_i32_2 = arith.constant 0 : i32
    %c0_i32_3 = arith.constant 0 : i32
    return %c0_i32, %c0_i32_0, %c0_i32_1, %c0_i32_2 : i32, i32, i32, i32
  }
  func.func @transform_4(%arg0: i32) -> (i32, i32, i32) {
    %c0_i32 = arith.constant 0 : i32
    %c0_i32_0 = arith.constant 0 : i32
    %c0_i32_1 = arith.constant 0 : i32
    %c0_i32_2 = arith.constant 0 : i32
    return %c0_i32, %c0_i32_0, %c0_i32_1 : i32, i32, i32
  }
  func.func @transform_5(%arg0: i32) -> (i32, i32, i32, i32) {
    %c0_i32 = arith.constant 0 : i32
    %c0_i32_0 = arith.constant 0 : i32
    %c0_i32_1 = arith.constant 0 : i32
    %c0_i32_2 = arith.constant 0 : i32
    return %arg0, %c0_i32, %c0_i32_0, %c0_i32_1 : i32, i32, i32, i32
  }
}

</mosaic_0001>

<bundles_post_ra>
// kernel: conv_residual_blocks_forward.1
= control target key start
LH: loop header
LB: loop body
LE: loop exit
PB: predicated region body
PF: predicated region fallthrough
CT: control target
= control target key end

     0   :  { %10 = vsyncpa [#allocation6], 0  ;;  %s19473_s0 = inlined_call_operand.vmem [shape: f32[2,16,16,64], index: 0, kind: input, shape index: {}]   ;;  %s19474_s1 = inlined_call_operand.vmem [shape: bf16[2,9,64,64], index: 1, kind: input, shape index: {}]   ;;  %s19475_s2 = inlined_call_operand.vmem [shape: f32[2,1,64], index: 2, kind: input, shape index: {}]   ;;  %s19476_s3 = inlined_call_operand.vmem [shape: bf16[2,9,64,64], index: 3, kind: input, shape index: {}]   ;;  %s19477_s4 = inlined_call_operand.vmem [shape: f32[2,1,64], index: 4, kind: input, shape index: {}]   ;;  %s19478_s5 = inlined_call_operand.hbm [shape: f32[2,16,16,64], index: 5, kind: output, shape index: {}]  }
   0x1   :  { %12 = vsyncpa [#allocation6 + $0x1], 0  ;;  %s15458_s18 = smov 0   ;;  %s15460_s19 = smov 0  }
   0x2   :  { %s15462_s20 = smov 0   ;;  %s15464_s21 = smov 0  }
   0x3 LB: > { %s15479_s22 = sadd.s32 4294967295, %s15418_s21   ;;  %s12376_s23 = sadd.s32 4294967294, %s15418_s21   ;;  %s15418_s21 = sphi %s15464_s21, %s19765_s21   ;;  %s15414_s20 = sphi %s15462_s20, %s19764_s20   ;;  %s15410_s19 = sphi %s15460_s19, %s19763_s19   ;;  %s15406_s18 = sphi %s15458_s18, %s19762_s18  }
   0x4   : > { %s15483_s24 = sadd.s32 1, %s15418_s21   ;;  %s135_s25 = sadd.s32 1, %s15414_s20 }
   0x5   : > { %s132_s26 = ssub.s32 %s15418_s21, %s15483_s24  ;;  %p145_p0 = scmp.ne.s32.totalorder %s15414_s20, %s15410_s19 }
   0x6   : > { %p133_p1 = scmp.eq.s32.totalorder %s132_s26, 0  ;;  %p146_p2 = scmp.eq.s32.totalorder %s15479_s22, 1 }
   0x7   : > { %p151_p3 = scmp.ne.s32.totalorder %s15410_s19, %s15406_s18  ;;  %p152_p4 = scmp.eq.s32.totalorder %s12376_s23, 1 }
   0x8   : > { %s15494_s27 = scalar_select %p133_p1, %s15414_s20, %s135_s25  }
   0x9   : > { %p15496_p5 = por %p146_p2, %p145_p0  ;;  %p15500_p6 = por %p152_p4, %p151_p3 }
   0xa   : > { %p12379_p7 = scmp.ge.s32.totalorder %s15418_s21, 1  ;;  %p190_p8 = scmp.lt.s32.totalorder %s15418_s21, 3 }
   0xc   : > { %p191_p9 = pnand %p12379_p7, %p190_p8 }
   0xe   : > { %194 = sbr.rel (%p191_p9) target bundleno = 1773 (0x6ed), region = 40 }
  0x15   : > { %s215_s30 = sand.u32 1, %s15410_s19   ;;  %vm224_vm0 = vcmask 519168   ;;  %vm227_vm1 = vcmask 516096   ;;  %vm234_vm2 = vsmask.f32 256  ;;  %v15424_v0 = vmov 0  }
  0x16   : > { %s15509_s6 = sshll.u32 %s215_s30, 8  ;;  %225 = vst.msk [vmem:[#allocation3] sm:$0xf] %vm224_vm0, %v15424_v0  ;;  %226 = vst.msk [vmem:[#allocation3 + $0x4] sm:$0xf] %vm224_vm0, %v15424_v0  ;;  %v19561_v1 = vmov 0 }
  0x17   : > { %230 = vst.msk [vmem:[#allocation3 + $0xcc] sm:$0xf] %vm224_vm0, %v15424_v0  ;;  %231 = vst.msk [vmem:[#allocation3 + $0xd0] sm:$0xf] %vm224_vm0, %v15424_v0  ;;  %vm290_vm4 = vsmask.f32 7938 }
  0x18   : > { %346 = vst.msk [vmem:[#allocation4] sm:$0xf] %vm224_vm0, %v15424_v0  ;;  %347 = vst.msk [vmem:[#allocation4 + $0x4] sm:$0xf] %vm224_vm0, %v15424_v0  ;;  %v239_v2 = vld [vmem:[#allocation3 + $0xc] sm:$0x1] }
  0x19   : > { %350 = vst.msk [vmem:[#allocation4 + $0xcc] sm:$0xf] %vm224_vm0, %v15424_v0  ;;  %351 = vst.msk [vmem:[#allocation4 + $0xd0] sm:$0xf] %vm224_vm0, %v15424_v0  ;;  %p218_p10 = scmp.lt.s32.totalorder %s15479_s22, 1  ;;  %vm493_vm7 = vcmask 523264  }
  0x1a   : > { %228 = vst.msk [vmem:[#allocation3 + $0x8] sm:$0x1] %vm227_vm1, %v15424_v0  ;;  %vm15522_vm3 = vmand %vm227_vm1, %vm234_vm2  ;;  %v242_v4 = vld [vmem:[#allocation3 + $0x18] sm:$0x1]  ;;  %v245_v5 = vld [vmem:[#allocation3 + $0x24] sm:$0x1] }
  0x1b   : > { %v19562_v1 = vsel %vm15522_vm3, 4294967295, %v19561_v1  ;;  %232 = vst.msk [vmem:[#allocation3 + $0xd4] sm:$0x1] %vm227_vm1, %v15424_v0  ;;  %348 = vst.msk [vmem:[#allocation4 + $0x8] sm:$0x1] %vm227_vm1, %v15424_v0  ;;  %v240_v3 = vsel %vm15522_vm3, 0, %v239_v2 }
  0x1c   : > { %19563 = vst [vmem:[#allocation8_spill] sm:$0xff] %v19562_v1  ;;  %352 = vst.msk [vmem:[#allocation4 + $0xd4] sm:$0x1] %vm227_vm1, %v15424_v0  ;;  %v243_v6 = vsel %vm15522_vm3, 0, %v242_v4  ;;  %v246_v7 = vsel %vm15522_vm3, 0, %v245_v5  ;;  %s219_s7 = scalar_select %p218_p10, %s15479_s22, 1 }
  0x1d   : > { %241 = vst [vmem:[#allocation3 + $0xc] sm:$0x1] %v240_v3  ;;  %v248_v8 = vld [vmem:[#allocation3 + $0x30] sm:$0x1]  ;;  %v251_v9 = vld [vmem:[#allocation3 + $0x3c] sm:$0x1]  ;;  %vm15550_vm5 = vmand %vm227_vm1, %vm290_vm4 }
  0x1e   : > { %244 = vst [vmem:[#allocation3 + $0x18] sm:$0x1] %v243_v6  ;;  %247 = vst [vmem:[#allocation3 + $0x24] sm:$0x1] %v246_v7  ;;  %v249_v10 = vsel %vm15522_vm3, 0, %v248_v8  ;;  %v252_v11 = vsel %vm15522_vm3, 0, %v251_v9 }
  0x1f   : > { %v254_v12 = vld [vmem:[#allocation3 + $0x48] sm:$0x1]  ;;  %v257_v13 = vld [vmem:[#allocation3 + $0x54] sm:$0x1]  ;;  %250 = vst [vmem:[#allocation3 + $0x30] sm:$0x1] %v249_v10  ;;  %vm15685_vm8 = vmand %vm224_vm0, %vm290_vm4 }
  0x20   : > { %253 = vst [vmem:[#allocation3 + $0x3c] sm:$0x1] %v252_v11  ;;  %v255_v14 = vsel %vm15522_vm3, 0, %v254_v12  ;;  %v258_v15 = vsel %vm15522_vm3, 0, %v257_v13  ;;  %v260_v16 = vld [vmem:[#allocation3 + $0x60] sm:$0x1] }
  0x21   : > { %v263_v17 = vld [vmem:[#allocation3 + $0x6c] sm:$0x1]  ;;  %256 = vst [vmem:[#allocation3 + $0x48] sm:$0x1] %v255_v14  ;;  %259 = vst [vmem:[#allocation3 + $0x54] sm:$0x1] %v258_v15 }
  0x22   : > { %v261_v18 = vsel %vm15522_vm3, 0, %v260_v16  ;;  %v264_v19 = vsel %vm15522_vm3, 0, %v263_v17  ;;  %v266_v20 = vld [vmem:[#allocation3 + $0x78] sm:$0x1]  ;;  %v269_v21 = vld [vmem:[#allocation3 + $0x84] sm:$0x1] }
  0x23   : > { %262 = vst [vmem:[#allocation3 + $0x60] sm:$0x1] %v261_v18  ;;  %265 = vst [vmem:[#allocation3 + $0x6c] sm:$0x1] %v264_v19  ;;  %v267_v23 = vsel %vm15522_vm3, 0, %v266_v20  ;;  %v270_v24 = vsel %vm15522_vm3, 0, %v269_v21 }
  0x24   : > { %v272_v25 = vld [vmem:[#allocation3 + $0x90] sm:$0x1]  ;;  %v275_v26 = vld [vmem:[#allocation3 + $0x9c] sm:$0x1]  ;;  %268 = vst [vmem:[#allocation3 + $0x78] sm:$0x1] %v267_v23 }
  0x25   : > { %271 = vst [vmem:[#allocation3 + $0x84] sm:$0x1] %v270_v24  ;;  %v273_v27 = vsel %vm15522_vm3, 0, %v272_v25  ;;  %v276_v28 = vsel %vm15522_vm3, 0, %v275_v26  ;;  %v278_v29 = vld [vmem:[#allocation3 + $0xa8] sm:$0x1] }
  0x26   : > { %v281_v30 = vld [vmem:[#allocation3 + $0xb4] sm:$0x1]  ;;  %274 = vst [vmem:[#allocation3 + $0x90] sm:$0x1] %v273_v27  ;;  %277 = vst [vmem:[#allocation3 + $0x9c] sm:$0x1] %v276_v28 }
  0x27   : > { %v279_v31 = vsel %vm15522_vm3, 0, %v278_v29  ;;  %v282_v32 = vsel %vm15522_vm3, 0, %v281_v30  ;;  %v284_v33 = vld [vmem:[#allocation3 + $0xc0] sm:$0x1]  ;;  %v295_v34 = vld [vmem:[#allocation3 + $0x14] sm:$0x1] }
  0x28   : > { %280 = vst [vmem:[#allocation3 + $0xa8] sm:$0x1] %v279_v31  ;;  %283 = vst [vmem:[#allocation3 + $0xb4] sm:$0x1] %v282_v32  ;;  %v285_v35 = vsel %vm15522_vm3, 0, %v284_v33  ;;  %v296_v36 = vsel %vm15550_vm5, 0, %v295_v34 }
  0x29   : > { %v298_v37 = vld [vmem:[#allocation3 + $0x20] sm:$0x1]  ;;  %v301_v38 = vld [vmem:[#allocation3 + $0x2c] sm:$0x1]  ;;  %286 = vst [vmem:[#allocation3 + $0xc0] sm:$0x1] %v285_v35 }
  0x2a   : > { %297 = vst [vmem:[#allocation3 + $0x14] sm:$0x1] %v296_v36  ;;  %v299_v39 = vsel %vm15550_vm5, 0, %v298_v37  ;;  %v302_v40 = vsel %vm15550_vm5, 0, %v301_v38  ;;  %v304_v41 = vld [vmem:[#allocation3 + $0x38] sm:$0x1] }
  0x2b   : > { %v307_v42 = vld [vmem:[#allocation3 + $0x44] sm:$0x1]  ;;  %300 = vst [vmem:[#allocation3 + $0x20] sm:$0x1] %v299_v39  ;;  %303 = vst [vmem:[#allocation3 + $0x2c] sm:$0x1] %v302_v40 }
  0x2c   : > { %v305_v43 = vsel %vm15550_vm5, 0, %v304_v41  ;;  %v308_v44 = vsel %vm15550_vm5, 0, %v307_v42  ;;  %v310_v45 = vld [vmem:[#allocation3 + $0x50] sm:$0x1]  ;;  %v313_v46 = vld [vmem:[#allocation3 + $0x5c] sm:$0x1] }
  0x2d   : > { %306 = vst [vmem:[#allocation3 + $0x38] sm:$0x1] %v305_v43  ;;  %309 = vst [vmem:[#allocation3 + $0x44] sm:$0x1] %v308_v44  ;;  %v311_v47 = vsel %vm15550_vm5, 0, %v310_v45  ;;  %v314_v48 = vsel %vm15550_vm5, 0, %v313_v46 }
  0x2e   : > { %v316_v49 = vld [vmem:[#allocation3 + $0x68] sm:$0x1]  ;;  %v319_v50 = vld [vmem:[#allocation3 + $0x74] sm:$0x1]  ;;  %312 = vst [vmem:[#allocation3 + $0x50] sm:$0x1] %v311_v47 }
  0x2f   : > { %315 = vst [vmem:[#allocation3 + $0x5c] sm:$0x1] %v314_v48  ;;  %v317_v51 = vsel %vm15550_vm5, 0, %v316_v49  ;;  %v320_v52 = vsel %vm15550_vm5, 0, %v319_v50  ;;  %v322_v53 = vld [vmem:[#allocation3 + $0x80] sm:$0x1] }
  0x30   : > { %v325_v54 = vld [vmem:[#allocation3 + $0x8c] sm:$0x1]  ;;  %318 = vst [vmem:[#allocation3 + $0x68] sm:$0x1] %v317_v51  ;;  %321 = vst [vmem:[#allocation3 + $0x74] sm:$0x1] %v320_v52 }
  0x31   : > { %v323_v55 = vsel %vm15550_vm5, 0, %v322_v53  ;;  %v326_v56 = vsel %vm15550_vm5, 0, %v325_v54  ;;  %v328_v57 = vld [vmem:[#allocation3 + $0x98] sm:$0x1]  ;;  %v331_v58 = vld [vmem:[#allocation3 + $0xa4] sm:$0x1] }
  0x32   : > { %324 = vst [vmem:[#allocation3 + $0x80] sm:$0x1] %v323_v55  ;;  %327 = vst [vmem:[#allocation3 + $0x8c] sm:$0x1] %v326_v56  ;;  %v329_v59 = vsel %vm15550_vm5, 0, %v328_v57  ;;  %v332_v60 = vsel %vm15550_vm5, 0, %v331_v58 }
  0x33   : > { %v334_v61 = vld [vmem:[#allocation3 + $0xb0] sm:$0x1]  ;;  %v337_v62 = vld [vmem:[#allocation3 + $0xbc] sm:$0x1]  ;;  %330 = vst [vmem:[#allocation3 + $0x98] sm:$0x1] %v329_v59 }
  0x34   : > { %333 = vst [vmem:[#allocation3 + $0xa4] sm:$0x1] %v332_v60  ;;  %v335_v63 = vsel %vm15550_vm5, 0, %v334_v61  ;;  %v338_v0 = vsel %vm15550_vm5, 0, %v337_v62  ;;  %v340_v2 = vld [vmem:[#allocation3 + $0xc8] sm:$0x1] }
  0x35   : > { %v236_v3 = vld [vmem:[#allocation3] sm:$0x1]  ;;  %336 = vst [vmem:[#allocation3 + $0xb0] sm:$0x1] %v335_v63  ;;  %339 = vst [vmem:[#allocation3 + $0xbc] sm:$0x1] %v338_v0 }
  0x36   : > { %v341_v4 = vsel %vm15550_vm5, 0, %v340_v2  ;;  %v237_v5 = vsel %vm15522_vm3, 0, %v236_v3  ;;  %v287_v6 = vld [vmem:[#allocation3 + $0xcc] sm:$0x1]  ;;  %v292_v7 = vld [vmem:[#allocation3 + $0x8] sm:$0x1] }
  0x37   : > { %342 = vst [vmem:[#allocation3 + $0xc8] sm:$0x1] %v341_v4  ;;  %238 = vst [vmem:[#allocation3] sm:$0x1] %v237_v5  ;;  %v288_v8 = vsel %vm15522_vm3, 0, %v287_v6  ;;  %v293_v9 = vsel %vm15550_vm5, 0, %v292_v7 }
  0x38   : > { %v343_v10 = vld [vmem:[#allocation3 + $0xd4] sm:$0x1]  ;;  %v353_v11 = vld [vmem:[#allocation4] sm:$0x1]  ;;  %289 = vst [vmem:[#allocation3 + $0xcc] sm:$0x1] %v288_v8 }
  0x39   : > { %294 = vst [vmem:[#allocation3 + $0x8] sm:$0x1] %v293_v9  ;;  %v344_v12 = vsel %vm15550_vm5, 0, %v343_v10  ;;  %v354_v13 = vsel %vm15522_vm3, 0, %v353_v11  ;;  %v356_v14 = vld [vmem:[#allocation4 + $0xc] sm:$0x1] }
  0x3a   : > { %v359_v15 = vld [vmem:[#allocation4 + $0x18] sm:$0x1]  ;;  %345 = vst [vmem:[#allocation3 + $0xd4] sm:$0x1] %v344_v12  ;;  %355 = vst [vmem:[#allocation4] sm:$0x1] %v354_v13 }
  0x3b   : > { %v357_v16 = vsel %vm15522_vm3, 0, %v356_v14  ;;  %v360_v17 = vsel %vm15522_vm3, 0, %v359_v15  ;;  %v362_v18 = vld [vmem:[#allocation4 + $0x24] sm:$0x1]  ;;  %v365_v19 = vld [vmem:[#allocation4 + $0x30] sm:$0x1] }
  0x3c   : > { %358 = vst [vmem:[#allocation4 + $0xc] sm:$0x1] %v357_v16  ;;  %361 = vst [vmem:[#allocation4 + $0x18] sm:$0x1] %v360_v17  ;;  %v363_v20 = vsel %vm15522_vm3, 0, %v362_v18  ;;  %v366_v21 = vsel %vm15522_vm3, 0, %v365_v19 }
  0x3d   : > { %v368_v23 = vld [vmem:[#allocation4 + $0x3c] sm:$0x1]  ;;  %v371_v24 = vld [vmem:[#allocation4 + $0x48] sm:$0x1]  ;;  %364 = vst [vmem:[#allocation4 + $0x24] sm:$0x1] %v363_v20 }
  0x3e   : > { %367 = vst [vmem:[#allocation4 + $0x30] sm:$0x1] %v366_v21  ;;  %v369_v25 = vsel %vm15522_vm3, 0, %v368_v23  ;;  %v372_v26 = vsel %vm15522_vm3, 0, %v371_v24  ;;  %v374_v27 = vld [vmem:[#allocation4 + $0x54] sm:$0x1] }
  0x3f   : > { %v377_v28 = vld [vmem:[#allocation4 + $0x60] sm:$0x1]  ;;  %370 = vst [vmem:[#allocation4 + $0x3c] sm:$0x1] %v369_v25  ;;  %373 = vst [vmem:[#allocation4 + $0x48] sm:$0x1] %v372_v26 }
  0x40   : > { %v375_v29 = vsel %vm15522_vm3, 0, %v374_v27  ;;  %v378_v30 = vsel %vm15522_vm3, 0, %v377_v28  ;;  %v380_v31 = vld [vmem:[#allocation4 + $0x6c] sm:$0x1]  ;;  %v383_v32 = vld [vmem:[#allocation4 + $0x78] sm:$0x1] }
  0x41   : > { %376 = vst [vmem:[#allocation4 + $0x54] sm:$0x1] %v375_v29  ;;  %379 = vst [vmem:[#allocation4 + $0x60] sm:$0x1] %v378_v30  ;;  %v381_v33 = vsel %vm15522_vm3, 0, %v380_v31  ;;  %v384_v34 = vsel %vm15522_vm3, 0, %v383_v32 }
  0x42   : > { %v386_v35 = vld [vmem:[#allocation4 + $0x84] sm:$0x1]  ;;  %v389_v36 = vld [vmem:[#allocation4 + $0x90] sm:$0x1]  ;;  %382 = vst [vmem:[#allocation4 + $0x6c] sm:$0x1] %v381_v33 }
  0x43   : > { %385 = vst [vmem:[#allocation4 + $0x78] sm:$0x1] %v384_v34  ;;  %v387_v37 = vsel %vm15522_vm3, 0, %v386_v35  ;;  %v390_v38 = vsel %vm15522_vm3, 0, %v389_v36  ;;  %v392_v39 = vld [vmem:[#allocation4 + $0x9c] sm:$0x1] }
  0x44   : > { %v395_v40 = vld [vmem:[#allocation4 + $0xa8] sm:$0x1]  ;;  %388 = vst [vmem:[#allocation4 + $0x84] sm:$0x1] %v387_v37  ;;  %391 = vst [vmem:[#allocation4 + $0x90] sm:$0x1] %v390_v38 }
  0x45   : > { %v393_v41 = vsel %vm15522_vm3, 0, %v392_v39  ;;  %v396_v42 = vsel %vm15522_vm3, 0, %v395_v40  ;;  %v398_v43 = vld [vmem:[#allocation4 + $0xb4] sm:$0x1]  ;;  %v401_v44 = vld [vmem:[#allocation4 + $0xc0] sm:$0x1] }
  0x46   : > { %394 = vst [vmem:[#allocation4 + $0x9c] sm:$0x1] %v393_v41  ;;  %397 = vst [vmem:[#allocation4 + $0xa8] sm:$0x1] %v396_v42  ;;  %v399_v45 = vsel %vm15522_vm3, 0, %v398_v43  ;;  %v402_v46 = vsel %vm15522_vm3, 0, %v401_v44 }
  0x47   : > { %v404_v47 = vld [vmem:[#allocation4 + $0xcc] sm:$0x1]  ;;  %v407_v48 = vld [vmem:[#allocation4 + $0x8] sm:$0x1]  ;;  %400 = vst [vmem:[#allocation4 + $0xb4] sm:$0x1] %v399_v45 }
  0x48   : > { %403 = vst [vmem:[#allocation4 + $0xc0] sm:$0x1] %v402_v46  ;;  %v405_v49 = vsel %vm15522_vm3, 0, %v404_v47  ;;  %v408_v50 = vsel %vm15550_vm5, 0, %v407_v48  ;;  %v410_v51 = vld [vmem:[#allocation4 + $0x14] sm:$0x1] }
  0x49   : > { %v413_v52 = vld [vmem:[#allocation4 + $0x20] sm:$0x1]  ;;  %406 = vst [vmem:[#allocation4 + $0xcc] sm:$0x1] %v405_v49  ;;  %409 = vst [vmem:[#allocation4 + $0x8] sm:$0x1] %v408_v50 }
  0x4a   : > { %v411_v53 = vsel %vm15550_vm5, 0, %v410_v51  ;;  %v414_v54 = vsel %vm15550_vm5, 0, %v413_v52  ;;  %v416_v55 = vld [vmem:[#allocation4 + $0x2c] sm:$0x1]  ;;  %v419_v56 = vld [vmem:[#allocation4 + $0x38] sm:$0x1] }
  0x4b   : > { %412 = vst [vmem:[#allocation4 + $0x14] sm:$0x1] %v411_v53  ;;  %415 = vst [vmem:[#allocation4 + $0x20] sm:$0x1] %v414_v54  ;;  %v417_v57 = vsel %vm15550_vm5, 0, %v416_v55  ;;  %v420_v58 = vsel %vm15550_vm5, 0, %v419_v56 }
  0x4c   : > { %v422_v59 = vld [vmem:[#allocation4 + $0x44] sm:$0x1]  ;;  %v425_v60 = vld [vmem:[#allocation4 + $0x50] sm:$0x1]  ;;  %418 = vst [vmem:[#allocation4 + $0x2c] sm:$0x1] %v417_v57 }
  0x4d   : > { %421 = vst [vmem:[#allocation4 + $0x38] sm:$0x1] %v420_v58  ;;  %v423_v61 = vsel %vm15550_vm5, 0, %v422_v59  ;;  %v426_v62 = vsel %vm15550_vm5, 0, %v425_v60  ;;  %v428_v63 = vld [vmem:[#allocation4 + $0x5c] sm:$0x1] }
  0x4e   : > { %v431_v0 = vld [vmem:[#allocation4 + $0x68] sm:$0x1]  ;;  %424 = vst [vmem:[#allocation4 + $0x44] sm:$0x1] %v423_v61  ;;  %427 = vst [vmem:[#allocation4 + $0x50] sm:$0x1] %v426_v62 }
  0x4f   : > { %v429_v2 = vsel %vm15550_vm5, 0, %v428_v63  ;;  %v432_v3 = vsel %vm15550_vm5, 0, %v431_v0  ;;  %v434_v4 = vld [vmem:[#allocation4 + $0x74] sm:$0x1]  ;;  %v437_v5 = vld [vmem:[#allocation4 + $0x80] sm:$0x1] }
  0x50   : > { %430 = vst [vmem:[#allocation4 + $0x5c] sm:$0x1] %v429_v2  ;;  %433 = vst [vmem:[#allocation4 + $0x68] sm:$0x1] %v432_v3  ;;  %v435_v6 = vsel %vm15550_vm5, 0, %v434_v4  ;;  %v438_v7 = vsel %vm15550_vm5, 0, %v437_v5 }
  0x51   : > { %v440_v8 = vld [vmem:[#allocation4 + $0x8c] sm:$0x1]  ;;  %v443_v9 = vld [vmem:[#allocation4 + $0x98] sm:$0x1]  ;;  %436 = vst [vmem:[#allocation4 + $0x74] sm:$0x1] %v435_v6 }
  0x52   : > { %439 = vst [vmem:[#allocation4 + $0x80] sm:$0x1] %v438_v7  ;;  %v441_v10 = vsel %vm15550_vm5, 0, %v440_v8  ;;  %v444_v11 = vsel %vm15550_vm5, 0, %v443_v9  ;;  %v446_v12 = vld [vmem:[#allocation4 + $0xa4] sm:$0x1] }
  0x53   : > { %v449_v13 = vld [vmem:[#allocation4 + $0xb0] sm:$0x1]  ;;  %442 = vst [vmem:[#allocation4 + $0x8c] sm:$0x1] %v441_v10  ;;  %445 = vst [vmem:[#allocation4 + $0x98] sm:$0x1] %v444_v11 }
  0x54   : > { %v447_v14 = vsel %vm15550_vm5, 0, %v446_v12  ;;  %v450_v15 = vsel %vm15550_vm5, 0, %v449_v13  ;;  %v452_v16 = vld [vmem:[#allocation4 + $0xbc] sm:$0x1]  ;;  %v455_v17 = vld [vmem:[#allocation4 + $0xc8] sm:$0x1] }
  0x55   : > { %448 = vst [vmem:[#allocation4 + $0xa4] sm:$0x1] %v447_v14  ;;  %451 = vst [vmem:[#allocation4 + $0xb0] sm:$0x1] %v450_v15  ;;  %v453_v18 = vsel %vm15550_vm5, 0, %v452_v16  ;;  %v456_v19 = vsel %vm15550_vm5, 0, %v455_v17 }
  0x56   : > { %v458_v20 = vld [vmem:[#allocation4 + $0xd4] sm:$0x1]  ;;  %454 = vst [vmem:[#allocation4 + $0xbc] sm:$0x1] %v453_v18  ;;  %457 = vst [vmem:[#allocation4 + $0xc8] sm:$0x1] %v456_v19 }
  0x57   : > { %v459_v21 = vsel %vm15550_vm5, 0, %v458_v20  ;;  %vm654_vm6 = vsmask.f32 4368  ;;  %s13376_s8 = sshll.u32 %s219_s7, 8  ;;  %v19566_v23 = vmov 0  ;;  %v19569_v22 = vmov 0 }
  0x58   : > { %460 = vst [vmem:[#allocation4 + $0xd4] sm:$0x1] %v459_v21  ;;  %v19567_v23 = vsel %vm15685_vm8, 4294967295, %v19566_v23  ;;  %s15692_s11 = scalar_lea.vmem %s19473_s0, %s13376_s8  ;;  %vm15695_vm9 = vmor %vm234_vm2, %vm654_vm6  ;;  %v15751_v49 = vld [vmem:[#allocation3 + $0xc] sm:$0xf]  ;;  %s16029_s12 = scalar_lea.vmem [#allocation5], %s15509_s6 }
  0x59   : > { %19568 = vst [vmem:[#allocation9_spill] sm:$0xff] %v19567_v23  ;;  %v19570_v22 = vsel %vm15695_vm9, 4294967295, %v19569_v22  ;;  %v461_v24 = vld [vmem:[%s15692_s11] sm:$0xff]  ;;  %v462_v25 = vld [vmem:[%s15692_s11 + $0x8] sm:$0xff]  ;;  %v463_v26 = vld [vmem:[%s15692_s11 + $0x10] sm:$0xff]  ;;  %s16031_s13 = smov 0  }
  0x5a   : > { %19571 = vst [vmem:[#allocation10_spill] sm:$0xff] %v19570_v22  ;;  %494 = vst.msk [vmem:[#allocation2] sm:$0xff] %vm493_vm7, %v461_v24  ;;  %v464_v27 = vld [vmem:[%s15692_s11 + $0x18] sm:$0xff]  ;;  %v465_v28 = vld [vmem:[%s15692_s11 + $0x20] sm:$0xff]  ;;  %v13377_v30 = vpack.c.bf16 %v461_v24, %v461_v24  ;;  %v15708_v31 = vpack.c.bf16 %v462_v25, %v462_v25  ;;  %v15710_v32 = vpack.c.bf16 %v463_v26, %v463_v26 }
  0x5b   : > { %495 = vst.msk [vmem:[#allocation2 + $0x8] sm:$0xff] %vm493_vm7, %v462_v25  ;;  %496 = vst.msk [vmem:[#allocation2 + $0x10] sm:$0xff] %vm493_vm7, %v463_v26  ;;  %v466_v29 = vld [vmem:[%s15692_s11 + $0x28] sm:$0xff]  ;;  %v467_v33 = vld [vmem:[%s15692_s11 + $0x30] sm:$0xff]  ;;  %v15718_v36 = vpack.c.bf16 %v464_v27, %v464_v27  ;;  %v15720_v37 = vpack.c.bf16 %v465_v28, %v465_v28 }
  0x5c   : > { %497 = vst.msk [vmem:[#allocation2 + $0x18] sm:$0xff] %vm493_vm7, %v464_v27  ;;  %498 = vst.msk [vmem:[#allocation2 + $0x20] sm:$0xff] %vm493_vm7, %v465_v28  ;;  %v468_v34 = vld [vmem:[%s15692_s11 + $0x38] sm:$0xff]  ;;  %v469_v35 = vld [vmem:[%s15692_s11 + $0x40] sm:$0xff]  ;;  %v15722_v38 = vpack.c.bf16 %v466_v29, %v466_v29  ;;  %v657_v42 = vshrl.u32 %v13377_v30, 16  ;;  %v660_v43 = vshll.u32 %v13377_v30, 16  ;;  %v15735_v45 = vpack.c.bf16 %v467_v33, %v467_v33 }
  0x5d   : > { %499 = vst.msk [vmem:[#allocation2 + $0x28] sm:$0xff] %vm493_vm7, %v466_v29  ;;  %500 = vst.msk [vmem:[#allocation2 + $0x30] sm:$0xff] %vm493_vm7, %v467_v33  ;;  %v470_v39 = vld [vmem:[%s15692_s11 + $0x48] sm:$0xff]  ;;  %v15729_v40 = vld [vmem:[%s15692_s11 + $0x50] sm:$0xff]  ;;  %v665_v44 = vshrl.u32 %v15708_v31, 16  ;;  %v668_v50 = vshll.u32 %v15708_v31, 16  ;;  %v15756_v54 = vpack.c.bf16 %v468_v34, %v468_v34  ;;  %v15774_v62 = vpack.c.bf16 %v469_v35, %v469_v35 }
  0x5e   : > { %501 = vst.msk [vmem:[#allocation2 + $0x38] sm:$0xff] %vm493_vm7, %v468_v34  ;;  %502 = vst.msk [vmem:[#allocation2 + $0x40] sm:$0xff] %vm493_vm7, %v469_v35  ;;  %v15732_v41 = vld [vmem:[%s15692_s11 + $0x58] sm:$0xff]  ;;  %v15743_v46 = vld [vmem:[%s15692_s11 + $0x60] sm:$0xff]  ;;  %v674_v52 = vshrl.u32 %v15710_v32, 16  ;;  %v677_v53 = vshll.u32 %v15710_v32, 16  ;;  %v15793_v6 = vpack.c.bf16 %v470_v39, %v470_v39 }
  0x5f   : > { %503 = vst.msk [vmem:[#allocation2 + $0x48] sm:$0xff] %vm493_vm7, %v470_v39  ;;  %504 = vst.msk [vmem:[#allocation2 + $0x50] sm:$0xff] %vm493_vm7, %v15729_v40  ;;  %v15746_v47 = vld [vmem:[%s15692_s11 + $0x68] sm:$0xff]  ;;  %v15749_v48 = vld [vmem:[%s15692_s11 + $0x70] sm:$0xff]  ;;  %v659_v58 = vrot.slane %v657_v42, 7  ;;  %v667_v59 = vrot.slane %v665_v44, 7 }
  0x60   : > { %505 = vst.msk [vmem:[#allocation2 + $0x58] sm:$0xff] %vm493_vm7, %v15732_v41  ;;  %v983_v51 = vld [vmem:[#allocation3 + $0x14] sm:$0x1]  ;;  %506 = vst.msk [vmem:[#allocation2 + $0x60] sm:$0xff] %vm493_vm7, %v15743_v46  ;;  %v15765_v55 = vld [vmem:[%s15692_s11 + $0x78] sm:$0xff]  ;;  %v682_v61 = vshrl.u32 %v15718_v36, 16 }
  0x61   : > { %507 = vst.msk [vmem:[#allocation2 + $0x68] sm:$0xff] %vm493_vm7, %v15746_v47  ;;  %508 = vst.msk [vmem:[#allocation2 + $0x70] sm:$0xff] %vm493_vm7, %v15749_v48  ;;  %v15768_v56 = vld [vmem:[%s15692_s11 + $0x80] sm:$0xff]  ;;  %v15771_v57 = vld [vmem:[%s15692_s11 + $0x88] sm:$0xff]  ;;  %v676_v3 = vrot.slane %v674_v52, 7  ;;  %v685_v4 = vshll.u32 %v15718_v36, 16  ;;  %v662_v10 = vor.u32 %v660_v43, %v659_v58  ;;  %v670_v12 = vor.u32 %v668_v50, %v667_v59 }
  0x62   : > { %v986_v60 = vld [vmem:[#allocation3 + $0x18] sm:$0xf]  ;;  %509 = vst.msk [vmem:[#allocation2 + $0x78] sm:$0xff] %vm493_vm7, %v15765_v55  ;;  %510 = vst.msk [vmem:[#allocation2 + $0x80] sm:$0xff] %vm493_vm7, %v15768_v56  ;;  %v15783_v63 = vld [vmem:[%s15692_s11 + $0x90] sm:$0xff]  ;;  %v691_v5 = vshrl.u32 %v15720_v37, 16 }
  0x63   : > { %511 = vst.msk [vmem:[#allocation2 + $0x88] sm:$0xff] %vm493_vm7, %v15771_v57  ;;  %v15786_v0 = vld [vmem:[%s15692_s11 + $0x98] sm:$0xff]  ;;  %v15789_v2 = vld [vmem:[%s15692_s11 + $0xa0] sm:$0xff]  ;;  %512 = vst.msk [vmem:[#allocation2 + $0x90] sm:$0xff] %vm493_vm7, %v15783_v63  ;;  %v663_v11 = vrot.slane %v659_v58, 4  ;;  %v672_v13 = vrot.slane %v667_v59, 4  ;;  %v679_v18 = vor.u32 %v677_v53, %v676_v3  ;;  %v980_v27 = vsel %vm15685_vm8, %v662_v10, %v15751_v49 }
  0x64   : > { %513 = vst.msk [vmem:[#allocation2 + $0x98] sm:$0xff] %vm493_vm7, %v15786_v0  ;;  %514 = vst.msk [vmem:[#allocation2 + $0xa0] sm:$0xff] %vm493_vm7, %v15789_v2  ;;  %v15802_v7 = vld [vmem:[%s15692_s11 + $0xa8] sm:$0xff]  ;;  %v15805_v8 = vld [vmem:[%s15692_s11 + $0xb0] sm:$0xff]  ;;  %v680_v19 = vrot.slane %v676_v3, 4  ;;  %v684_v20 = vrot.slane %v682_v61, 7 }
  0x65   : > { %v15808_v9 = vld [vmem:[%s15692_s11 + $0xb8] sm:$0xff]  ;;  %v990_v14 = vld [vmem:[#allocation3 + $0x20] sm:$0x1]  ;;  %515 = vst.msk [vmem:[#allocation2 + $0xa8] sm:$0xff] %vm493_vm7, %v15802_v7  ;;  %516 = vst.msk [vmem:[#allocation2 + $0xb0] sm:$0xff] %vm493_vm7, %v15805_v8  ;;  %v693_v21 = vrot.slane %v691_v5, 7  ;;  %v671_v28 = vsel %vm15695_vm9, %v663_v11, %v670_v12  ;;  %v984_v29 = vsel %vm15522_vm3, %v672_v13, %v983_v51  ;;  %v987_v33 = vsel %vm15685_vm8, %v679_v18, %v986_v60 }
  0x66   : > { %517 = vst.msk [vmem:[#allocation2 + $0xb8] sm:$0xff] %vm493_vm7, %v15808_v9  ;;  %v15817_v15 = vld [vmem:[%s15692_s11 + $0xc0] sm:$0xff]  ;;  %v15820_v16 = vld [vmem:[%s15692_s11 + $0xc8] sm:$0xff]  ;;  %v15823_v17 = vld [vmem:[%s15692_s11 + $0xd0] sm:$0xff]  ;;  %v694_v30 = vshll.u32 %v15720_v37, 16  ;;  %v687_v34 = vor.u32 %v685_v4, %v684_v20  ;;  %v689_v35 = vrot.slane %v684_v20, 4 }
  0x67   : > { %518 = vst.msk [vmem:[#allocation2 + $0xc0] sm:$0xff] %vm493_vm7, %v15817_v15  ;;  %519 = vst.msk [vmem:[#allocation2 + $0xc8] sm:$0xff] %vm493_vm7, %v15820_v16  ;;  %v15832_v24 = vld [vmem:[%s15692_s11 + $0xd8] sm:$0xff]  ;;  %v15835_v25 = vld [vmem:[%s15692_s11 + $0xe0] sm:$0xff]  ;;  %v697_v37 = vrot.slane %v693_v21, 4  ;;  %v699_v42 = vshrl.u32 %v15722_v38, 16 }
  0x68   : > { %520 = vst.msk [vmem:[#allocation2 + $0xd0] sm:$0xff] %vm493_vm7, %v15823_v17  ;;  %v15838_v26 = vld [vmem:[%s15692_s11 + $0xe8] sm:$0xff]  ;;  %521 = vst.msk [vmem:[#allocation2 + $0xd8] sm:$0xff] %vm493_vm7, %v15832_v24  ;;  %v15855_v31 = vld [vmem:[%s15692_s11 + $0xf0] sm:$0xff]  ;;  %v696_v39 = vor.u32 %v694_v30, %v693_v21  ;;  %v702_v43 = vshll.u32 %v15722_v38, 16  ;;  %v708_v44 = vshrl.u32 %v15735_v45, 16  ;;  %v688_v49 = vsel %vm15695_vm9, %v680_v19, %v687_v34 }
  0x69   : > { %522 = vst.msk [vmem:[#allocation2 + $0xe0] sm:$0xff] %vm493_vm7, %v15835_v25  ;;  %523 = vst.msk [vmem:[#allocation2 + $0xe8] sm:$0xff] %vm493_vm7, %v15838_v26  ;;  %v15858_v32 = vld [vmem:[%s15692_s11 + $0xf8] sm:$0xff]  ;;  %v993_v36 = vld [vmem:[#allocation3 + $0x24] sm:$0xf]  ;;  %v991_v50 = vsel %vm15522_vm3, %v689_v35, %v990_v14  ;;  %v711_v51 = vshll.u32 %v15735_v45, 16 }
  0x6a   : > { %981 = vst [vmem:[#allocation3 + $0xc] sm:$0xf] %v980_v27  ;;  %982 = vst.msk [vmem:[#allocation3 + $0x10] sm:$0xf] %vm224_vm0, %v671_v28  ;;  %v716_v52 = vshrl.u32 %v15756_v54, 16  ;;  %v994_v53 = vsel %vm15685_vm8, %v696_v39, %v993_v36  ;;  %v701_v58 = vrot.slane %v699_v42, 7  ;;  %v13388_v42 = vpack.c.bf16 %v15732_v41, %v15732_v41 }
  0x6b   : > { %985 = vst [vmem:[#allocation3 + $0x14] sm:$0x1] %v984_v29  ;;  %524 = vst.msk [vmem:[#allocation2 + $0xf0] sm:$0xff] %vm493_vm7, %v15855_v31  ;;  %v997_v38 = vld [vmem:[#allocation3 + $0x2c] sm:$0x1]  ;;  %v710_v59 = vrot.slane %v708_v44, 7  ;;  %v13389_v44 = vpack.c.bf16 %v15743_v46, %v15743_v46 }
  0x6c   : > { %525 = vst.msk [vmem:[#allocation2 + $0xf8] sm:$0xff] %vm493_vm7, %v15858_v32  ;;  %988 = vst [vmem:[#allocation3 + $0x18] sm:$0xf] %v987_v33  ;;  %v719_v60 = vshll.u32 %v15756_v54, 16  ;;  %v1000_v61 = vld [vmem:[#allocation3 + $0x30] sm:$0xf]  ;;  %v704_v10 = vor.u32 %v702_v43, %v701_v58 }
  0x6d   : > { %989 = vst.msk [vmem:[#allocation3 + $0x1c] sm:$0xf] %vm224_vm0, %v688_v49  ;;  %992 = vst [vmem:[#allocation3 + $0x20] sm:$0x1] %v991_v50  ;;  %v718_v3 = vrot.slane %v716_v52, 7  ;;  %v725_v4 = vshrl.u32 %v15774_v62, 16  ;;  %v713_v12 = vor.u32 %v711_v51, %v710_v59  ;;  %v13390_v49 = vpack.c.bf16 %v15746_v47, %v15746_v47 }
  0x6e   : > { %995 = vst [vmem:[#allocation3 + $0x24] sm:$0xf] %v994_v53  ;;  %v728_v45 = vshll.u32 %v15774_v62, 16  ;;  %v733_v5 = vshrl.u32 %v15793_v6, 16  ;;  %v706_v11 = vrot.slane %v701_v58, 4  ;;  %v714_v13 = vrot.slane %v710_v59, 4 }
  0x6f   : > { %v1004_v14 = vld [vmem:[#allocation3 + $0x38] sm:$0x1]  ;;  %v721_v18 = vor.u32 %v719_v60, %v718_v3  ;;  %v723_v19 = vrot.slane %v718_v3, 4  ;;  %v727_v20 = vrot.slane %v725_v4, 7  ;;  %v705_v54 = vsel %vm15695_vm9, %v697_v37, %v704_v10  ;;  %v1007_v28 = vld [vmem:[#allocation3 + $0x3c] sm:$0xf] }
  0x70   : > { %v735_v21 = vrot.slane %v733_v5, 7  ;;  %v998_v27 = vsel %vm15522_vm3, %v706_v11, %v997_v38  ;;  %v1001_v62 = vsel %vm15685_vm8, %v713_v12, %v1000_v61  ;;  %v736_v29 = vshll.u32 %v15793_v6, 16  ;;  %996 = vst.msk [vmem:[#allocation3 + $0x28] sm:$0xf] %vm224_vm0, %v705_v54  ;;  %v1011_v36 = vld [vmem:[#allocation3 + $0x44] sm:$0x1] }
  0x71   : > { %999 = vst [vmem:[#allocation3 + $0x2c] sm:$0x1] %v998_v27  ;;  %1002 = vst [vmem:[#allocation3 + $0x30] sm:$0xf] %v1001_v62  ;;  %v722_v30 = vsel %vm15695_vm9, %v714_v13, %v721_v18  ;;  %v1005_v33 = vsel %vm15522_vm3, %v723_v19, %v1004_v14  ;;  %v730_v34 = vor.u32 %v728_v45, %v727_v20  ;;  %v731_v35 = vrot.slane %v727_v20, 4 }
  0x72   : > { %1003 = vst.msk [vmem:[#allocation3 + $0x34] sm:$0xf] %vm224_vm0, %v722_v30  ;;  %1006 = vst [vmem:[#allocation3 + $0x38] sm:$0x1] %v1005_v33  ;;  %v738_v37 = vor.u32 %v736_v29, %v735_v21  ;;  %v740_v39 = vrot.slane %v735_v21, 4  ;;  %v13387_v6 = vpack.c.bf16 %v15729_v40, %v15729_v40  ;;  %v13391_v50 = vpack.c.bf16 %v15749_v48, %v15749_v48 }
  0x73   : > { %v1008_v43 = vsel %vm15685_vm8, %v730_v34, %v1007_v28  ;;  %v750_v53 = vshrl.u32 %v13388_v42, 16  ;;  %v753_v46 = vshll.u32 %v13388_v42, 16  ;;  %v759_v58 = vshrl.u32 %v13389_v44, 16  ;;  %v1014_v59 = vld [vmem:[#allocation3 + $0x48] sm:$0xf] }
  0x74   : > { %1009 = vst [vmem:[#allocation3 + $0x3c] sm:$0xf] %v1008_v43  ;;  %v739_v51 = vsel %vm15695_vm9, %v731_v35, %v738_v37  ;;  %v1012_v40 = vsel %vm15522_vm3, %v740_v39, %v1011_v36  ;;  %v742_v41 = vshrl.u32 %v13387_v6, 16  ;;  %v745_v52 = vshll.u32 %v13387_v6, 16  ;;  %v1018_v4 = vld [vmem:[#allocation3 + $0x50] sm:$0x1] }
  0x75   : > { %1010 = vst.msk [vmem:[#allocation3 + $0x40] sm:$0xf] %vm224_vm0, %v739_v51  ;;  %1013 = vst [vmem:[#allocation3 + $0x44] sm:$0x1] %v1012_v40  ;;  %v762_v38 = vshll.u32 %v13389_v44, 16  ;;  %v767_v60 = vshrl.u32 %v13390_v49, 16  ;;  %v13392_v10 = vpack.c.bf16 %v15765_v55, %v15765_v55  ;;  %v13393_v44 = vpack.c.bf16 %v15768_v56, %v15768_v56 }
  0x76   : > { %v744_v47 = vrot.slane %v742_v41, 7  ;;  %v770_v48 = vshll.u32 %v13390_v49, 16  ;;  %v776_v61 = vshrl.u32 %v13391_v50, 16  ;;  %v752_v3 = vrot.slane %v750_v53, 7  ;;  %v1021_v13 = vld [vmem:[#allocation3 + $0x54] sm:$0xf] }
  0x77   : > { %v761_v45 = vrot.slane %v759_v58, 7  ;;  %v779_v5 = vshll.u32 %v13391_v50, 16  ;;  %v769_v14 = vrot.slane %v767_v60, 7  ;;  %v1025_v27 = vld [vmem:[#allocation3 + $0x5c] sm:$0x1]  ;;  %v784_v42 = vshrl.u32 %v13392_v10, 16 }
  0x78   : > { %v747_v11 = vor.u32 %v745_v52, %v744_v47  ;;  %v748_v12 = vrot.slane %v744_v47, 4  ;;  %v778_v18 = vrot.slane %v776_v61, 7  ;;  %v755_v19 = vor.u32 %v753_v46, %v752_v3  ;;  %v1028_v62 = vld [vmem:[#allocation3 + $0x60] sm:$0xf]  ;;  %v1032_v53 = vld [vmem:[#allocation3 + $0x68] sm:$0x1] }
  0x79   : > { %v757_v20 = vrot.slane %v752_v3, 4  ;;  %v764_v21 = vor.u32 %v762_v38, %v761_v45  ;;  %v765_v54 = vrot.slane %v761_v45, 4  ;;  %v772_v29 = vor.u32 %v770_v48, %v769_v14  ;;  %v1035_v3 = vld [vmem:[#allocation3 + $0x6c] sm:$0xf] }
  0x7a   : > { %v1015_v28 = vsel %vm15685_vm8, %v747_v11, %v1014_v59  ;;  %v774_v30 = vrot.slane %v769_v14, 4  ;;  %v781_v33 = vor.u32 %v779_v5, %v778_v18  ;;  %v756_v55 = vsel %vm15695_vm9, %v748_v12, %v755_v19  ;;  %v1042_v14 = vld [vmem:[#allocation3 + $0x78] sm:$0xf] }
  0x7b   : > { %1016 = vst [vmem:[#allocation3 + $0x48] sm:$0xf] %v1015_v28  ;;  %v1019_v34 = vsel %vm15522_vm3, %v757_v20, %v1018_v4  ;;  %v1022_v35 = vsel %vm15685_vm8, %v764_v21, %v1021_v13  ;;  %v782_v36 = vrot.slane %v778_v18, 4  ;;  %1017 = vst.msk [vmem:[#allocation3 + $0x4c] sm:$0xf] %vm224_vm0, %v756_v55  ;;  %v773_v37 = vsel %vm15695_vm9, %v765_v54, %v772_v29 }
  0x7c   : > { %1020 = vst [vmem:[#allocation3 + $0x50] sm:$0x1] %v1019_v34  ;;  %1023 = vst [vmem:[#allocation3 + $0x54] sm:$0xf] %v1022_v35  ;;  %v1026_v39 = vsel %vm15522_vm3, %v774_v30, %v1025_v27  ;;  %v1029_v6 = vsel %vm15685_vm8, %v781_v33, %v1028_v62  ;;  %v787_v43 = vshll.u32 %v13392_v10, 16  ;;  %v13394_v49 = vpack.c.bf16 %v15771_v57, %v15771_v57 }
  0x7d   : > { %1024 = vst.msk [vmem:[#allocation3 + $0x58] sm:$0xf] %vm224_vm0, %v773_v37  ;;  %1027 = vst [vmem:[#allocation3 + $0x5c] sm:$0x1] %v1026_v39  ;;  %v13395_v50 = vpack.c.bf16 %v15783_v63, %v15783_v63  ;;  %v786_v51 = vrot.slane %v784_v42, 7  ;;  %v13396_v40 = vpack.c.bf16 %v15786_v0, %v15786_v0  ;;  %v13397_v41 = vpack.c.bf16 %v15789_v2, %v15789_v2 }
  0x7e   : > { %1030 = vst [vmem:[#allocation3 + $0x60] sm:$0xf] %v1029_v6  ;;  %v15943_v52 = vpack.c.bf16 %v15802_v7, %v15802_v7  ;;  %v793_v46 = vshrl.u32 %v13393_v44, 16  ;;  %v796_v56 = vshll.u32 %v13393_v44, 16  ;;  %v801_v58 = vshrl.u32 %v13394_v49, 16 }
  0x7f   : > { %v804_v38 = vshll.u32 %v13394_v49, 16  ;;  %v789_v57 = vor.u32 %v787_v43, %v786_v51  ;;  %v791_v47 = vrot.slane %v786_v51, 4  ;;  %v810_v59 = vshrl.u32 %v13395_v50, 16  ;;  %v1039_v4 = vld [vmem:[#allocation3 + $0x74] sm:$0x1] }
  0x80   : > { %v813_v63 = vshll.u32 %v13395_v50, 16  ;;  %v795_v60 = vrot.slane %v793_v46, 7  ;;  %v803_v48 = vrot.slane %v801_v58, 7  ;;  %v818_v61 = vshrl.u32 %v13396_v40, 16  ;;  %v1046_v28 = vld [vmem:[#allocation3 + $0x80] sm:$0x1] }
  0x81   : > { %v821_v0 = vshll.u32 %v13396_v40, 16  ;;  %v790_v2 = vsel %vm15695_vm9, %v782_v36, %v789_v57  ;;  %v1033_v7 = vsel %vm15522_vm3, %v791_v47, %v1032_v53  ;;  %v812_v45 = vrot.slane %v810_v59, 7  ;;  %v1049_v34 = vld [vmem:[#allocation3 + $0x84] sm:$0xf]  ;;  %v1056_v57 = vld [vmem:[#allocation3 + $0x90] sm:$0xf] }
  0x82   : > { %v827_v5 = vshrl.u32 %v13397_v41, 16  ;;  %1031 = vst.msk [vmem:[#allocation3 + $0x64] sm:$0xf] %vm224_vm0, %v790_v2  ;;  %1034 = vst [vmem:[#allocation3 + $0x68] sm:$0x1] %v1033_v7  ;;  %v798_v10 = vor.u32 %v796_v56, %v795_v60  ;;  %v799_v11 = vrot.slane %v795_v60, 4  ;;  %v806_v12 = vor.u32 %v804_v38, %v803_v48 }
  0x83   : > { %v808_v13 = vrot.slane %v803_v48, 4  ;;  %v815_v18 = vor.u32 %v813_v63, %v812_v45  ;;  %v816_v19 = vrot.slane %v812_v45, 4  ;;  %v820_v20 = vrot.slane %v818_v61, 7  ;;  %v1060_v7 = vld [vmem:[#allocation3 + $0x98] sm:$0x1] }
  0x84   : > { %v829_v21 = vrot.slane %v827_v5, 7  ;;  %v1036_v54 = vsel %vm15685_vm8, %v798_v10, %v1035_v3  ;;  %v807_v27 = vsel %vm15695_vm9, %v799_v11, %v806_v12  ;;  %v830_v29 = vshll.u32 %v13397_v41, 16  ;;  %v1053_v41 = vld [vmem:[#allocation3 + $0x8c] sm:$0x1]  ;;  %v1063_v3 = vld [vmem:[#allocation3 + $0x9c] sm:$0xf] }
  0x85   : > { %v1040_v62 = vsel %vm15522_vm3, %v808_v13, %v1039_v4  ;;  %1037 = vst [vmem:[#allocation3 + $0x6c] sm:$0xf] %v1036_v54  ;;  %1038 = vst.msk [vmem:[#allocation3 + $0x70] sm:$0xf] %vm224_vm0, %v807_v27  ;;  %v1043_v30 = vsel %vm15685_vm8, %v815_v18, %v1042_v14  ;;  %v823_v33 = vor.u32 %v821_v0, %v820_v20  ;;  %v825_v55 = vrot.slane %v820_v20, 4 }
  0x86   : > { %1041 = vst [vmem:[#allocation3 + $0x74] sm:$0x1] %v1040_v62  ;;  %v833_v35 = vrot.slane %v829_v21, 4  ;;  %1044 = vst [vmem:[#allocation3 + $0x78] sm:$0xf] %v1043_v30  ;;  %v832_v36 = vor.u32 %v830_v29, %v829_v21  ;;  %v835_v37 = vshrl.u32 %v15943_v52, 16  ;;  %v13399_v6 = vpack.c.bf16 %v15805_v8, %v15805_v8 }
  0x87   : > { %v838_v39 = vshll.u32 %v15943_v52, 16  ;;  %v824_v42 = vsel %vm15695_vm9, %v816_v19, %v823_v33  ;;  %v1047_v43 = vsel %vm15522_vm3, %v825_v55, %v1046_v28  ;;  %v13400_v44 = vpack.c.bf16 %v15808_v9, %v15808_v9  ;;  %v1067_v27 = vld [vmem:[#allocation3 + $0xa4] sm:$0x1]  ;;  %v1070_v62 = vld [vmem:[#allocation3 + $0xa8] sm:$0xf] }
  0x88   : > { %v13401_v49 = vpack.c.bf16 %v15817_v15, %v15817_v15  ;;  %1045 = vst.msk [vmem:[#allocation3 + $0x7c] sm:$0xf] %vm224_vm0, %v824_v42  ;;  %1048 = vst [vmem:[#allocation3 + $0x80] sm:$0x1] %v1047_v43  ;;  %v1050_v50 = vsel %vm15685_vm8, %v832_v36, %v1049_v34  ;;  %v837_v51 = vrot.slane %v835_v37, 7  ;;  %v844_v8 = vshrl.u32 %v13399_v6, 16 }
  0x89   : > { %v847_v40 = vshll.u32 %v13399_v6, 16  ;;  %1051 = vst [vmem:[#allocation3 + $0x84] sm:$0xf] %v1050_v50  ;;  %v852_v52 = vshrl.u32 %v13400_v44, 16  ;;  %v855_v53 = vshll.u32 %v13400_v44, 16  ;;  %v13402_v15 = vpack.c.bf16 %v15820_v16, %v15820_v16 }
  0x8a   : > { %v861_v46 = vshrl.u32 %v13401_v49, 16  ;;  %v864_v56 = vshll.u32 %v13401_v49, 16  ;;  %v840_v58 = vor.u32 %v838_v39, %v837_v51  ;;  %v842_v9 = vrot.slane %v837_v51, 4  ;;  %v1074_v43 = vld [vmem:[#allocation3 + $0xb0] sm:$0x1] }
  0x8b   : > { %v846_v38 = vrot.slane %v844_v8, 7  ;;  %v854_v47 = vrot.slane %v852_v52, 7  ;;  %v13403_v63 = vpack.c.bf16 %v15823_v17, %v15823_v17  ;;  %v13404_v60 = vpack.c.bf16 %v15832_v24, %v15832_v24  ;;  %v1077_v8 = vld [vmem:[#allocation3 + $0xb4] sm:$0xf] }
  0x8c   : > { %v863_v59 = vrot.slane %v861_v46, 7  ;;  %v841_v48 = vsel %vm15695_vm9, %v833_v35, %v840_v58  ;;  %v1054_v61 = vsel %vm15522_vm3, %v842_v9, %v1053_v41  ;;  %v869_v5 = vshrl.u32 %v13402_v15, 16 }
  0x8d   : > { %v849_v0 = vor.u32 %v847_v40, %v846_v38  ;;  %v850_v2 = vrot.slane %v846_v38, 4  ;;  %1052 = vst.msk [vmem:[#allocation3 + $0x88] sm:$0xf] %vm224_vm0, %v841_v48  ;;  %1055 = vst [vmem:[#allocation3 + $0x8c] sm:$0x1] %v1054_v61  ;;  %v857_v16 = vor.u32 %v855_v53, %v854_v47  ;;  %v859_v4 = vrot.slane %v854_v47, 4 }
  0x8e   : > { %v866_v45 = vor.u32 %v864_v56, %v863_v59  ;;  %v867_v17 = vrot.slane %v863_v59, 4  ;;  %v872_v10 = vshll.u32 %v13402_v15, 16  ;;  %v878_v11 = vshrl.u32 %v13403_v63, 16  ;;  %v1081_v38 = vld [vmem:[#allocation3 + $0xbc] sm:$0x1] }
  0x8f   : > { %v1057_v24 = vsel %vm15685_vm8, %v849_v0, %v1056_v57  ;;  %v858_v12 = vsel %vm15695_vm9, %v850_v2, %v857_v16  ;;  %v1061_v13 = vsel %vm15522_vm3, %v859_v4, %v1060_v7  ;;  %v881_v18 = vshll.u32 %v13403_v63, 16  ;;  %v1088_v7 = vld [vmem:[#allocation3 + $0xc8] sm:$0x1] }
  0x90   : > { %1058 = vst [vmem:[#allocation3 + $0x90] sm:$0xf] %v1057_v24  ;;  %v1064_v14 = vsel %vm15685_vm8, %v866_v45, %v1063_v3  ;;  %1059 = vst.msk [vmem:[#allocation3 + $0x94] sm:$0xf] %vm224_vm0, %v858_v12  ;;  %v871_v19 = vrot.slane %v869_v5, 7  ;;  %v880_v20 = vrot.slane %v878_v11, 7  ;;  %v13405_v28 = vpack.c.bf16 %v15835_v25, %v15835_v25 }
  0x91   : > { %1062 = vst [vmem:[#allocation3 + $0x98] sm:$0x1] %v1061_v13  ;;  %1065 = vst [vmem:[#allocation3 + $0x9c] sm:$0xf] %v1064_v14  ;;  %v886_v21 = vshrl.u32 %v13404_v60, 16  ;;  %v889_v54 = vshll.u32 %v13404_v60, 16  ;;  %v13406_v29 = vpack.c.bf16 %v15838_v26, %v15838_v26  ;;  %v13407_v30 = vpack.c.bf16 %v15855_v31, %v15855_v31 }
  0x92   : > { %v13408_v33 = vpack.c.bf16 %v15858_v32, %v15858_v32  ;;  %v874_v55 = vor.u32 %v872_v10, %v871_v19  ;;  %v876_v34 = vrot.slane %v871_v19, 4  ;;  %v883_v35 = vor.u32 %v881_v18, %v880_v20  ;;  %v1084_v60 = vld [vmem:[#allocation3 + $0xc0] sm:$0xf] }
  0x93   : > { %v884_v36 = vrot.slane %v880_v20, 4  ;;  %v888_v37 = vrot.slane %v886_v21, 7  ;;  %v895_v39 = vshrl.u32 %v13405_v28, 16  ;;  %v898_v6 = vshll.u32 %v13405_v28, 16 }
  0x94   : > { %v903_v42 = vshrl.u32 %v13406_v29, 16  ;;  %v875_v25 = vsel %vm15695_vm9, %v867_v17, %v874_v55  ;;  %v1068_v26 = vsel %vm15522_vm3, %v876_v34, %v1067_v27  ;;  %v1071_v31 = vsel %vm15685_vm8, %v883_v35, %v1070_v62 }
  0x95   : > { %v906_v44 = vshll.u32 %v13406_v29, 16  ;;  %1066 = vst.msk [vmem:[#allocation3 + $0xa0] sm:$0xf] %vm224_vm0, %v875_v25  ;;  %1069 = vst [vmem:[#allocation3 + $0xa4] sm:$0x1] %v1068_v26  ;;  %v891_v32 = vor.u32 %v889_v54, %v888_v37  ;;  %v893_v49 = vrot.slane %v888_v37, 4 }
  0x96   : > { %1072 = vst [vmem:[#allocation3 + $0xa8] sm:$0xf] %v1071_v31  ;;  %v897_v50 = vrot.slane %v895_v39, 7  ;;  %v905_v51 = vrot.slane %v903_v42, 7  ;;  %v912_v40 = vshrl.u32 %v13407_v30, 16  ;;  %v915_v41 = vshll.u32 %v13407_v30, 16 }
  0x97   : > { %v920_v52 = vshrl.u32 %v13408_v33, 16  ;;  %v923_v53 = vshll.u32 %v13408_v33, 16  ;;  %v892_v46 = vsel %vm15695_vm9, %v884_v36, %v891_v32  ;;  %v1075_v56 = vsel %vm15522_vm3, %v893_v49, %v1074_v43 }
  0x98   : > { %v900_v58 = vor.u32 %v898_v6, %v897_v50  ;;  %v901_v9 = vrot.slane %v897_v50, 4  ;;  %1073 = vst.msk [vmem:[#allocation3 + $0xac] sm:$0xf] %vm224_vm0, %v892_v46  ;;  %1076 = vst [vmem:[#allocation3 + $0xb0] sm:$0x1] %v1075_v56  ;;  %v908_v15 = vor.u32 %v906_v44, %v905_v51  ;;  %v910_v57 = vrot.slane %v905_v51, 4 }
  0x99   : > { %v914_v47 = vrot.slane %v912_v40, 7  ;;  %v922_v59 = vrot.slane %v920_v52, 7 }
  0x9a   : > { %v1078_v63 = vsel %vm15685_vm8, %v900_v58, %v1077_v8  ;;  %v909_v48 = vsel %vm15695_vm9, %v901_v9, %v908_v15  ;;  %v1082_v61 = vsel %vm15522_vm3, %v910_v57, %v1081_v38 }
  0x9b   : > { %1079 = vst [vmem:[#allocation3 + $0xb4] sm:$0xf] %v1078_v63  ;;  %v917_v0 = vor.u32 %v915_v41, %v914_v47  ;;  %v918_v2 = vrot.slane %v914_v47, 4  ;;  %1080 = vst.msk [vmem:[#allocation3 + $0xb8] sm:$0xf] %vm224_vm0, %v909_v48  ;;  %v925_v3 = vor.u32 %v923_v53, %v922_v59  ;;  %v927_v16 = vrot.slane %v922_v59, 4 }
  0x9c   : > { %1083 = vst [vmem:[#allocation3 + $0xbc] sm:$0x1] %v1082_v61 }
  0x9d   : > { %v1085_v4 = vsel %vm15685_vm8, %v917_v0, %v1084_v60  ;;  %v926_v45 = vsel %vm15695_vm9, %v918_v2, %v925_v3  ;;  %v1089_v17 = vsel %vm15522_vm3, %v927_v16, %v1088_v7 }
  0x9e   : > { %1086 = vst [vmem:[#allocation3 + $0xc0] sm:$0xf] %v1085_v4  ;;  %1087 = vst.msk [vmem:[#allocation3 + $0xc4] sm:$0xf] %vm224_vm0, %v926_v45 }
  0x9f   : > { %1090 = vst [vmem:[#allocation3 + $0xc8] sm:$0x1] %v1089_v17 }
  0xa0 LB: >> { %v15186_v24 = vld [vmem:[#allocation3] sm:$0xff]   ;;  %s13409_s14 = smul.u32 288, %s15422_s13  ;;  %v15187_v14 = vld [vmem:[#allocation3 + $0xc] sm:$0xff]   ;;  %v15189_v18 = vld [vmem:[#allocation3 + $0x18] sm:$0xff]   ;;  %vm1541_vm10 = vsmask.f32 3328  ;;  %s1097_s8 = scalar_lea.vmem %s19475_s2, %s15422_s13  ;;  %s15422_s13 = sphi %s16031_s13, %s1096_s13  }
  0xa1   : >> { %13844 = vmatprep.mubr.msk.bf16.mxu0 %vm493_vm7, %v15186_v24  ;;  %v15190_v21 = vld [vmem:[#allocation3 + $0x24] sm:$0xff]   ;;  %v15191_v54 = vld [vmem:[#allocation3 + $0x30] sm:$0xff]   ;;  %v15192_v28 = vld [vmem:[#allocation3 + $0x3c] sm:$0xff]   ;;  %vm1542_vm11 = vsmask.f32 7440  ;;  %vm2316_vm13 = vcmask 1042432   ;;  %s6605_s11 = scalar_lea.vmem %s19477_s4, %s15422_s13 }
  0xa2   : >> { %s16043_s17 = scalar_lea.vmem %s19474_s1, %s13409_s14  ;;  %v15194_v29 = vld [vmem:[#allocation3 + $0x48] sm:$0xff]   ;;  %v15195_v30 = vld [vmem:[#allocation3 + $0x54] sm:$0xff]   ;;  %v15196_v33 = vld [vmem:[#allocation3 + $0x60] sm:$0xff]   ;;  %vm2317_vm14 = vcmask 1046532   ;;  %s17344_s26 = scalar_lea.vmem %s19476_s3, %s13409_s14 }
  0xa3   : >> { %v15182_v5 = vld [vmem:[%s16043_s17] sm:$0xff]   ;;  %v15183_v10 = vld [vmem:[%s16043_s17 + $0x8] sm:$0xff]   ;;  %v15184_v11 = vld [vmem:[%s16043_s17 + $0x10] sm:$0xff]   ;;  %s1096_s13 = sadd.s32 1, %s15422_s13  }
  0xa4   : >> { %13836 = vmatprep.subr.bf16.mxu0 %v15182_v5  ;;  %v15185_v12 = vld [vmem:[%s16043_s17 + $0x18] sm:$0xff]   ;;  %v15188_v13 = vld [vmem:[%s16043_s17 + $0x20] sm:$0xff]   ;;  %v15193_v19 = vld [vmem:[%s16043_s17 + $0x28] sm:$0xff]   ;;  %p1093_p11 = scmp.ge.s32.totalorder %s1096_s13, 2  }
  0xa5   : >> { %13837 = vmatpush3.bf16.msra.mxu0 %v15182_v5  ;;  %v15198_v20 = vld [vmem:[%s16043_s17 + $0x30] sm:$0xff]   ;;  %v15203_v27 = vld [vmem:[%s16043_s17 + $0x38] sm:$0xff]   ;;  %v16058_v62 = vld [vmem:[%s16043_s17 + $0x40] sm:$0xff]   ;;  %s13475_s13 = sshll.u32 (%p1093_p11), %s15479_s22, 12  ;;  %s12239_s14 = sshll.u32 (%p1093_p11), %s16029_s12, 4  ;;  %s19412_s14 = int_to_ptr.vmem [resolvable:$true] %s12239_s14 }
  0xa6   : >> { %13838 = vmatprep.subr.bf16.mxu0 %v15183_v10  ;;  %v1493_v55 = vld [vmem:[#allocation3] sm:$0xf]  ;;  %v16063_v34 = vld [vmem:[#allocation3 + $0x4] sm:$0xf]  ;;  %v1496_v6 = vld [vmem:[#allocation3 + $0xc] sm:$0xf]  ;;  %s19410_s16 = scalar_lea.hbm (%p1093_p11), %s19478_s5, %s13475_s13 }
  0xa7   : >> { %v1545_v35 = vshrl.u32 %v1493_v55, 16  ;;  %v1548_v36 = vshll.u32 %v1493_v55, 16  ;;  %v1554_v37 = vshll.u32 %v16063_v34, 16  ;;  %v1558_v39 = vshrl.u32 %v16063_v34, 16  ;;  %v15197_v42 = vld [vmem:[#allocation3 + $0x6c] sm:$0xff]   ;;  %v15199_v25 = vld [vmem:[#allocation3 + $0x78] sm:$0xff]   ;;  %vm16090_vm12 = vmor %vm1541_vm10, %vm1542_vm11 }
  0xa8   : >> { %v16069_v43 = vld [vmem:[#allocation3 + $0x8] sm:$0x1]  ;;  %v16073_v49 = vld [vmem:[#allocation3 + $0x10] sm:$0xf]  ;;  %v1569_v50 = vshrl.u32 %v1496_v6, 16  ;;  %v1572_v51 = vshll.u32 %v1496_v6, 16  ;;  %vm16352_vm15 = vmor %vm2316_vm13, %vm2317_vm14 }
  0xa9   : >> { %13839 = vmatpush3.bf16.msra.mxu0 %v15183_v10  ;;  %v1547_v26 = vrot.slane %v1545_v35, 4  ;;  %v1550_v31 = vrot.slane %v1548_v36, 5  ;;  %v16071_v44 = vrot.slane %v1554_v37, 5  ;;  %v1560_v32 = vrot.slane %v1558_v39, 4  ;;  %v1499_v52 = vld [vmem:[#allocation3 + $0x18] sm:$0xf] }
  0xaa   : >> { %13840 = vmatprep.subr.bf16.mxu0 %v15184_v11  ;;  %v1564_v40 = vshll.u32 %v16069_v43, 16  ;;  %v1578_v41 = vshll.u32 %v16073_v49, 16  ;;  %v16078_v53 = vld [vmem:[#allocation3 + $0x1c] sm:$0xf]  ;;  %v16082_v56 = vld [vmem:[#allocation3 + $0x14] sm:$0x1] }
  0xab   : >> { %v1551_v8 = vor.u32 %v1550_v31, %v1547_v26  ;;  %v1561_v46 = vor.u32 %v1560_v32, %v16071_v44  ;;  %v1582_v58 = vshrl.u32 %v16073_v49, 16  ;;  %v1571_v9 = vrot.slane %v1569_v50, 4  ;;  %v15200_v63 = vld [vmem:[#allocation3 + $0x84] sm:$0xff]   ;;  %v15201_v60 = vld [vmem:[#allocation3 + $0x90] sm:$0xff]   ;;  %v15202_v36 = vld [vmem:[#allocation3 + $0x9c] sm:$0xff]   ;;  %s15352_s23 = scalar_lea.vmem (%p1093_p11), %s19412_s14, 4096 }
  0xac   : >> { %v1574_v38 = vrot.slane %v1572_v51, 5  ;;  %v1593_v15 = vshrl.u32 %v1499_v52, 16  ;;  %v1596_v57 = vshll.u32 %v1499_v52, 16  ;;  %v1602_v47 = vshll.u32 %v16078_v53, 16  ;;  %v1502_v4 = vld [vmem:[#allocation3 + $0x24] sm:$0xf]  ;;  %p15353_p12 = scmp.ne.s32.totalorder (%p1093_p11), %s19412_s14, %s15352_s23 }
  0xad   : >> { %13841 = vmatpush3.bf16.msra.mxu0 %v15184_v11  ;;  %v1606_v59 = vshrl.u32 %v16078_v53, 16  ;;  %v1552_v48 = vrot.slane %v1551_v8, 4  ;;  %v1566_v61 = vrot.slane %v1564_v40, 5  ;;  %v16087_v0 = vrot.slane %v1578_v41, 5  ;;  %v16094_v45 = vld [vmem:[#allocation3 + $0x28] sm:$0xf] }
  0xae   : >> { %13842 = vmatprep.subr.bf16.mxu0 %v15185_v12  ;;  %v1588_v2 = vshll.u32 %v16082_v56, 16  ;;  %v1562_v3 = vrot.slane %v1561_v46, 4  ;;  %v1584_v16 = vrot.slane %v1582_v58, 4  ;;  %v1575_v17 = vor.u32 %v1574_v38, %v1571_v9  ;;  %v1505_v24 = vld [vmem:[#allocation3 + $0x30] sm:$0xf]  ;;  %v15204_v37 = vld [vmem:[#allocation3 + $0xa8] sm:$0xff]   ;;  %p15354_p13 = pnand (%p1093_p11), %p15353_p12, %p15496_p5 }
  0xaf   : >> { %v1595_v5 = vrot.slane %v1593_v15, 4  ;;  %v1598_v10 = vrot.slane %v1596_v57, 5  ;;  %v16096_v11 = vrot.slane %v1602_v47, 5  ;;  %v16118_v26 = vld [vmem:[#allocation3 + $0x2c] sm:$0x1]  ;;  %s15425_s25 = smov (%p1093_p11), [#allocation5]  }
  0xb0   : >> { %v1576_v39 = vrot.slane %v1575_v17, 4  ;;  %v16122_v51 = vld [vmem:[#allocation3 + $0x38] sm:$0x1]  ;;  %v1508_v46 = vld [vmem:[#allocation3 + $0x3c] sm:$0xf]  ;;  %p15355_p0 = pneg (%p1093_p11), %p15354_p13 }
  0xb1   : >> { %13843 = vmatpush3.bf16.msra.mxu0 %v15185_v12  ;;  %v1608_v12 = vrot.slane %v1606_v59, 4  ;;  %v1599_v6 = vor.u32 %v1598_v10, %v1595_v5  ;;  %v16126_v57 = vld [vmem:[#allocation3 + $0x40] sm:$0xf] }
  0xb2   : >> { %13876 = vmatprep.subr.bf16.mxu0 %v15188_v13  ;;  %v1678_v5 = vshrl.u32 %v16126_v57, 16 }
  0xb3   : >> { %v1600_v38 = vrot.slane %v1599_v6, 4 }
  0xb4   : >> { %13845 = vmatmul.mubr.msk.bf16.vlgmr.msra.gmra.mrb[0].mxu0 %vm493_vm7, %v15187_v14  ;;  %v16101_v14 = vld [vmem:[#allocation3 + $0x20] sm:$0x1] }
  0xb5   : >> { %13877 = vmatpush3.bf16.msra.mxu0 %v15188_v13  ;;  %13848 = vmatprep.mubr.msk.bf16.mxu0 %vm493_vm7, %v15189_v18  ;;  %v16098_v13 = vld [vmem:[#allocation3 + $0x34] sm:$0xf]  ;;  %v1617_v18 = vshrl.u32 %v1502_v4, 16 }
  0xb6   : >> { %13878 = vmatprep.subr.bf16.mxu0 %v15193_v19  ;;  %v1650_v55 = vshll.u32 %v16098_v13, 16  ;;  %v1654_v35 = vshrl.u32 %v16098_v13, 16 }
  0xb7   : >> { %v1619_v31 = vrot.slane %v1617_v18, 4  ;;  %v16145_v18 = vld [vmem:[#allocation3 + $0x4c] sm:$0xf] }
  0xb8   : >> { %v16124_v41 = vrot.slane %v1650_v55, 5  ;;  %v1656_v52 = vrot.slane %v1654_v35, 4  ;;  %v1698_v6 = vshll.u32 %v16145_v18, 16 }
  0xb9   : >> { %13879 = vmatpush3.bf16.msra.mxu0 %v15193_v19  ;;  %v1620_v19 = vshll.u32 %v1502_v4, 16  ;;  %v1581_v4 = vsel %vm16090_vm12, %v1576_v39, %v16087_v0  ;;  %v1680_v39 = vrot.slane %v1678_v5, 4  ;;  %v1520_v5 = vld [vmem:[#allocation3 + $0x6c] sm:$0xf] }
  0xba   : >> { %13880 = vmatprep.subr.bf16.mxu0 %v15198_v20  ;;  %v1657_v17 = vor.u32 %v1656_v52, %v16124_v41 }
  0xbc   : >> { %13849 = vmatmul.mubr.msk.bf16.gmra.mrb[4].mxu0 %vm493_vm7, %v15190_v21  ;;  %v1630_v21 = vshrl.u32 %v16094_v45, 16 }
  0xbd   : >> { %13852 = vmatprep.mubr.msk.bf16.mxu0 %vm493_vm7, %v15191_v54  ;;  %13881 = vmatpush3.bf16.msra.mxu0 %v15198_v20  ;;  %v1626_v20 = vshll.u32 %v16094_v45, 16  ;;  %v1557_v54 = vsel %vm16090_vm12, %v1552_v48, %v16071_v44  ;;  %v1622_v44 = vrot.slane %v1620_v19, 5  ;;  %v1511_v48 = vld [vmem:[#allocation3 + $0x48] sm:$0xf] }
  0xbe   : >> { %13882 = vmatprep.subr.bf16.mxu0 %v15203_v27  ;;  %v1632_v50 = vrot.slane %v1630_v21, 4  ;;  %v1689_v19 = vshrl.u32 %v1511_v48, 16  ;;  %v15205_v21 = vld [vmem:[#allocation3 + $0xb4] sm:$0xff]  }
  0xbf   : >> { %v16120_v32 = vrot.slane %v1626_v20, 5  ;;  %v1623_v59 = vor.u32 %v1622_v44, %v1619_v31  ;;  %v1692_v20 = vshll.u32 %v1511_v48, 16  ;;  %v1702_v31 = vshrl.u32 %v16145_v18, 16 }
  0xc1   : >> { %13883 = vmatpush3.bf16.msra.mxu0 %v15203_v27  ;;  %v16109_v27 = vrot.slane %v1588_v2, 5  ;;  %v1660_v2 = vshll.u32 %v16122_v51, 16 }
  0xc2   : >> { %13916 = vmatprep.subr.bf16.mxu0 %v16058_v62 }
  0xc3   : >> { %v1662_v55 = vrot.slane %v1660_v2, 5 }
  0xc4   : >> { %13853 = vmatmul.mubr.msk.bf16.gmra.mrb[8].mxu0 %vm493_vm7, %v15192_v28  ;;  %v1641_v28 = vshrl.u32 %v1505_v24, 16 }
  0xc5   : >> { %13856 = vmatprep.mubr.msk.bf16.mxu0 %vm493_vm7, %v15194_v29  ;;  %v1644_v29 = vshll.u32 %v1505_v24, 16  ;;  %v1674_v24 = vshll.u32 %v16126_v57, 16 }
  0xc6   : >> { %v1643_v8 = vrot.slane %v1641_v28, 4 }
  0xc7   : >> { %v1646_v40 = vrot.slane %v1644_v29, 5 }
  0xcc   : >> { %13857 = vmatmul.mubr.msk.bf16.gmra.mrb[12].mxu0 %vm493_vm7, %v15195_v30  ;;  %v1567_v30 = vsel %vm16090_vm12, %v1562_v3, %v1566_v61  ;;  %v1647_v61 = vor.u32 %v1646_v40, %v1643_v8  ;;  %v1665_v3 = vshrl.u32 %v1508_v46, 16  ;;  %v1514_v40 = vld [vmem:[#allocation3 + $0x54] sm:$0xf] }
  0xcd   : >> { %13860 = vmatprep.mubr.msk.bf16.mxu0 %vm493_vm7, %v15196_v33  ;;  %v1585_v33 = vor.u32 %v1584_v16, %v16087_v0  ;;  %v12462_v58 = vcombine.low %v1557_v54, %v1567_v30  ;;  %v1668_v16 = vshll.u32 %v1508_v46, 16  ;;  %v1624_v54 = vrot.slane %v1623_v59, 4  ;;  %v16149_v30 = vld [vmem:[#allocation3 + $0x44] sm:$0x1] }
  0xce   : >> { %v1716_v2 = vshll.u32 %v1514_v40, 16 }
  0xcf   : >> { %v1586_v9 = vrot.slane %v1585_v33, 4  ;;  %v1648_v33 = vrot.slane %v1647_v61, 4  ;;  %v1670_v35 = vrot.slane %v1668_v16, 5  ;;  %v1629_v8 = vsel %vm16090_vm12, %v1624_v54, %v16120_v32 }
  0xd0   : >> { %v1704_v61 = vrot.slane %v1702_v31, 4 }
  0xd1   : >> { %v1591_v10 = vsel %vm16090_vm12, %v1586_v9, %v16109_v27  ;;  %v1667_v27 = vrot.slane %v1665_v3, 4  ;;  %v1653_v46 = vsel %vm16090_vm12, %v1648_v33, %v16124_v41  ;;  %v1713_v41 = vshrl.u32 %v1514_v40, 16  ;;  %v15207_v3 = vld [vmem:[%s16043_s17 + $0x48] sm:$0xff]  }
  0xd2   : >> { %v12463_v44 = vcombine.low %v1581_v4, %v1591_v10 }
  0xd3   : >> { %v1671_v9 = vor.u32 %v1670_v35, %v1667_v27 }
  0xd4   : >> { %13861 = vmatmul.mubr.msk.bf16.gmra.mrb[16].mxu0 %vm493_vm7, %v15197_v42  ;;  %v1609_v42 = vor.u32 %v1608_v12, %v16096_v11  ;;  %v1605_v12 = vsel %vm16090_vm12, %v1600_v38, %v16096_v11  ;;  %v1658_v11 = vrot.slane %v1657_v17, 4  ;;  %v1684_v38 = vshll.u32 %v16149_v30, 16 }
  0xd5   : >> { %13864 = vmatprep.mubr.msk.bf16.mxu0 %vm493_vm7, %v15199_v25  ;;  %v1612_v25 = vshll.u32 %v16101_v14, 16  ;;  %v16181_v10 = vrot.slane %v1671_v9, 4 }
  0xd6   : >> { %v1610_v47 = vrot.slane %v1609_v42, 4  ;;  %v1691_v42 = vrot.slane %v1689_v19, 4 }
  0xd7   : >> { %v1614_v15 = vrot.slane %v1612_v25, 5  ;;  %v1694_v25 = vrot.slane %v1692_v20, 5 }
  0xd9   : >> { %v1615_v0 = vsel %vm16090_vm12, %v1610_v47, %v1614_v15  ;;  %v16168_v15 = vld [vmem:[#allocation3 + $0x58] sm:$0xf]  ;;  %v1517_v47 = vld [vmem:[#allocation3 + $0x60] sm:$0xf]  ;;  %v1695_v48 = vor.u32 %v1694_v25, %v1691_v42  ;;  %v16200_v42 = vld [vmem:[#allocation3 + $0x7c] sm:$0xf] }
  0xda   : >> { %v1722_v16 = vshll.u32 %v16168_v15, 16  ;;  %v1726_v4 = vshrl.u32 %v16168_v15, 16  ;;  %v1737_v17 = vshrl.u32 %v1517_v47, 16 }
  0xdb   : >> { %v16195_v27 = vrot.slane %v1695_v48, 4 }
  0xdc   : >> { %13865 = vmatmul.mubr.msk.bf16.gmra.mrb[20].mxu0 %vm493_vm7, %v15200_v63  ;;  %v1633_v63 = vor.u32 %v1632_v50, %v16120_v32  ;;  %v12464_v50 = vcombine.low %v1605_v12, %v1615_v0  ;;  %v1663_v32 = vsel %vm16090_vm12, %v1658_v11, %v1662_v55  ;;  %v16183_v12 = vrot.slane %v1684_v38, 5  ;;  %v1523_v0 = vld [vmem:[#allocation3 + $0x78] sm:$0xf]  ;;  %v16193_v55 = vld [vmem:[#allocation3 + $0x5c] sm:$0x1] }
  0xdd   : >> { %13868 = vmatprep.mubr.msk.bf16.mxu0 %vm493_vm7, %v15201_v60  ;;  %v1636_v60 = vshll.u32 %v16118_v26, 16  ;;  %v1715_v11 = vrot.slane %v1713_v41, 4  ;;  %v16203_v25 = vrot.slane %v1722_v16, 5  ;;  %v1728_v31 = vrot.slane %v1726_v4, 4  ;;  %v16219_v16 = vld [vmem:[#allocation3 + $0x74] sm:$0x1] }
  0xde   : >> { %v1634_v28 = vrot.slane %v1633_v63, 4  ;;  %v1761_v38 = vshrl.u32 %v1520_v5, 16  ;;  %v1794_v4 = vshll.u32 %v16200_v42, 16 }
  0xdf   : >> { %v1638_v29 = vrot.slane %v1636_v60, 5  ;;  %v16176_v60 = vld [vmem:[#allocation3 + $0x64] sm:$0xf]  ;;  %v1729_v41 = vor.u32 %v1728_v31, %v16203_v25 }
  0xe0   : >> { %v1746_v19 = vshll.u32 %v16176_v60, 16  ;;  %v1750_v20 = vshrl.u32 %v16176_v60, 16  ;;  %v1526_v31 = vld [vmem:[#allocation3 + $0x84] sm:$0xf] }
  0xe1   : >> { %v1639_v52 = vsel %vm16090_vm12, %v1634_v28, %v1638_v29  ;;  %v12466_v28 = vcombine.low %v1653_v46, %v1663_v32 }
  0xe2   : >> { %v12465_v54 = vcombine.low %v1629_v8, %v1639_v52  ;;  %v1739_v8 = vrot.slane %v1737_v17, 4  ;;  %v15208_v52 = vld [vmem:[%s16043_s17 + $0x50] sm:$0xff]   ;;  %v16208_v46 = vrot.slane %v1746_v19, 5  ;;  %v1752_v9 = vrot.slane %v1750_v20, 4  ;;  %v16225_v20 = vld [vmem:[#allocation3 + $0x80] sm:$0x1] }
  0xe3   : >> { %v1798_v17 = vshrl.u32 %v16200_v42, 16 }
  0xe4   : >> { %13869 = vmatmul.mubr.msk.bf16.gmra.mrb[24].mxu0 %vm493_vm7, %v15202_v36  ;;  %v16151_v36 = vld [vmem:[#allocation3 + $0x50] sm:$0x1]  ;;  %v1753_v19 = vor.u32 %v1752_v9, %v16208_v46  ;;  %v16237_v9 = vld [vmem:[#allocation3 + $0x88] sm:$0xf] }
  0xe5   : >> { %13872 = vmatprep.mubr.msk.bf16.mxu0 %vm493_vm7, %v15204_v37  ;;  %v16153_v37 = vrot.slane %v1674_v24, 5  ;;  %v1708_v63 = vshll.u32 %v16151_v36, 16  ;;  %v1740_v24 = vshll.u32 %v1517_v47, 16  ;;  %v1764_v47 = vshll.u32 %v1520_v5, 16 }
  0xe7   : >> { %v1681_v59 = vor.u32 %v1680_v39, %v16153_v37  ;;  %v16191_v33 = vrot.slane %v1708_v63, 5  ;;  %v1718_v39 = vrot.slane %v1716_v2, 5  ;;  %v1742_v40 = vrot.slane %v1740_v24, 5  ;;  %v15209_v24 = vld [vmem:[%s16043_s17 + $0x58] sm:$0xff]  }
  0xe8   : >> { %v1788_v63 = vshll.u32 %v1523_v0, 16 }
  0xe9   : >> { %v16189_v29 = vrot.slane %v1681_v59, 4  ;;  %v1785_v59 = vshrl.u32 %v1523_v0, 16  ;;  %v1743_v5 = vor.u32 %v1742_v40, %v1739_v8 }
  0xeb   : >> { %v1687_v1 = vsel %vm16090_vm12, %v16189_v29, %v16183_v12  ;;  %v1800_v12 = vrot.slane %v1798_v17, 4  ;;  %v1744_v29 = vrot.slane %v1743_v5, 4  ;;  %v16256_v5 = vld [vmem:[#allocation3 + $0x94] sm:$0xf] }
  0xec   : >> { %13873 = vmatmul.mubr.msk.bf16.gmra.mrb[28].mxu0 %vm493_vm7, %v15205_v21  ;;  %v16187_v21 = vld [vmem:[#allocation3 + $0x70] sm:$0xf]  ;;  %19575 = vst [vmem:[#allocation12_spill] sm:$0xff] %v16256_v5 }
  0xed   : >> { %13884 = vmatprep.mubr.msk.bf16.mxu0 %vm493_vm7, %v12462_v58  ;;  %v16173_v58 = vrot.slane %v1698_v6, 5  ;;  %v16198_v6 = vld [vmem:[#allocation3 + $0x68] sm:$0x1]  ;;  %v1770_v32 = vshll.u32 %v16187_v21, 16 }
  0xee   : >> { %v1756_v2 = vshll.u32 %v16198_v6, 16 }
  0xef   : >> { %v1705_v35 = vor.u32 %v1704_v61, %v16173_v58  ;;  %v1732_v61 = vshll.u32 %v16193_v55, 16  ;;  %v16227_v0 = vrot.slane %v1770_v32, 5  ;;  %v16243_v32 = vrot.slane %v1794_v4, 5 }
  0xf1   : >> { %v1706_v48 = vrot.slane %v1705_v35, 4  ;;  %v1734_v40 = vrot.slane %v1732_v61, 5  ;;  %v1812_v61 = vshll.u32 %v1526_v31, 16  ;;  %v1801_v17 = vor.u32 %v1800_v12, %v16243_v32 }
  0xf4   : >> { %13885 = vmatmul.mubr.msk.bf16.vlgmr.msra.gmra.mrb[0].mxu0 %vm493_vm7, %v12463_v44  ;;  %v1774_v44 = vshrl.u32 %v16187_v21, 16 }
  0xf5   : >> { %13917 = vmatpush3.bf16.msra.mxu0 %v16058_v62  ;;  %13888 = vmatprep.mubr.msk.bf16.mxu0 %vm493_vm7, %v12464_v50  ;;  %v1677_v62 = vsel %vm16090_vm12, %v16181_v10, %v16153_v37  ;;  %v1719_v50 = vor.u32 %v1718_v39, %v1715_v11  ;;  %v1763_v37 = vrot.slane %v1761_v38, 4  ;;  %v1766_v10 = vrot.slane %v1764_v47, 5 }
  0xf6   : >> { %13918 = vmatprep.subr.bf16.mxu0 %v15207_v3  ;;  %v1776_v35 = vrot.slane %v1774_v44, 4  ;;  %v1787_v11 = vrot.slane %v1785_v59, 4  ;;  %v1790_v39 = vrot.slane %v1788_v63, 5  ;;  %v1711_v38 = vsel %vm16090_vm12, %v1706_v48, %v16191_v33  ;;  %v16250_v33 = vld [vmem:[%s16043_s17 + $0x60] sm:$0xff]  }
  0xf7   : >> { %v1720_v8 = vrot.slane %v1719_v50, 4  ;;  %v1730_v47 = vrot.slane %v1729_v41, 4  ;;  %v1754_v44 = vrot.slane %v1753_v19, 4  ;;  %v1767_v59 = vor.u32 %v1766_v10, %v1763_v37  ;;  %v1529_v41 = vld [vmem:[#allocation3 + $0x90] sm:$0xf] }
  0xf8   : >> { %v1791_v63 = vor.u32 %v1790_v39, %v1787_v11  ;;  %v1804_v50 = vshll.u32 %v16225_v20, 16  ;;  %v1809_v48 = vshrl.u32 %v1526_v31, 16  ;;  %v12467_v4 = vcombine.low %v1677_v62, %v1687_v1  ;;  %v1532_v1 = vld [vmem:[#allocation3 + $0x9c] sm:$0xf] }
  0xf9   : >> { %13919 = vmatpush3.bf16.msra.mxu0 %v15207_v3  ;;  %v1701_v3 = vsel %vm16090_vm12, %v16195_v27, %v16173_v58  ;;  %v1758_v58 = vrot.slane %v1756_v2, 5  ;;  %v1780_v27 = vshll.u32 %v16219_v16, 16  ;;  %v16253_v2 = vld [vmem:[#allocation3 + $0x8c] sm:$0x1]  ;;  %v1725_v19 = vsel %vm16090_vm12, %v1720_v8, %v16203_v25 }
  0xfa   : >> { %13920 = vmatprep.subr.bf16.mxu0 %v15208_v52  ;;  %19574 = vst [vmem:[#allocation11_spill] sm:$0xff] %v16253_v2  ;;  %v1735_v37 = vsel %vm16090_vm12, %v1730_v47, %v1734_v40  ;;  %v1768_v62 = vrot.slane %v1767_v59, 4  ;;  %v16264_v39 = vrot.slane %v1791_v63, 4  ;;  %v16266_v31 = vrot.slane %v1804_v50, 5 }
  0xfb   : >> { %v1782_v10 = vrot.slane %v1780_v27, 5  ;;  %v1749_v25 = vsel %vm16090_vm12, %v1744_v29, %v16208_v46  ;;  %v1759_v8 = vsel %vm16090_vm12, %v1754_v44, %v1758_v58  ;;  %v1811_v40 = vrot.slane %v1809_v48, 4 }
  0xfc   : >> { %13889 = vmatmul.mubr.msk.bf16.gmra.mrb[4].mxu0 %vm493_vm7, %v12465_v54  ;;  %v1777_v54 = vor.u32 %v1776_v35, %v16227_v0  ;;  %v1822_v35 = vshrl.u32 %v16237_v9, 16  ;;  %v16277_v47 = vrot.slane %v1801_v17, 4  ;;  %v1833_v27 = vshrl.u32 %v1529_v41, 16 }
  0xfd   : >> { %13892 = vmatprep.mubr.msk.bf16.mxu0 %vm493_vm7, %v12466_v28  ;;  %13921 = vmatpush3.bf16.msra.mxu0 %v15208_v52  ;;  %v12468_v28 = vcombine.low %v1701_v3, %v1711_v38  ;;  %v1818_v52 = vshll.u32 %v16237_v9, 16  ;;  %v16268_v3 = vld [vmem:[#allocation3 + $0xa0] sm:$0xf]  ;;  %v1814_v38 = vrot.slane %v1812_v61, 5  ;;  %v1836_v59 = vshll.u32 %v1529_v41, 16 }
  0xfe   : >> { %13922 = vmatprep.subr.bf16.mxu0 %v15209_v24  ;;  %v1778_v11 = vrot.slane %v1777_v54, 4  ;;  %19576 = vst [vmem:[#allocation13_spill] sm:$0xff] %v16268_v3  ;;  %v16281_v54 = vld [vmem:[#allocation3 + $0xac] sm:$0xf]  ;;  %v1824_v63 = vrot.slane %v1822_v35, 4  ;;  %v1828_v46 = vshll.u32 %v16253_v2, 16  ;;  %v12469_v58 = vcombine.low %v1725_v19, %v1735_v37 }
  0xff   : >> { %v16279_v12 = vrot.slane %v1818_v52, 5  ;;  %19577 = vst [vmem:[#allocation14_spill] sm:$0xff] %v16281_v54  ;;  %v1842_v29 = vshll.u32 %v16256_v5, 16  ;;  %v1846_v44 = vshrl.u32 %v16256_v5, 16  ;;  %v12470_v50 = vcombine.low %v1749_v25, %v1759_v8  ;;  %v16294_v52 = vld [vmem:[#allocation3 + $0x98] sm:$0x1] }
 0x100   : >> { %v1857_v48 = vshrl.u32 %v1532_v1, 16  ;;  %v1860_v61 = vshll.u32 %v1532_v1, 16  ;;  %v1783_v41 = vsel %vm16090_vm12, %v1778_v11, %v1782_v10  ;;  %v1870_v17 = vshrl.u32 %v16268_v3, 16  ;;  %v16301_v11 = vld [vmem:[#allocation3 + $0xa4] sm:$0x1] }
 0x101   : >> { %13923 = vmatpush3.bf16.msra.mxu0 %v15209_v24  ;;  %v1535_v24 = vld [vmem:[#allocation3 + $0xa8] sm:$0xf]  ;;  %v1835_v35 = vrot.slane %v1833_v27, 4  ;;  %v1838_v22 = vrot.slane %v1836_v59, 5  ;;  %v16296_v37 = vrot.slane %v1842_v29, 5  ;;  %v1848_v1 = vrot.slane %v1846_v44, 4 }
 0x102   : >> { %13956 = vmatprep.subr.bf16.mxu0 %v16250_v33  ;;  %v1881_v23 = vshrl.u32 %v1535_v24, 16  ;;  %v1884_v19 = vshll.u32 %v1535_v24, 16  ;;  %v1890_v25 = vshll.u32 %v16281_v54, 16  ;;  %v1825_v10 = vor.u32 %v1824_v63, %v16279_v12  ;;  %v16303_v2 = vld [vmem:[#allocation3 + $0xb0] sm:$0x1] }
 0x103   : >> { %v1859_v8 = vrot.slane %v1857_v48, 4  ;;  %19578 = vst [vmem:[#allocation15_spill] sm:$0xff] %v16303_v2  ;;  %v1872_v24 = vrot.slane %v1870_v17, 4  ;;  %v1538_v29 = vld [vmem:[#allocation3 + $0xb4] sm:$0xf] }
 0x104   : >> { %13893 = vmatmul.mubr.msk.bf16.gmra.mrb[8].mxu0 %vm493_vm7, %v12467_v4  ;;  %v1773_v4 = vsel %vm16090_vm12, %v1768_v62, %v16227_v0  ;;  %v1894_v0 = vshrl.u32 %v16281_v54, 16  ;;  %v1815_v62 = vor.u32 %v1814_v38, %v1811_v40  ;;  %v1797_v40 = vsel %vm16090_vm12, %v16264_v39, %v16243_v32  ;;  %v16316_v48 = vld [vmem:[#allocation3 + $0xb8] sm:$0xf] }
 0x105   : >> { %13896 = vmatprep.mubr.msk.bf16.mxu0 %vm493_vm7, %v12468_v28  ;;  %v1866_v28 = vshll.u32 %v16268_v3, 16  ;;  %v1862_v3 = vrot.slane %v1860_v61, 5  ;;  %v12471_v27 = vcombine.low %v1773_v4, %v1783_v41  ;;  %v1807_v38 = vsel %vm16090_vm12, %v16277_v47, %v16266_v31 }
 0x106   : >> { %v1883_v63 = vrot.slane %v1881_v23, 4  ;;  %v1886_v44 = vrot.slane %v1884_v19, 5  ;;  %v1830_v61 = vrot.slane %v1828_v46, 5  ;;  %v1852_v4 = vshll.u32 %v16294_v52, 16  ;;  %v16324_v19 = vld [vmem:[#allocation3 + $0xbc] sm:$0x1] }
 0x107   : >> { %v16305_v59 = vrot.slane %v1866_v28, 5  ;;  %v1896_v41 = vrot.slane %v1894_v0, 4  ;;  %v1816_v28 = vrot.slane %v1815_v62, 4  ;;  %v1826_v17 = vrot.slane %v1825_v10, 4  ;;  %v2252_v0 = vld [vmem:[#allocation3] sm:$0xe] }
 0x108   : >> { %v1839_v54 = vor.u32 %v1838_v22, %v1835_v35  ;;  %v1849_v32 = vor.u32 %v1848_v1, %v16296_v37  ;;  %v1863_v39 = vor.u32 %v1862_v3, %v1859_v8  ;;  %v1876_v23 = vshll.u32 %v16301_v11, 16 }
 0x109   : >> { %v1873_v5 = vor.u32 %v1872_v24, %v16305_v59  ;;  %v1900_v31 = vshll.u32 %v16303_v2, 16  ;;  %v1887_v47 = vor.u32 %v1886_v44, %v1883_v63  ;;  %v1905_v46 = vshrl.u32 %v1538_v29, 16 }
 0x10a   : >> { %v12472_v62 = vcombine.low %v1797_v40, %v1807_v38  ;;  %v1854_v10 = vrot.slane %v1852_v4, 5  ;;  %v1918_v35 = vshrl.u32 %v16316_v48, 16  ;;  %v1821_v3 = vsel %vm16090_vm12, %v1816_v28, %v16279_v12 }
 0x10b   : >> { %v1831_v1 = vsel %vm16090_vm12, %v1826_v17, %v1830_v61  ;;  %v1840_v8 = vrot.slane %v1839_v54, 4  ;;  %v1850_v24 = vrot.slane %v1849_v32, 4  ;;  %v1874_v63 = vrot.slane %v1873_v5, 4 }
 0x10c   : >> { %13897 = vmatmul.mubr.msk.bf16.gmra.mrb[12].mxu0 %vm493_vm7, %v12469_v58  ;;  %v1892_v58 = vrot.slane %v1890_v25, 5  ;;  %v1914_v25 = vshll.u32 %v16316_v48, 16  ;;  %v1878_v44 = vrot.slane %v1876_v23, 5  ;;  %v1902_v2 = vrot.slane %v1900_v31, 5 }
 0x10d   : >> { %13900 = vmatprep.mubr.msk.bf16.mxu0 %vm493_vm7, %v12470_v50  ;;  %v1908_v50 = vshll.u32 %v1538_v29, 16  ;;  %v1864_v29 = vrot.slane %v1863_v39, 4  ;;  %v1888_v40 = vrot.slane %v1887_v47, 4  ;;  %v1907_v38 = vrot.slane %v1905_v46, 4 }
 0x10e   : >> { %v1897_v22 = vor.u32 %v1896_v41, %v1892_v58  ;;  %v1916_v41 = vrot.slane %v1914_v25, 5  ;;  %v1920_v28 = vrot.slane %v1918_v35, 4  ;;  %v1924_v61 = vshll.u32 %v16324_v19, 16 }
 0x10f   : >> { %v1910_v4 = vrot.slane %v1908_v50, 5  ;;  %v12498_v54 = vrot.slane %v2252_v0, 9  ;;  %v1845_v17 = vsel %vm16090_vm12, %v1840_v8, %v16296_v37  ;;  %v1855_v5 = vsel %vm16090_vm12, %v1850_v24, %v1854_v10 }
 0x110   : >> { %v1898_v12 = vrot.slane %v1897_v22, 4  ;;  %v2324_v32 = vrot.slane %v16069_v43, 5  ;;  %v12473_v39 = vcombine.low %v1821_v3, %v1831_v1  ;;  %v12474_v31 = vcombine.low %v1845_v17, %v1855_v5  ;;  %v2256_v5 = vld [vmem:[#allocation3 + $0x30] sm:$0xe] }
 0x111   : >> { %v1911_v23 = vor.u32 %v1910_v4, %v1907_v38  ;;  %v1921_v47 = vor.u32 %v1920_v28, %v1916_v41  ;;  %v1926_v50 = vrot.slane %v1924_v61, 5  ;;  %v1869_v37 = vsel %vm16090_vm12, %v1864_v29, %v16305_v59  ;;  %v2253_v59 = vld [vmem:[#allocation3 + $0xc] sm:$0xe]  ;;  %v2254_v29 = vld [vmem:[#allocation3 + $0x18] sm:$0xe] }
 0x112   : >> { %v1879_v25 = vsel %vm16090_vm12, %v1874_v63, %v1878_v44  ;;  %v19579_v43 = vmov 0  ;;  %v1903_v10 = vsel %vm16090_vm12, %v1898_v12, %v1902_v2  ;;  %v2328_v8 = vrot.slane %v16073_v49, 5  ;;  %v2255_v61 = vld [vmem:[#allocation3 + $0x24] sm:$0xe] }
 0x113   : >> { %v1912_v46 = vrot.slane %v1911_v23, 4  ;;  %v19580_v43 = vsel %vm16352_vm15, 4294967295, %v19579_v43  ;;  %v12475_v22 = vcombine.low %v1869_v37, %v1879_v25  ;;  %v2331_v4 = vrot.slane %v16082_v56, 5 }
 0x114   : >> { %13901 = vmatmul.mubr.msk.bf16.gmra.mrb[16].mxu0 %vm493_vm7, %v12471_v27  ;;  %v2321_v27 = vrot.slane %v16063_v34, 5  ;;  %v1922_v34 = vrot.slane %v1921_v47, 4  ;;  %19581 = vst [vmem:[#allocation16_spill] sm:$0xff] %v19580_v43  ;;  %v2330_v38 = vrot.slane %v2328_v8, 4  ;;  %v2338_v28 = vrot.slane %v16101_v14, 5 }
 0x115   : >> { %13904 = vmatprep.mubr.msk.bf16.mxu0 %vm493_vm7, %v12472_v62  ;;  %v1893_v62 = vsel %vm16090_vm12, %v1888_v40, %v1892_v58  ;;  %v1917_v3 = vsel %vm16090_vm12, %v1912_v46, %v1916_v41  ;;  %v2335_v58 = vrot.slane %v16078_v53, 5  ;;  %v12499_v40 = vrot.slane %v2253_v59, 9 }
 0x116   : >> { %v2323_v0 = vrot.slane %v2321_v27, 4  ;;  %v12476_v35 = vcombine.low %v1893_v62, %v1903_v10  ;;  %v1927_v1 = vsel %vm16090_vm12, %v1922_v34, %v1926_v50  ;;  %v2322_v2 = vsel %vm16352_vm15, %v12498_v54, %v2321_v27  ;;  %v15211_v50 = vld [vmem:[%s16043_s17 + $0x68] sm:$0xff]   ;;  %v2257_v34 = vld [vmem:[#allocation3 + $0x3c] sm:$0xe] }
 0x117   : >> { %v12477_v63 = vcombine.low %v1917_v3, %v1927_v1  ;;  %v12500_v41 = vrot.slane %v2254_v29, 9  ;;  %v2337_v12 = vrot.slane %v2335_v58, 4  ;;  %v2329_v49 = vsel %vm16352_vm15, %v12499_v40, %v2328_v8  ;;  %v2258_v62 = vld [vmem:[#allocation3 + $0x48] sm:$0xe]  ;;  %v2259_v29 = vld [vmem:[#allocation3 + $0x54] sm:$0xe] }
 0x118   : >> { %v2325_v24 = vsel %vm16352_vm15, %v2323_v0, %v2324_v32  ;;  %v2332_v53 = vsel %vm16352_vm15, %v2330_v38, %v2331_v4  ;;  %v2342_v54 = vrot.slane %v16094_v45, 5  ;;  %v2349_v17 = vrot.slane %v16098_v13, 5  ;;  %v15212_v0 = vld [vmem:[%s16043_s17 + $0x70] sm:$0xff]   ;;  %v2260_v40 = vld [vmem:[#allocation3 + $0x60] sm:$0xe] }
 0x119   : >> { %v12523_v44 = vcombine.low %v2322_v2, %v2325_v24  ;;  %v2336_v56 = vsel %vm16352_vm15, %v12500_v41, %v2335_v58  ;;  %v2339_v14 = vsel %vm16352_vm15, %v2337_v12, %v2338_v28  ;;  %v12524_v27 = vcombine.low %v2329_v49, %v2332_v53  ;;  %v15213_v58 = vld [vmem:[%s16043_s17 + $0x78] sm:$0xff]  }
 0x11a   : >> { %v12501_v32 = vrot.slane %v2255_v61, 9  ;;  %v2344_v23 = vrot.slane %v2342_v54, 4  ;;  %v12502_v47 = vrot.slane %v2256_v5, 9  ;;  %v2351_v46 = vrot.slane %v2349_v17, 4 }
 0x11b   : >> { %v2352_v45 = vrot.slane %v16122_v51, 5  ;;  %v2359_v3 = vrot.slane %v16149_v30, 5  ;;  %v2366_v8 = vrot.slane %v16151_v36, 5  ;;  %v2370_v30 = vrot.slane %v16168_v15, 5 }
 0x11c   : >> { %13905 = vmatmul.mubr.msk.bf16.gmra.mrb[20].mxu0 %vm493_vm7, %v12473_v39  ;;  %v12525_v39 = vcombine.low %v2336_v56, %v2339_v14  ;;  %v2343_v13 = vsel %vm16352_vm15, %v12501_v32, %v2342_v54  ;;  %v2350_v25 = vsel %vm16352_vm15, %v12502_v47, %v2349_v17  ;;  %v12505_v41 = vrot.slane %v2259_v29, 9  ;;  %v2261_v56 = vld [vmem:[#allocation3 + $0x6c] sm:$0xe]  ;;  %v2262_v17 = vld [vmem:[#allocation3 + $0x78] sm:$0xe] }
 0x11d   : >> { %13908 = vmatprep.mubr.msk.bf16.mxu0 %vm493_vm7, %v12474_v31  ;;  %v2345_v31 = vrot.slane %v16118_v26, 5  ;;  %v2356_v26 = vrot.slane %v16126_v57, 5  ;;  %v2353_v51 = vsel %vm16352_vm15, %v2351_v46, %v2352_v45  ;;  %v12504_v57 = vrot.slane %v2258_v62, 9 }
 0x11e   : >> { %v2372_v12 = vrot.slane %v2370_v30, 4  ;;  %v2373_v15 = vrot.slane %v16193_v55, 5  ;;  %v12506_v28 = vrot.slane %v2260_v40, 9  ;;  %v2380_v53 = vrot.slane %v16198_v6, 5 }
 0x11f   : >> { %v2346_v37 = vsel %vm16352_vm15, %v2344_v23, %v2345_v31  ;;  %v2358_v59 = vrot.slane %v2356_v26, 4  ;;  %v2384_v54 = vrot.slane %v16187_v21, 5  ;;  %v2391_v14 = vrot.slane %v16200_v42, 5 }
 0x120   : >> { %v12526_v10 = vcombine.low %v2343_v13, %v2346_v37  ;;  %v2374_v61 = vsel %vm16352_vm15, %v2372_v12, %v2373_v15  ;;  %v12507_v32 = vrot.slane %v2261_v56, 9  ;;  %v2387_v23 = vrot.slane %v16219_v16, 5  ;;  %v2263_v13 = vld [vmem:[#allocation3 + $0x84] sm:$0xe] }
 0x121   : >> { %v2360_v2 = vsel %vm16352_vm15, %v2358_v59, %v2359_v3  ;;  %v12508_v31 = vrot.slane %v2262_v17, 9  ;;  %v2393_v47 = vrot.slane %v2391_v14, 4  ;;  %v2394_v21 = vrot.slane %v16225_v20, 5  ;;  %v19582_v20 = vld [vmem:[#allocation12_spill] sm:$0xff]  ;;  %v19584_v3 = vld [vmem:[#allocation13_spill] sm:$0xff] }
 0x122   : >> { %v2385_v46 = vsel %vm16352_vm15, %v12507_v32, %v2384_v54  ;;  %v2398_v45 = vrot.slane %v16237_v9, 5  ;;  %v2405_v37 = vrot.slane %v19582_v20, 5  ;;  %v2408_v9 = vrot.slane %v16294_v52, 5  ;;  %v19585_v52 = vld [vmem:[#allocation14_spill] sm:$0xff]  ;;  %v15214_v17 = vld [vmem:[#allocation3 + $0xc] sm:$0xff]  }
 0x123   : >> { %v2395_v16 = vsel %vm16352_vm15, %v2393_v47, %v2394_v21  ;;  %v15226_v32 = vld [vmem:[%s16043_s17 + $0x90] sm:$0xff]   ;;  %v16495_v47 = vld [vmem:[%s16043_s17 + $0xa0] sm:$0xff]   ;;  %v15220_v21 = vld [vmem:[#allocation3 + $0x48] sm:$0xff]  }
 0x124   : >> { %13909 = vmatmul.mubr.msk.bf16.gmra.mrb[24].mxu0 %vm493_vm7, %v12475_v22  ;;  %v12527_v22 = vcombine.low %v2350_v25, %v2353_v51 }
 0x125   : >> { %13912 = vmatprep.mubr.msk.bf16.mxu0 %vm493_vm7, %v12476_v35  ;;  %v12503_v35 = vrot.slane %v2257_v34, 9  ;;  %v12509_v34 = vrot.slane %v2263_v13, 9 }
 0x12c   : >> { %13913 = vmatmul.mubr.msk.bf16.gmra.mrb[28].mxu0 %vm493_vm7, %v12477_v63  ;;  %v2377_v63 = vrot.slane %v16176_v60, 5  ;;  %v2371_v60 = vsel %vm16352_vm15, %v12505_v41, %v2370_v30 }
 0x12d   : >> { %13924 = vmatprep.mubr.msk.bf16.mxu0 %vm493_vm7, %v12523_v44  ;;  %v16419_v44 = vld [vmem:[%s16043_s17 + $0x80] sm:$0xff]   ;;  %v12530_v5 = vcombine.low %v2371_v60, %v2374_v61 }
 0x12e   : >> { %v2379_v49 = vrot.slane %v2377_v63, 4  ;;  %v2378_v55 = vsel %vm16352_vm15, %v12506_v28, %v2377_v63  ;;  %v2415_v63 = vrot.slane %v16301_v11, 5  ;;  %v2426_v28 = vrot.slane %v16316_v48, 5 }
 0x130   : >> { %v2381_v6 = vsel %vm16352_vm15, %v2379_v49, %v2380_v53  ;;  %v2267_v53 = vld [vmem:[#allocation3 + $0xb4] sm:$0xe] }
 0x134   : >> { %13925 = vmatmul.mubr.msk.bf16.vlgmr.msra.gmra.mrb[0].mxu0 %vm493_vm7, %v12524_v27  ;;  %v12531_v27 = vcombine.low %v2378_v55, %v2381_v6  ;;  %v2428_v55 = vrot.slane %v2426_v28, 4  ;;  %v2429_v6 = vrot.slane %v16324_v19, 5  ;;  %v15217_v19 = vld [vmem:[#allocation3 + $0x24] sm:$0xff]  }
 0x135   : >> { %13957 = vmatpush3.bf16.msra.mxu0 %v16250_v33  ;;  %13928 = vmatprep.mubr.msk.bf16.mxu0 %vm493_vm7, %v12525_v39  ;;  %v2363_v33 = vrot.slane %v16145_v18, 5  ;;  %v2357_v18 = vsel %vm16352_vm15, %v12503_v35, %v2356_v26  ;;  %v2386_v39 = vrot.slane %v2384_v54, 4  ;;  %v2264_v26 = vld [vmem:[#allocation3 + $0x90] sm:$0xe]  ;;  %v2399_v35 = vsel %vm16352_vm15, %v12509_v34, %v2398_v45 }
 0x136   : >> { %13958 = vmatprep.subr.bf16.mxu0 %v15211_v50  ;;  %v12528_v38 = vcombine.low %v2357_v18, %v2360_v2  ;;  %v2419_v18 = vrot.slane %v19585_v52, 5  ;;  %v2266_v2 = vld [vmem:[#allocation3 + $0xa8] sm:$0xe]  ;;  %v12513_v54 = vrot.slane %v2267_v53, 9  ;;  %v2430_v56 = vsel %vm16352_vm15, %v2428_v55, %v2429_v6 }
 0x137   : >> { %v2365_v1 = vrot.slane %v2363_v33, 4  ;;  %v2364_v24 = vsel %vm16352_vm15, %v12504_v57, %v2363_v33  ;;  %v2388_v42 = vsel %vm16352_vm15, %v2386_v39, %v2387_v23  ;;  %v2400_v33 = vrot.slane %v2398_v45, 4  ;;  %v15218_v39 = vld [vmem:[#allocation3 + $0x30] sm:$0xff]   ;;  %v15219_v23 = vld [vmem:[#allocation3 + $0x3c] sm:$0xff]   ;;  %v3143_v45 = vld [vmem:[#allocation3 + $0xc] sm:$0xf] }
 0x138   : >> { %v12532_v25 = vcombine.low %v2385_v46, %v2388_v42  ;;  %v2412_v57 = vrot.slane %v19584_v3, 5  ;;  %v12512_v40 = vrot.slane %v2266_v2, 9  ;;  %v2427_v48 = vsel %vm16352_vm15, %v12513_v54, %v2426_v28  ;;  %v15222_v46 = vld [vmem:[#allocation3 + $0x54] sm:$0xff]   ;;  %v15224_v42 = vld [vmem:[#allocation3 + $0x6c] sm:$0xff]   ;;  %v15229_v2 = vld [vmem:[#allocation3 + $0x9c] sm:$0xff]  }
 0x139   : >> { %13959 = vmatpush3.bf16.msra.mxu0 %v15211_v50  ;;  %v2367_v36 = vsel %vm16352_vm15, %v2365_v1, %v2366_v8  ;;  %v2392_v50 = vsel %vm16352_vm15, %v12508_v31, %v2391_v14  ;;  %v12538_v14 = vcombine.low %v2427_v48, %v2430_v56  ;;  %v15231_v31 = vld [vmem:[%s16043_s17 + $0x98] sm:$0xff]   ;;  %v3195_v13 = vshll.u32 %v3143_v45, 16 }
 0x13a   : >> { %13960 = vmatprep.subr.bf16.mxu0 %v15212_v0  ;;  %v12529_v4 = vcombine.low %v2364_v24, %v2367_v36  ;;  %v12533_v51 = vcombine.low %v2392_v50, %v2395_v16  ;;  %v2414_v29 = vrot.slane %v2412_v57, 4  ;;  %v2420_v49 = vsel %vm16352_vm15, %v12512_v40, %v2419_v18  ;;  %v16500_v50 = vld [vmem:[#allocation3 + $0x10] sm:$0xf]  ;;  %v16517_v40 = vld [vmem:[#allocation3 + $0x20] sm:$0x1] }
 0x13b   : >> { %v3192_v16 = vshrl.u32 %v3143_v45, 16  ;;  %v3201_v20 = vshll.u32 %v16500_v50, 16  ;;  %v3197_v34 = vrot.slane %v3195_v13, 5  ;;  %v3155_v54 = vld [vmem:[#allocation3 + $0x3c] sm:$0xf] }
 0x13c   : >> { %13929 = vmatmul.mubr.msk.bf16.gmra.mrb[4].mxu0 %vm493_vm7, %v12526_v10  ;;  %v12510_v10 = vrot.slane %v2264_v26, 9  ;;  %v2416_v15 = vsel %vm16352_vm15, %v2414_v29, %v2415_v63  ;;  %v15225_v26 = vld [vmem:[#allocation3 + $0x78] sm:$0xff]   ;;  %v3158_v13 = vld [vmem:[#allocation3 + $0x48] sm:$0xf] }
 0x13d   : >> { %13932 = vmatprep.mubr.msk.bf16.mxu0 %vm493_vm7, %v12527_v22  ;;  %13961 = vmatpush3.bf16.msra.mxu0 %v15212_v0  ;;  %v19583_v0 = vld [vmem:[#allocation11_spill] sm:$0xff]  ;;  %v2407_v22 = vrot.slane %v2405_v37, 4 }
 0x13e   : >> { %13962 = vmatprep.subr.bf16.mxu0 %v15213_v58  ;;  %v2401_v62 = vrot.slane %v19583_v0, 5  ;;  %v2406_v1 = vsel %vm16352_vm15, %v12510_v10, %v2405_v37  ;;  %v3205_v37 = vshrl.u32 %v16500_v50, 16  ;;  %v3203_v0 = vrot.slane %v3201_v20, 5  ;;  %v16506_v10 = vld [vmem:[#allocation3 + $0x14] sm:$0x1] }
 0x13f   : >> { %v2409_v8 = vsel %vm16352_vm15, %v2407_v22, %v2408_v9  ;;  %v3211_v3 = vshll.u32 %v16506_v10, 16 }
 0x140   : >> { %v2402_v59 = vsel %vm16352_vm15, %v2400_v33, %v2401_v62  ;;  %v12535_v24 = vcombine.low %v2406_v1, %v2409_v8  ;;  %v3146_v33 = vld [vmem:[#allocation3 + $0x18] sm:$0xf]  ;;  %v3207_v62 = vrot.slane %v3205_v37, 4  ;;  %v3149_v1 = vld [vmem:[#allocation3 + $0x24] sm:$0xf]  ;;  %v15228_v8 = vld [vmem:[#allocation3 + $0x90] sm:$0xff]  }
 0x141   : >> { %13963 = vmatpush3.bf16.msra.mxu0 %v15213_v58  ;;  %v2265_v58 = vld [vmem:[#allocation3 + $0x9c] sm:$0xe]  ;;  %v12534_v30 = vcombine.low %v2399_v35, %v2402_v59  ;;  %v3216_v22 = vshrl.u32 %v3146_v33, 16  ;;  %v3219_v9 = vshll.u32 %v3146_v33, 16  ;;  %v3213_v63 = vrot.slane %v3211_v3, 5 }
 0x142   : >> { %13996 = vmatprep.subr.bf16.mxu0 %v16419_v44  ;;  %v12511_v36 = vrot.slane %v2265_v58, 9  ;;  %v3208_v59 = vor.u32 %v3207_v62, %v3203_v0  ;;  %v16551_v62 = vld [vmem:[#allocation3 + $0x4c] sm:$0xf]  ;;  %v3312_v3 = vshrl.u32 %v3158_v13, 16 }
 0x143   : >> { %v3218_v58 = vrot.slane %v3216_v22, 4  ;;  %v3221_v52 = vrot.slane %v3219_v9, 5  ;;  %v16554_v22 = vld [vmem:[#allocation3 + $0x38] sm:$0x1] }
 0x144   : >> { %13933 = vmatmul.mubr.msk.bf16.gmra.mrb[8].mxu0 %vm493_vm7, %v12528_v38  ;;  %v2421_v38 = vrot.slane %v2419_v18, 4  ;;  %v2413_v12 = vsel %vm16352_vm15, %v12511_v36, %v2412_v57  ;;  %v16511_v57 = vld [vmem:[#allocation3 + $0x1c] sm:$0xf]  ;;  %v16513_v18 = vld [vmem:[#allocation3 + $0x28] sm:$0xf]  ;;  %v3209_v29 = vrot.slane %v3208_v59, 4 }
 0x145   : >> { %13936 = vmatprep.mubr.msk.bf16.mxu0 %vm493_vm7, %v12529_v4  ;;  %v19586_v4 = vld [vmem:[#allocation15_spill] sm:$0xff]  ;;  %v12536_v60 = vcombine.low %v2413_v12, %v2416_v15  ;;  %v3229_v36 = vshrl.u32 %v16511_v57, 16  ;;  %v3253_v12 = vshrl.u32 %v16513_v18, 16  ;;  %v3152_v15 = vld [vmem:[#allocation3 + $0x30] sm:$0xf]  ;;  %v3222_v28 = vor.u32 %v3221_v52, %v3218_v58 }
 0x146   : >> { %v2422_v41 = vrot.slane %v19586_v4, 5  ;;  %v3243_v4 = vshll.u32 %v3149_v1, 16  ;;  %v3214_v55 = vsel %vm16090_vm12, %v3209_v29, %v3213_v63  ;;  %v3264_v56 = vshrl.u32 %v3152_v15, 16  ;;  %v3161_v63 = vld [vmem:[#allocation3 + $0x54] sm:$0xf] }
 0x147   : >> { %v3325_v29 = vshrl.u32 %v16551_v62, 16 }
 0x148   : >> { %v2423_v11 = vsel %vm16352_vm15, %v2421_v38, %v2422_v41  ;;  %v3240_v38 = vshrl.u32 %v3149_v1, 16  ;;  %v3249_v41 = vshll.u32 %v16513_v18, 16  ;;  %v3245_v48 = vrot.slane %v3243_v4, 5 }
 0x149   : >> { %v12537_v61 = vcombine.low %v2420_v49, %v2423_v11  ;;  %v16522_v49 = vld [vmem:[#allocation3 + $0x34] sm:$0xf] }
 0x14a   : >> { %v3242_v6 = vrot.slane %v3240_v38, 4 }
 0x14c   : >> { %13937 = vmatmul.mubr.msk.bf16.gmra.mrb[12].mxu0 %vm493_vm7, %v12530_v5  ;;  %v15215_v5 = vld [vmem:[#allocation3 + $0x18] sm:$0xff]  }
 0x14d   : >> { %13940 = vmatprep.mubr.msk.bf16.mxu0 %vm493_vm7, %v12531_v27  ;;  %v15221_v27 = vld [vmem:[%s16043_s17 + $0x88] sm:$0xff]  }
 0x154   : >> { %13941 = vmatmul.mubr.msk.bf16.gmra.mrb[16].mxu0 %vm493_vm7, %v12532_v25  ;;  %v15227_v25 = vld [vmem:[#allocation3 + $0x84] sm:$0xff]  }
 0x155   : >> { %13944 = vmatprep.mubr.msk.bf16.mxu0 %vm493_vm7, %v12533_v51  ;;  %v3194_v51 = vrot.slane %v3192_v16, 4 }
 0x157   : >> { %v3198_v35 = vor.u32 %v3197_v34, %v3194_v51  ;;  %v3266_v34 = vrot.slane %v3264_v56, 4  ;;  %v16573_v56 = vld [vmem:[#allocation3 + $0x50] sm:$0x1] }
 0x15c   : >> { %13945 = vmatmul.mubr.msk.bf16.gmra.mrb[20].mxu0 %vm493_vm7, %v12534_v30  ;;  %v3199_v30 = vrot.slane %v3198_v35, 4 }
 0x15d   : >> { %13948 = vmatprep.mubr.msk.bf16.mxu0 %vm493_vm7, %v12535_v24  ;;  %v3225_v24 = vshll.u32 %v16511_v57, 16 }
 0x15e   : >> { %v3204_v11 = vsel %vm16090_vm12, %v3199_v30, %v3203_v0 }
 0x15f   : >> { %v16527_v53 = vrot.slane %v3225_v24, 5  ;;  %v12613_v20 = vcombine.low %v3204_v11, %v3214_v55 }
 0x164   : >> { %13949 = vmatmul.mubr.msk.bf16.gmra.mrb[24].mxu0 %vm493_vm7, %v12536_v60  ;;  %v3231_v60 = vrot.slane %v3229_v36, 4  ;;  %v3321_v36 = vshll.u32 %v16551_v62, 16 }
 0x165   : >> { %13952 = vmatprep.mubr.msk.bf16.mxu0 %vm493_vm7, %v12537_v61  ;;  %v3235_v61 = vshll.u32 %v16517_v40, 16 }
 0x167   : >> { %v16545_v37 = vrot.slane %v3235_v61, 5  ;;  %v3314_v61 = vrot.slane %v3312_v3, 4 }
 0x16c   : >> { %13953 = vmatmul.mubr.msk.bf16.gmra.mrb[28].mxu0 %vm493_vm7, %v12538_v14  ;;  %v16532_v14 = vld [vmem:[#allocation3 + $0x40] sm:$0xf] }
 0x16d   : >> { %13964 = vmatprep.mubr.msk.bf16.mxu0 %vm493_vm7, %v15214_v17  ;;  %v16534_v17 = vld [vmem:[#allocation3 + $0x2c] sm:$0x1]  ;;  %v3297_v45 = vshll.u32 %v16532_v14, 16  ;;  %v3301_v16 = vshrl.u32 %v16532_v14, 16 }
 0x16f   : >> { %v16563_v58 = vrot.slane %v3297_v45, 5  ;;  %v3303_v52 = vrot.slane %v3301_v16, 4 }
 0x174   : >> { %13965 = vmatmul.mubr.msk.bf16.vlgmr.msra.gmra.mrb[0].mxu0 %vm493_vm7, %v15215_v5  ;;  %v16536_v5 = vrot.slane %v3249_v41, 5 }
 0x175   : >> { %13997 = vmatpush3.bf16.msra.mxu0 %v16419_v44  ;;  %13968 = vmatprep.mubr.msk.bf16.mxu0 %vm493_vm7, %v15217_v19  ;;  %v15223_v44 = vld [vmem:[#allocation3 + $0x60] sm:$0xff]   ;;  %v3255_v19 = vrot.slane %v3253_v12, 4  ;;  %v3283_v12 = vshll.u32 %v16554_v22, 16 }
 0x176   : >> { %13998 = vmatprep.subr.bf16.mxu0 %v15221_v27 }
 0x177   : >> { %v3256_v51 = vor.u32 %v3255_v19, %v16536_v5  ;;  %v16575_v19 = vrot.slane %v3321_v36, 5 }
 0x179   : >> { %13999 = vmatpush3.bf16.msra.mxu0 %v15221_v27  ;;  %v3267_v27 = vshll.u32 %v3152_v15, 16  ;;  %v3257_v38 = vrot.slane %v3256_v51, 4  ;;  %v16568_v15 = vld [vmem:[#allocation3 + $0x58] sm:$0xf]  ;;  %v16598_v51 = vld [vmem:[#allocation3 + $0x64] sm:$0xf] }
 0x17a   : >> { %14000 = vmatprep.subr.bf16.mxu0 %v15226_v32  ;;  %v3369_v36 = vshll.u32 %v16598_v51, 16 }
 0x17b   : >> { %v3269_v33 = vrot.slane %v3267_v27, 5  ;;  %v3327_v27 = vrot.slane %v3325_v29, 4  ;;  %v3373_v29 = vshrl.u32 %v16598_v51, 16 }
 0x17c   : >> { %13969 = vmatmul.mubr.msk.bf16.gmra.mrb[4].mxu0 %vm493_vm7, %v15218_v39  ;;  %v15230_v39 = vld [vmem:[#allocation3 + $0xa8] sm:$0xff]  }
 0x17d   : >> { %13972 = vmatprep.mubr.msk.bf16.mxu0 %vm493_vm7, %v15219_v23  ;;  %14001 = vmatpush3.bf16.msra.mxu0 %v15226_v32  ;;  %v3273_v32 = vshll.u32 %v16522_v49, 16  ;;  %v3277_v23 = vshrl.u32 %v16522_v49, 16  ;;  %v3270_v41 = vor.u32 %v3269_v33, %v3266_v34  ;;  %v3328_v33 = vor.u32 %v3327_v27, %v16575_v19 }
 0x17e   : >> { %14002 = vmatprep.subr.bf16.mxu0 %v15231_v31 }
 0x17f   : >> { %v16549_v0 = vrot.slane %v3273_v32, 5  ;;  %v3279_v9 = vrot.slane %v3277_v23, 4  ;;  %v3345_v32 = vshll.u32 %v16568_v15, 16 }
 0x181   : >> { %14003 = vmatpush3.bf16.msra.mxu0 %v15231_v31  ;;  %v3288_v31 = vshrl.u32 %v3155_v54, 16  ;;  %v3280_v11 = vor.u32 %v3279_v9, %v16549_v0  ;;  %v16601_v9 = vld [vmem:[#allocation3 + $0x5c] sm:$0x1] }
 0x182   : >> { %14036 = vmatprep.subr.bf16.mxu0 %v16495_v47 }
 0x183   : >> { %v3290_v35 = vrot.slane %v3288_v31, 4 }
 0x184   : >> { %13973 = vmatmul.mubr.msk.bf16.gmra.mrb[8].mxu0 %vm493_vm7, %v15220_v21  ;;  %v3291_v21 = vshll.u32 %v3155_v54, 16  ;;  %v3304_v54 = vor.u32 %v3303_v52, %v16563_v58 }
 0x185   : >> { %13976 = vmatprep.mubr.msk.bf16.mxu0 %vm493_vm7, %v15222_v46  ;;  %v15232_v46 = vld [vmem:[#allocation3 + $0xb4] sm:$0xff]  }
 0x186   : >> { %v3293_v59 = vrot.slane %v3291_v21, 5  ;;  %v16585_v21 = vrot.slane %v3270_v41, 4  ;;  %v3305_v34 = vrot.slane %v3304_v54, 4  ;;  %v3170_v54 = vld [vmem:[#allocation3 + $0x78] sm:$0xf] }
 0x18c   : >> { %13977 = vmatmul.mubr.msk.bf16.gmra.mrb[12].mxu0 %vm493_vm7, %v15223_v44  ;;  %v16540_v44 = vrot.slane %v3222_v28, 4  ;;  %v15233_v28 = vld [vmem:[#allocation3 + $0xc0] sm:$0xff]  }
 0x18d   : >> { %13980 = vmatprep.mubr.msk.bf16.mxu0 %vm493_vm7, %v15224_v42  ;;  %v3232_v42 = vor.u32 %v3231_v60, %v16527_v53 }
 0x18e   : >> { %v3228_v1 = vsel %vm16090_vm12, %v16540_v44, %v16527_v53  ;;  %v3294_v53 = vor.u32 %v3293_v59, %v3290_v35  ;;  %v16603_v35 = vrot.slane %v3345_v32, 5  ;;  %v16636_v32 = vld [vmem:[#allocation3 + $0x7c] sm:$0xf] }
 0x18f   : >> { %v3233_v30 = vrot.slane %v3232_v42, 4  ;;  %v16592_v42 = vrot.slane %v3280_v11, 4  ;;  %v16628_v11 = vrot.slane %v3328_v33, 4 }
 0x190   : >> { %v16594_v45 = vrot.slane %v3294_v53, 4  ;;  %v15235_v53 = vld [vmem:[%s16043_s17 + $0xa8] sm:$0xff]  }
 0x191   : >> { %v3238_v23 = vsel %vm16090_vm12, %v3233_v30, %v16545_v37  ;;  %v3276_v30 = vsel %vm16090_vm12, %v16585_v21, %v16549_v0 }
 0x192   : >> { %v12614_v3 = vcombine.low %v3228_v1, %v3238_v23  ;;  %v16615_v1 = vld [vmem:[#allocation3 + $0x70] sm:$0xf]  ;;  %v3300_v0 = vsel %vm16090_vm12, %v16594_v45, %v16563_v58  ;;  %v16639_v23 = vrot.slane %v3369_v36, 5 }
 0x193   : >> { %v3397_v27 = vshrl.u32 %v16615_v1, 16 }
 0x194   : >> { %13981 = vmatmul.mubr.msk.bf16.gmra.mrb[16].mxu0 %vm493_vm7, %v15225_v26  ;;  %v3246_v26 = vor.u32 %v3245_v48, %v3242_v6  ;;  %v3336_v6 = vshrl.u32 %v3161_v63, 16  ;;  %v3339_v48 = vshll.u32 %v3161_v63, 16  ;;  %v3167_v63 = vld [vmem:[#allocation3 + $0x6c] sm:$0xf] }
 0x195   : >> { %13984 = vmatprep.mubr.msk.bf16.mxu0 %vm493_vm7, %v15227_v25  ;;  %v3259_v25 = vshll.u32 %v16534_v17, 16 }
 0x196   : >> { %v3247_v24 = vrot.slane %v3246_v26, 4  ;;  %v3338_v26 = vrot.slane %v3336_v6, 4  ;;  %v3387_v6 = vshll.u32 %v3167_v63, 16 }
 0x197   : >> { %v3261_v4 = vrot.slane %v3259_v25, 5  ;;  %v3341_v25 = vrot.slane %v3339_v48, 5  ;;  %v3393_v48 = vshll.u32 %v16615_v1, 16 }
 0x198   : >> { %v3252_v31 = vsel %vm16090_vm12, %v3247_v24, %v16536_v5  ;;  %v3331_v5 = vshll.u32 %v16573_v56, 16 }
 0x199   : >> { %v3262_v44 = vsel %vm16090_vm12, %v3257_v38, %v3261_v4  ;;  %v3342_v41 = vor.u32 %v3341_v25, %v3338_v26  ;;  %v3389_v25 = vrot.slane %v3387_v6, 5 }
 0x19a   : >> { %v12615_v52 = vcombine.low %v3252_v31, %v3262_v44  ;;  %v16619_v4 = vrot.slane %v3331_v5, 5  ;;  %v3375_v31 = vrot.slane %v3373_v29, 4  ;;  %v15236_v5 = vld [vmem:[%s16043_s17 + $0xb0] sm:$0xff]  }
 0x19b   : >> { %v3343_v21 = vrot.slane %v3342_v41, 4 }
 0x19c   : >> { %13985 = vmatmul.mubr.msk.bf16.gmra.mrb[20].mxu0 %vm493_vm7, %v15228_v8  ;;  %v16561_v8 = vld [vmem:[#allocation3 + $0x44] sm:$0x1]  ;;  %v3334_v36 = vsel %vm16090_vm12, %v16628_v11, %v16619_v4 }
 0x19d   : >> { %13988 = vmatprep.mubr.msk.bf16.mxu0 %vm493_vm7, %v15229_v2  ;;  %v3315_v2 = vshll.u32 %v3158_v13, 16  ;;  %v3307_v60 = vshll.u32 %v16561_v8, 16  ;;  %v3164_v13 = vld [vmem:[#allocation3 + $0x60] sm:$0xf] }
 0x19f   : >> { %v3317_v55 = vrot.slane %v3315_v2, 5  ;;  %v3309_v16 = vrot.slane %v3307_v60, 5  ;;  %v3360_v2 = vshrl.u32 %v3164_v13, 16 }
 0x1a1   : >> { %v3318_v37 = vor.u32 %v3317_v55, %v3314_v61  ;;  %v16632_v61 = vld [vmem:[#allocation3 + $0x68] sm:$0x1]  ;;  %v3384_v55 = vshrl.u32 %v3167_v63, 16  ;;  %v3362_v58 = vrot.slane %v3360_v2, 4  ;;  %v16650_v2 = vld [vmem:[#allocation3 + $0x74] sm:$0x1]  ;;  %v3348_v63 = vsel %vm16090_vm12, %v3343_v21, %v16603_v35 }
 0x1a2   : >> { %v3379_v44 = vshll.u32 %v16632_v61, 16 }
 0x1a3   : >> { %v16617_v38 = vrot.slane %v3318_v37, 4  ;;  %v3421_v37 = vshrl.u32 %v16636_v32, 16  ;;  %v3386_v26 = vrot.slane %v3384_v55, 4 }
 0x1a4   : >> { %13989 = vmatmul.mubr.msk.bf16.gmra.mrb[24].mxu0 %vm493_vm7, %v15230_v39  ;;  %v3349_v39 = vshrl.u32 %v16568_v15, 16  ;;  %v16660_v29 = vrot.slane %v3379_v44, 5  ;;  %v16683_v44 = vld [vmem:[%s16043_s17 + $0xc0] sm:$0xff]  }
 0x1a5   : >> { %13992 = vmatprep.mubr.msk.bf16.mxu0 %vm493_vm7, %v15232_v46  ;;  %v16587_v46 = vrot.slane %v3283_v12, 5  ;;  %v3355_v12 = vshll.u32 %v16601_v9, 16 }
 0x1a6   : >> { %v3351_v59 = vrot.slane %v3349_v39, 4 }
 0x1a7   : >> { %v3286_v24 = vsel %vm16090_vm12, %v16592_v42, %v16587_v46  ;;  %v3357_v46 = vrot.slane %v3355_v12, 5  ;;  %v3408_v42 = vshrl.u32 %v3170_v54, 16 }
 0x1a8   : >> { %v3352_v60 = vor.u32 %v3351_v59, %v16603_v35  ;;  %v12616_v33 = vcombine.low %v3276_v30, %v3286_v24  ;;  %v3173_v24 = vld [vmem:[#allocation3 + $0x84] sm:$0xf] }
 0x1a9   : >> { %v3410_v30 = vrot.slane %v3408_v42, 4  ;;  %v3432_v55 = vshrl.u32 %v3173_v24, 16  ;;  %v3435_v6 = vshll.u32 %v3173_v24, 16 }
 0x1aa   : >> { %v3353_v45 = vrot.slane %v3352_v60, 4  ;;  %v16674_v60 = vld [vmem:[#allocation3 + $0x80] sm:$0x1] }
 0x1ab   : >> { %v3427_v21 = vshll.u32 %v16674_v60, 16 }
 0x1ac   : >> { %13993 = vmatmul.mubr.msk.bf16.gmra.mrb[28].mxu0 %vm493_vm7, %v15233_v28  ;;  %v3310_v28 = vsel %vm16090_vm12, %v3305_v34, %v3309_v16  ;;  %v3411_v16 = vshll.u32 %v3170_v54, 16  ;;  %v16647_v34 = vrot.slane %v3393_v48, 5  ;;  %v3358_v4 = vsel %vm16090_vm12, %v3353_v45, %v3357_v46  ;;  %v3176_v46 = vld [vmem:[#allocation3 + $0x90] sm:$0xf] }
 0x1ad   : >> { %14004 = vmatprep.mubr.msk.bf16.mxu0 %vm493_vm7, %v12613_v20  ;;  %v3363_v20 = vshll.u32 %v3164_v13, 16  ;;  %v3417_v13 = vshll.u32 %v16636_v32, 16  ;;  %v12617_v59 = vcombine.low %v3300_v0, %v3310_v28  ;;  %v3423_v0 = vrot.slane %v3421_v37, 4  ;;  %v16685_v37 = vld [vmem:[#allocation3 + $0x8c] sm:$0x1] }
 0x1ae   : >> { %v3413_v41 = vrot.slane %v3411_v16, 5  ;;  %v3390_v28 = vor.u32 %v3389_v25, %v3386_v26  ;;  %v12619_v42 = vcombine.low %v3348_v63, %v3358_v4  ;;  %v3434_v25 = vrot.slane %v3432_v55, 4 }
 0x1af   : >> { %v3365_v39 = vrot.slane %v3363_v20, 5  ;;  %v3324_v20 = vsel %vm16090_vm12, %v16617_v38, %v16575_v19  ;;  %v16665_v12 = vrot.slane %v3417_v13, 5  ;;  %v16667_v19 = vld [vmem:[#allocation3 + $0x88] sm:$0xf]  ;;  %v15237_v38 = vld [vmem:[%s16043_s17 + $0xb8] sm:$0xff]  }
 0x1b0   : >> { %v3441_v48 = vshll.u32 %v16667_v19, 16  ;;  %v3391_v45 = vrot.slane %v3390_v28, 4 }
 0x1b4   : >> { %14005 = vmatmul.mubr.msk.bf16.vlgmr.msra.gmra.mrb[0].mxu0 %vm493_vm7, %v12614_v3  ;;  %v3366_v3 = vor.u32 %v3365_v39, %v3362_v58  ;;  %v12618_v58 = vcombine.low %v3324_v20, %v3334_v36  ;;  %v3414_v39 = vor.u32 %v3413_v41, %v3410_v30  ;;  %v3456_v20 = vshrl.u32 %v3176_v46, 16  ;;  %v16697_v30 = vld [vmem:[#allocation3 + $0xa0] sm:$0xf] }
 0x1b5   : >> { %14037 = vmatpush3.bf16.msra.mxu0 %v16495_v47  ;;  %14008 = vmatprep.mubr.msk.bf16.mxu0 %vm493_vm7, %v12615_v52  ;;  %v3399_v47 = vrot.slane %v3397_v27, 4  ;;  %v3376_v52 = vor.u32 %v3375_v31, %v16639_v23  ;;  %v3445_v27 = vshrl.u32 %v16667_v19, 16  ;;  %v3424_v31 = vor.u32 %v3423_v0, %v16665_v12 }
 0x1b6   : >> { %14038 = vmatprep.subr.bf16.mxu0 %v15235_v53  ;;  %v3367_v35 = vrot.slane %v3366_v3, 4  ;;  %v16695_v3 = vrot.slane %v3441_v48, 5  ;;  %v3459_v36 = vshll.u32 %v3176_v46, 16  ;;  %v3415_v24 = vrot.slane %v3414_v39, 4  ;;  %v16718_v39 = vld [vmem:[#allocation3 + $0x98] sm:$0x1] }
 0x1b7   : >> { %v3400_v11 = vor.u32 %v3399_v47, %v16647_v34  ;;  %v3377_v54 = vrot.slane %v3376_v52, 4  ;;  %v3437_v47 = vrot.slane %v3435_v6, 5  ;;  %v3447_v52 = vrot.slane %v3445_v27, 4 }
 0x1b8   : >> { %v3425_v63 = vrot.slane %v3424_v31, 4  ;;  %v3451_v41 = vshll.u32 %v16685_v37, 16  ;;  %v3458_v6 = vrot.slane %v3456_v20, 4  ;;  %v3461_v48 = vrot.slane %v3459_v36, 5 }
 0x1b9   : >> { %14039 = vmatpush3.bf16.msra.mxu0 %v15235_v53  ;;  %v3403_v53 = vshll.u32 %v16650_v2, 16  ;;  %v3401_v16 = vrot.slane %v3400_v11, 4  ;;  %v3382_v26 = vsel %vm16090_vm12, %v3377_v54, %v16660_v29  ;;  %v3396_v11 = vsel %vm16090_vm12, %v3391_v45, %v16647_v34 }
 0x1ba   : >> { %14040 = vmatprep.subr.bf16.mxu0 %v15236_v5  ;;  %v3438_v54 = vor.u32 %v3437_v47, %v3434_v25  ;;  %v3448_v55 = vor.u32 %v3447_v52, %v16695_v3  ;;  %v3420_v27 = vsel %vm16090_vm12, %v3415_v24, %v16665_v12  ;;  %v3462_v20 = vor.u32 %v3461_v48, %v3458_v6  ;;  %v16727_v24 = vld [vmem:[#allocation3 + $0xac] sm:$0xf] }
 0x1bb   : >> { %v3405_v13 = vrot.slane %v3403_v53, 5  ;;  %v3489_v53 = vshll.u32 %v16697_v30, 16  ;;  %v3475_v36 = vshll.u32 %v16718_v39, 16  ;;  %19588 = vst [vmem:[#allocation11_spill] sm:$0xff] %v16727_v24 }
 0x1bc   : >> { %14009 = vmatmul.mubr.msk.bf16.gmra.mrb[4].mxu0 %vm493_vm7, %v12616_v33  ;;  %v16693_v33 = vld [vmem:[#allocation3 + $0x94] sm:$0xf]  ;;  %v3439_v12 = vrot.slane %v3438_v54, 4  ;;  %v3449_v52 = vrot.slane %v3448_v55, 4  ;;  %v3463_v54 = vrot.slane %v3462_v20, 4 }
 0x1bd   : >> { %14012 = vmatprep.mubr.msk.bf16.mxu0 %vm493_vm7, %v12617_v59  ;;  %14041 = vmatpush3.bf16.msra.mxu0 %v15236_v5  ;;  %v3372_v5 = vsel %vm16090_vm12, %v3367_v35, %v16639_v23  ;;  %v3179_v59 = vld [vmem:[#allocation3 + $0x9c] sm:$0xf]  ;;  %v3429_v23 = vrot.slane %v3427_v21, 5  ;;  %v3465_v29 = vshll.u32 %v16693_v33, 16  ;;  %v3469_v0 = vshrl.u32 %v16693_v33, 16 }
 0x1be   : >> { %14042 = vmatprep.subr.bf16.mxu0 %v15237_v38  ;;  %v3480_v4 = vshrl.u32 %v3179_v59, 16  ;;  %v3483_v28 = vshll.u32 %v3179_v59, 16  ;;  %v3493_v35 = vshrl.u32 %v16697_v30, 16  ;;  %v12620_v45 = vcombine.low %v3372_v5, %v3382_v26  ;;  %v3182_v59 = vld [vmem:[#allocation3 + $0xa8] sm:$0xf] }
 0x1bf   : >> { %v3430_v34 = vsel %vm16090_vm12, %v3425_v63, %v3429_v23  ;;  %v16720_v31 = vrot.slane %v3465_v29, 5  ;;  %v3471_v21 = vrot.slane %v3469_v0, 4  ;;  %v16724_v25 = vrot.slane %v3489_v53, 5  ;;  %v3185_v29 = vld [vmem:[#allocation3 + $0xb4] sm:$0xf] }
 0x1c0   : >> { %v3482_v46 = vrot.slane %v3480_v4, 4  ;;  %v3495_v47 = vrot.slane %v3493_v35, 4  ;;  %v12622_v63 = vcombine.low %v3420_v27, %v3430_v34  ;;  %v3504_v26 = vshrl.u32 %v3182_v59, 16  ;;  %v16731_v0 = vld [vmem:[#allocation3 + $0xb8] sm:$0xf] }
 0x1c1   : >> { %14043 = vmatpush3.bf16.msra.mxu0 %v15237_v38  ;;  %v3406_v38 = vsel %vm16090_vm12, %v3401_v16, %v3405_v13  ;;  %v16722_v13 = vld [vmem:[#allocation3 + $0xa4] sm:$0x1]  ;;  %v3472_v23 = vor.u32 %v3471_v21, %v16720_v31  ;;  %v3444_v53 = vsel %vm16090_vm12, %v3439_v12, %v16695_v3  ;;  %v3477_v55 = vrot.slane %v3475_v36, 5 }
 0x1c2   : >> { %14076 = vmatprep.subr.bf16.mxu0 %v16683_v44  ;;  %v12621_v16 = vcombine.low %v3396_v11, %v3406_v38  ;;  %19587 = vst [vmem:[#allocation12_spill] sm:$0xff] %v16722_v13  ;;  %v3499_v5 = vshll.u32 %v16722_v13, 16  ;;  %v3496_v4 = vor.u32 %v3495_v47, %v16724_v25  ;;  %v3513_v11 = vshll.u32 %v16727_v24, 16  ;;  %v16745_v47 = vld [vmem:[#allocation3 + $0xb0] sm:$0x1] }
 0x1c3   : >> { %v3517_v38 = vshrl.u32 %v16727_v24, 16  ;;  %v3528_v6 = vshrl.u32 %v3185_v29, 16  ;;  %v3531_v48 = vshll.u32 %v3185_v29, 16  ;;  %v3537_v27 = vshll.u32 %v16731_v0, 16  ;;  %v16747_v13 = vld [vmem:[#allocation3 + $0xc4] sm:$0xf] }
 0x1c4   : >> { %14013 = vmatmul.mubr.msk.bf16.gmra.mrb[8].mxu0 %vm493_vm7, %v12618_v58  ;;  %v3453_v58 = vrot.slane %v3451_v41, 5  ;;  %v3541_v34 = vshrl.u32 %v16731_v0, 16  ;;  %v3473_v21 = vrot.slane %v3472_v23, 4  ;;  %v3515_v3 = vrot.slane %v3513_v11, 5 }
 0x1c5   : >> { %14016 = vmatprep.mubr.msk.bf16.mxu0 %vm493_vm7, %v12619_v42  ;;  %v3485_v42 = vrot.slane %v3483_v28, 5  ;;  %v3507_v28 = vshll.u32 %v3182_v59, 16  ;;  %v3519_v12 = vrot.slane %v3517_v38, 4  ;;  %v3533_v20 = vrot.slane %v3531_v48, 5 }
 0x1c6   : >> { %v3454_v35 = vsel %vm16090_vm12, %v3449_v52, %v3453_v58  ;;  %v3188_v58 = vld [vmem:[#allocation3 + $0xc0] sm:$0xf]  ;;  %v3530_v52 = vrot.slane %v3528_v6, 4  ;;  %v3539_v36 = vrot.slane %v3537_v27, 5  ;;  %v3543_v29 = vrot.slane %v3541_v34, 4 }
 0x1c7   : >> { %v3486_v41 = vor.u32 %v3485_v42, %v3482_v46  ;;  %v3501_v42 = vrot.slane %v3499_v5, 5  ;;  %v3509_v59 = vrot.slane %v3507_v28, 5  ;;  %v12623_v24 = vcombine.low %v3444_v53, %v3454_v35 }
 0x1c8   : >> { %v3468_v23 = vsel %vm16090_vm12, %v3463_v54, %v16720_v31  ;;  %v3523_v5 = vshll.u32 %v16745_v47, 16  ;;  %v3520_v38 = vor.u32 %v3519_v12, %v3515_v3  ;;  %v3552_v31 = vshrl.u32 %v3188_v58, 16 }
 0x1c9   : >> { %v3487_v46 = vrot.slane %v3486_v41, 4  ;;  %v3478_v41 = vsel %vm16090_vm12, %v3473_v21, %v3477_v55  ;;  %v3555_v53 = vshll.u32 %v3188_v58, 16  ;;  %v3561_v35 = vshll.u32 %v16747_v13, 16  ;;  %v16767_v58 = vld [vmem:[#allocation3 + $0xc8] sm:$0x1] }
 0x1ca   : >> { %v3565_v54 = vshrl.u32 %v16747_v13, 16  ;;  %v3534_v55 = vor.u32 %v3533_v20, %v3530_v52  ;;  %v3544_v6 = vor.u32 %v3543_v29, %v3539_v36  ;;  %v12624_v48 = vcombine.low %v3468_v23, %v3478_v41 }
 0x1cb   : >> { %v3521_v34 = vrot.slane %v3520_v38, 4  ;;  %v3525_v21 = vrot.slane %v3523_v5, 5  ;;  %v3571_v41 = vshll.u32 %v16767_v58, 16 }
 0x1cc   : >> { %14017 = vmatmul.mubr.msk.bf16.gmra.mrb[12].mxu0 %vm493_vm7, %v12620_v45  ;;  %v3506_v45 = vrot.slane %v3504_v26, 4  ;;  %v16755_v26 = vld [vmem:[#allocation3 + $0xbc] sm:$0x1] }
 0x1cd   : >> { %14020 = vmatprep.mubr.msk.bf16.mxu0 %vm493_vm7, %v12621_v16  ;;  %v3497_v16 = vrot.slane %v3496_v4, 4  ;;  %v3492_v4 = vsel %vm16090_vm12, %v3487_v46, %v16724_v25  ;;  %v3554_v46 = vrot.slane %v3552_v31, 4  ;;  %v3526_v20 = vsel %vm16090_vm12, %v3521_v34, %v3525_v21  ;;  %v3901_v34 = vld [vmem:[#allocation3 + $0x24] sm:$0xe] }
 0x1ce   : >> { %v3510_v11 = vor.u32 %v3509_v59, %v3506_v45  ;;  %v3563_v45 = vrot.slane %v3561_v35, 5  ;;  %v3545_v59 = vrot.slane %v3544_v6, 4  ;;  %v3573_v35 = vrot.slane %v3571_v41, 5 }
 0x1cf   : >> { %v3502_v28 = vsel %vm16090_vm12, %v3497_v16, %v3501_v42  ;;  %v3557_v42 = vrot.slane %v3555_v53, 5  ;;  %v3567_v16 = vrot.slane %v3565_v54, 4  ;;  %v3968_v6 = vrot.slane %v16506_v10, 5 }
 0x1d0   : >> { %v12625_v27 = vcombine.low %v3492_v4, %v3502_v28  ;;  %v3511_v25 = vrot.slane %v3510_v11, 4  ;;  %v3965_v28 = vrot.slane %v16500_v50, 5  ;;  %v3899_v11 = vld [vmem:[#allocation3 + $0xc] sm:$0xe]  ;;  %v3979_v10 = vrot.slane %v16513_v18, 5 }
 0x1d1   : >> { %v3558_v29 = vor.u32 %v3557_v42, %v3554_v46  ;;  %v3568_v23 = vor.u32 %v3567_v16, %v3563_v45  ;;  %v12649_v54 = vrot.slane %v3899_v11, 9  ;;  %v3989_v11 = vrot.slane %v16554_v22, 5 }
 0x1d2   : >> { %v3516_v52 = vsel %vm16090_vm12, %v3511_v25, %v3515_v3  ;;  %v3900_v25 = vld [vmem:[#allocation3 + $0x18] sm:$0xe]  ;;  %v4000_v22 = vrot.slane %v16551_v62, 5 }
 0x1d3   : >> { %v12626_v38 = vcombine.low %v3516_v52, %v3526_v20  ;;  %v3559_v31 = vrot.slane %v3558_v29, 4  ;;  %v3569_v53 = vrot.slane %v3568_v23, 4  ;;  %v12650_v42 = vrot.slane %v3900_v25, 9  ;;  %v3903_v23 = vld [vmem:[#allocation3 + $0x3c] sm:$0xe] }
 0x1d4   : >> { %14021 = vmatmul.mubr.msk.bf16.gmra.mrb[16].mxu0 %vm493_vm7, %v12622_v63  ;;  %v3547_v63 = vshll.u32 %v16755_v26, 16  ;;  %v3986_v52 = vrot.slane %v16522_v49, 5  ;;  %v3993_v29 = vrot.slane %v16532_v14, 5  ;;  %v3996_v49 = vrot.slane %v16561_v8, 5 }
 0x1d5   : >> { %14024 = vmatprep.mubr.msk.bf16.mxu0 %vm493_vm7, %v12623_v24  ;;  %v3535_v24 = vrot.slane %v3534_v55, 4  ;;  %v3967_v55 = vrot.slane %v3965_v28, 4  ;;  %v3574_v50 = vsel %vm16090_vm12, %v3569_v53, %v3573_v35 }
 0x1d6   : >> { %v3549_v12 = vrot.slane %v3547_v63, 5  ;;  %v3972_v63 = vrot.slane %v16511_v57, 5  ;;  %v3982_v57 = vrot.slane %v16534_v17, 5  ;;  %v3902_v17 = vld [vmem:[#allocation3 + $0x30] sm:$0xe] }
 0x1d7   : >> { %v3540_v5 = vsel %vm16090_vm12, %v3535_v24, %v3539_v36  ;;  %v3564_v36 = vsel %vm16090_vm12, %v3559_v31, %v3563_v45  ;;  %v3975_v45 = vrot.slane %v16517_v40, 5  ;;  %v12651_v24 = vrot.slane %v3901_v34, 9  ;;  %v15239_v31 = vld [vmem:[%s16043_s17 + $0xc8] sm:$0xff]   ;;  %v15241_v34 = vld [vmem:[%s16043_s17 + $0xd8] sm:$0xff]  }
 0x1d8   : >> { %v3550_v4 = vsel %vm16090_vm12, %v3545_v59, %v3549_v12  ;;  %v12628_v21 = vcombine.low %v3564_v36, %v3574_v50  ;;  %v3974_v16 = vrot.slane %v3972_v63, 4  ;;  %v3981_v59 = vrot.slane %v3979_v10, 4 }
 0x1d9   : >> { %v12627_v3 = vcombine.low %v3540_v5, %v3550_v4  ;;  %v3973_v12 = vsel %vm16352_vm15, %v12650_v42, %v3972_v63  ;;  %v3980_v40 = vsel %vm16352_vm15, %v12651_v24, %v3979_v10  ;;  %v12652_v4 = vrot.slane %v3902_v17, 9  ;;  %v3906_v42 = vld [vmem:[#allocation3 + $0x60] sm:$0xe]  ;;  %v3907_v24 = vld [vmem:[#allocation3 + $0x6c] sm:$0xe] }
 0x1da   : >> { %v3976_v18 = vsel %vm16352_vm15, %v3974_v16, %v3975_v45  ;;  %v3983_v20 = vsel %vm16352_vm15, %v3981_v59, %v3982_v57  ;;  %v4010_v10 = vrot.slane %v16601_v9, 5  ;;  %v4021_v16 = vrot.slane %v16615_v1, 5  ;;  %v16841_v45 = vld [vmem:[%s16043_s17 + $0xe0] sm:$0xff]  }
 0x1db   : >> { %v12675_v41 = vcombine.low %v3973_v12, %v3976_v18  ;;  %v12676_v5 = vcombine.low %v3980_v40, %v3983_v20  ;;  %v3987_v14 = vsel %vm16352_vm15, %v12652_v4, %v3986_v52  ;;  %v12656_v12 = vrot.slane %v3906_v42, 9 }
 0x1dc   : >> { %14025 = vmatmul.mubr.msk.bf16.gmra.mrb[20].mxu0 %vm493_vm7, %v12624_v48  ;;  %v3966_v48 = vsel %vm16352_vm15, %v12649_v54, %v3965_v28  ;;  %v3988_v28 = vrot.slane %v3986_v52, 4  ;;  %v3904_v54 = vld [vmem:[#allocation3 + $0x48] sm:$0xe]  ;;  %v12657_v52 = vrot.slane %v3907_v24, 9  ;;  %v4023_v40 = vrot.slane %v4021_v16, 4 }
 0x1dd   : >> { %14028 = vmatprep.mubr.msk.bf16.mxu0 %vm493_vm7, %v12625_v27  ;;  %v3969_v27 = vsel %vm16352_vm15, %v3967_v55, %v3968_v6  ;;  %v15240_v55 = vld [vmem:[%s16043_s17 + $0xd0] sm:$0xff]   ;;  %v12654_v63 = vrot.slane %v3904_v54, 9  ;;  %v4024_v20 = vrot.slane %v16650_v2, 5 }
 0x1de   : >> { %v12674_v46 = vcombine.low %v3966_v48, %v3969_v27  ;;  %v3990_v53 = vsel %vm16352_vm15, %v3988_v28, %v3989_v11  ;;  %v3905_v6 = vld [vmem:[#allocation3 + $0x54] sm:$0xe]  ;;  %v4002_v48 = vrot.slane %v4000_v22, 4  ;;  %v4003_v27 = vrot.slane %v16573_v56, 5 }
 0x1df   : >> { %v12677_v36 = vcombine.low %v3987_v14, %v3990_v53  ;;  %v12655_v62 = vrot.slane %v3905_v6, 9  ;;  %v4014_v56 = vrot.slane %v16598_v51, 5  ;;  %v4017_v51 = vrot.slane %v16632_v61, 5 }
 0x1e0   : >> { %v4022_v61 = vsel %vm16352_vm15, %v12657_v52, %v4021_v16  ;;  %v4025_v2 = vsel %vm16352_vm15, %v4023_v40, %v4024_v20  ;;  %v4042_v53 = vrot.slane %v16693_v33, 5  ;;  %v4059_v16 = vrot.slane %v16745_v47, 5  ;;  %v3914_v52 = vld [vmem:[#allocation3 + $0xc0] sm:$0xe] }
 0x1e1   : >> { %v4016_v18 = vrot.slane %v4014_v56, 4  ;;  %v4015_v1 = vsel %vm16352_vm15, %v12656_v12, %v4014_v56  ;;  %v12682_v28 = vcombine.low %v4022_v61, %v4025_v2  ;;  %v12664_v20 = vrot.slane %v3914_v52, 9  ;;  %v15242_v2 = vld [vmem:[#allocation3 + $0x18] sm:$0xff]  }
 0x1e2   : >> { %v4044_v6 = vrot.slane %v4042_v53, 4 }
 0x1e3   : >> { %v4018_v17 = vsel %vm16352_vm15, %v4016_v18, %v4017_v51  ;;  %v4070_v18 = vrot.slane %v16747_v13, 5 }
 0x1e4   : >> { %14029 = vmatmul.mubr.msk.bf16.gmra.mrb[24].mxu0 %vm493_vm7, %v12626_v38  ;;  %v12653_v38 = vrot.slane %v3903_v23, 9  ;;  %v3908_v23 = vld [vmem:[#allocation3 + $0x78] sm:$0xe]  ;;  %v12681_v4 = vcombine.low %v4015_v1, %v4018_v17  ;;  %v4073_v17 = vrot.slane %v16767_v58, 5  ;;  %v15245_v58 = vld [vmem:[#allocation3 + $0x30] sm:$0xff]  }
 0x1e5   : >> { %14032 = vmatprep.mubr.msk.bf16.mxu0 %vm493_vm7, %v12627_v3  ;;  %v3995_v3 = vrot.slane %v3993_v29, 4  ;;  %v12658_v11 = vrot.slane %v3908_v23, 9  ;;  %v4072_v1 = vrot.slane %v4070_v18, 4  ;;  %v4071_v13 = vsel %vm16352_vm15, %v12664_v20, %v4070_v18  ;;  %v15243_v23 = vld [vmem:[#allocation3 + $0x24] sm:$0xff]  }
 0x1e6   : >> { %v3994_v35 = vsel %vm16352_vm15, %v12653_v38, %v3993_v29  ;;  %v4028_v29 = vrot.slane %v16636_v32, 5  ;;  %v4038_v32 = vrot.slane %v16685_v37, 5  ;;  %v4049_v37 = vrot.slane %v16697_v30, 5 }
 0x1e7   : >> { %v3997_v8 = vsel %vm16352_vm15, %v3995_v3, %v3996_v49  ;;  %v4031_v3 = vrot.slane %v16674_v60, 5 }
 0x1e8   : >> { %v12678_v50 = vcombine.low %v3994_v35, %v3997_v8  ;;  %v4030_v38 = vrot.slane %v4028_v29, 4  ;;  %v4029_v14 = vsel %vm16352_vm15, %v12658_v11, %v4028_v29  ;;  %v3910_v35 = vld [vmem:[#allocation3 + $0x90] sm:$0xe]  ;;  %v3911_v8 = vld [vmem:[#allocation3 + $0x9c] sm:$0xe]  ;;  %v4074_v29 = vsel %vm16352_vm15, %v4072_v1, %v4073_v17 }
 0x1e9   : >> { %v12689_v61 = vcombine.low %v4071_v13, %v4074_v29  ;;  %v15259_v11 = vld [vmem:[%s16043_s17 + $0xf8] sm:$0xff]   ;;  %v4800_v13 = vld [vmem:[#allocation3 + $0x48] sm:$0xf]  ;;  %v16955_v29 = vld [vmem:[#allocation3 + $0x4c] sm:$0xf] }
 0x1ec   : >> { %14033 = vmatmul.mubr.msk.bf16.gmra.mrb[28].mxu0 %vm493_vm7, %v12628_v21  ;;  %v4004_v21 = vsel %vm16352_vm15, %v4002_v48, %v4003_v27  ;;  %v19589_v48 = vld [vmem:[#allocation12_spill] sm:$0xff] }
 0x1ed   : >> { %14044 = vmatprep.mubr.msk.bf16.mxu0 %vm493_vm7, %v12674_v46  ;;  %v4052_v33 = vrot.slane %v19589_v48, 5 }
 0x1f4   : >> { %14045 = vmatmul.mubr.msk.bf16.vlgmr.msra.gmra.mrb[0].mxu0 %vm493_vm7, %v12675_v41  ;;  %v4035_v41 = vrot.slane %v16667_v19, 5  ;;  %v4032_v19 = vsel %vm16352_vm15, %v4030_v38, %v4031_v3  ;;  %v16917_v38 = vld [vmem:[%s16043_s17 + $0x100] sm:$0xff]   ;;  %v15248_v3 = vld [vmem:[#allocation3 + $0x54] sm:$0xff]  }
 0x1f5   : >> { %14077 = vmatpush3.bf16.msra.mxu0 %v16683_v44  ;;  %14048 = vmatprep.mubr.msk.bf16.mxu0 %vm493_vm7, %v12676_v5  ;;  %v4007_v44 = vrot.slane %v16568_v15, 5  ;;  %v4001_v15 = vsel %vm16352_vm15, %v12654_v63, %v4000_v22  ;;  %v3909_v5 = vld [vmem:[#allocation3 + $0x84] sm:$0xe]  ;;  %v12683_v54 = vcombine.low %v4029_v14, %v4032_v19  ;;  %v4051_v63 = vrot.slane %v4049_v37, 4  ;;  %v16924_v14 = vld [vmem:[#allocation3 + $0x1c] sm:$0xf] }
 0x1f6   : >> { %14078 = vmatprep.subr.bf16.mxu0 %v15239_v31  ;;  %v12679_v59 = vcombine.low %v4001_v15, %v4004_v21  ;;  %v12659_v49 = vrot.slane %v3909_v5, 9  ;;  %v4063_v15 = vrot.slane %v16731_v0, 5  ;;  %v3913_v21 = vld [vmem:[#allocation3 + $0xb4] sm:$0xe] }
 0x1f7   : >> { %v4009_v25 = vrot.slane %v4007_v44, 4  ;;  %v4008_v46 = vsel %vm16352_vm15, %v12655_v62, %v4007_v44  ;;  %v19590_v62 = vld [vmem:[#allocation11_spill] sm:$0xff]  ;;  %v12663_v24 = vrot.slane %v3913_v21, 9  ;;  %v15254_v5 = vld [vmem:[%s16043_s17 + $0xf0] sm:$0xff]   ;;  %v15256_v21 = vld [vmem:[#allocation3 + $0x9c] sm:$0xff]  }
 0x1f8   : >> { %v4036_v22 = vsel %vm16352_vm15, %v12659_v49, %v4035_v41  ;;  %v15250_v49 = vld [vmem:[#allocation3 + $0x60] sm:$0xff]  }
 0x1f9   : >> { %14079 = vmatpush3.bf16.msra.mxu0 %v15239_v31  ;;  %v4011_v9 = vsel %vm16352_vm15, %v4009_v25, %v4010_v10  ;;  %v4037_v31 = vrot.slane %v4035_v41, 4  ;;  %v4056_v25 = vrot.slane %v19590_v62, 5  ;;  %v4064_v51 = vsel %vm16352_vm15, %v12663_v24, %v4063_v15  ;;  %v15249_v41 = vld [vmem:[%s16043_s17 + $0xe8] sm:$0xff]   ;;  %v16938_v62 = vld [vmem:[#allocation3 + $0x34] sm:$0xf] }
 0x1fa   : >> { %14080 = vmatprep.subr.bf16.mxu0 %v15240_v55  ;;  %v12680_v57 = vcombine.low %v4008_v46, %v4011_v9  ;;  %v15257_v24 = vld [vmem:[#allocation3 + $0xa8] sm:$0xff]   ;;  %v4898_v18 = vshrl.u32 %v16938_v62, 16 }
 0x1fb   : >> { %v4039_v60 = vsel %vm16352_vm15, %v4037_v31, %v4038_v32  ;;  %v4058_v42 = vrot.slane %v4056_v25, 4  ;;  %v15252_v31 = vld [vmem:[#allocation3 + $0x78] sm:$0xff]  }
 0x1fc   : >> { %14049 = vmatmul.mubr.msk.bf16.gmra.mrb[4].mxu0 %vm493_vm7, %v12677_v36  ;;  %v12684_v44 = vcombine.low %v4036_v22, %v4039_v60  ;;  %v4045_v36 = vrot.slane %v16718_v39, 5  ;;  %v4053_v39 = vsel %vm16352_vm15, %v4051_v63, %v4052_v33  ;;  %v4788_v32 = vld [vmem:[#allocation3 + $0x18] sm:$0xf]  ;;  %v15253_v22 = vld [vmem:[#allocation3 + $0x84] sm:$0xff]   ;;  %v4846_v60 = vshll.u32 %v16924_v14, 16 }
 0x1fd   : >> { %14052 = vmatprep.mubr.msk.bf16.mxu0 %vm493_vm7, %v12678_v50  ;;  %14081 = vmatpush3.bf16.msra.mxu0 %v15240_v55  ;;  %v12660_v55 = vrot.slane %v3910_v35, 9  ;;  %v12661_v50 = vrot.slane %v3911_v8, 9  ;;  %v4060_v0 = vsel %vm16352_vm15, %v4058_v42, %v4059_v16  ;;  %v4837_v19 = vshrl.u32 %v4788_v32, 16  ;;  %v15255_v8 = vld [vmem:[#allocation3 + $0x90] sm:$0xff]  }
 0x1fe   : >> { %14082 = vmatprep.subr.bf16.mxu0 %v15241_v34  ;;  %v4046_v30 = vsel %vm16352_vm15, %v4044_v6, %v4045_v36  ;;  %v4850_v35 = vshrl.u32 %v16924_v14, 16  ;;  %v16931_v63 = vrot.slane %v4846_v60, 5  ;;  %v4946_v60 = vshrl.u32 %v16955_v29, 16 }
 0x1ff   : >> { %v4043_v27 = vsel %vm16352_vm15, %v12660_v55, %v4042_v53  ;;  %v4050_v10 = vsel %vm16352_vm15, %v12661_v50, %v4049_v37  ;;  %v4840_v53 = vshll.u32 %v4788_v32, 16  ;;  %v4791_v37 = vld [vmem:[#allocation3 + $0x24] sm:$0xf]  ;;  %v4794_v50 = vld [vmem:[#allocation3 + $0x30] sm:$0xf] }
 0x200   : >> { %v12685_v56 = vcombine.low %v4043_v27, %v4046_v30  ;;  %v12686_v46 = vcombine.low %v4050_v10, %v4053_v39  ;;  %v4861_v6 = vshrl.u32 %v4791_v37, 16  ;;  %v4864_v36 = vshll.u32 %v4791_v37, 16  ;;  %v16936_v30 = vld [vmem:[#allocation3 + $0x20] sm:$0x1] }
 0x201   : >> { %14083 = vmatpush3.bf16.msra.mxu0 %v15241_v34  ;;  %v3912_v34 = vld [vmem:[#allocation3 + $0xa8] sm:$0xe]  ;;  %v4842_v55 = vrot.slane %v4840_v53, 5  ;;  %v4852_v48 = vrot.slane %v4850_v35, 4  ;;  %v4888_v10 = vshll.u32 %v4794_v50, 16  ;;  %v15260_v32 = vld [vmem:[#allocation3 + $0xc0] sm:$0xff]  }
 0x202   : >> { %14116 = vmatprep.subr.bf16.mxu0 %v16841_v45  ;;  %v12662_v9 = vrot.slane %v3912_v34, 9  ;;  %v4863_v34 = vrot.slane %v4861_v6, 4  ;;  %v4803_v35 = vld [vmem:[#allocation3 + $0x54] sm:$0xf] }
 0x204   : >> { %14053 = vmatmul.mubr.msk.bf16.gmra.mrb[8].mxu0 %vm493_vm7, %v12679_v59  ;;  %v4065_v59 = vrot.slane %v4063_v15, 4  ;;  %v4057_v12 = vsel %vm16352_vm15, %v12662_v9, %v4056_v25  ;;  %v4885_v25 = vshrl.u32 %v4794_v50, 16  ;;  %v4866_v15 = vrot.slane %v4864_v36, 5  ;;  %v16942_v9 = vld [vmem:[#allocation3 + $0x2c] sm:$0x1] }
 0x205   : >> { %14056 = vmatprep.mubr.msk.bf16.mxu0 %vm493_vm7, %v12680_v57  ;;  %v4066_v57 = vrot.slane %v16755_v26, 5  ;;  %v12687_v26 = vcombine.low %v4057_v12, %v4060_v0  ;;  %v4890_v0 = vrot.slane %v4888_v10, 5 }
 0x206   : >> { %v4887_v12 = vrot.slane %v4885_v25, 4  ;;  %v4867_v52 = vor.u32 %v4866_v15, %v4863_v34  ;;  %v4957_v34 = vshrl.u32 %v4803_v35, 16 }
 0x207   : >> { %v4067_v47 = vsel %vm16352_vm15, %v4065_v59, %v4066_v57  ;;  %v4894_v59 = vshll.u32 %v16938_v62, 16  ;;  %v4797_v57 = vld [vmem:[#allocation3 + $0x3c] sm:$0xf] }
 0x208   : >> { %v12688_v40 = vcombine.low %v4064_v51, %v4067_v47  ;;  %v16948_v51 = vld [vmem:[#allocation3 + $0x40] sm:$0xf] }
 0x20c   : >> { %14057 = vmatmul.mubr.msk.bf16.gmra.mrb[12].mxu0 %vm493_vm7, %v12681_v4  ;;  %v15246_v4 = vld [vmem:[#allocation3 + $0x3c] sm:$0xff]  }
 0x20d   : >> { %14060 = vmatprep.mubr.msk.bf16.mxu0 %vm493_vm7, %v12682_v28  ;;  %v15247_v28 = vld [vmem:[#allocation3 + $0x48] sm:$0xff]  }
 0x214   : >> { %14061 = vmatmul.mubr.msk.bf16.gmra.mrb[16].mxu0 %vm493_vm7, %v12683_v54  ;;  %v16928_v54 = vld [vmem:[#allocation3 + $0x28] sm:$0xf] }
 0x215   : >> { %14064 = vmatprep.mubr.msk.bf16.mxu0 %vm493_vm7, %v12684_v44  ;;  %v4839_v44 = vrot.slane %v4837_v19, 4  ;;  %v4870_v33 = vshll.u32 %v16928_v54, 16  ;;  %v4874_v27 = vshrl.u32 %v16928_v54, 16 }
 0x217   : >> { %v4843_v39 = vor.u32 %v4842_v55, %v4839_v44  ;;  %v16944_v42 = vrot.slane %v4870_v33, 5  ;;  %v4876_v16 = vrot.slane %v4874_v27, 4  ;;  %v16985_v33 = vld [vmem:[#allocation3 + $0x58] sm:$0xf]  ;;  %v16987_v27 = vld [vmem:[#allocation3 + $0x50] sm:$0x1] }
 0x219   : >> { %v4844_v47 = vrot.slane %v4843_v39, 4  ;;  %v4877_v17 = vor.u32 %v4876_v16, %v16944_v42  ;;  %v16996_v16 = vld [vmem:[#allocation3 + $0xd0] sm:$0xf] }
 0x21b   : >> { %v4849_v19 = vsel %vm16090_vm12, %v4844_v47, %v16931_v63  ;;  %v16974_v37 = vrot.slane %v4877_v17, 4  ;;  %v4952_v17 = vshll.u32 %v16987_v27, 16 }
 0x21c   : >> { %14065 = vmatmul.mubr.msk.bf16.gmra.mrb[20].mxu0 %vm493_vm7, %v12685_v56  ;;  %v4853_v56 = vor.u32 %v4852_v48, %v16931_v63 }
 0x21d   : >> { %14068 = vmatprep.mubr.msk.bf16.mxu0 %vm493_vm7, %v12686_v46  ;;  %v4856_v46 = vshll.u32 %v16936_v30, 16 }
 0x21e   : >> { %v4854_v20 = vrot.slane %v4853_v56, 4  ;;  %v4948_v56 = vrot.slane %v4946_v60, 4  ;;  %v4827_v60 = vld [vmem:[#allocation3 + $0xb4] sm:$0xf] }
 0x21f   : >> { %v4858_v1 = vrot.slane %v4856_v46, 5  ;;  %v4960_v46 = vshll.u32 %v4803_v35, 16 }
 0x221   : >> { %v4859_v53 = vsel %vm16090_vm12, %v4854_v20, %v4858_v1 }
 0x222   : >> { %v12764_v15 = vcombine.low %v4849_v19, %v4859_v53 }
 0x224   : >> { %14069 = vmatmul.mubr.msk.bf16.gmra.mrb[24].mxu0 %vm493_vm7, %v12687_v26  ;;  %v4880_v26 = vshll.u32 %v16942_v9, 16 }
 0x225   : >> { %14072 = vmatprep.mubr.msk.bf16.mxu0 %vm493_vm7, %v12688_v40  ;;  %v16951_v40 = vld [vmem:[#allocation3 + $0x38] sm:$0x1] }
 0x22c   : >> { %14073 = vmatmul.mubr.msk.bf16.gmra.mrb[28].mxu0 %vm493_vm7, %v12689_v61  ;;  %v16958_v61 = vrot.slane %v4894_v59, 5 }
 0x22d   : >> { %14084 = vmatprep.mubr.msk.bf16.mxu0 %vm493_vm7, %v15242_v2  ;;  %v4909_v2 = vshrl.u32 %v4797_v57, 16 }
 0x22f   : >> { %v4911_v44 = vrot.slane %v4909_v2, 4  ;;  %v17008_v2 = vld [vmem:[#allocation3 + $0x64] sm:$0xf] }
 0x230   : >> { %v4990_v19 = vshll.u32 %v17008_v2, 16  ;;  %v4994_v53 = vshrl.u32 %v17008_v2, 16 }
 0x234   : >> { %14085 = vmatmul.mubr.msk.bf16.vlgmr.msra.gmra.mrb[0].mxu0 %vm493_vm7, %v15243_v23  ;;  %v4912_v23 = vshll.u32 %v4797_v57, 16  ;;  %v4966_v57 = vshll.u32 %v16985_v33, 16 }
 0x235   : >> { %14117 = vmatpush3.bf16.msra.mxu0 %v16841_v45  ;;  %14088 = vmatprep.mubr.msk.bf16.mxu0 %vm493_vm7, %v15245_v58  ;;  %v15251_v45 = vld [vmem:[#allocation3 + $0x6c] sm:$0xff]   ;;  %v4918_v58 = vshll.u32 %v16948_v51, 16 }
 0x236   : >> { %14118 = vmatprep.subr.bf16.mxu0 %v15249_v41  ;;  %v4914_v55 = vrot.slane %v4912_v23, 5 }
 0x237   : >> { %v16978_v6 = vrot.slane %v4918_v58, 5  ;;  %v15261_v58 = vld [vmem:[#allocation3 + $0xcc] sm:$0xff]  }
 0x239   : >> { %14119 = vmatpush3.bf16.msra.mxu0 %v15249_v41  ;;  %v4891_v41 = vor.u32 %v4890_v0, %v4887_v12  ;;  %v5559_v12 = vld [vmem:[#allocation3 + $0xcc] sm:$0xe]  ;;  %v5715_v0 = vrot.slane %v16996_v16, 5 }
 0x23a   : >> { %14120 = vmatprep.subr.bf16.mxu0 %v15254_v5  ;;  %v12815_v20 = vrot.slane %v5559_v12, 9  ;;  %v17052_v12 = vld [vmem:[#allocation3 + $0x68] sm:$0x1] }
 0x23b   : >> { %v16980_v36 = vrot.slane %v4891_v41, 4  ;;  %v5717_v23 = vrot.slane %v5715_v0, 4 }
 0x23c   : >> { %14089 = vmatmul.mubr.msk.bf16.gmra.mrb[4].mxu0 %vm493_vm7, %v15246_v4  ;;  %v4904_v4 = vshll.u32 %v16951_v40, 16 }
 0x23d   : >> { %14092 = vmatprep.mubr.msk.bf16.mxu0 %vm493_vm7, %v15247_v28  ;;  %14121 = vmatpush3.bf16.msra.mxu0 %v15254_v5  ;;  %v4900_v5 = vrot.slane %v4898_v18, 4  ;;  %v4922_v28 = vshrl.u32 %v16948_v51, 16 }
 0x23e   : >> { %14122 = vmatprep.subr.bf16.mxu0 %v15259_v11  ;;  %v16983_v63 = vrot.slane %v4904_v4, 5  ;;  %v4962_v4 = vrot.slane %v4960_v46, 5  ;;  %v17049_v46 = vld [vmem:[#allocation3 + $0x70] sm:$0xf] }
 0x23f   : >> { %v4901_v50 = vor.u32 %v4900_v5, %v16958_v61  ;;  %v4924_v48 = vrot.slane %v4922_v28, 4  ;;  %v17013_v28 = vsel %vm16352_vm15, %v12815_v20, %v5715_v0  ;;  %v4996_v0 = vrot.slane %v4994_v53, 4 }
 0x240   : >> { %19591 = vst [vmem:[#allocation13_spill] sm:$0xff] %v17013_v28  ;;  %v5014_v20 = vshll.u32 %v17049_v46, 16  ;;  %v17192_v28 = vld [vmem:[#allocation3 + $0xbc] sm:$0x1] }
 0x241   : >> { %14123 = vmatpush3.bf16.msra.mxu0 %v15259_v11  ;;  %v16963_v11 = vrot.slane %v4867_v52, 4  ;;  %v4902_v47 = vrot.slane %v4901_v50, 4  ;;  %v4915_v52 = vor.u32 %v4914_v55, %v4911_v44  ;;  %v4925_v1 = vor.u32 %v4924_v48, %v16978_v6 }
 0x242   : >> { %14156 = vmatprep.subr.bf16.mxu0 %v16917_v38  ;;  %v4897_v44 = vsel %vm16090_vm12, %v16980_v36, %v16958_v61 }
 0x243   : >> { %v17035_v55 = vrot.slane %v4915_v52, 4  ;;  %v4907_v48 = vsel %vm16090_vm12, %v4902_v47, %v16983_v63  ;;  %v17054_v63 = vrot.slane %v4990_v19, 5  ;;  %v4815_v19 = vld [vmem:[#allocation3 + $0x84] sm:$0xf] }
 0x244   : >> { %14093 = vmatmul.mubr.msk.bf16.gmra.mrb[8].mxu0 %vm493_vm7, %v15248_v3  ;;  %v4933_v3 = vshrl.u32 %v4800_v13, 16  ;;  %v12766_v47 = vcombine.low %v4897_v44, %v4907_v48 }
 0x245   : >> { %14096 = vmatprep.mubr.msk.bf16.mxu0 %vm493_vm7, %v15250_v49  ;;  %v4936_v49 = vshll.u32 %v4800_v13, 16  ;;  %v4959_v13 = vrot.slane %v4957_v34, 4 }
 0x246   : >> { %v4935_v25 = vrot.slane %v4933_v3, 4 }
 0x247   : >> { %v4938_v10 = vrot.slane %v4936_v49, 5  ;;  %v4963_v34 = vor.u32 %v4962_v4, %v4959_v13 }
 0x249   : >> { %v4939_v41 = vor.u32 %v4938_v10, %v4935_v25  ;;  %v17043_v25 = vrot.slane %v4925_v1, 4  ;;  %v5018_v1 = vshrl.u32 %v17049_v46, 16  ;;  %v17068_v13 = vrot.slane %v4963_v34, 4 }
 0x24b   : >> { %v17045_v10 = vrot.slane %v4939_v41, 4  ;;  %v5000_v41 = vshll.u32 %v17052_v12, 16 }
 0x24c   : >> { %14097 = vmatmul.mubr.msk.bf16.gmra.mrb[12].mxu0 %vm493_vm7, %v15251_v45  ;;  %v4942_v45 = vshll.u32 %v16955_v29, 16 }
 0x24d   : >> { %14100 = vmatprep.mubr.msk.bf16.mxu0 %vm493_vm7, %v15252_v31  ;;  %v15258_v31 = vld [vmem:[#allocation3 + $0xb4] sm:$0xff]  }
 0x24e   : >> { %v16989_v39 = vrot.slane %v4942_v45, 5 }
 0x250   : >> { %v4949_v5 = vor.u32 %v4948_v56, %v16989_v39 }
 0x254   : >> { %14101 = vmatmul.mubr.msk.bf16.gmra.mrb[16].mxu0 %vm493_vm7, %v15253_v22  ;;  %v16971_v22 = vrot.slane %v4880_v26, 5  ;;  %v4806_v26 = vld [vmem:[#allocation3 + $0x60] sm:$0xf] }
 0x255   : >> { %14104 = vmatprep.mubr.msk.bf16.mxu0 %vm493_vm7, %v15255_v8  ;;  %v16976_v8 = vld [vmem:[#allocation3 + $0x44] sm:$0x1]  ;;  %v4981_v3 = vshrl.u32 %v4806_v26, 16  ;;  %v4984_v49 = vshll.u32 %v4806_v26, 16 }
 0x256   : >> { %v4928_v59 = vshll.u32 %v16976_v8, 16  ;;  %v4883_v35 = vsel %vm16090_vm12, %v16974_v37, %v16971_v22  ;;  %v4954_v22 = vrot.slane %v4952_v17, 5  ;;  %v4809_v37 = vld [vmem:[#allocation3 + $0x6c] sm:$0xf]  ;;  %v4812_v17 = vld [vmem:[#allocation3 + $0x78] sm:$0xf] }
 0x257   : >> { %v4983_v36 = vrot.slane %v4981_v3, 4  ;;  %v4986_v56 = vrot.slane %v4984_v49, 5  ;;  %v5005_v52 = vshrl.u32 %v4809_v37, 16  ;;  %v15263_v3 = vld [vmem:[%s16043_s17 + $0x108] sm:$0xff]   ;;  %v4997_v49 = vor.u32 %v4996_v0, %v17054_v63  ;;  %v15264_v0 = vld [vmem:[%s16043_s17 + $0x110] sm:$0xff]  }
 0x258   : >> { %v17037_v50 = vrot.slane %v4928_v59, 5  ;;  %v4950_v59 = vrot.slane %v4949_v5, 4  ;;  %v5029_v53 = vshrl.u32 %v4812_v17, 16 }
 0x25a   : >> { %v4931_v26 = vsel %vm16090_vm12, %v17043_v25, %v17037_v50  ;;  %v4955_v5 = vsel %vm16090_vm12, %v4950_v59, %v4954_v22  ;;  %v17087_v50 = vld [vmem:[#allocation3 + $0x88] sm:$0xf]  ;;  %v17090_v25 = vrot.slane %v5014_v20, 5 }
 0x25b   : >> { %v5062_v59 = vshll.u32 %v17087_v50, 16 }
 0x25c   : >> { %14105 = vmatmul.mubr.msk.bf16.gmra.mrb[20].mxu0 %vm493_vm7, %v15256_v21  ;;  %v4873_v21 = vsel %vm16090_vm12, %v16963_v11, %v16944_v42  ;;  %v4970_v42 = vshrl.u32 %v16985_v33, 16  ;;  %v17015_v11 = vrot.slane %v4966_v57, 5 }
 0x25d   : >> { %14108 = vmatprep.mubr.msk.bf16.mxu0 %vm493_vm7, %v15257_v24  ;;  %v16998_v24 = vld [vmem:[#allocation3 + $0xd4] sm:$0x1] }
 0x25e   : >> { %v5718_v18 = vrot.slane %v16998_v24, 5 }
 0x260   : >> { %v17019_v45 = vsel %vm16352_vm15, %v5717_v23, %v5718_v18  ;;  %v12765_v18 = vcombine.low %v4873_v21, %v4883_v35  ;;  %v17066_v21 = vld [vmem:[#allocation3 + $0x7c] sm:$0xf]  ;;  %v5032_v35 = vshll.u32 %v4812_v17, 16 }
 0x261   : >> { %19592 = vst [vmem:[#allocation14_spill] sm:$0xff] %v17019_v45  ;;  %v5038_v44 = vshll.u32 %v17066_v21, 16 }
 0x264   : >> { %14109 = vmatmul.mubr.msk.bf16.gmra.mrb[24].mxu0 %vm493_vm7, %v15258_v31  ;;  %v17021_v31 = vld [vmem:[#allocation3 + $0x5c] sm:$0x1] }
 0x265   : >> { %14112 = vmatprep.mubr.msk.bf16.mxu0 %vm493_vm7, %v15260_v32  ;;  %v4972_v32 = vrot.slane %v4970_v42, 4  ;;  %v4976_v61 = vshll.u32 %v17021_v31, 16  ;;  %v4921_v42 = vsel %vm16090_vm12, %v17035_v55, %v16978_v6  ;;  %v4945_v6 = vsel %vm16090_vm12, %v17045_v10, %v16989_v39 }
 0x266   : >> { %v5042_v55 = vshrl.u32 %v17066_v21, 16  ;;  %v5007_v39 = vrot.slane %v5005_v52, 4  ;;  %v5020_v10 = vrot.slane %v5018_v1, 4  ;;  %v5034_v52 = vrot.slane %v5032_v35, 5 }
 0x267   : >> { %v4973_v57 = vor.u32 %v4972_v32, %v17015_v11  ;;  %v17070_v23 = vrot.slane %v4976_v61, 5  ;;  %v17083_v32 = vld [vmem:[#allocation3 + $0x74] sm:$0x1]  ;;  %v5053_v61 = vshrl.u32 %v4815_v19, 16  ;;  %v12767_v20 = vcombine.low %v4921_v42, %v4931_v26  ;;  %v4818_v26 = vld [vmem:[#allocation3 + $0x90] sm:$0xf] }
 0x268   : >> { %v5024_v34 = vshll.u32 %v17083_v32, 16  ;;  %v5021_v17 = vor.u32 %v5020_v10, %v17090_v25  ;;  %v5080_v10 = vshll.u32 %v4818_v26, 16 }
 0x269   : >> { %v17079_v4 = vrot.slane %v4973_v57, 4  ;;  %v5066_v57 = vshrl.u32 %v17087_v50, 16  ;;  %v5055_v42 = vrot.slane %v5053_v61, 4 }
 0x26b   : >> { %v5068_v35 = vrot.slane %v5066_v57, 4 }
 0x26c   : >> { %14113 = vmatmul.mubr.msk.bf16.gmra.mrb[28].mxu0 %vm493_vm7, %v15261_v58  ;;  %v4987_v58 = vor.u32 %v4986_v56, %v4983_v36  ;;  %v4998_v36 = vrot.slane %v4997_v49, 4  ;;  %v5056_v56 = vshll.u32 %v4815_v19, 16  ;;  %v4979_v49 = vsel %vm16090_vm12, %v17079_v4, %v17070_v23 }
 0x26d   : >> { %14124 = vmatprep.mubr.msk.bf16.mxu0 %vm493_vm7, %v12764_v15  ;;  %v5008_v15 = vshll.u32 %v4809_v37, 16  ;;  %v5002_v37 = vrot.slane %v5000_v41, 5  ;;  %v4969_v41 = vsel %vm16090_vm12, %v17068_v13, %v17015_v11  ;;  %v17111_v19 = vrot.slane %v5024_v34, 5  ;;  %v17118_v11 = vld [vmem:[#allocation3 + $0x94] sm:$0xf]  ;;  %v15265_v13 = vld [vmem:[%s16043_s17 + $0x118] sm:$0xff]  }
 0x26e   : >> { %v4988_v22 = vrot.slane %v4987_v58, 4  ;;  %v17101_v58 = vld [vmem:[#allocation3 + $0x80] sm:$0x1]  ;;  %v12769_v34 = vcombine.low %v4969_v41, %v4979_v49  ;;  %v4824_v49 = vld [vmem:[#allocation3 + $0xa8] sm:$0xf]  ;;  %s19432_s17 = scalar_lea.sflag (%p1093_p11), [#allocation6], %s215_s30 }
 0x26f   : >> { %v5010_v48 = vrot.slane %v5008_v15, 5  ;;  %v17098_v15 = vrot.slane %v5038_v44, 5  ;;  %v5003_v23 = vsel %vm16090_vm12, %v4998_v36, %v5002_v37  ;;  %v5048_v44 = vshll.u32 %v17101_v58, 16  ;;  %v17141_v41 = vld [vmem:[#allocation3 + $0xa0] sm:$0xf] }
 0x270   : >> { %v5090_v37 = vshrl.u32 %v17118_v11, 16 }
 0x271   : >> { %v5011_v1 = vor.u32 %v5010_v48, %v5007_v39  ;;  %v5022_v39 = vrot.slane %v5021_v17, 4  ;;  %v5077_v48 = vshrl.u32 %v4818_v26, 16  ;;  %v5082_v17 = vrot.slane %v5080_v10, 5 }
 0x272   : >> { %v5092_v26 = vrot.slane %v5090_v37, 4 }
 0x274   : >> { %14125 = vmatmul.mubr.msk.bf16.vlgmr.msra.gmra.mrb[0].mxu0 %vm493_vm7, %v12765_v18  ;;  %v5031_v18 = vrot.slane %v5029_v53, 4  ;;  %v17116_v53 = vrot.slane %v5062_v59, 5  ;;  %v4821_v59 = vld [vmem:[#allocation3 + $0x9c] sm:$0xf] }
 0x275   : >> { %14157 = vmatpush3.bf16.msra.mxu0 %v16917_v38  ;;  %14128 = vmatprep.mubr.msk.bf16.mxu0 %vm493_vm7, %v12766_v47  ;;  %v5044_v38 = vrot.slane %v5042_v55, 4  ;;  %v12768_v47 = vcombine.low %v4945_v6, %v4955_v5  ;;  %v4993_v6 = vsel %vm16090_vm12, %v4988_v22, %v17054_v63  ;;  %v5058_v5 = vrot.slane %v5056_v56, 5  ;;  %v17125_v55 = vld [vmem:[#allocation3 + $0x8c] sm:$0x1] }
 0x276   : >> { %14158 = vmatprep.subr.bf16.mxu0 %v15263_v3  ;;  %v5035_v4 = vor.u32 %v5034_v52, %v5031_v18  ;;  %v5012_v63 = vrot.slane %v5011_v1, 4  ;;  %v5086_v22 = vshll.u32 %v17118_v11, 16  ;;  %v5069_v36 = vor.u32 %v5068_v35, %v17116_v53  ;;  %v17145_v35 = vld [vmem:[#allocation3 + $0xac] sm:$0xf] }
 0x277   : >> { %v5059_v61 = vor.u32 %v5058_v5, %v5055_v42  ;;  %v5072_v56 = vshll.u32 %v17125_v55, 16  ;;  %v12770_v57 = vcombine.low %v4993_v6, %v5003_v23  ;;  %v5079_v1 = vrot.slane %v5077_v48, 4 }
 0x278   : >> { %v5036_v18 = vrot.slane %v5035_v4, 4  ;;  %v17143_v42 = vrot.slane %v5086_v22, 5  ;;  %v5101_v6 = vshrl.u32 %v4821_v59, 16  ;;  %v5104_v5 = vshll.u32 %v4821_v59, 16 }
 0x279   : >> { %14159 = vmatpush3.bf16.msra.mxu0 %v15263_v3  ;;  %v5045_v3 = vor.u32 %v5044_v38, %v17098_v15  ;;  %v5050_v38 = vrot.slane %v5048_v44, 5  ;;  %v5060_v23 = vrot.slane %v5059_v61, 4  ;;  %v5070_v4 = vrot.slane %v5069_v36, 4 }
 0x27a   : >> { %14160 = vmatprep.subr.bf16.mxu0 %v15264_v0  ;;  %v5114_v44 = vshrl.u32 %v17141_v41, 16  ;;  %v5041_v48 = vsel %vm16090_vm12, %v5036_v18, %v17098_v15  ;;  %v5134_v10 = vshll.u32 %v17145_v35, 16  ;;  %v5138_v22 = vshrl.u32 %v17145_v35, 16  ;;  %v17165_v18 = vld [vmem:[#allocation3 + $0xa4] sm:$0x1] }
 0x27b   : >> { %v5046_v52 = vrot.slane %v5045_v3, 4  ;;  %v5083_v37 = vor.u32 %v5082_v17, %v5079_v1  ;;  %v5093_v61 = vor.u32 %v5092_v26, %v17143_v42  ;;  %v5103_v36 = vrot.slane %v5101_v6, 4  ;;  %v17169_v26 = vld [vmem:[#allocation3 + $0xb0] sm:$0x1] }
 0x27c   : >> { %14129 = vmatmul.mubr.msk.bf16.gmra.mrb[4].mxu0 %vm493_vm7, %v12767_v20  ;;  %v17133_v20 = vld [vmem:[#allocation3 + $0x98] sm:$0x1]  ;;  %19593 = vst [vmem:[#allocation15_spill] sm:$0xff] %v17169_v26  ;;  %v17171_v6 = vrot.slane %v5134_v10, 5 }
 0x27d   : >> { %14132 = vmatprep.mubr.msk.bf16.mxu0 %vm493_vm7, %v12768_v47  ;;  %14161 = vmatpush3.bf16.msra.mxu0 %v15264_v0  ;;  %v5017_v0 = vsel %vm16090_vm12, %v5012_v63, %v17090_v25  ;;  %v5027_v47 = vsel %vm16090_vm12, %v5022_v39, %v17111_v19  ;;  %v5074_v25 = vrot.slane %v5072_v56, 5  ;;  %v5096_v3 = vshll.u32 %v17133_v20, 16 }
 0x27e   : >> { %14162 = vmatprep.subr.bf16.mxu0 %v15265_v13  ;;  %v5110_v19 = vshll.u32 %v17141_v41, 16  ;;  %v5125_v63 = vshrl.u32 %v4824_v49, 16  ;;  %v5128_v39 = vshll.u32 %v4824_v49, 16  ;;  %v5106_v56 = vrot.slane %v5104_v5, 5 }
 0x27f   : >> { %v5075_v15 = vsel %vm16090_vm12, %v5070_v4, %v5074_v25  ;;  %v5098_v59 = vrot.slane %v5096_v3, 5  ;;  %v12771_v1 = vcombine.low %v5017_v0, %v5027_v47  ;;  %v5140_v5 = vrot.slane %v5138_v22, 4  ;;  %v17174_v25 = vld [vmem:[#allocation3 + $0xb8] sm:$0xf] }
 0x280   : >> { %v5127_v49 = vrot.slane %v5125_v63, 4  ;;  %v5107_v45 = vor.u32 %v5106_v56, %v5103_v36  ;;  %v5120_v4 = vshll.u32 %v17165_v18, 16  ;;  %19594 = vst [vmem:[#allocation12_spill] sm:$0xff] %v17174_v25  ;;  %v5144_v0 = vshll.u32 %v17169_v26, 16  ;;  %v4830_v63 = vld [vmem:[#allocation3 + $0xc0] sm:$0xf] }
 0x281   : >> { %14163 = vmatpush3.bf16.msra.mxu0 %v15265_v13  ;;  %v5051_v13 = vsel %vm16090_vm12, %v5046_v52, %v5050_v38  ;;  %v17167_v52 = vrot.slane %v5110_v19, 5  ;;  %v5116_v38 = vrot.slane %v5114_v44, 4  ;;  %v5149_v47 = vshrl.u32 %v4827_v60, 16 }
 0x282   : >> { %v12772_v17 = vcombine.low %v5041_v48, %v5051_v13  ;;  %v5141_v48 = vor.u32 %v5140_v5, %v17171_v6  ;;  %v5152_v13 = vshll.u32 %v4827_v60, 16  ;;  %v5158_v10 = vshll.u32 %v17174_v25, 16 }
 0x283   : >> { %v5117_v19 = vor.u32 %v5116_v38, %v17167_v52  ;;  %v5162_v22 = vshrl.u32 %v17174_v25, 16  ;;  %v5108_v36 = vrot.slane %v5107_v45, 4  ;;  %v5122_v56 = vrot.slane %v5120_v4, 5 }
 0x284   : >> { %14133 = vmatmul.mubr.msk.bf16.gmra.mrb[8].mxu0 %vm493_vm7, %v12769_v34  ;;  %v5065_v34 = vsel %vm16090_vm12, %v5060_v23, %v17116_v53  ;;  %v5084_v53 = vrot.slane %v5083_v37, 4  ;;  %v5094_v23 = vrot.slane %v5093_v61, 4  ;;  %v5151_v5 = vrot.slane %v5149_v47, 4 }
 0x285   : >> { %14136 = vmatprep.mubr.msk.bf16.mxu0 %vm493_vm7, %v12770_v57  ;;  %v5130_v57 = vrot.slane %v5128_v39, 5  ;;  %v12773_v3 = vcombine.low %v5065_v34, %v5075_v15  ;;  %v17178_v39 = vld [vmem:[#allocation3 + $0xc4] sm:$0xf]  ;;  %v5173_v34 = vshrl.u32 %v4830_v63, 16  ;;  %v5176_v15 = vshll.u32 %v4830_v63, 16 }
 0x286   : >> { %19595 = vst [vmem:[#allocation11_spill] sm:$0xff] %v17178_v39  ;;  %v5089_v37 = vsel %vm16090_vm12, %v5084_v53, %v17143_v42  ;;  %v5099_v61 = vsel %vm16090_vm12, %v5094_v23, %v5098_v59  ;;  %v5182_v38 = vshll.u32 %v17178_v39, 16  ;;  %v5186_v60 = vshrl.u32 %v17178_v39, 16  ;;  %v4833_v63 = vld [vmem:[#allocation3 + $0xcc] sm:$0xf] }
 0x287   : >> { %v5131_v44 = vor.u32 %v5130_v57, %v5127_v49  ;;  %v5118_v49 = vrot.slane %v5117_v19, 4  ;;  %v5154_v25 = vrot.slane %v5152_v13, 5  ;;  %v5160_v42 = vrot.slane %v5158_v10, 5 }
 0x288   : >> { %v5164_v53 = vrot.slane %v5162_v22, 4  ;;  %v12774_v26 = vcombine.low %v5089_v37, %v5099_v61  ;;  %v5175_v59 = vrot.slane %v5173_v34, 4  ;;  %v5178_v45 = vrot.slane %v5176_v15, 5 }
 0x289   : >> { %v5132_v57 = vrot.slane %v5131_v44, 4  ;;  %v5184_v23 = vrot.slane %v5182_v38, 5  ;;  %v5188_v4 = vrot.slane %v5186_v60, 4  ;;  %v5113_v39 = vsel %vm16090_vm12, %v5108_v36, %v17167_v52 }
 0x28a   : >> { %v5123_v19 = vsel %vm16090_vm12, %v5118_v49, %v5122_v56  ;;  %v5168_v44 = vshll.u32 %v17192_v28, 16  ;;  %v5155_v13 = vor.u32 %v5154_v25, %v5151_v5  ;;  %v5165_v10 = vor.u32 %v5164_v53, %v5160_v42 }
 0x28b   : >> { %v5137_v47 = vsel %vm16090_vm12, %v5132_v57, %v17171_v6  ;;  %v5197_v52 = vshrl.u32 %v4833_v63, 16  ;;  %v5200_v22 = vshll.u32 %v4833_v63, 16  ;;  %v5206_v37 = vshll.u32 %v16996_v16, 16 }
 0x28c   : >> { %14137 = vmatmul.mubr.msk.bf16.gmra.mrb[12].mxu0 %vm493_vm7, %v12771_v1  ;;  %v5146_v1 = vrot.slane %v5144_v0, 5  ;;  %v17200_v0 = vld [vmem:[#allocation3 + $0xc8] sm:$0x1]  ;;  %v5210_v61 = vshrl.u32 %v16996_v16, 16  ;;  %v5179_v36 = vor.u32 %v5178_v45, %v5175_v59  ;;  %v5189_v56 = vor.u32 %v5188_v4, %v5184_v23 }
 0x28d   : >> { %14140 = vmatprep.mubr.msk.bf16.mxu0 %vm493_vm7, %v12772_v17  ;;  %v5142_v17 = vrot.slane %v5141_v48, 4  ;;  %v12775_v34 = vcombine.low %v5113_v39, %v5123_v19  ;;  %v5156_v6 = vrot.slane %v5155_v13, 4  ;;  %v5166_v38 = vrot.slane %v5165_v10, 4 }
 0x28e   : >> { %v5170_v60 = vrot.slane %v5168_v44, 5  ;;  %v5199_v49 = vrot.slane %v5197_v52, 4  ;;  %v5202_v25 = vrot.slane %v5200_v22, 5  ;;  %v5208_v57 = vrot.slane %v5206_v37, 5  ;;  %v5544_v44 = vld [vmem:[#allocation3 + $0x18] sm:$0xe] }
 0x28f   : >> { %v5147_v48 = vsel %vm16090_vm12, %v5142_v17, %v5146_v1  ;;  %v5212_v1 = vrot.slane %v5210_v61, 4  ;;  %v5190_v5 = vrot.slane %v5189_v56, 4  ;;  %v5161_v16 = vsel %vm16090_vm12, %v5156_v6, %v5160_v42  ;;  %v5545_v56 = vld [vmem:[#allocation3 + $0x24] sm:$0xe] }
 0x290   : >> { %v12776_v15 = vcombine.low %v5137_v47, %v5147_v48  ;;  %v5171_v39 = vsel %vm16090_vm12, %v5166_v38, %v5170_v60  ;;  %v5203_v53 = vor.u32 %v5202_v25, %v5199_v49  ;;  %v5216_v45 = vshll.u32 %v16998_v24, 16 }
 0x291   : >> { %v5213_v59 = vor.u32 %v5212_v1, %v5208_v57  ;;  %v5610_v19 = vrot.slane %v16924_v14, 5  ;;  %v12777_v47 = vcombine.low %v5161_v16, %v5171_v39  ;;  %v12800_v52 = vrot.slane %v5544_v44, 9 }
 0x292   : >> { %v5204_v48 = vrot.slane %v5203_v53, 4  ;;  %v5218_v10 = vrot.slane %v5216_v45, 5  ;;  %v5613_v37 = vrot.slane %v16936_v30, 5  ;;  %v5624_v30 = vrot.slane %v16938_v62, 5 }
 0x293   : >> { %v5214_v13 = vrot.slane %v5213_v59, 4  ;;  %v5612_v22 = vrot.slane %v5610_v19, 4  ;;  %v5611_v61 = vsel %vm16352_vm15, %v12800_v52, %v5610_v19  ;;  %v12801_v6 = vrot.slane %v5545_v56, 9  ;;  %v5551_v56 = vld [vmem:[#allocation3 + $0x6c] sm:$0xe] }
 0x294   : >> { %14141 = vmatmul.mubr.msk.bf16.gmra.mrb[16].mxu0 %vm493_vm7, %v12773_v3  ;;  %v5192_v3 = vshll.u32 %v17200_v0, 16  ;;  %v5209_v24 = vsel %vm16090_vm12, %v5204_v48, %v5208_v57  ;;  %v5620_v60 = vrot.slane %v16942_v9, 5  ;;  %v5626_v25 = vrot.slane %v5624_v30, 4  ;;  %v5550_v48 = vld [vmem:[#allocation3 + $0x60] sm:$0xe] }
 0x295   : >> { %14144 = vmatprep.mubr.msk.bf16.mxu0 %vm493_vm7, %v12774_v26  ;;  %v5180_v26 = vrot.slane %v5179_v36, 4  ;;  %v5219_v14 = vsel %vm16090_vm12, %v5214_v13, %v5218_v10  ;;  %v5614_v36 = vsel %vm16352_vm15, %v5612_v22, %v5613_v37  ;;  %v5631_v1 = vrot.slane %v16948_v51, 5 }
 0x296   : >> { %v5194_v17 = vrot.slane %v5192_v3, 5  ;;  %v5546_v3 = vld [vmem:[#allocation3 + $0x30] sm:$0xe]  ;;  %v5634_v45 = vrot.slane %v16976_v8, 5  ;;  %v5641_v51 = vrot.slane %v16987_v27, 5  ;;  %v5645_v44 = vrot.slane %v16985_v33, 5 }
 0x297   : >> { %v5185_v4 = vsel %vm16090_vm12, %v5180_v26, %v5184_v23  ;;  %v5617_v23 = vrot.slane %v16928_v54, 5  ;;  %v12802_v49 = vrot.slane %v5546_v3, 9  ;;  %v5627_v54 = vrot.slane %v16951_v40, 5 }
 0x298   : >> { %v5195_v63 = vsel %vm16090_vm12, %v5190_v5, %v5194_v17  ;;  %v5547_v5 = vld [vmem:[#allocation3 + $0x3c] sm:$0xe]  ;;  %v5638_v40 = vrot.slane %v16955_v29, 5  ;;  %v5548_v17 = vld [vmem:[#allocation3 + $0x48] sm:$0xe]  ;;  %v5633_v59 = vrot.slane %v5631_v1, 4 }
 0x299   : >> { %v12778_v42 = vcombine.low %v5185_v4, %v5195_v63  ;;  %v5619_v38 = vrot.slane %v5617_v23, 4  ;;  %v5618_v57 = vsel %vm16352_vm15, %v12801_v6, %v5617_v23  ;;  %v5625_v26 = vsel %vm16352_vm15, %v12802_v49, %v5624_v30  ;;  %v5552_v30 = vld [vmem:[#allocation3 + $0x78] sm:$0xe] }
 0x29a   : >> { %v5628_v9 = vsel %vm16352_vm15, %v5626_v25, %v5627_v54  ;;  %v12803_v53 = vrot.slane %v5547_v5, 9  ;;  %v12804_v4 = vrot.slane %v5548_v17, 9  ;;  %v5640_v63 = vrot.slane %v5638_v40, 4 }
 0x29b   : >> { %v5621_v62 = vsel %vm16352_vm15, %v5619_v38, %v5620_v60  ;;  %v12827_v39 = vcombine.low %v5625_v26, %v5628_v9  ;;  %v5635_v29 = vsel %vm16352_vm15, %v5633_v59, %v5634_v45  ;;  %v5652_v27 = vrot.slane %v17008_v2, 5 }
 0x29c   : >> { %14145 = vmatmul.mubr.msk.bf16.gmra.mrb[20].mxu0 %vm493_vm7, %v12775_v34  ;;  %v12779_v34 = vcombine.low %v5209_v24, %v5219_v14  ;;  %v12826_v16 = vcombine.low %v5618_v57, %v5621_v62  ;;  %v5632_v19 = vsel %vm16352_vm15, %v12803_v53, %v5631_v1  ;;  %v5642_v8 = vsel %vm16352_vm15, %v5640_v63, %v5641_v51  ;;  %v5553_v62 = vld [vmem:[#allocation3 + $0x84] sm:$0xe]  ;;  %v5554_v1 = vld [vmem:[#allocation3 + $0x90] sm:$0xe]  ;;  %v5556_v63 = vld [vmem:[#allocation3 + $0xa8] sm:$0xe] }
 0x29d   : >> { %14148 = vmatprep.mubr.msk.bf16.mxu0 %vm493_vm7, %v12776_v15  ;;  %v12825_v15 = vcombine.low %v5611_v61, %v5614_v36  ;;  %v12828_v13 = vcombine.low %v5632_v19, %v5635_v29  ;;  %v5647_v22 = vrot.slane %v5645_v44, 4  ;;  %v5648_v37 = vrot.slane %v17021_v31, 5 }
 0x29e   : >> { %v12806_v24 = vrot.slane %v5550_v48, 9  ;;  %v5654_v14 = vrot.slane %v5652_v27, 4  ;;  %v5655_v33 = vrot.slane %v17052_v12, 5  ;;  %v5659_v61 = vrot.slane %v17049_v46, 5 }
 0x29f   : >> { %v5649_v2 = vsel %vm16352_vm15, %v5647_v22, %v5648_v37  ;;  %v5666_v12 = vrot.slane %v17066_v21, 5  ;;  %v5662_v38 = vrot.slane %v17083_v32, 5  ;;  %v12808_v60 = vrot.slane %v5552_v30, 9  ;;  %v5557_v22 = vld [vmem:[#allocation3 + $0xb4] sm:$0xe]  ;;  %v19598_v37 = vld [vmem:[#allocation11_spill] sm:$0xff] }
 0x2a0   : >> { %v5653_v36 = vsel %vm16352_vm15, %v12806_v24, %v5652_v27  ;;  %v5656_v31 = vsel %vm16352_vm15, %v5654_v14, %v5655_v33  ;;  %v5661_v6 = vrot.slane %v5659_v61, 4  ;;  %v5669_v46 = vrot.slane %v17101_v58, 5  ;;  %v19596_v27 = vld [vmem:[#allocation15_spill] sm:$0xff]  ;;  %v5558_v14 = vld [vmem:[#allocation3 + $0xc0] sm:$0xe] }
 0x2a1   : >> { %v5668_v49 = vrot.slane %v5666_v12, 4  ;;  %v5673_v54 = vrot.slane %v17087_v50, 5  ;;  %v5667_v57 = vsel %vm16352_vm15, %v12808_v60, %v5666_v12  ;;  %v5680_v58 = vrot.slane %v17118_v11, 5 }
 0x2a2   : >> { %v5663_v21 = vsel %vm16352_vm15, %v5661_v6, %v5662_v38  ;;  %v12809_v5 = vrot.slane %v5553_v62, 9  ;;  %v5676_v17 = vrot.slane %v17125_v55, 5  ;;  %v5683_v50 = vrot.slane %v17133_v20, 5  ;;  %v19600_v38 = vld [vmem:[#allocation14_spill] sm:$0xff]  ;;  %v7001_v62 = vld [vmem:[#allocation4 + $0x4] sm:$0xf] }
 0x2a3   : >> { %v5670_v32 = vsel %vm16352_vm15, %v5668_v49, %v5669_v46  ;;  %v5687_v59 = vrot.slane %v17141_v41, 5  ;;  %v5694_v20 = vrot.slane %v17145_v35, 5  ;;  %v5697_v41 = vrot.slane %v19596_v27, 5  ;;  %v15266_v49 = vld [vmem:[%s17344_s26] sm:$0xff]   ;;  %v15267_v46 = vld [vmem:[%s17344_s26 + $0x8] sm:$0xff]  }
 0x2a4   : >> { %14149 = vmatmul.mubr.msk.bf16.gmra.mrb[24].mxu0 %vm493_vm7, %v12777_v47  ;;  %v5639_v47 = vsel %vm16352_vm15, %v12804_v4, %v5638_v40  ;;  %v12833_v9 = vcombine.low %v5667_v57, %v5670_v32  ;;  %v5675_v40 = vrot.slane %v5673_v54, 4  ;;  %v5674_v53 = vsel %vm16352_vm15, %v12809_v5, %v5673_v54  ;;  %v5555_v4 = vld [vmem:[#allocation3 + $0x9c] sm:$0xe]  ;;  %14196 = vmatprep.subr.bf16.mxu1 %v15266_v49  ;;  %v17352_v57 = vld [vmem:[%s17344_s26 + $0x20] sm:$0xff]   ;;  %v7000_v32 = vld [vmem:[#allocation4] sm:$0xf] }
 0x2a5   : >> { %14152 = vmatprep.mubr.msk.bf16.mxu0 %vm493_vm7, %v12778_v42  ;;  %v5549_v42 = vld [vmem:[#allocation3 + $0x54] sm:$0xe]  ;;  %v12829_v10 = vcombine.low %v5639_v47, %v5642_v8  ;;  %v12811_v29 = vrot.slane %v5555_v4, 9  ;;  %v5690_v47 = vrot.slane %v17165_v18, 5  ;;  %v12812_v8 = vrot.slane %v5556_v63, 9  ;;  %14197 = vmatpush3.bf16.msra.mxu1 %v15266_v49  ;;  %v15270_v54 = vld [vmem:[#allocation4] sm:$0xff]  }
 0x2a6   : >> { %v12805_v52 = vrot.slane %v5549_v42, 9  ;;  %v5677_v11 = vsel %vm16352_vm15, %v5675_v40, %v5676_v17  ;;  %v5696_v42 = vrot.slane %v5694_v20, 4  ;;  %v5708_v24 = vrot.slane %v19598_v37, 5  ;;  %14198 = vmatprep.subr.bf16.mxu1 %v15267_v46  ;;  %14204 = vmatprep.mubr.msk.bf16.mxu1 %vm493_vm7, %v15270_v54  ;;  %v17359_v5 = vld [vmem:[%s1097_s8] ss:$0 sm:$0xff] }
 0x2a7   : >> { %v12834_v51 = vcombine.low %v5674_v53, %v5677_v11  ;;  %v5688_v48 = vsel %vm16352_vm15, %v12811_v29, %v5687_v59  ;;  %v5711_v12 = vrot.slane %v17200_v0, 5  ;;  %v19599_v0 = vld [vmem:[#allocation13_spill] sm:$0xff]  ;;  %v7002_v63 = vld [vmem:[#allocation4 + $0x8] sm:$0x1] }
 0x2a8   : >> { %v5646_v23 = vsel %vm16352_vm15, %v12805_v52, %v5645_v44  ;;  %v5689_v44 = vrot.slane %v5687_v59, 4  ;;  %v5695_v52 = vsel %vm16352_vm15, %v12812_v8, %v5694_v20  ;;  %v5698_v18 = vsel %vm16352_vm15, %v5696_v42, %v5697_v41 }
 0x2a9   : >> { %v12830_v3 = vcombine.low %v5646_v23, %v5649_v2  ;;  %v12837_v23 = vcombine.low %v5695_v52, %v5698_v18  ;;  %v12813_v2 = vrot.slane %v5557_v22, 9  ;;  %v19601_v60 = vcombine.low %v19599_v0, %v19600_v38  ;;  %14199 = vmatpush3.bf16.msra.mxu1 %v15267_v46  ;;  %v6504_v46 = vld [vmem:[#allocation4 + $0x20] sm:$0x1] }
 0x2aa   : >> { %v5691_v35 = vsel %vm16352_vm15, %v5689_v44, %v5690_v47  ;;  %v7068_v41 = vshll.u32 %v7002_v63, 16 }
 0x2ab   : >> { %v12836_v33 = vcombine.low %v5688_v48, %v5691_v35 }
 0x2ac   : >> { %14153 = vmatmul.mubr.msk.bf16.gmra.mrb[28].mxu0 %vm493_vm7, %v12779_v34  ;;  %v12831_v34 = vcombine.low %v5653_v36, %v5656_v31  ;;  %v5704_v36 = vrot.slane %v17192_v28, 5  ;;  %v12814_v31 = vrot.slane %v5558_v14, 9 }
 0x2ad   : >> { %14164 = vmatprep.mubr.msk.bf16.mxu0 %vm493_vm7, %v12825_v15  ;;  %v12807_v15 = vrot.slane %v5551_v56, 9  ;;  %v5710_v56 = vrot.slane %v5708_v24, 4 }
 0x2af   : >> { %v5660_v25 = vsel %vm16352_vm15, %v12807_v15, %v5659_v61  ;;  %v5712_v28 = vsel %vm16352_vm15, %v5710_v56, %v5711_v12 }
 0x2b0   : >> { %v12832_v26 = vcombine.low %v5660_v25, %v5663_v21  ;;  %v15268_v25 = vld [vmem:[%s17344_s26 + $0x10] sm:$0xff]   ;;  %v15269_v21 = vld [vmem:[%s17344_s26 + $0x18] sm:$0xff]  }
 0x2b1   : >> { %14200 = vmatprep.subr.bf16.mxu1 %v15268_v25 }
 0x2b2   : >> { %14201 = vmatpush3.bf16.msra.mxu1 %v15268_v25 }
 0x2b3   : >> { %14202 = vmatprep.subr.bf16.mxu1 %v15269_v21 }
 0x2b4   : >> { %14165 = vmatmul.mubr.msk.bf16.vlgmr.msra.gmra.mrb[0].mxu0 %vm493_vm7, %v12826_v16  ;;  %v12810_v16 = vrot.slane %v5554_v1, 9  ;;  %v7052_v1 = vshll.u32 %v7000_v32, 16 }
 0x2b5   : >> { %14168 = vmatprep.mubr.msk.bf16.mxu0 %vm493_vm7, %v12827_v39  ;;  %v5682_v39 = vrot.slane %v5680_v58, 4 }
 0x2b6   : >> { %v5681_v45 = vsel %vm16352_vm15, %v12810_v16, %v5680_v58  ;;  %14203 = vmatpush3.bf16.msra.mxu1 %v15269_v21  ;;  %v7049_v58 = vshrl.u32 %v7000_v32, 16  ;;  %v7054_v17 = vrot.slane %v7052_v1, 5  ;;  %v6497_v1 = vld [vmem:[#allocation4 + $0x14] sm:$0x1] }
 0x2b7   : >> { %v5684_v55 = vsel %vm16352_vm15, %v5682_v39, %v5683_v50  ;;  %14236 = vmatprep.subr.bf16.mxu1 %v17352_v57 }
 0x2b8   : >> { %v12835_v19 = vcombine.low %v5681_v45, %v5684_v55  ;;  %v7051_v40 = vrot.slane %v7049_v58, 4 }
 0x2bc   : >> { %14169 = vmatmul.mubr.msk.bf16.gmra.mrb[4].mxu0 %vm493_vm7, %v12828_v13  ;;  %v19597_v13 = vld [vmem:[#allocation12_spill] sm:$0xff] }
 0x2bd   : >> { %14172 = vmatprep.mubr.msk.bf16.mxu0 %vm493_vm7, %v12829_v10  ;;  %v5701_v10 = vrot.slane %v19597_v13, 5 }
 0x2bf   : >> { %v5703_v61 = vrot.slane %v5701_v10, 4  ;;  %v5702_v30 = vsel %vm16352_vm15, %v12813_v2, %v5701_v10 }
 0x2c4   : >> { %14173 = vmatmul.mubr.msk.bf16.gmra.mrb[8].mxu0 %vm493_vm7, %v12830_v3  ;;  %v5705_v3 = vsel %vm16352_vm15, %v5703_v61, %v5704_v36  ;;  %v6500_v36 = vld [vmem:[#allocation4 + $0x18] sm:$0xf] }
 0x2c5   : >> { %14176 = vmatprep.mubr.msk.bf16.mxu0 %vm493_vm7, %v12831_v34  ;;  %v5709_v34 = vsel %vm16352_vm15, %v12814_v31, %v5708_v24  ;;  %v12838_v15 = vcombine.low %v5702_v30, %v5705_v3 }
 0x2c6   : >> { %v12839_v6 = vcombine.low %v5709_v34, %v5712_v28 }
 0x2cc   : >> { %14177 = vmatmul.mubr.msk.bf16.gmra.mrb[12].mxu0 %vm493_vm7, %v12832_v26  ;;  %v7058_v26 = vshll.u32 %v7001_v62, 16 }
 0x2cd   : >> { %14180 = vmatprep.mubr.msk.bf16.mxu0 %vm493_vm7, %v12833_v9  ;;  %v7062_v9 = vshrl.u32 %v7001_v62, 16 }
 0x2ce   : >> { %v17361_v16 = vrot.slane %v7058_v26, 5 }
 0x2cf   : >> { %v7064_v39 = vrot.slane %v7062_v9, 4 }
 0x2d4   : >> { %14181 = vmatmul.mubr.msk.bf16.gmra.mrb[16].mxu0 %vm493_vm7, %v12834_v51  ;;  %v7055_v51 = vor.u32 %v7054_v17, %v7051_v40 }
 0x2d5   : >> { %14184 = vmatprep.mubr.msk.bf16.mxu0 %vm493_vm7, %v12835_v19  ;;  %v7065_v19 = vor.u32 %v7064_v39, %v17361_v16 }
 0x2d6   : >> { %v17368_v13 = vrot.slane %v7055_v51, 4 }
 0x2d7   : >> { %v17370_v10 = vrot.slane %v7065_v19, 4 }
 0x2dc   : >> { %14185 = vmatmul.mubr.msk.bf16.gmra.mrb[20].mxu0 %vm493_vm7, %v12836_v33 }
 0x2dd   : >> { %14188 = vmatprep.mubr.msk.bf16.mxu0 %vm493_vm7, %v12837_v23 }
 0x2e4   : >> { %14189 = vmatmul.mubr.msk.bf16.gmra.mrb[24].mxu0 %vm493_vm7, %v12838_v15  ;;  %v6493_v15 = vld [vmem:[#allocation4 + $0xc] sm:$0xf] }
 0x2e5   : >> { %14192 = vmatprep.mubr.msk.bf16.mxu0 %vm493_vm7, %v12839_v6 }
 0x2ec   : >> { %14193 = vmatmul.mubr.msk.bf16.gmra.mrb[28].mxu0 %vm493_vm7, %v19601_v60 }
 0x387   : >> { %v14166_v50 = vpop.f32.mrb[0].mxu0 }
 0x388   : >> { %v14556_v53 = vadd.f32 %v14166_v50, %v17359_v5  ;;  %v5885_v11 = vpop.f32.mrb[1].mxu0 }
 0x389   : >> { %v14557_v59 = vadd.f32 %v17359_v5, %v5885_v11  ;;  %v14167_v45 = vpop.f32.mrb[2].mxu0 }
 0x38a   : >> { %v6046_v55 = vmax.f32 %v14556_v53, 0.0  ;;  %v14558_v4 = vadd.f32 %v14167_v45, %v17359_v5  ;;  %v5888_v20 = vpop.f32.mrb[3].mxu0 }
 0x38b   : >> { %v6044_v29 = vmax.f32 %v14557_v59, 0.0  ;;  %v14559_v44 = vadd.f32 %v17359_v5, %v5888_v20 }
 0x38c   : >> { %v13412_v47 = vpack.c.bf16 %v6046_v55, %v6046_v55  ;;  %v6047_v8 = vmax.f32 %v14558_v4, 0.0  ;;  %v17382_v55 = vrot.slane %v7068_v41, 5 }
 0x38d   : >> { %v13410_v42 = vpack.c.bf16 %v6044_v29, %v6044_v29  ;;  %v6045_v27 = vmax.f32 %v14559_v44, 0.0 }
 0x38e   : >> { %v6190_v48 = vshrl.u32 %v13412_v47, 16  ;;  %v13413_v35 = vpack.c.bf16 %v6047_v8, %v6047_v8  ;;  %v6193_v52 = vshll.u32 %v13412_v47, 16 }
 0x38f   : >> { %v6173_v18 = vshrl.u32 %v13410_v42, 16  ;;  %v6176_v22 = vshll.u32 %v13410_v42, 16  ;;  %v13411_v37 = vpack.c.bf16 %v6045_v27, %v6045_v27  ;;  %v14170_v24 = vpop.f32.mrb[4].mxu0  ;;  %v6514_v27 = vld [vmem:[#allocation4 + $0x30] sm:$0xf] }
 0x390   : >> { %v6192_v14 = vrot.slane %v6190_v48, 7  ;;  %v6198_v33 = vshrl.u32 %v13413_v35, 16  ;;  %v6201_v23 = vshll.u32 %v13413_v35, 16  ;;  %v14560_v2 = vadd.f32 %v14170_v24, %v17359_v5  ;;  %v5901_v61 = vpop.f32.mrb[5].mxu0  ;;  %v6507_v24 = vld [vmem:[#allocation4 + $0x24] sm:$0xf] }
 0x391   : >> { %v6175_v31 = vrot.slane %v6173_v18, 7  ;;  %v6181_v56 = vshrl.u32 %v13411_v37, 16  ;;  %v6184_v12 = vshll.u32 %v13411_v37, 16  ;;  %v14561_v30 = vadd.f32 %v17359_v5, %v5901_v61  ;;  %v14171_v3 = vpop.f32.mrb[6].mxu0 }
 0x392   : >> { %v6195_v34 = vor.u32 %v6193_v52, %v6192_v14  ;;  %v6196_v28 = vrot.slane %v6192_v14, 4  ;;  %v6200_v6 = vrot.slane %v6198_v33, 7  ;;  %v6050_v0 = vmax.f32 %v14560_v2, 0.0  ;;  %v5904_v38 = vpop.f32.mrb[7].mxu0 }
 0x393   : >> { %v6178_v60 = vor.u32 %v6176_v22, %v6175_v31  ;;  %v6179_v49 = vrot.slane %v6175_v31, 4  ;;  %v6183_v25 = vrot.slane %v6181_v56, 7  ;;  %v6048_v21 = vmax.f32 %v14561_v30, 0.0 }
 0x394   : >> { %v6501_v32 = vsel %vm15685_vm8, %v6195_v34, %v6500_v36  ;;  %v6203_v62 = vor.u32 %v6201_v23, %v6200_v6  ;;  %v6205_v58 = vrot.slane %v6200_v6, 4  ;;  %v13416_v26 = vpack.c.bf16 %v6050_v0, %v6050_v0  ;;  %v15277_v0 = vld [vmem:[%s17344_s26 + $0x28] sm:$0xff]  }
 0x395   : >> { %6502 = vst [vmem:[#allocation4 + $0x18] sm:$0xf] %v6501_v32  ;;  %v6494_v9 = vsel %vm15685_vm8, %v6178_v60, %v6493_v15  ;;  %v6186_v40 = vor.u32 %v6184_v12, %v6183_v25  ;;  %v6188_v17 = vrot.slane %v6183_v25, 4  ;;  %v13414_v39 = vpack.c.bf16 %v6048_v21, %v6048_v21  ;;  %v6518_v25 = vld [vmem:[#allocation4 + $0x38] sm:$0x1] }
 0x396   : >> { %6495 = vst [vmem:[#allocation4 + $0xc] sm:$0xf] %v6494_v9  ;;  %v6204_v53 = vsel %vm15695_vm9, %v6196_v28, %v6203_v62  ;;  %v6505_v59 = vsel %vm15522_vm3, %v6205_v58, %v6504_v46  ;;  %v6224_v45 = vshrl.u32 %v13416_v26, 16  ;;  %v6227_v63 = vshll.u32 %v13416_v26, 16  ;;  %v6511_v21 = vld [vmem:[#allocation4 + $0x2c] sm:$0x1] }
 0x397   : >> { %6503 = vst.msk [vmem:[#allocation4 + $0x1c] sm:$0xf] %vm224_vm0, %v6204_v53  ;;  %6506 = vst [vmem:[#allocation4 + $0x20] sm:$0x1] %v6505_v59  ;;  %v6187_v4 = vsel %vm15695_vm9, %v6179_v49, %v6186_v40  ;;  %v6498_v20 = vsel %vm15522_vm3, %v6188_v17, %v6497_v1  ;;  %v6207_v51 = vshrl.u32 %v13414_v39, 16  ;;  %v14174_v19 = vpop.f32.mrb[8].mxu0  ;;  %v14562_v44 = vadd.f32 %v14171_v3, %v17359_v5 }
 0x398   : >> { %6496 = vst.msk [vmem:[#allocation4 + $0x10] sm:$0xf] %vm224_vm0, %v6187_v4  ;;  %6499 = vst [vmem:[#allocation4 + $0x14] sm:$0x1] %v6498_v20  ;;  %v17390_v29 = vrot.slane %v6224_v45, 7  ;;  %v14563_v47 = vadd.f32 %v17359_v5, %v5904_v38  ;;  %v14564_v8 = vadd.f32 %v14174_v19, %v17359_v5  ;;  %v5917_v42 = vpop.f32.mrb[9].mxu0  ;;  %v7061_v18 = vsel %vm16090_vm12, %v17368_v13, %v17361_v16 }
 0x399   : >> { %v17395_v41 = vrot.slane %v6207_v51, 7  ;;  %v6210_v48 = vshll.u32 %v13414_v39, 16  ;;  %v14565_v35 = vadd.f32 %v17359_v5, %v5917_v42  ;;  %v14175_v52 = vpop.f32.mrb[10].mxu0  ;;  %v6051_v14 = vmax.f32 %v14562_v44, 0.0  ;;  %v6528_v39 = vld [vmem:[#allocation4 + $0x48] sm:$0xf] }
 0x39a   : >> { %v6229_v22 = vor.u32 %v6227_v63, %v17390_v29  ;;  %v6230_v37 = vrot.slane %v17390_v29, 4  ;;  %v6049_v33 = vmax.f32 %v14563_v47, 0.0  ;;  %v5920_v23 = vpop.f32.mrb[11].mxu0  ;;  %v6054_v36 = vmax.f32 %v14564_v8, 0.0 }
 0x39b   : >> { %v6212_v2 = vor.u32 %v6210_v48, %v17395_v41  ;;  %v6213_v61 = vrot.slane %v17395_v41, 4  ;;  %v6052_v31 = vmax.f32 %v14565_v35, 0.0  ;;  %v13417_v12 = vpack.c.bf16 %v6051_v14, %v6051_v14 }
 0x39c   : >> { %v6515_v56 = vsel %vm15685_vm8, %v6229_v22, %v6514_v27  ;;  %v13415_v30 = vpack.c.bf16 %v6049_v33, %v6049_v33  ;;  %v14566_v3 = vadd.f32 %v14175_v52, %v17359_v5  ;;  %v13420_v28 = vpack.c.bf16 %v6054_v36, %v6054_v36  ;;  %v6521_v27 = vld [vmem:[#allocation4 + $0x3c] sm:$0xf] }
 0x39d   : >> { %6516 = vst [vmem:[#allocation4 + $0x30] sm:$0xf] %v6515_v56  ;;  %v6508_v34 = vsel %vm15685_vm8, %v6212_v2, %v6507_v24  ;;  %v13418_v15 = vpack.c.bf16 %v6052_v31, %v6052_v31  ;;  %v14567_v6 = vadd.f32 %v17359_v5, %v5920_v23  ;;  %v6232_v38 = vshrl.u32 %v13417_v12, 16  ;;  %v15282_v24 = vld [vmem:[%s17344_s26 + $0x30] sm:$0xff]  }
 0x39e   : >> { %6509 = vst [vmem:[#allocation4 + $0x24] sm:$0xf] %v6508_v34  ;;  %v6235_v60 = vshll.u32 %v13417_v12, 16  ;;  %v6215_v49 = vshrl.u32 %v13415_v30, 16  ;;  %v6218_v46 = vshll.u32 %v13415_v30, 16  ;;  %v6258_v32 = vshrl.u32 %v13420_v28, 16 }
 0x39f   : >> { %v6261_v62 = vshll.u32 %v13420_v28, 16  ;;  %v6241_v58 = vshrl.u32 %v13418_v15, 16  ;;  %v6244_v1 = vshll.u32 %v13418_v15, 16  ;;  %v14178_v26 = vpop.f32.mrb[12].mxu0  ;;  %v15271_v9 = vld [vmem:[#allocation4 + $0xc] sm:$0xff]   ;;  %v6234_v40 = vrot.slane %v6232_v38, 7 }
 0x3a0   : >> { %v6217_v17 = vrot.slane %v6215_v49, 7  ;;  %v6055_v53 = vmax.f32 %v14566_v3, 0.0  ;;  %v6053_v59 = vmax.f32 %v14567_v6, 0.0  ;;  %v5933_v45 = vpop.f32.mrb[13].mxu0  ;;  %v15273_v4 = vld [vmem:[#allocation4 + $0x18] sm:$0xff]   ;;  %v17413_v20 = vrot.slane %v6258_v32, 7  ;;  %14205 = vmatmul.mubr.msk.bf16.vlgmr.msra.gmra.mrb[0].mxu1 %vm493_vm7, %v15271_v9 }
 0x3a1   : >> { %v17415_v63 = vrot.slane %v6241_v58, 7  ;;  %v14568_v51 = vadd.f32 %v14178_v26, %v17359_v5  ;;  %v14569_v19 = vadd.f32 %v17359_v5, %v5933_v45  ;;  %v14179_v29 = vpop.f32.mrb[14].mxu0  ;;  %v6237_v44 = vor.u32 %v6235_v60, %v6234_v40  ;;  %14208 = vmatprep.mubr.msk.bf16.mxu1 %vm493_vm7, %v15273_v4  ;;  %14237 = vmatpush3.bf16.msra.mxu1 %v17352_v57  ;;  %v15287_v38 = vld [vmem:[%s17344_s26 + $0x38] sm:$0xff]   ;;  %v6532_v60 = vld [vmem:[#allocation4 + $0x50] sm:$0x1]  ;;  %v17447_v45 = vld [vmem:[%s17344_s26 + $0x40] sm:$0xff]  }
 0x3a2   : >> { %v6239_v47 = vrot.slane %v6234_v40, 4  ;;  %v6220_v8 = vor.u32 %v6218_v46, %v6217_v17  ;;  %v6222_v42 = vrot.slane %v6217_v17, 4  ;;  %v5936_v41 = vpop.f32.mrb[15].mxu0  ;;  %v6263_v48 = vor.u32 %v6261_v62, %v17413_v20  ;;  %14238 = vmatprep.subr.bf16.mxu1 %v15277_v0  ;;  %v6525_v49 = vld [vmem:[#allocation4 + $0x44] sm:$0x1] }
 0x3a3   : >> { %v6264_v35 = vrot.slane %v17413_v20, 4  ;;  %v6246_v52 = vor.u32 %v6244_v1, %v17415_v63  ;;  %v6247_v22 = vrot.slane %v17415_v63, 4  ;;  %v6238_v14 = vsel %vm15695_vm9, %v6230_v37, %v6237_v44  ;;  %v6542_v44 = vld [vmem:[#allocation4 + $0x60] sm:$0xf] }
 0x3a4   : >> { %v6519_v33 = vsel %vm15522_vm3, %v6239_v47, %v6518_v25  ;;  %v6221_v23 = vsel %vm15695_vm9, %v6213_v61, %v6220_v8  ;;  %v6512_v57 = vsel %vm15522_vm3, %v6222_v42, %v6511_v21  ;;  %6517 = vst.msk [vmem:[#allocation4 + $0x34] sm:$0xf] %vm224_vm0, %v6238_v14  ;;  %v6529_v2 = vsel %vm15685_vm8, %v6263_v48, %v6528_v39  ;;  %v6535_v47 = vld [vmem:[#allocation4 + $0x54] sm:$0xf] }
 0x3a5   : >> { %6520 = vst [vmem:[#allocation4 + $0x38] sm:$0x1] %v6519_v33  ;;  %6510 = vst.msk [vmem:[#allocation4 + $0x28] sm:$0xf] %vm224_vm0, %v6221_v23  ;;  %v6522_v37 = vsel %vm15685_vm8, %v6246_v52, %v6521_v27  ;;  %v13421_v36 = vpack.c.bf16 %v6055_v53, %v6055_v53  ;;  %v13419_v31 = vpack.c.bf16 %v6053_v59, %v6053_v59  ;;  %v6058_v61 = vmax.f32 %v14568_v51, 0.0 }
 0x3a6   : >> { %6513 = vst [vmem:[#allocation4 + $0x2c] sm:$0x1] %v6512_v57  ;;  %6530 = vst [vmem:[#allocation4 + $0x48] sm:$0xf] %v6529_v2  ;;  %v6056_v56 = vmax.f32 %v14569_v19, 0.0  ;;  %v14570_v12 = vadd.f32 %v14179_v29, %v17359_v5  ;;  %v14571_v30 = vadd.f32 %v17359_v5, %v5936_v41  ;;  %14239 = vmatpush3.bf16.msra.mxu1 %v15277_v0 }
 0x3a7   : >> { %6523 = vst [vmem:[#allocation4 + $0x3c] sm:$0xf] %v6522_v37  ;;  %v6266_v3 = vshrl.u32 %v13421_v36, 16  ;;  %v6269_v34 = vshll.u32 %v13421_v36, 16  ;;  %v6249_v28 = vshrl.u32 %v13419_v31, 16  ;;  %v6252_v15 = vshll.u32 %v13419_v31, 16  ;;  %14240 = vmatprep.subr.bf16.mxu1 %v15282_v24 }
 0x3a8   : >> { %v14182_v6 = vpop.f32.mrb[16].mxu0  ;;  %v13424_v46 = vpack.c.bf16 %v6058_v61, %v6058_v61  ;;  %v13422_v25 = vpack.c.bf16 %v6056_v56, %v6056_v56  ;;  %v6059_v21 = vmax.f32 %v14570_v12, 0.0  ;;  %v6057_v32 = vmax.f32 %v14571_v30, 0.0 }
 0x3a9   : >> { %v5949_v62 = vpop.f32.mrb[17].mxu0  ;;  %v6268_v58 = vrot.slane %v6266_v3, 7  ;;  %v6251_v1 = vrot.slane %v6249_v28, 7  ;;  %v14572_v26 = vadd.f32 %v14182_v6, %v17359_v5 }
 0x3aa   : >> { %v14573_v0 = vadd.f32 %v17359_v5, %v5949_v62  ;;  %v14183_v9 = vpop.f32.mrb[18].mxu0  ;;  %v6292_v40 = vshrl.u32 %v13424_v46, 16  ;;  %v6295_v17 = vshll.u32 %v13424_v46, 16  ;;  %v6275_v39 = vshrl.u32 %v13422_v25, 16  ;;  %14241 = vmatpush3.bf16.msra.mxu1 %v15282_v24 }
 0x3ab   : >> { %v6278_v53 = vshll.u32 %v13422_v25, 16  ;;  %v5952_v59 = vpop.f32.mrb[19].mxu0  ;;  %v6271_v4 = vor.u32 %v6269_v34, %v6268_v58  ;;  %v6273_v51 = vrot.slane %v6268_v58, 4  ;;  %v6254_v19 = vor.u32 %v6252_v15, %v6251_v1  ;;  %14242 = vmatprep.subr.bf16.mxu1 %v15287_v38  ;;  %v15275_v52 = vld [vmem:[#allocation4 + $0x30] sm:$0xff]  }
 0x3ac   : >> { %v6256_v29 = vrot.slane %v6251_v1, 4  ;;  %v6294_v8 = vrot.slane %v6292_v40, 7  ;;  %v6277_v42 = vrot.slane %v6275_v39, 7  ;;  %v13425_v27 = vpack.c.bf16 %v6059_v21, %v6059_v21  ;;  %v15274_v48 = vld [vmem:[#allocation4 + $0x24] sm:$0xff]   ;;  %v17620_v16 = vld [vmem:[#allocation4 + $0x38] sm:$0x1] }
 0x3ad   : >> { %v13423_v41 = vpack.c.bf16 %v6057_v32, %v6057_v32  ;;  %v6272_v24 = vsel %vm15695_vm9, %v6264_v35, %v6271_v4  ;;  %v6533_v14 = vsel %vm15522_vm3, %v6273_v51, %v6532_v60  ;;  %v6255_v33 = vsel %vm15695_vm9, %v6247_v22, %v6254_v19  ;;  %14209 = vmatmul.mubr.msk.bf16.gmra.mrb[4].mxu1 %vm493_vm7, %v15274_v48  ;;  %v6546_v60 = vld [vmem:[#allocation4 + $0x68] sm:$0x1]  ;;  %v6556_v19 = vld [vmem:[#allocation4 + $0x78] sm:$0xf] }
 0x3ae   : >> { %v6526_v23 = vsel %vm15522_vm3, %v6256_v29, %v6525_v49  ;;  %6531 = vst.msk [vmem:[#allocation4 + $0x4c] sm:$0xf] %vm224_vm0, %v6272_v24  ;;  %6534 = vst [vmem:[#allocation4 + $0x50] sm:$0x1] %v6533_v14  ;;  %v6297_v20 = vor.u32 %v6295_v17, %v6294_v8  ;;  %v6298_v57 = vrot.slane %v6294_v8, 4  ;;  %v6280_v35 = vor.u32 %v6278_v53, %v6277_v42 }
 0x3af   : >> { %6524 = vst.msk [vmem:[#allocation4 + $0x40] sm:$0xf] %vm224_vm0, %v6255_v33  ;;  %6527 = vst [vmem:[#allocation4 + $0x44] sm:$0x1] %v6526_v23  ;;  %v6281_v2 = vrot.slane %v6277_v42, 4  ;;  %v6300_v37 = vshrl.u32 %v13425_v27, 16  ;;  %14212 = vmatprep.mubr.msk.bf16.mxu1 %vm493_vm7, %v15275_v52  ;;  %14243 = vmatpush3.bf16.msra.mxu1 %v15287_v38  ;;  %v14574_v15 = vadd.f32 %v14183_v9, %v17359_v5 }
 0x3b0   : >> { %v6303_v63 = vshll.u32 %v13425_v27, 16  ;;  %v6283_v36 = vshrl.u32 %v13423_v41, 16  ;;  %v6286_v31 = vshll.u32 %v13423_v41, 16  ;;  %v14186_v22 = vpop.f32.mrb[20].mxu0  ;;  %v6543_v61 = vsel %vm15685_vm8, %v6297_v20, %v6542_v44  ;;  %14276 = vmatprep.subr.bf16.mxu1 %v17447_v45  ;;  %v6539_v49 = vld [vmem:[#allocation4 + $0x5c] sm:$0x1] }
 0x3b1   : >> { %v6536_v56 = vsel %vm15685_vm8, %v6280_v35, %v6535_v47  ;;  %v6062_v12 = vmax.f32 %v14572_v26, 0.0  ;;  %v6060_v30 = vmax.f32 %v14573_v0, 0.0  ;;  %v5965_v3 = vpop.f32.mrb[21].mxu0  ;;  %6544 = vst [vmem:[#allocation4 + $0x60] sm:$0xf] %v6543_v61  ;;  %v6302_v34 = vrot.slane %v6300_v37, 7 }
 0x3b2   : >> { %6537 = vst [vmem:[#allocation4 + $0x54] sm:$0xf] %v6536_v56  ;;  %v6285_v28 = vrot.slane %v6283_v36, 7  ;;  %v14575_v6 = vadd.f32 %v17359_v5, %v5952_v59  ;;  %v14187_v38 = vpop.f32.mrb[22].mxu0  ;;  %v14576_v21 = vadd.f32 %v14186_v22, %v17359_v5  ;;  %v14577_v32 = vadd.f32 %v17359_v5, %v5965_v3  ;;  %v6549_v41 = vld [vmem:[#allocation4 + $0x6c] sm:$0xf] }
 0x3b3   : >> { %v13428_v46 = vpack.c.bf16 %v6062_v12, %v6062_v12  ;;  %v13426_v25 = vpack.c.bf16 %v6060_v30, %v6060_v30  ;;  %v5968_v62 = vpop.f32.mrb[23].mxu0  ;;  %v6305_v58 = vor.u32 %v6303_v63, %v6302_v34  ;;  %v6307_v1 = vrot.slane %v6302_v34, 4 }
 0x3b4   : >> { %v6288_v26 = vor.u32 %v6286_v31, %v6285_v28  ;;  %v6290_v0 = vrot.slane %v6285_v28, 4  ;;  %v6063_v8 = vmax.f32 %v14574_v15, 0.0  ;;  %v6061_v42 = vmax.f32 %v14575_v6, 0.0 }
 0x3b5   : >> { %v6326_v40 = vshrl.u32 %v13428_v46, 16  ;;  %v6329_v17 = vshll.u32 %v13428_v46, 16  ;;  %v6309_v39 = vshrl.u32 %v13426_v25, 16  ;;  %v6312_v9 = vshll.u32 %v13426_v25, 16  ;;  %v15278_v27 = vld [vmem:[#allocation4 + $0x48] sm:$0xff]  }
 0x3b6   : >> { %v6306_v53 = vsel %vm15695_vm9, %v6298_v57, %v6305_v58  ;;  %v6547_v59 = vsel %vm15522_vm3, %v6307_v1, %v6546_v60  ;;  %v6289_v4 = vsel %vm15695_vm9, %v6281_v2, %v6288_v26  ;;  %v6540_v51 = vsel %vm15522_vm3, %v6290_v0, %v6539_v49  ;;  %v15276_v29 = vld [vmem:[#allocation4 + $0x3c] sm:$0xff]   ;;  %v6553_v60 = vld [vmem:[#allocation4 + $0x74] sm:$0x1]  ;;  %v6570_v58 = vld [vmem:[#allocation4 + $0x90] sm:$0xf] }
 0x3b7   : >> { %6545 = vst.msk [vmem:[#allocation4 + $0x64] sm:$0xf] %vm224_vm0, %v6306_v53  ;;  %6548 = vst [vmem:[#allocation4 + $0x68] sm:$0x1] %v6547_v59  ;;  %v17484_v44 = vrot.slane %v6326_v40, 7  ;;  %v17486_v47 = vrot.slane %v6309_v39, 7  ;;  %v14578_v24 = vadd.f32 %v14187_v38, %v17359_v5  ;;  %v14579_v14 = vadd.f32 %v17359_v5, %v5968_v62  ;;  %14213 = vmatmul.mubr.msk.bf16.gmra.mrb[8].mxu1 %vm493_vm7, %v15276_v29 }
 0x3b8   : >> { %6538 = vst.msk [vmem:[#allocation4 + $0x58] sm:$0xf] %vm224_vm0, %v6289_v4  ;;  %6541 = vst [vmem:[#allocation4 + $0x5c] sm:$0x1] %v6540_v51  ;;  %v6066_v48 = vmax.f32 %v14576_v21, 0.0  ;;  %v6064_v52 = vmax.f32 %v14577_v32, 0.0  ;;  %14216 = vmatprep.mubr.msk.bf16.mxu1 %vm493_vm7, %v15278_v27  ;;  %v13429_v37 = vpack.c.bf16 %v6063_v8, %v6063_v8  ;;  %v13427_v63 = vpack.c.bf16 %v6061_v42, %v6061_v42 }
 0x3b9   : >> { %v14190_v33 = vpop.f32.mrb[24].mxu0  ;;  %v6331_v23 = vor.u32 %v6329_v17, %v17484_v44  ;;  %v6332_v20 = vrot.slane %v17484_v44, 4  ;;  %v6314_v57 = vor.u32 %v6312_v9, %v17486_v47  ;;  %v6315_v35 = vrot.slane %v17486_v47, 4  ;;  %v6560_v38 = vld [vmem:[#allocation4 + $0x80] sm:$0x1] }
 0x3ba   : >> { %v5981_v2 = vpop.f32.mrb[25].mxu0  ;;  %v13432_v36 = vpack.c.bf16 %v6066_v48, %v6066_v48  ;;  %v13430_v31 = vpack.c.bf16 %v6064_v52, %v6064_v52  ;;  %v6067_v12 = vmax.f32 %v14578_v24, 0.0  ;;  %v6065_v30 = vmax.f32 %v14579_v14, 0.0  ;;  %v6563_v29 = vld [vmem:[#allocation4 + $0x84] sm:$0xf] }
 0x3bb   : >> { %v17496_v22 = vpop.f32.mrb[26].mxu0  ;;  %v6557_v61 = vsel %vm15685_vm8, %v6331_v23, %v6556_v19  ;;  %v6550_v56 = vsel %vm15685_vm8, %v6314_v57, %v6549_v41  ;;  %v6334_v34 = vshrl.u32 %v13429_v37, 16  ;;  %v6337_v28 = vshll.u32 %v13429_v37, 16 }
 0x3bc   : >> { %v5984_v3 = vpop.f32.mrb[27].mxu0  ;;  %6558 = vst [vmem:[#allocation4 + $0x78] sm:$0xf] %v6557_v61  ;;  %6551 = vst [vmem:[#allocation4 + $0x6c] sm:$0xf] %v6550_v56  ;;  %v6317_v15 = vshrl.u32 %v13427_v63, 16  ;;  %v13433_v1 = vpack.c.bf16 %v6067_v12, %v6067_v12  ;;  %v13431_v26 = vpack.c.bf16 %v6065_v30, %v6065_v30  ;;  %v14580_v39 = vadd.f32 %v14190_v33, %v17359_v5 }
 0x3bd   : >> { %v6320_v6 = vshll.u32 %v13427_v63, 16  ;;  %v6360_v49 = vshrl.u32 %v13432_v36, 16  ;;  %v6363_v46 = vshll.u32 %v13432_v36, 16  ;;  %v6343_v25 = vshrl.u32 %v13430_v31, 16 }
 0x3be   : >> { %v6346_v21 = vshll.u32 %v13430_v31, 16  ;;  %v6336_v32 = vrot.slane %v6334_v34, 7  ;;  %v6319_v62 = vrot.slane %v6317_v15, 7  ;;  %v14581_v9 = vadd.f32 %v17359_v5, %v5981_v2  ;;  %v15280_v53 = vld [vmem:[#allocation4 + $0x60] sm:$0xff]   ;;  %v6574_v34 = vld [vmem:[#allocation4 + $0x98] sm:$0x1] }
 0x3bf   : >> { %v15279_v0 = vld [vmem:[#allocation4 + $0x54] sm:$0xff]   ;;  %v6362_v40 = vrot.slane %v6360_v49, 7  ;;  %v17502_v17 = vrot.slane %v6343_v25, 7  ;;  %v14194_v44 = vpop.f32.mrb[28].mxu0  ;;  %v6368_v57 = vshrl.u32 %v13433_v1, 16  ;;  %v6371_v2 = vshll.u32 %v13433_v1, 16 }
 0x3c0   : >> { %v6339_v59 = vor.u32 %v6337_v28, %v6336_v32  ;;  %v6341_v4 = vrot.slane %v6336_v32, 4  ;;  %v6322_v51 = vor.u32 %v6320_v6, %v6319_v62  ;;  %v6324_v19 = vrot.slane %v6319_v62, 4  ;;  %14217 = vmatmul.mubr.msk.bf16.gmra.mrb[12].mxu1 %vm493_vm7, %v15279_v0  ;;  %v5997_v41 = vpop.f32.mrb[29].mxu0 }
 0x3c1   : >> { %v6365_v47 = vor.u32 %v6363_v46, %v6362_v40  ;;  %v6366_v8 = vrot.slane %v6362_v40, 4  ;;  %v6348_v42 = vor.u32 %v6346_v21, %v17502_v17  ;;  %v6349_v27 = vrot.slane %v17502_v17, 4  ;;  %14220 = vmatprep.mubr.msk.bf16.mxu1 %vm493_vm7, %v15280_v53  ;;  %v17518_v33 = vpop.f32.mrb[30].mxu0  ;;  %v6567_v46 = vld [vmem:[#allocation4 + $0x8c] sm:$0x1] }
 0x3c2   : >> { %v6340_v48 = vsel %vm15695_vm9, %v6332_v20, %v6339_v59  ;;  %v6561_v52 = vsel %vm15522_vm3, %v6341_v4, %v6560_v38  ;;  %v6323_v24 = vsel %vm15695_vm9, %v6315_v35, %v6322_v51  ;;  %v6554_v14 = vsel %vm15522_vm3, %v6324_v19, %v6553_v60  ;;  %v17526_v35 = vpop.f32.mrb[31].mxu0  ;;  %v6577_v53 = vld [vmem:[#allocation4 + $0x9c] sm:$0xf] }
 0x3c3   : >> { %6559 = vst.msk [vmem:[#allocation4 + $0x7c] sm:$0xf] %vm224_vm0, %v6340_v48  ;;  %6562 = vst [vmem:[#allocation4 + $0x80] sm:$0x1] %v6561_v52  ;;  %v6571_v23 = vsel %vm15685_vm8, %v6365_v47, %v6570_v58  ;;  %v6564_v20 = vsel %vm15685_vm8, %v6348_v42, %v6563_v29  ;;  %v6351_v37 = vshrl.u32 %v13431_v26, 16  ;;  %v6354_v63 = vshll.u32 %v13431_v26, 16 }
 0x3c4   : >> { %6552 = vst.msk [vmem:[#allocation4 + $0x70] sm:$0xf] %vm224_vm0, %v6323_v24  ;;  %6555 = vst [vmem:[#allocation4 + $0x74] sm:$0x1] %v6554_v14  ;;  %v6070_v36 = vmax.f32 %v14580_v39, 0.0  ;;  %v6068_v31 = vmax.f32 %v14581_v9, 0.0  ;;  %v14582_v56 = vadd.f32 %v17496_v22, %v17359_v5  ;;  %v14583_v12 = vadd.f32 %v17359_v5, %v5984_v3 }
 0x3c5   : >> { %6572 = vst [vmem:[#allocation4 + $0x90] sm:$0xf] %v6571_v23  ;;  %6565 = vst [vmem:[#allocation4 + $0x84] sm:$0xf] %v6564_v20  ;;  %v6370_v61 = vrot.slane %v6368_v57, 7  ;;  %v14584_v30 = vadd.f32 %v14194_v44, %v17359_v5  ;;  %v6353_v28 = vrot.slane %v6351_v37, 7  ;;  %v14585_v38 = vadd.f32 %v17359_v5, %v5997_v41 }
 0x3c6   : >> { %v13436_v15 = vpack.c.bf16 %v6070_v36, %v6070_v36  ;;  %v13434_v6 = vpack.c.bf16 %v6068_v31, %v6068_v31  ;;  %v6071_v25 = vmax.f32 %v14582_v56, 0.0  ;;  %v6069_v21 = vmax.f32 %v14583_v12, 0.0  ;;  %v6584_v26 = vld [vmem:[#allocation4 + $0xa8] sm:$0xf]  ;;  %v6581_v31 = vld [vmem:[#allocation4 + $0xa4] sm:$0x1] }
 0x3c7   : >> { %v6373_v60 = vor.u32 %v6371_v2, %v6370_v61  ;;  %v6375_v49 = vrot.slane %v6370_v61, 4  ;;  %v6356_v32 = vor.u32 %v6354_v63, %v6353_v28  ;;  %v6358_v62 = vrot.slane %v6353_v28, 4  ;;  %v6588_v63 = vld [vmem:[#allocation4 + $0xb0] sm:$0x1] }
 0x3c8   : >> { %v6394_v58 = vshrl.u32 %v13436_v15, 16  ;;  %v6397_v1 = vshll.u32 %v13436_v15, 16  ;;  %v6377_v0 = vshrl.u32 %v13434_v6, 16  ;;  %v6380_v40 = vshll.u32 %v13434_v6, 16  ;;  %v7003_v15 = vld [vmem:[#allocation4 + $0xc] sm:$0xf] }
 0x3c9   : >> { %v6374_v22 = vsel %vm15695_vm9, %v6366_v8, %v6373_v60  ;;  %v6575_v3 = vsel %vm15522_vm3, %v6375_v49, %v6574_v34  ;;  %v6357_v17 = vsel %vm15695_vm9, %v6349_v27, %v6356_v32  ;;  %v6568_v39 = vsel %vm15522_vm3, %v6358_v62, %v6567_v46  ;;  %v6598_v62 = vld [vmem:[#allocation4 + $0xc0] sm:$0xf] }
 0x3ca   : >> { %6573 = vst.msk [vmem:[#allocation4 + $0x94] sm:$0xf] %vm224_vm0, %v6374_v22  ;;  %6576 = vst [vmem:[#allocation4 + $0x98] sm:$0x1] %v6575_v3  ;;  %v6396_v9 = vrot.slane %v6394_v58, 7  ;;  %v13437_v59 = vpack.c.bf16 %v6071_v25, %v6071_v25  ;;  %v6379_v51 = vrot.slane %v6377_v0, 7  ;;  %v13435_v19 = vpack.c.bf16 %v6069_v21, %v6069_v21 }
 0x3cb   : >> { %v15281_v4 = vld [vmem:[#allocation4 + $0x6c] sm:$0xff]   ;;  %6566 = vst.msk [vmem:[#allocation4 + $0x88] sm:$0xf] %vm224_vm0, %v6357_v17  ;;  %6569 = vst [vmem:[#allocation4 + $0x8c] sm:$0x1] %v6568_v39  ;;  %v6074_v29 = vmax.f32 %v14584_v30, 0.0  ;;  %v14586_v61 = vadd.f32 %v17518_v33, %v17359_v5  ;;  %v14587_v56 = vadd.f32 %v17359_v5, %v17526_v35 }
 0x3cc   : >> { %v6072_v44 = vmax.f32 %v14585_v38, 0.0  ;;  %v15283_v47 = vld [vmem:[#allocation4 + $0x78] sm:$0xff]   ;;  %v6399_v8 = vor.u32 %v6397_v1, %v6396_v9  ;;  %v6400_v42 = vrot.slane %v6396_v9, 4  ;;  %v6402_v41 = vshrl.u32 %v13437_v59, 16  ;;  %14221 = vmatmul.mubr.msk.bf16.gmra.mrb[16].mxu1 %vm493_vm7, %v15281_v4  ;;  %v17569_v4 = vld [vmem:[#allocation4 + $0x10] sm:$0xf] }
 0x3cd   : >> { %v6405_v48 = vshll.u32 %v13437_v59, 16  ;;  %v6382_v27 = vor.u32 %v6380_v40, %v6379_v51  ;;  %v6383_v52 = vrot.slane %v6379_v51, 4  ;;  %v6385_v24 = vshrl.u32 %v13435_v19, 16  ;;  %14224 = vmatprep.mubr.msk.bf16.mxu1 %vm493_vm7, %v15283_v47  ;;  %v7006_v39 = vld [vmem:[#allocation4 + $0x18] sm:$0xf] }
 0x3ce   : >> { %v6388_v14 = vshll.u32 %v13435_v19, 16  ;;  %v6585_v23 = vsel %vm15685_vm8, %v6399_v8, %v6584_v26  ;;  %v6404_v20 = vrot.slane %v6402_v41, 7  ;;  %v13440_v57 = vpack.c.bf16 %v6074_v29, %v6074_v29  ;;  %v6591_v26 = vld [vmem:[#allocation4 + $0xb4] sm:$0xf]  ;;  %v6602_v41 = vld [vmem:[#allocation4 + $0xc8] sm:$0x1] }
 0x3cf   : >> { %v13438_v2 = vpack.c.bf16 %v6072_v44, %v6072_v44  ;;  %6586 = vst [vmem:[#allocation4 + $0xa8] sm:$0xf] %v6585_v23  ;;  %v6578_v37 = vsel %vm15685_vm8, %v6382_v27, %v6577_v53  ;;  %v6387_v36 = vrot.slane %v6385_v24, 7  ;;  %v6075_v21 = vmax.f32 %v14586_v61, 0.0  ;;  %v17571_v51 = vld [vmem:[#allocation4 + $0x14] sm:$0x1] }
 0x3d0   : >> { %6579 = vst [vmem:[#allocation4 + $0x9c] sm:$0xf] %v6578_v37  ;;  %v6407_v12 = vor.u32 %v6405_v48, %v6404_v20  ;;  %v6409_v30 = vrot.slane %v6404_v20, 4  ;;  %v6428_v34 = vshrl.u32 %v13440_v57, 16  ;;  %v6431_v28 = vshll.u32 %v13440_v57, 16 }
 0x3d1   : >> { %v6390_v6 = vor.u32 %v6388_v14, %v6387_v36  ;;  %v6392_v38 = vrot.slane %v6387_v36, 4  ;;  %v6411_v60 = vshrl.u32 %v13438_v2, 16  ;;  %v6414_v49 = vshll.u32 %v13438_v2, 16  ;;  %v15285_v22 = vld [vmem:[#allocation4 + $0x90] sm:$0xff]   ;;  %v6595_v14 = vld [vmem:[#allocation4 + $0xbc] sm:$0x1] }
 0x3d2   : >> { %v6408_v46 = vsel %vm15695_vm9, %v6400_v42, %v6407_v12  ;;  %v6589_v25 = vsel %vm15522_vm3, %v6409_v30, %v6588_v63  ;;  %v6430_v33 = vrot.slane %v6428_v34, 7  ;;  %v15284_v32 = vld [vmem:[#allocation4 + $0x84] sm:$0xff]   ;;  %v6073_v1 = vmax.f32 %v14587_v56, 0.0  ;;  %v17580_v63 = vld [vmem:[#allocation4 + $0x1c] sm:$0xf] }
 0x3d3   : >> { %6587 = vst.msk [vmem:[#allocation4 + $0xac] sm:$0xf] %vm224_vm0, %v6408_v46  ;;  %6590 = vst [vmem:[#allocation4 + $0xb0] sm:$0x1] %v6589_v25  ;;  %v6391_v5 = vsel %vm15695_vm9, %v6383_v52, %v6390_v6  ;;  %v6582_v35 = vsel %vm15522_vm3, %v6392_v38, %v6581_v31  ;;  %v6413_v58 = vrot.slane %v6411_v60, 7  ;;  %v13441_v0 = vpack.c.bf16 %v6075_v21, %v6075_v21 }
 0x3d4   : >> { %6580 = vst.msk [vmem:[#allocation4 + $0xa0] sm:$0xf] %vm224_vm0, %v6391_v5  ;;  %6583 = vst [vmem:[#allocation4 + $0xa4] sm:$0x1] %v6582_v35  ;;  %v6433_v3 = vor.u32 %v6431_v28, %v6430_v33  ;;  %14225 = vmatmul.mubr.msk.bf16.gmra.mrb[20].mxu1 %vm493_vm7, %v15284_v32  ;;  %v7071_v40 = vsel %vm16090_vm12, %v17370_v10, %v17382_v55  ;;  %v7073_v17 = vshrl.u32 %v7003_v15, 16  ;;  %v6434_v9 = vrot.slane %v6430_v33, 4 }
 0x3d5   : >> { %v6416_v53 = vor.u32 %v6414_v49, %v6413_v58  ;;  %v13439_v59 = vpack.c.bf16 %v6073_v1, %v6073_v1  ;;  %14228 = vmatprep.mubr.msk.bf16.mxu1 %vm493_vm7, %v15285_v22  ;;  %v7076_v19 = vshll.u32 %v7003_v15, 16  ;;  %v6436_v44 = vshrl.u32 %v13441_v0, 16  ;;  %v17582_v36 = vld [vmem:[#allocation4 + $0x20] sm:$0x1]  ;;  %v7009_v32 = vld [vmem:[#allocation4 + $0x24] sm:$0xf] }
 0x3d6   : >> { %v6599_v29 = vsel %vm15685_vm8, %v6433_v3, %v6598_v62  ;;  %v6439_v47 = vshll.u32 %v13441_v0, 16  ;;  %v7075_v8 = vrot.slane %v7073_v17, 4  ;;  %v7082_v23 = vshll.u32 %v17569_v4, 16  ;;  %v17588_v5 = vld [vmem:[#allocation4 + $0x28] sm:$0xf] }
 0x3d7   : >> { %6600 = vst [vmem:[#allocation4 + $0xc0] sm:$0xf] %v6599_v29  ;;  %v6592_v42 = vsel %vm15685_vm8, %v6416_v53, %v6591_v26  ;;  %v6419_v48 = vshrl.u32 %v13439_v59, 16  ;;  %v6422_v27 = vshll.u32 %v13439_v59, 16  ;;  %v7078_v52 = vrot.slane %v7076_v19, 5 }
 0x3d8   : >> { %6593 = vst [vmem:[#allocation4 + $0xb4] sm:$0xf] %v6592_v42  ;;  %v6438_v24 = vrot.slane %v6436_v44, 7  ;;  %v7086_v20 = vshrl.u32 %v17569_v4, 16  ;;  %v7092_v57 = vshll.u32 %v17571_v51, 16  ;;  %v7097_v31 = vshrl.u32 %v7006_v39, 16 }
 0x3d9   : >> { %v6421_v2 = vrot.slane %v6419_v48, 7  ;;  %v7079_v37 = vor.u32 %v7078_v52, %v7075_v8  ;;  %v7100_v61 = vshll.u32 %v7006_v39, 16  ;;  %v7084_v30 = vrot.slane %v7082_v23, 5  ;;  %v17601_v17 = vld [vmem:[#allocation4 + $0x2c] sm:$0x1] }
 0x3da   : >> { %v6441_v56 = vor.u32 %v6439_v47, %v6438_v24  ;;  %v6443_v12 = vrot.slane %v6438_v24, 4  ;;  %v7088_v34 = vrot.slane %v7086_v20, 4  ;;  %v6417_v28 = vrot.slane %v6413_v58, 4  ;;  %v15288_v25 = vld [vmem:[#allocation4 + $0xa8] sm:$0xff]   ;;  %v7012_v8 = vld [vmem:[#allocation4 + $0x30] sm:$0xf] }
 0x3db   : >> { %v6424_v15 = vor.u32 %v6422_v27, %v6421_v2  ;;  %v6426_v6 = vrot.slane %v6421_v2, 4  ;;  %v15286_v38 = vld [vmem:[#allocation4 + $0x9c] sm:$0xff]   ;;  %v7080_v60 = vrot.slane %v7079_v37, 4  ;;  %v7099_v21 = vrot.slane %v7097_v31, 4  ;;  %v17616_v52 = vld [vmem:[#allocation4 + $0x34] sm:$0xf] }
 0x3dc   : >> { %v6442_v49 = vsel %vm15695_vm9, %v6434_v9, %v6441_v56  ;;  %v6603_v46 = vsel %vm15522_vm3, %v6443_v12, %v6602_v41  ;;  %v7089_v33 = vor.u32 %v7088_v34, %v7084_v30  ;;  %14229 = vmatmul.mubr.msk.bf16.gmra.mrb[24].mxu1 %vm493_vm7, %v15286_v38  ;;  %v7094_v58 = vrot.slane %v7092_v57, 5  ;;  %v7015_v20 = vld [vmem:[#allocation4 + $0x3c] sm:$0xf]  ;;  %v18162_v50 = vld [vmem:[#allocation4 + $0xa0] sm:$0xf] }
 0x3dd   : >> { %6601 = vst.msk [vmem:[#allocation4 + $0xc4] sm:$0xf] %vm224_vm0, %v6442_v49  ;;  %6604 = vst [vmem:[#allocation4 + $0xc8] sm:$0x1] %v6603_v46  ;;  %v6425_v35 = vsel %vm15695_vm9, %v6417_v28, %v6424_v15  ;;  %v6596_v62 = vsel %vm15522_vm3, %v6426_v6, %v6595_v14  ;;  %v7102_v1 = vrot.slane %v7100_v61, 5  ;;  %14232 = vmatprep.mubr.msk.bf16.mxu1 %vm493_vm7, %v15288_v25  ;;  %v7106_v3 = vshll.u32 %v17580_v63, 16 }
 0x3de   : >> { %6594 = vst.msk [vmem:[#allocation4 + $0xb8] sm:$0xf] %vm224_vm0, %v6425_v35  ;;  %6597 = vst [vmem:[#allocation4 + $0xbc] sm:$0x1] %v6596_v62  ;;  %v7090_v22 = vrot.slane %v7089_v33, 4  ;;  %v7110_v26 = vshrl.u32 %v17580_v63, 16  ;;  %v12940_v19 = vcombine.low %v7061_v18, %v7071_v40  ;;  %v7085_v13 = vsel %vm16090_vm12, %v7080_v60, %v7084_v30 }
 0x3df   : >> { %v7116_v0 = vshll.u32 %v17582_v36, 16  ;;  %v7103_v39 = vor.u32 %v7102_v1, %v7099_v21  ;;  %v7121_v9 = vshrl.u32 %v7009_v32, 16  ;;  %v7124_v53 = vshll.u32 %v7009_v32, 16  ;;  %v17628_v60 = vld [vmem:[#allocation4 + $0x40] sm:$0xf] }
 0x3e0   : >> { %v7130_v59 = vshll.u32 %v17588_v5, 16  ;;  %v7095_v29 = vsel %vm16090_vm12, %v7090_v22, %v7094_v58  ;;  %v7108_v44 = vrot.slane %v7106_v3, 5  ;;  %v7112_v47 = vrot.slane %v7110_v26, 4  ;;  %v17636_v21 = vld [vmem:[#allocation4 + $0x44] sm:$0x1] }
 0x3e1   : >> { %v7104_v42 = vrot.slane %v7103_v39, 4  ;;  %v7118_v41 = vrot.slane %v7116_v0, 5  ;;  %v7123_v48 = vrot.slane %v7121_v9, 4  ;;  %v7126_v27 = vrot.slane %v7124_v53, 5  ;;  %v7018_v32 = vld [vmem:[#allocation4 + $0x48] sm:$0xf] }
 0x3e2   : >> { %v7113_v24 = vor.u32 %v7112_v47, %v7108_v44  ;;  %v7132_v10 = vrot.slane %v7130_v59, 5  ;;  %v7134_v55 = vshrl.u32 %v17588_v5, 16  ;;  %v7140_v14 = vshll.u32 %v17601_v17, 16  ;;  %v17639_v22 = vld [vmem:[#allocation4 + $0x4c] sm:$0xf] }
 0x3e3   : >> { %v7127_v18 = vor.u32 %v7126_v27, %v7123_v48  ;;  %v7145_v40 = vshrl.u32 %v7012_v8, 16  ;;  %v7148_v23 = vshll.u32 %v7012_v8, 16  ;;  %v12941_v57 = vcombine.low %v7085_v13, %v7095_v29  ;;  %v18164_v54 = vld [vmem:[#allocation4 + $0xa4] sm:$0x1] }
 0x3e4   : >> { %v7114_v2 = vrot.slane %v7113_v24, 4  ;;  %v7136_v37 = vrot.slane %v7134_v55, 4  ;;  %v7154_v31 = vshll.u32 %v17616_v52, 16  ;;  %v7109_v56 = vsel %vm16090_vm12, %v7104_v42, %v7108_v44  ;;  %v17647_v42 = vld [vmem:[#allocation4 + $0x50] sm:$0x1] }
 0x3e5   : >> { %v15289_v61 = vld [vmem:[#allocation4 + $0xb4] sm:$0xff]   ;;  %v7128_v12 = vrot.slane %v7127_v18, 4  ;;  %v7147_v34 = vrot.slane %v7145_v40, 4  ;;  %v7150_v28 = vrot.slane %v7148_v23, 5  ;;  %v7142_v6 = vrot.slane %v7140_v14, 5 }
 0x3e6   : >> { %v7137_v15 = vor.u32 %v7136_v37, %v7132_v10  ;;  %v7156_v38 = vrot.slane %v7154_v31, 5  ;;  %v7158_v30 = vshrl.u32 %v17616_v52, 16  ;;  %14233 = vmatmul.mubr.msk.bf16.gmra.mrb[28].mxu1 %vm493_vm7, %v15289_v61  ;;  %v7119_v49 = vsel %vm16090_vm12, %v7114_v2, %v7118_v41  ;;  %v7021_v41 = vld [vmem:[#allocation4 + $0x54] sm:$0xf]  ;;  %v17657_v31 = vld [vmem:[#allocation4 + $0x58] sm:$0xf] }
 0x3e7   : >> { %v7133_v46 = vsel %vm16090_vm12, %v7128_v12, %v7132_v10  ;;  %v7151_v25 = vor.u32 %v7150_v28, %v7147_v34  ;;  %v7164_v33 = vshll.u32 %v17620_v16, 16  ;;  %14244 = vmatprep.mubr.msk.bf16.mxu1 %vm493_vm7, %v12940_v19  ;;  %v7169_v58 = vshrl.u32 %v7015_v20, 16  ;;  %v15291_v14 = vld [vmem:[%s17344_s26 + $0x48] sm:$0xff]   ;;  %v17660_v28 = vld [vmem:[#allocation4 + $0x5c] sm:$0x1] }
 0x3e8   : >> { %v7138_v35 = vrot.slane %v7137_v15, 4  ;;  %v7160_v62 = vrot.slane %v7158_v30, 4  ;;  %v7172_v1 = vshll.u32 %v7015_v20, 16  ;;  %v7178_v0 = vshll.u32 %v17628_v60, 16  ;;  %v7024_v15 = vld [vmem:[#allocation4 + $0x60] sm:$0xf] }
 0x3e9   : >> { %v7152_v3 = vrot.slane %v7151_v25, 4  ;;  %v7166_v26 = vrot.slane %v7164_v33, 5  ;;  %v7182_v39 = vshrl.u32 %v17628_v60, 16  ;;  %v7171_v59 = vrot.slane %v7169_v58, 4  ;;  %v15292_v25 = vld [vmem:[%s17344_s26 + $0x50] sm:$0xff]  }
 0x3ea   : >> { %v7143_v9 = vsel %vm16090_vm12, %v7138_v35, %v7142_v6  ;;  %v7161_v53 = vor.u32 %v7160_v62, %v7156_v38  ;;  %v7174_v29 = vrot.slane %v7172_v1, 5  ;;  %v12942_v19 = vcombine.low %v7109_v56, %v7119_v49  ;;  %v15316_v43 = vld [vmem:[#allocation4 + $0xb4] sm:$0xff]  }
 0x3eb   : >> { %v17645_v44 = vcombine.low %v7133_v46, %v7143_v9  ;;  %v7180_v47 = vrot.slane %v7178_v0, 5  ;;  %v7184_v8 = vrot.slane %v7182_v39, 4  ;;  %v7188_v24 = vshll.u32 %v17636_v21, 16  ;;  %v17665_v46 = vld [vmem:[#allocation4 + $0x64] sm:$0xf] }
 0x3ec   : >> { %v7162_v48 = vrot.slane %v7161_v53, 4  ;;  %v7175_v27 = vor.u32 %v7174_v29, %v7171_v59  ;;  %v7193_v10 = vshrl.u32 %v7018_v32, 16  ;;  %v7196_v13 = vshll.u32 %v7018_v32, 16  ;;  %v17674_v9 = vld [vmem:[#allocation4 + $0x68] sm:$0x1]  ;;  %v15293_v59 = vld [vmem:[%s17344_s26 + $0x58] sm:$0xff]  }
 0x3ed   : >> { %v7185_v55 = vor.u32 %v7184_v8, %v7180_v47  ;;  %v7202_v18 = vshll.u32 %v17639_v22, 16  ;;  %v7206_v40 = vshrl.u32 %v17639_v22, 16  ;;  %v7157_v23 = vsel %vm16090_vm12, %v7152_v3, %v7156_v38  ;;  %v7027_v53 = vld [vmem:[#allocation4 + $0x6c] sm:$0xf] }
 0x3ee   : >> { %v7167_v20 = vsel %vm16090_vm12, %v7162_v48, %v7166_v26  ;;  %v7176_v2 = vrot.slane %v7175_v27, 4  ;;  %v7195_v37 = vrot.slane %v7193_v10, 4  ;;  %14245 = vmatmul.mubr.msk.bf16.vlgmr.msra.gmra.mrb[0].mxu1 %vm493_vm7, %v12941_v57  ;;  %v7190_v56 = vrot.slane %v7188_v24, 5 }
 0x3ef   : >> { %v7186_v61 = vrot.slane %v7185_v55, 4  ;;  %v7198_v12 = vrot.slane %v7196_v13, 5  ;;  %v7204_v34 = vrot.slane %v7202_v18, 5  ;;  %14248 = vmatprep.mubr.msk.bf16.mxu1 %vm493_vm7, %v12942_v19  ;;  %14277 = vmatpush3.bf16.msra.mxu1 %v17447_v45  ;;  %v12944_v6 = vcombine.low %v7157_v23, %v7167_v20 }
 0x3f0   : >> { %v7208_v38 = vrot.slane %v7206_v40, 4  ;;  %v7212_v30 = vshll.u32 %v17647_v42, 16  ;;  %v7217_v49 = vshrl.u32 %v7021_v41, 16  ;;  %v7181_v57 = vsel %vm16090_vm12, %v7176_v2, %v7180_v47  ;;  %14278 = vmatprep.subr.bf16.mxu1 %v15291_v14  ;;  %v17683_v40 = vld [vmem:[#allocation4 + $0x70] sm:$0xf] }
 0x3f1   : >> { %v7199_v33 = vor.u32 %v7198_v12, %v7195_v37  ;;  %v7220_v32 = vshll.u32 %v7021_v41, 16  ;;  %v7226_v35 = vshll.u32 %v17657_v31, 16  ;;  %v7191_v45 = vsel %vm16090_vm12, %v7186_v61, %v7190_v56 }
 0x3f2   : >> { %v7209_v62 = vor.u32 %v7208_v38, %v7204_v34  ;;  %v7214_v58 = vrot.slane %v7212_v30, 5  ;;  %v7219_v1 = vrot.slane %v7217_v49, 4  ;;  %v7230_v39 = vshrl.u32 %v17657_v31, 16  ;;  %v17690_v38 = vld [vmem:[#allocation4 + $0x74] sm:$0x1]  ;;  %v17694_v49 = vld [vmem:[%s17344_s26 + $0x60] sm:$0xff]  }
 0x3f3   : >> { %v7200_v3 = vrot.slane %v7199_v33, 4  ;;  %v7222_v26 = vrot.slane %v7220_v32, 5  ;;  %v7228_v0 = vrot.slane %v7226_v35, 5  ;;  %14279 = vmatpush3.bf16.msra.mxu1 %v15291_v14  ;;  %v7236_v19 = vshll.u32 %v17660_v28, 16  ;;  %v7030_v35 = vld [vmem:[#allocation4 + $0x78] sm:$0xf] }
 0x3f4   : >> { %v7210_v29 = vrot.slane %v7209_v62, 4  ;;  %v7241_v47 = vshrl.u32 %v7024_v15, 16  ;;  %v7244_v8 = vshll.u32 %v7024_v15, 16  ;;  %v12945_v41 = vcombine.low %v7181_v57, %v7191_v45  ;;  %14280 = vmatprep.subr.bf16.mxu1 %v15292_v25 }
 0x3f5   : >> { %v7223_v48 = vor.u32 %v7222_v26, %v7219_v1  ;;  %v7232_v27 = vrot.slane %v7230_v39, 4  ;;  %v7250_v24 = vshll.u32 %v17665_v46, 16  ;;  %v7205_v10 = vsel %vm16090_vm12, %v7200_v3, %v7204_v34  ;;  %v17701_v1 = vld [vmem:[#allocation4 + $0x7c] sm:$0xf] }
 0x3f6   : >> { %v7215_v55 = vsel %vm16090_vm12, %v7210_v29, %v7214_v58  ;;  %v7243_v13 = vrot.slane %v7241_v47, 4  ;;  %v7246_v18 = vrot.slane %v7244_v8, 5  ;;  %14249 = vmatmul.mubr.msk.bf16.gmra.mrb[4].mxu1 %vm493_vm7, %v17645_v44  ;;  %v7238_v20 = vrot.slane %v7236_v19, 5  ;;  %v17704_v19 = vld [vmem:[#allocation4 + $0x80] sm:$0x1] }
 0x3f7   : >> { %v7224_v14 = vrot.slane %v7223_v48, 4  ;;  %v7233_v23 = vor.u32 %v7232_v27, %v7228_v0  ;;  %v7252_v2 = vrot.slane %v7250_v24, 5  ;;  %14252 = vmatprep.mubr.msk.bf16.mxu1 %vm493_vm7, %v12944_v6  ;;  %v7254_v61 = vshrl.u32 %v17665_v46, 16  ;;  %14281 = vmatpush3.bf16.msra.mxu1 %v15292_v25 }
 0x3f8   : >> { %v7247_v37 = vor.u32 %v7246_v18, %v7243_v13  ;;  %v7260_v56 = vshll.u32 %v17674_v9, 16  ;;  %v7265_v12 = vshrl.u32 %v7027_v53, 16  ;;  %v12946_v34 = vcombine.low %v7205_v10, %v7215_v55  ;;  %14282 = vmatprep.subr.bf16.mxu1 %v15293_v59 }
 0x3f9   : >> { %v7234_v15 = vrot.slane %v7233_v23, 4  ;;  %v7268_v30 = vshll.u32 %v7027_v53, 16  ;;  %v7274_v44 = vshll.u32 %v17683_v40, 16  ;;  %v7229_v6 = vsel %vm16090_vm12, %v7224_v14, %v7228_v0  ;;  %v7033_v14 = vld [vmem:[#allocation4 + $0x84] sm:$0xf] }
 0x3fa   : >> { %v7248_v57 = vrot.slane %v7247_v37, 4  ;;  %v7256_v33 = vrot.slane %v7254_v61, 4  ;;  %v7267_v32 = vrot.slane %v7265_v12, 4  ;;  %v7278_v58 = vshrl.u32 %v17683_v40, 16  ;;  %v17716_v61 = vld [vmem:[#allocation4 + $0x88] sm:$0xf] }
 0x3fb   : >> { %v7239_v25 = vsel %vm16090_vm12, %v7234_v15, %v7238_v20  ;;  %v7270_v45 = vrot.slane %v7268_v30, 5  ;;  %v7276_v62 = vrot.slane %v7274_v44, 5  ;;  %v7262_v39 = vrot.slane %v7260_v56, 5  ;;  %14283 = vmatpush3.bf16.msra.mxu1 %v15293_v59 }
 0x3fc   : >> { %v12947_v3 = vcombine.low %v7229_v6, %v7239_v25  ;;  %v7257_v26 = vor.u32 %v7256_v33, %v7252_v2  ;;  %v7284_v53 = vshll.u32 %v17690_v38, 16  ;;  %v7280_v29 = vrot.slane %v7278_v58, 4  ;;  %14316 = vmatprep.subr.bf16.mxu1 %v17694_v49  ;;  %v17720_v6 = vld [vmem:[#allocation4 + $0x8c] sm:$0x1] }
 0x3fd   : >> { %v7271_v0 = vor.u32 %v7270_v45, %v7267_v32  ;;  %v7289_v47 = vshrl.u32 %v7030_v35, 16  ;;  %v7292_v8 = vshll.u32 %v7030_v35, 16  ;;  %v7253_v48 = vsel %vm16090_vm12, %v7248_v57, %v7252_v2  ;;  %v7036_v45 = vld [vmem:[#allocation4 + $0x90] sm:$0xf] }
 0x3fe   : >> { %v7258_v27 = vrot.slane %v7257_v26, 4  ;;  %v7298_v24 = vshll.u32 %v17701_v1, 16  ;;  %v7302_v10 = vshrl.u32 %v17701_v1, 16  ;;  %14253 = vmatmul.mubr.msk.bf16.gmra.mrb[8].mxu1 %vm493_vm7, %v12945_v41  ;;  %v7281_v59 = vor.u32 %v7280_v29, %v7276_v62 }
 0x3ff   : >> { %v7272_v55 = vrot.slane %v7271_v0, 4  ;;  %v7291_v13 = vrot.slane %v7289_v47, 4  ;;  %v7294_v18 = vrot.slane %v7292_v8, 5  ;;  %14256 = vmatprep.mubr.msk.bf16.mxu1 %vm493_vm7, %v12946_v34  ;;  %v7308_v2 = vshll.u32 %v17704_v19, 16  ;;  %v17726_v0 = vld [vmem:[#allocation4 + $0x94] sm:$0xf] }
 0x400   : >> { %v7263_v23 = vsel %vm16090_vm12, %v7258_v27, %v7262_v39  ;;  %v7300_v20 = vrot.slane %v7298_v24, 5  ;;  %v7304_v37 = vrot.slane %v7302_v10, 4  ;;  %v7282_v12 = vrot.slane %v7281_v59, 4  ;;  %v17731_v24 = vld [vmem:[#allocation4 + $0x98] sm:$0x1] }
 0x401   : >> { %v12948_v56 = vcombine.low %v7253_v48, %v7263_v23  ;;  %v7286_v15 = vrot.slane %v7284_v53, 5  ;;  %v7295_v41 = vor.u32 %v7294_v18, %v7291_v13  ;;  %v7277_v30 = vsel %vm16090_vm12, %v7272_v55, %v7276_v62  ;;  %v7039_v59 = vld [vmem:[#allocation4 + $0x9c] sm:$0xf] }
 0x402   : >> { %v7305_v44 = vor.u32 %v7304_v37, %v7300_v20  ;;  %v7313_v34 = vshrl.u32 %v7033_v14, 16  ;;  %v7316_v57 = vshll.u32 %v7033_v14, 16  ;;  %v7322_v35 = vshll.u32 %v17716_v61, 16 }
 0x403   : >> { %v7287_v33 = vsel %vm16090_vm12, %v7282_v12, %v7286_v15  ;;  %v7296_v32 = vrot.slane %v7295_v41, 4  ;;  %v7326_v25 = vshrl.u32 %v17716_v61, 16  ;;  %v7310_v26 = vrot.slane %v7308_v2, 5  ;;  %v17739_v15 = vld [vmem:[#allocation4 + $0xa0] sm:$0xf] }
 0x404   : >> { %v7306_v58 = vrot.slane %v7305_v44, 4  ;;  %v7315_v39 = vrot.slane %v7313_v34, 4  ;;  %v7318_v53 = vrot.slane %v7316_v57, 5  ;;  %v12949_v62 = vcombine.low %v7277_v30, %v7287_v33 }
 0x405   : >> { %v7324_v29 = vrot.slane %v7322_v35, 5  ;;  %v7328_v47 = vrot.slane %v7326_v25, 4  ;;  %v7332_v8 = vshll.u32 %v17720_v6, 16  ;;  %v7301_v48 = vsel %vm16090_vm12, %v7296_v32, %v7300_v20  ;;  %v17742_v32 = vld [vmem:[#allocation4 + $0xa4] sm:$0x1] }
 0x406   : >> { %v7319_v27 = vor.u32 %v7318_v53, %v7315_v39  ;;  %v7337_v10 = vshrl.u32 %v7036_v45, 16  ;;  %v7340_v55 = vshll.u32 %v7036_v45, 16  ;;  %14257 = vmatmul.mubr.msk.bf16.gmra.mrb[12].mxu1 %vm493_vm7, %v12947_v3  ;;  %v7311_v13 = vsel %vm16090_vm12, %v7306_v58, %v7310_v26  ;;  %v7042_v25 = vld [vmem:[#allocation4 + $0xa8] sm:$0xf] }
 0x407   : >> { %v7329_v18 = vor.u32 %v7328_v47, %v7324_v29  ;;  %v7334_v14 = vrot.slane %v7332_v8, 5  ;;  %v7346_v23 = vshll.u32 %v17726_v0, 16  ;;  %14260 = vmatprep.mubr.msk.bf16.mxu1 %vm493_vm7, %v12948_v56  ;;  %v7350_v12 = vshrl.u32 %v17726_v0, 16 }
 0x408   : >> { %v7320_v37 = vrot.slane %v7319_v27, 4  ;;  %v7339_v2 = vrot.slane %v7337_v10, 4  ;;  %v7342_v20 = vrot.slane %v7340_v55, 5  ;;  %v7356_v3 = vshll.u32 %v17731_v24, 16 }
 0x409   : >> { %v7330_v41 = vrot.slane %v7329_v18, 4  ;;  %v7348_v30 = vrot.slane %v7346_v23, 5  ;;  %v7361_v44 = vshrl.u32 %v7039_v59, 16  ;;  %v12950_v34 = vcombine.low %v7301_v48, %v7311_v13  ;;  %v17749_v48 = vld [vmem:[#allocation4 + $0xac] sm:$0xf] }
 0x40a   : >> { %v7343_v57 = vor.u32 %v7342_v20, %v7339_v2  ;;  %v7352_v33 = vrot.slane %v7350_v12, 4  ;;  %v7364_v35 = vshll.u32 %v7039_v59, 16  ;;  %v7325_v56 = vsel %vm16090_vm12, %v7320_v37, %v7324_v29  ;;  %v17753_v23 = vld [vmem:[#allocation4 + $0xb0] sm:$0x1] }
 0x40b   : >> { %v7335_v45 = vsel %vm16090_vm12, %v7330_v41, %v7334_v14  ;;  %v7363_v58 = vrot.slane %v7361_v44, 4  ;;  %v7370_v26 = vshll.u32 %v17739_v15, 16  ;;  %v7358_v47 = vrot.slane %v7356_v3, 5  ;;  %v7045_v41 = vld [vmem:[#allocation4 + $0xb4] sm:$0xf] }
 0x40c   : >> { %v7344_v39 = vrot.slane %v7343_v57, 4  ;;  %v7353_v53 = vor.u32 %v7352_v33, %v7348_v30  ;;  %v7366_v8 = vrot.slane %v7364_v35, 5  ;;  %v7374_v10 = vshrl.u32 %v17739_v15, 16  ;;  %v17763_v35 = vld [vmem:[#allocation4 + $0xb8] sm:$0xf] }
 0x40d   : >> { %v7372_v27 = vrot.slane %v7370_v26, 5  ;;  %v7380_v55 = vshll.u32 %v17742_v32, 16  ;;  %v7385_v59 = vshrl.u32 %v7042_v25, 16  ;;  %v12951_v13 = vcombine.low %v7325_v56, %v7335_v45 }
 0x40e   : >> { %v7354_v29 = vrot.slane %v7353_v53, 4  ;;  %v7367_v18 = vor.u32 %v7366_v8, %v7363_v58  ;;  %v7388_v14 = vshll.u32 %v7042_v25, 16  ;;  %14261 = vmatmul.mubr.msk.bf16.gmra.mrb[16].mxu1 %vm493_vm7, %v12949_v62  ;;  %v7349_v37 = vsel %vm16090_vm12, %v7344_v39, %v7348_v30  ;;  %v17766_v39 = vld [vmem:[#allocation4 + $0xbc] sm:$0x1] }
 0x40f   : >> { %v7376_v2 = vrot.slane %v7374_v10, 4  ;;  %v7387_v20 = vrot.slane %v7385_v59, 4  ;;  %v7394_v12 = vshll.u32 %v17749_v48, 16  ;;  %14264 = vmatprep.mubr.msk.bf16.mxu1 %vm493_vm7, %v12950_v34  ;;  %v7398_v33 = vshrl.u32 %v17749_v48, 16 }
 0x410   : >> { %v7359_v3 = vsel %vm16090_vm12, %v7354_v29, %v7358_v47  ;;  %v7368_v44 = vrot.slane %v7367_v18, 4  ;;  %v7390_v57 = vrot.slane %v7388_v14, 5  ;;  %v7382_v56 = vrot.slane %v7380_v55, 5  ;;  %v7755_v14 = vld [vmem:[#allocation4] sm:$0xe] }
 0x411   : >> { %v12952_v62 = vcombine.low %v7349_v37, %v7359_v3  ;;  %v7377_v25 = vor.u32 %v7376_v2, %v7372_v27  ;;  %v7396_v30 = vrot.slane %v7394_v12, 5  ;;  %v7400_v58 = vrot.slane %v7398_v33, 4 }
 0x412   : >> { %v7391_v45 = vor.u32 %v7390_v57, %v7387_v20  ;;  %v7404_v26 = vshll.u32 %v17753_v23, 16  ;;  %v7409_v34 = vshrl.u32 %v7045_v41, 16  ;;  %v7373_v53 = vsel %vm16090_vm12, %v7368_v44, %v7372_v27 }
 0x413   : >> { %v7378_v47 = vrot.slane %v7377_v25, 4  ;;  %v7412_v8 = vshll.u32 %v7045_v41, 16  ;;  %v7418_v10 = vshll.u32 %v17763_v35, 16  ;;  %v7401_v29 = vor.u32 %v7400_v58, %v7396_v30  ;;  %v7756_v41 = vld [vmem:[#allocation4 + $0xc] sm:$0xe] }
 0x414   : >> { %v7392_v59 = vrot.slane %v7391_v45, 4  ;;  %v7411_v18 = vrot.slane %v7409_v34, 4  ;;  %v7422_v55 = vshrl.u32 %v17763_v35, 16  ;;  %v7428_v12 = vshll.u32 %v17766_v39, 16  ;;  %v15350_v58 = vld [vmem:[#allocation4 + $0x4] sm:$0xf] }
 0x415   : >> { %v7383_v37 = vsel %vm16090_vm12, %v7378_v47, %v7382_v56  ;;  %v7414_v2 = vrot.slane %v7412_v8, 5  ;;  %v7420_v20 = vrot.slane %v7418_v10, 5  ;;  %v7402_v57 = vrot.slane %v7401_v29, 4  ;;  %v15351_v8 = vld [vmem:[#allocation4 + $0x8] sm:$0x1] }
 0x416   : >> { %v12953_v3 = vcombine.low %v7373_v53, %v7383_v37  ;;  %v7406_v27 = vrot.slane %v7404_v26, 5  ;;  %v7424_v44 = vrot.slane %v7422_v55, 4  ;;  %14265 = vmatmul.mubr.msk.bf16.gmra.mrb[20].mxu1 %vm493_vm7, %v12951_v13  ;;  %v7397_v33 = vsel %vm16090_vm12, %v7392_v59, %v7396_v30  ;;  %v7757_v10 = vld [vmem:[#allocation4 + $0x18] sm:$0xe] }
 0x417   : >> { %v7415_v25 = vor.u32 %v7414_v2, %v7411_v18  ;;  %v12976_v45 = vrot.slane %v7755_v14, 9  ;;  %v7821_v34 = vrot.slane %v15350_v58, 5  ;;  %14268 = vmatprep.mubr.msk.bf16.mxu1 %vm493_vm7, %v12952_v62  ;;  %v7430_v53 = vrot.slane %v7428_v12, 5 }
 0x418   : >> { %v7407_v56 = vsel %vm16090_vm12, %v7402_v57, %v7406_v27  ;;  %v7425_v47 = vor.u32 %v7424_v44, %v7420_v20  ;;  %v7824_v26 = vrot.slane %v15351_v8, 5  ;;  %v12977_v59 = vrot.slane %v7756_v41, 9  ;;  %v7758_v27 = vld [vmem:[#allocation4 + $0x24] sm:$0xe] }
 0x419   : >> { %v7416_v29 = vrot.slane %v7415_v25, 4  ;;  %v17783_v13 = vsel %vm16352_vm15, %v12976_v45, %v7821_v34  ;;  %v7823_v30 = vrot.slane %v7821_v34, 4  ;;  %v12954_v18 = vcombine.low %v7397_v33, %v7407_v56  ;;  %v7759_v33 = vld [vmem:[#allocation4 + $0x30] sm:$0xe] }
 0x41a   : >> { %v7426_v55 = vrot.slane %v7425_v47, 4  ;;  %v7828_v14 = vrot.slane %v17569_v4, 5  ;;  %v7831_v62 = vrot.slane %v17571_v51, 5  ;;  %v12978_v12 = vrot.slane %v7757_v10, 9  ;;  %v7760_v47 = vld [vmem:[#allocation4 + $0x3c] sm:$0xe] }
 0x41b   : >> { %v7421_v37 = vsel %vm16090_vm12, %v7416_v29, %v7420_v20  ;;  %v17791_v2 = vsel %vm16352_vm15, %v7823_v30, %v7824_v26  ;;  %v7835_v57 = vrot.slane %v17580_v63, 5  ;;  %v7838_v51 = vrot.slane %v17582_v36, 5  ;;  %v7761_v29 = vld [vmem:[#allocation4 + $0x48] sm:$0xe] }
 0x41c   : >> { %v7431_v44 = vsel %vm16090_vm12, %v7426_v55, %v7430_v53  ;;  %v13001_v41 = vcombine.low %v17783_v13, %v17791_v2  ;;  %v7830_v4 = vrot.slane %v7828_v14, 4  ;;  %v17801_v20 = vsel %vm16352_vm15, %v12977_v59, %v7828_v14  ;;  %v7762_v14 = vld [vmem:[#allocation4 + $0x54] sm:$0xe] }
 0x41d   : >> { %v12955_v25 = vcombine.low %v7421_v37, %v7431_v44  ;;  %v17805_v45 = vsel %vm16352_vm15, %v12978_v12, %v7835_v57  ;;  %v7837_v63 = vrot.slane %v7835_v57, 4  ;;  %v12979_v34 = vrot.slane %v7758_v27, 9  ;;  %v7763_v12 = vld [vmem:[#allocation4 + $0x60] sm:$0xe]  ;;  %v7764_v44 = vld [vmem:[#allocation4 + $0x6c] sm:$0xe] }
 0x41e   : >> { %v17809_v58 = vsel %vm16352_vm15, %v7830_v4, %v7831_v62  ;;  %v7842_v56 = vrot.slane %v17588_v5, 5  ;;  %v7845_v36 = vrot.slane %v17601_v17, 5  ;;  %14269 = vmatmul.mubr.msk.bf16.gmra.mrb[24].mxu1 %vm493_vm7, %v12953_v3  ;;  %v12980_v26 = vrot.slane %v7759_v33, 9  ;;  %v7765_v33 = vld [vmem:[#allocation4 + $0x78] sm:$0xe] }
 0x41f   : >> { %v13002_v53 = vcombine.low %v17801_v20, %v17809_v58  ;;  %v17818_v8 = vsel %vm16352_vm15, %v7837_v63, %v7838_v51  ;;  %v7849_v10 = vrot.slane %v17616_v52, 5  ;;  %14272 = vmatprep.mubr.msk.bf16.mxu1 %vm493_vm7, %v12954_v18  ;;  %v7852_v13 = vrot.slane %v17620_v16, 5 }
 0x420   : >> { %v13003_v5 = vcombine.low %v17805_v45, %v17818_v8  ;;  %v17826_v17 = vsel %vm16352_vm15, %v12979_v34, %v7842_v56  ;;  %v7844_v3 = vrot.slane %v7842_v56, 4  ;;  %v12981_v55 = vrot.slane %v7760_v47, 9 }
 0x421   : >> { %v17831_v30 = vsel %vm16352_vm15, %v12980_v26, %v7849_v10  ;;  %v7851_v59 = vrot.slane %v7849_v10, 4  ;;  %v7856_v52 = vrot.slane %v17628_v60, 5  ;;  %v7859_v62 = vrot.slane %v17636_v21, 5 }
 0x422   : >> { %v17836_v18 = vsel %vm16352_vm15, %v7844_v3, %v7845_v36  ;;  %v12982_v37 = vrot.slane %v7761_v29, 9  ;;  %v7863_v2 = vrot.slane %v17639_v22, 5  ;;  %v7866_v60 = vrot.slane %v17647_v42, 5 }
 0x423   : >> { %v13004_v16 = vcombine.low %v17826_v17, %v17836_v18  ;;  %v17844_v57 = vsel %vm16352_vm15, %v7851_v59, %v7852_v13  ;;  %v7858_v27 = vrot.slane %v7856_v52, 4  ;;  %v17851_v21 = vsel %vm16352_vm15, %v12981_v55, %v7856_v52  ;;  %v7766_v55 = vld [vmem:[#allocation4 + $0x84] sm:$0xe]  ;;  %v15298_v17 = vld [vmem:[#allocation4 + $0xc] sm:$0xff]   ;;  %v15299_v18 = vld [vmem:[#allocation4 + $0x18] sm:$0xff]  }
 0x424   : >> { %v13005_v4 = vcombine.low %v17831_v30, %v17844_v57  ;;  %v17855_v22 = vsel %vm16352_vm15, %v12982_v37, %v7863_v2  ;;  %v7865_v51 = vrot.slane %v7863_v2, 4  ;;  %v12983_v34 = vrot.slane %v7762_v14, 9  ;;  %v8641_v30 = vld [vmem:[#allocation4 + $0xc] sm:$0xf]  ;;  %v17989_v57 = vld [vmem:[#allocation4 + $0x10] sm:$0xf] }
 0x425   : >> { %v17859_v63 = vsel %vm16352_vm15, %v7858_v27, %v7859_v62  ;;  %v7870_v42 = vrot.slane %v17657_v31, 5  ;;  %v7873_v56 = vrot.slane %v17660_v28, 5  ;;  %v12984_v26 = vrot.slane %v7763_v12, 9  ;;  %v7768_v27 = vld [vmem:[#allocation4 + $0x9c] sm:$0xe] }
 0x426   : >> { %v13006_v36 = vcombine.low %v17851_v21, %v17859_v63  ;;  %v17867_v47 = vsel %vm16352_vm15, %v7865_v51, %v7866_v60  ;;  %v7877_v10 = vrot.slane %v17665_v46, 5  ;;  %14273 = vmatmul.mubr.msk.bf16.gmra.mrb[28].mxu1 %vm493_vm7, %v12955_v25  ;;  %v7880_v3 = vrot.slane %v17674_v9, 5  ;;  %v15295_v51 = vld [vmem:[%s17344_s26 + $0x68] sm:$0xff]  }
 0x427   : >> { %v13007_v29 = vcombine.low %v17855_v22, %v17867_v47  ;;  %v17875_v31 = vsel %vm16352_vm15, %v12983_v34, %v7870_v42  ;;  %v7872_v28 = vrot.slane %v7870_v42, 4  ;;  %14284 = vmatprep.mubr.msk.bf16.mxu1 %vm493_vm7, %v13001_v41  ;;  %v12985_v46 = vrot.slane %v7764_v44, 9  ;;  %v7767_v41 = vld [vmem:[#allocation4 + $0x90] sm:$0xe]  ;;  %v8644_v47 = vld [vmem:[#allocation4 + $0x18] sm:$0xf] }
 0x428   : >> { %v17881_v13 = vsel %vm16352_vm15, %v12984_v26, %v7877_v10  ;;  %v7879_v59 = vrot.slane %v7877_v10, 4  ;;  %v7884_v25 = vrot.slane %v17683_v40, 5  ;;  %v7887_v14 = vrot.slane %v17690_v38, 5 }
 0x429   : >> { %v17886_v52 = vsel %vm16352_vm15, %v7872_v28, %v7873_v56  ;;  %v12986_v62 = vrot.slane %v7765_v33, 9  ;;  %v7891_v9 = vrot.slane %v17701_v1, 5  ;;  %v7894_v12 = vrot.slane %v17704_v19, 5  ;;  %v7769_v56 = vld [vmem:[#allocation4 + $0xa8] sm:$0xe] }
 0x42a   : >> { %v13008_v37 = vcombine.low %v17875_v31, %v17886_v52  ;;  %v17894_v2 = vsel %vm16352_vm15, %v7879_v59, %v7880_v3  ;;  %v7886_v40 = vrot.slane %v7884_v25, 4  ;;  %v17901_v38 = vsel %vm16352_vm15, %v12985_v46, %v7884_v25  ;;  %v17996_v52 = vld [vmem:[#allocation4 + $0x14] sm:$0x1] }
 0x42b   : >> { %v13009_v60 = vcombine.low %v17881_v13, %v17894_v2  ;;  %v17905_v1 = vsel %vm16352_vm15, %v12986_v62, %v7891_v9  ;;  %v7893_v44 = vrot.slane %v7891_v9, 4  ;;  %v12987_v34 = vrot.slane %v7766_v55, 9 }
 0x42c   : >> { %v7888_v33 = vsel %vm16352_vm15, %v7886_v40, %v7887_v14  ;;  %v7898_v19 = vrot.slane %v17716_v61, 5  ;;  %v7901_v42 = vrot.slane %v17720_v6, 5  ;;  %v12988_v28 = vrot.slane %v7767_v41, 9 }
 0x42d   : >> { %v13010_v26 = vcombine.low %v17901_v38, %v7888_v33  ;;  %v7895_v10 = vsel %vm16352_vm15, %v7893_v44, %v7894_v12  ;;  %v7905_v3 = vrot.slane %v17726_v0, 5  ;;  %v7908_v25 = vrot.slane %v17731_v24, 5  ;;  %v15296_v0 = vld [vmem:[%s17344_s26 + $0x70] sm:$0xff]  }
 0x42e   : >> { %v13011_v59 = vcombine.low %v17905_v1, %v7895_v10  ;;  %v7900_v46 = vrot.slane %v7898_v19, 4  ;;  %14285 = vmatmul.mubr.msk.bf16.vlgmr.msra.gmra.mrb[0].mxu1 %vm493_vm7, %v13002_v53  ;;  %v7899_v61 = vsel %vm16352_vm15, %v12987_v34, %v7898_v19  ;;  %v12989_v55 = vrot.slane %v7768_v27, 9  ;;  %v15297_v27 = vld [vmem:[%s17344_s26 + $0x78] sm:$0xff]  }
 0x42f   : >> { %v7907_v6 = vrot.slane %v7905_v3, 4  ;;  %v7912_v14 = vrot.slane %v17739_v15, 5  ;;  %14288 = vmatprep.mubr.msk.bf16.mxu1 %vm493_vm7, %v13003_v5  ;;  %14317 = vmatpush3.bf16.msra.mxu1 %v17694_v49  ;;  %v7906_v20 = vsel %vm16352_vm15, %v12988_v28, %v7905_v3  ;;  %v7915_v58 = vrot.slane %v17742_v32, 5  ;;  %v7770_v49 = vld [vmem:[#allocation4 + $0xb4] sm:$0xe]  ;;  %v15315_v10 = vld [vmem:[%s17344_s26 + $0x98] sm:$0xff]  }
 0x430   : >> { %v7902_v24 = vsel %vm16352_vm15, %v7900_v46, %v7901_v42  ;;  %v7919_v53 = vrot.slane %v17749_v48, 5  ;;  %14318 = vmatprep.subr.bf16.mxu1 %v15295_v51  ;;  %v12990_v5 = vrot.slane %v7769_v56, 9  ;;  %v7922_v41 = vrot.slane %v17753_v23, 5  ;;  %v15303_v28 = vld [vmem:[#allocation4 + $0x3c] sm:$0xff]  }
 0x431   : >> { %v13012_v15 = vcombine.low %v7899_v61, %v7902_v24  ;;  %v7909_v45 = vsel %vm16352_vm15, %v7907_v6, %v7908_v25  ;;  %v7914_v8 = vrot.slane %v7912_v14, 4  ;;  %v7913_v40 = vsel %vm16352_vm15, %v12989_v55, %v7912_v14  ;;  %v18011_v55 = vld [vmem:[#allocation4 + $0x24] sm:$0xf]  ;;  %v18017_v24 = vld [vmem:[#allocation4 + $0x2c] sm:$0x1] }
 0x432   : >> { %v13013_v62 = vcombine.low %v7906_v20, %v7909_v45  ;;  %v7921_v9 = vrot.slane %v7919_v53, 4  ;;  %v7926_v48 = vrot.slane %v17763_v35, 5  ;;  %v7920_v38 = vsel %vm16352_vm15, %v12990_v5, %v7919_v53  ;;  %v18020_v20 = vld [vmem:[%s17344_s26 + $0xa0] sm:$0xff]   ;;  %v18024_v53 = vld [vmem:[#allocation4 + $0x34] sm:$0xf] }
 0x433   : >> { %v7916_v32 = vsel %vm16352_vm15, %v7914_v8, %v7915_v58  ;;  %14319 = vmatpush3.bf16.msra.mxu1 %v15295_v51  ;;  %v12991_v44 = vrot.slane %v7770_v49, 9  ;;  %v7929_v34 = vrot.slane %v17766_v39, 5  ;;  %v15300_v39 = vld [vmem:[%s17344_s26 + $0x80] sm:$0xff]   ;;  %v8690_v21 = vshrl.u32 %v8641_v30, 16  ;;  %v18022_v58 = vld [vmem:[#allocation4 + $0x30] sm:$0xf] }
 0x434   : >> { %v13014_v12 = vcombine.low %v7913_v40, %v7916_v32  ;;  %v7923_v1 = vsel %vm16352_vm15, %v7921_v9, %v7922_v41  ;;  %14320 = vmatprep.subr.bf16.mxu1 %v15296_v0  ;;  %v7928_v33 = vrot.slane %v7926_v48, 4  ;;  %v8693_v22 = vshll.u32 %v8641_v30, 16  ;;  %v18033_v49 = vld [vmem:[#allocation4 + $0x38] sm:$0x1]  ;;  %v15304_v9 = vld [vmem:[#allocation4 + $0x48] sm:$0xff]  }
 0x435   : >> { %v13015_v23 = vcombine.low %v7920_v38, %v7923_v1  ;;  %v7927_v35 = vsel %vm16352_vm15, %v12991_v44, %v7926_v48  ;;  %v8699_v63 = vshll.u32 %v17989_v57, 16  ;;  %v8692_v31 = vrot.slane %v8690_v21, 4  ;;  %v18040_v48 = vld [vmem:[#allocation4 + $0x40] sm:$0xf]  ;;  %v15306_v38 = vld [vmem:[#allocation4 + $0x54] sm:$0xff]   ;;  %v15308_v32 = vld [vmem:[#allocation4 + $0x6c] sm:$0xff]  }
 0x436   : >> { %14289 = vmatmul.mubr.msk.bf16.gmra.mrb[4].mxu1 %vm493_vm7, %v13004_v16  ;;  %v7930_v51 = vsel %vm16352_vm15, %v7928_v33, %v7929_v34  ;;  %v15305_v16 = vld [vmem:[%s17344_s26 + $0x88] sm:$0xff]   ;;  %v8695_v13 = vrot.slane %v8693_v22, 5  ;;  %v8714_v2 = vshrl.u32 %v8644_v47, 16  ;;  %v18048_v34 = vld [vmem:[#allocation4 + $0x44] sm:$0x1]  ;;  %v9483_v30 = vrot.slane %v18024_v53, 5 }
 0x437   : >> { %14292 = vmatprep.mubr.msk.bf16.mxu1 %vm493_vm7, %v13005_v4  ;;  %14321 = vmatpush3.bf16.msra.mxu1 %v15296_v0  ;;  %v13016_v19 = vcombine.low %v7927_v35, %v7930_v51  ;;  %v15301_v4 = vld [vmem:[#allocation4 + $0x24] sm:$0xff]   ;;  %v18000_v42 = vrot.slane %v8699_v63, 5  ;;  %v18050_v35 = vld [vmem:[#allocation4 + $0x4c] sm:$0xf]  ;;  %v18053_v51 = vld [vmem:[#allocation4 + $0x50] sm:$0x1] }
 0x438   : >> { %14322 = vmatprep.subr.bf16.mxu1 %v15297_v27  ;;  %v8696_v3 = vor.u32 %v8695_v13, %v8692_v31  ;;  %v18006_v25 = vrot.slane %v8714_v2, 4  ;;  %v18015_v0 = vld [vmem:[#allocation4 + $0x28] sm:$0xf]  ;;  %v9485_v13 = vrot.slane %v9483_v30, 4  ;;  %v9486_v2 = vrot.slane %v18033_v49, 5 }
 0x439   : >> { %v9401_v63 = vld [vmem:[#allocation4 + $0x48] sm:$0xe]  ;;  %v9404_v33 = vld [vmem:[#allocation4 + $0x6c] sm:$0xe]  ;;  %v18130_v5 = vld [vmem:[#allocation4 + $0x8c] sm:$0x1] }
 0x43b   : >> { %14323 = vmatpush3.bf16.msra.mxu1 %v15297_v27  ;;  %v9399_v27 = vld [vmem:[#allocation4 + $0x30] sm:$0xe] }
 0x43c   : >> { %14356 = vmatprep.subr.bf16.mxu1 %v15300_v39  ;;  %v13130_v22 = vrot.slane %v9399_v27, 9 }
 0x43e   : >> { %14293 = vmatmul.mubr.msk.bf16.gmra.mrb[8].mxu1 %vm493_vm7, %v13006_v36  ;;  %v8703_v36 = vshrl.u32 %v17989_v57, 16 }
 0x43f   : >> { %14296 = vmatprep.mubr.msk.bf16.mxu1 %vm493_vm7, %v13007_v29  ;;  %v15310_v29 = vld [vmem:[%s17344_s26 + $0x90] sm:$0xff]  }
 0x440   : >> { %v8705_v56 = vrot.slane %v8703_v36, 4  ;;  %v18061_v36 = vld [vmem:[#allocation4 + $0x58] sm:$0xf] }
 0x442   : >> { %v8706_v14 = vor.u32 %v8705_v56, %v18000_v42 }
 0x444   : >> { %v18043_v1 = vrot.slane %v8706_v14, 4  ;;  %v13132_v14 = vrot.slane %v9401_v63, 9 }
 0x446   : >> { %14297 = vmatmul.mubr.msk.bf16.gmra.mrb[12].mxu1 %vm493_vm7, %v13008_v37  ;;  %v17998_v37 = vld [vmem:[#allocation4 + $0x1c] sm:$0xf] }
 0x447   : >> { %14300 = vmatprep.mubr.msk.bf16.mxu1 %vm493_vm7, %v13009_v60  ;;  %v8717_v60 = vshll.u32 %v8644_v47, 16  ;;  %v8723_v46 = vshll.u32 %v17998_v37, 16  ;;  %v8727_v6 = vshrl.u32 %v17998_v37, 16  ;;  %v18063_v47 = vld [vmem:[#allocation4 + $0x5c] sm:$0x1] }
 0x448   : >> { %v9507_v41 = vrot.slane %v18063_v47, 5 }
 0x449   : >> { %v18008_v61 = vrot.slane %v8717_v60, 5  ;;  %v18030_v8 = vrot.slane %v8723_v46, 5  ;;  %v18037_v40 = vrot.slane %v8727_v6, 4  ;;  %v18075_v60 = vld [vmem:[#allocation4 + $0x64] sm:$0xf]  ;;  %v18088_v46 = vsel %vm16352_vm15, %v9485_v13, %v9486_v2 }
 0x44a   : >> { %19608 = vst [vmem:[#allocation13_spill] sm:$0xff] %v18088_v46  ;;  %v9493_v6 = vrot.slane %v18048_v34, 5  ;;  %v15307_v2 = vld [vmem:[#allocation4 + $0x60] sm:$0xff]   ;;  %v9410_v46 = vld [vmem:[#allocation4 + $0xb4] sm:$0xe] }
 0x44e   : >> { %14301 = vmatmul.mubr.msk.bf16.gmra.mrb[16].mxu1 %vm493_vm7, %v13010_v26  ;;  %v15302_v26 = vld [vmem:[#allocation4 + $0x30] sm:$0xff]  }
 0x44f   : >> { %14304 = vmatprep.mubr.msk.bf16.mxu1 %vm493_vm7, %v13011_v59  ;;  %v8709_v59 = vshll.u32 %v17996_v52, 16 }
 0x451   : >> { %v18028_v45 = vrot.slane %v8709_v59, 5  ;;  %v18084_v59 = vld [vmem:[#allocation4 + $0x68] sm:$0x1] }
 0x456   : >> { %14305 = vmatmul.mubr.msk.bf16.gmra.mrb[20].mxu1 %vm493_vm7, %v13012_v15  ;;  %v18026_v15 = vrot.slane %v8696_v3, 4  ;;  %v9402_v3 = vld [vmem:[#allocation4 + $0x54] sm:$0xe] }
 0x457   : >> { %14308 = vmatprep.mubr.msk.bf16.mxu1 %vm493_vm7, %v13013_v62  ;;  %v9398_v62 = vld [vmem:[#allocation4 + $0x24] sm:$0xe]  ;;  %v13133_v13 = vrot.slane %v9402_v3, 9 }
 0x45e   : >> { %14309 = vmatmul.mubr.msk.bf16.gmra.mrb[24].mxu1 %vm493_vm7, %v13014_v12  ;;  %v9476_v12 = vrot.slane %v18015_v0, 5 }
 0x45f   : >> { %14312 = vmatprep.mubr.msk.bf16.mxu1 %vm493_vm7, %v13015_v23  ;;  %v9406_v23 = vld [vmem:[#allocation4 + $0x84] sm:$0xe] }
 0x466   : >> { %14313 = vmatmul.mubr.msk.bf16.gmra.mrb[28].mxu1 %vm493_vm7, %v13016_v19  ;;  %v13129_v19 = vrot.slane %v9398_v62, 9  ;;  %v9497_v62 = vrot.slane %v18050_v35, 5 }
 0x467   : >> { %14324 = vmatprep.mubr.msk.bf16.mxu1 %vm493_vm7, %v15298_v17  ;;  %v9479_v17 = vrot.slane %v18017_v24, 5 }
 0x468   : >> { %v9499_v63 = vrot.slane %v9497_v62, 4 }
 0x46e   : >> { %14325 = vmatmul.mubr.msk.bf16.vlgmr.msra.gmra.mrb[0].mxu1 %vm493_vm7, %v15299_v18  ;;  %v9400_v18 = vld [vmem:[#allocation4 + $0x3c] sm:$0xe] }
 0x46f   : >> { %14328 = vmatprep.mubr.msk.bf16.mxu1 %vm493_vm7, %v15301_v4  ;;  %14357 = vmatpush3.bf16.msra.mxu1 %v15300_v39  ;;  %v9478_v39 = vrot.slane %v9476_v12, 4 }
 0x470   : >> { %14358 = vmatprep.subr.bf16.mxu1 %v15305_v16 }
 0x471   : >> { %v18071_v31 = vsel %vm16352_vm15, %v9478_v39, %v9479_v17  ;;  %v9403_v39 = vld [vmem:[#allocation4 + $0x60] sm:$0xe]  ;;  %v18098_v17 = vld [vmem:[#allocation4 + $0x74] sm:$0x1] }
 0x472   : >> { %19606 = vst [vmem:[#allocation12_spill] sm:$0xff] %v18071_v31 }
 0x473   : >> { %14359 = vmatpush3.bf16.msra.mxu1 %v15305_v16  ;;  %v9511_v16 = vrot.slane %v18075_v60, 5 }
 0x474   : >> { %14360 = vmatprep.subr.bf16.mxu1 %v15310_v29 }
 0x475   : >> { %v9513_v4 = vrot.slane %v9511_v16, 4 }
 0x476   : >> { %14329 = vmatmul.mubr.msk.bf16.gmra.mrb[4].mxu1 %vm493_vm7, %v15302_v26  ;;  %v18081_v26 = vsel %vm16352_vm15, %v13130_v22, %v9483_v30  ;;  %v18100_v30 = vld [vmem:[#allocation4 + $0x7c] sm:$0xf]  ;;  %v18108_v22 = vsel %vm16352_vm15, %v13132_v14, %v9497_v62  ;;  %v13134_v14 = vrot.slane %v9403_v39, 9  ;;  %v9405_v62 = vld [vmem:[#allocation4 + $0x78] sm:$0xe] }
 0x477   : >> { %14332 = vmatprep.mubr.msk.bf16.mxu1 %vm493_vm7, %v15303_v28  ;;  %14361 = vmatpush3.bf16.msra.mxu1 %v15310_v29  ;;  %v18067_v29 = vsel %vm16352_vm15, %v13129_v19, %v9476_v12  ;;  %19607 = vst [vmem:[#allocation11_spill] sm:$0xff] %v18081_v26  ;;  %v9490_v28 = vrot.slane %v18040_v48, 5  ;;  %v9504_v19 = vrot.slane %v18061_v36, 5  ;;  %19610 = vst [vmem:[#allocation17_spill] sm:$0xff] %v18108_v22  ;;  %v13136_v44 = vrot.slane %v9405_v62, 9 }
 0x478   : >> { %14362 = vmatprep.subr.bf16.mxu1 %v15315_v10  ;;  %19605 = vst [vmem:[#allocation15_spill] sm:$0xff] %v18067_v29  ;;  %v9525_v39 = vrot.slane %v18100_v30, 5  ;;  %v9408_v22 = vld [vmem:[#allocation4 + $0x9c] sm:$0xe] }
 0x479   : >> { %v9492_v27 = vrot.slane %v9490_v28, 4  ;;  %v9506_v56 = vrot.slane %v9504_v19, 4  ;;  %v8653_v29 = vld [vmem:[#allocation4 + $0x3c] sm:$0xf] }
 0x47a   : >> { %v18172_v62 = vsel %vm16352_vm15, %v13136_v44, %v9525_v39 }
 0x47b   : >> { %14363 = vmatpush3.bf16.msra.mxu1 %v15315_v10  ;;  %v13131_v10 = vrot.slane %v9400_v18, 9  ;;  %v18112_v12 = vsel %vm16352_vm15, %v9492_v27, %v9493_v6  ;;  %v18126_v6 = vsel %vm16352_vm15, %v13133_v13, %v9504_v19  ;;  %v18128_v27 = vld [vmem:[#allocation4 + $0x88] sm:$0xf]  ;;  %v18140_v19 = vld [vmem:[#allocation4 + $0x94] sm:$0xf]  ;;  %v13135_v13 = vrot.slane %v9404_v33, 9 }
 0x47c   : >> { %14396 = vmatprep.subr.bf16.mxu1 %v18020_v20  ;;  %19611 = vst [vmem:[#allocation18_spill] sm:$0xff] %v18112_v12  ;;  %19613 = vst [vmem:[#allocation20_spill] sm:$0xff] %v18126_v6  ;;  %v9532_v11 = vrot.slane %v18128_v27, 5  ;;  %v9535_v6 = vrot.slane %v18130_v5, 5  ;;  %v15311_v12 = vld [vmem:[#allocation4 + $0x84] sm:$0xff]  }
 0x47d   : >> { %v18104_v18 = vsel %vm16352_vm15, %v13131_v10, %v9490_v28  ;;  %v18116_v10 = vld [vmem:[#allocation4 + $0x80] sm:$0x1]  ;;  %v18136_v28 = vsel %vm16352_vm15, %v9506_v56, %v9507_v41  ;;  %v18150_v41 = vld [vmem:[#allocation4 + $0x98] sm:$0x1]  ;;  %19618 = vst [vmem:[#allocation25_spill] sm:$0xff] %v18172_v62 }
 0x47e   : >> { %14333 = vmatmul.mubr.msk.bf16.gmra.mrb[8].mxu1 %vm493_vm7, %v15304_v9  ;;  %v18092_v9 = vld [vmem:[#allocation4 + $0x70] sm:$0xf]  ;;  %19609 = vst [vmem:[#allocation14_spill] sm:$0xff] %v18104_v18  ;;  %19614 = vst [vmem:[#allocation21_spill] sm:$0xff] %v18136_v28  ;;  %v9534_v28 = vrot.slane %v9532_v11, 4 }
 0x47f   : >> { %14336 = vmatprep.mubr.msk.bf16.mxu1 %vm493_vm7, %v15306_v38  ;;  %v9500_v38 = vrot.slane %v18053_v51, 5  ;;  %v9518_v21 = vrot.slane %v18092_v9, 5  ;;  %v18194_v18 = vld [vmem:[#allocation4 + $0xb8] sm:$0xf] }
 0x480   : >> { %v18200_v44 = vsel %vm16352_vm15, %v9534_v28, %v9535_v6  ;;  %v18213_v28 = vld [vmem:[#allocation4 + $0xc4] sm:$0xf] }
 0x481   : >> { %v18122_v3 = vsel %vm16352_vm15, %v9499_v63, %v9500_v38  ;;  %v9514_v38 = vrot.slane %v18084_v59, 5  ;;  %v18146_v63 = vsel %vm16352_vm15, %v13134_v14, %v9511_v16  ;;  %v9520_v33 = vrot.slane %v9518_v21, 4  ;;  %19622 = vst [vmem:[#allocation29_spill] sm:$0xff] %v18200_v44  ;;  %v9411_v44 = vld [vmem:[#allocation4 + $0xc0] sm:$0xe] }
 0x482   : >> { %19612 = vst [vmem:[#allocation19_spill] sm:$0xff] %v18122_v3  ;;  %19615 = vst [vmem:[#allocation22_spill] sm:$0xff] %v18146_v63  ;;  %v9528_v14 = vrot.slane %v18116_v10, 5  ;;  %v13137_v16 = vrot.slane %v9406_v23, 9  ;;  %v9539_v3 = vrot.slane %v18140_v19, 5  ;;  %v9567_v26 = vrot.slane %v18213_v28, 5 }
 0x483   : >> { %v18154_v56 = vsel %vm16352_vm15, %v9513_v4, %v9514_v38  ;;  %v18168_v4 = vsel %vm16352_vm15, %v13135_v13, %v9518_v21  ;;  %v9527_v38 = vrot.slane %v9525_v39, 4  ;;  %v18180_v21 = vld [vmem:[#allocation4 + $0xac] sm:$0xf] }
 0x484   : >> { %19616 = vst [vmem:[#allocation23_spill] sm:$0xff] %v18154_v56  ;;  %19617 = vst [vmem:[#allocation24_spill] sm:$0xff] %v18168_v4  ;;  %v15309_v56 = vld [vmem:[#allocation4 + $0x78] sm:$0xff]   ;;  %v18190_v39 = vsel %vm16352_vm15, %v13137_v16, %v9532_v11  ;;  %v9546_v4 = vrot.slane %v18162_v50, 5  ;;  %v9553_v11 = vrot.slane %v18180_v21, 5 }
 0x485   : >> { %v18186_v23 = vsel %vm16352_vm15, %v9527_v38, %v9528_v14  ;;  %19621 = vst [vmem:[#allocation28_spill] sm:$0xff] %v18190_v39  ;;  %v9542_v14 = vrot.slane %v18150_v41, 5  ;;  %v18203_v38 = vld [vmem:[#allocation4 + $0xbc] sm:$0x1]  ;;  %v18226_v39 = vld [vmem:[#allocation4 + $0xc8] sm:$0x1] }
 0x486   : >> { %14337 = vmatmul.mubr.msk.bf16.gmra.mrb[12].mxu1 %vm493_vm7, %v15307_v2  ;;  %v9521_v2 = vrot.slane %v18098_v17, 5  ;;  %19620 = vst [vmem:[#allocation27_spill] sm:$0xff] %v18186_v23  ;;  %v9549_v23 = vrot.slane %v18164_v54, 5  ;;  %v9570_v31 = vrot.slane %v18226_v39, 5 }
 0x487   : >> { %14340 = vmatprep.mubr.msk.bf16.mxu1 %vm493_vm7, %v15308_v32  ;;  %v9407_v32 = vld [vmem:[#allocation4 + $0x90] sm:$0xe] }
 0x488   : >> { %v18176_v63 = vsel %vm16352_vm15, %v9520_v33, %v9521_v2  ;;  %v13138_v13 = vrot.slane %v9407_v32, 9  ;;  %v9409_v2 = vld [vmem:[#allocation4 + $0xa8] sm:$0xe]  ;;  %v18192_v33 = vld [vmem:[#allocation4 + $0xb0] sm:$0x1]  ;;  %v13139_v32 = vrot.slane %v9408_v22, 9 }
 0x489   : >> { %19619 = vst [vmem:[#allocation26_spill] sm:$0xff] %v18176_v63  ;;  %v9541_v63 = vrot.slane %v9539_v3, 4  ;;  %v13140_v62 = vrot.slane %v9409_v2, 9 }
 0x48a   : >> { %v18209_v16 = vsel %vm16352_vm15, %v13138_v13, %v9539_v3  ;;  %v9548_v3 = vrot.slane %v9546_v4, 4  ;;  %v9556_v13 = vrot.slane %v18192_v33, 5 }
 0x48b   : >> { %19623 = vst [vmem:[#allocation30_spill] sm:$0xff] %v18209_v16  ;;  %v18217_v6 = vsel %vm16352_vm15, %v9541_v63, %v9542_v14  ;;  %v18230_v63 = vsel %vm16352_vm15, %v13139_v32, %v9546_v4  ;;  %v18234_v2 = vsel %vm16352_vm15, %v13140_v62, %v9553_v11  ;;  %v13141_v14 = vrot.slane %v9410_v46, 9 }
 0x48c   : >> { %19624 = vst [vmem:[#allocation31_spill] sm:$0xff] %v18217_v6  ;;  %19625 = vst [vmem:[#allocation32_spill] sm:$0xff] %v18230_v63  ;;  %v18238_v22 = vsel %vm16352_vm15, %v9548_v3, %v9549_v23  ;;  %v9563_v16 = vrot.slane %v18203_v38, 5  ;;  %v13142_v46 = vrot.slane %v9411_v44, 9  ;;  %v9569_v3 = vrot.slane %v9567_v26, 4 }
 0x48d   : >> { %19626 = vst [vmem:[#allocation33_spill] sm:$0xff] %v18234_v2  ;;  %19627 = vst [vmem:[#allocation34_spill] sm:$0xff] %v18238_v22  ;;  %v15312_v22 = vld [vmem:[#allocation4 + $0x90] sm:$0xff]   ;;  %v19633_v44 = vshrl.u32 %v18015_v0, 16  ;;  %v19635_v2 = vshrl.u32 %v18024_v53, 16  ;;  %v19639_v23 = vshll.u32 %v18011_v55, 16 }
 0x48e   : >> { %14341 = vmatmul.mubr.msk.bf16.gmra.mrb[16].mxu1 %vm493_vm7, %v15309_v56  ;;  %v9560_v56 = vrot.slane %v18194_v18, 5 }
 0x48f   : >> { %14344 = vmatprep.mubr.msk.bf16.mxu1 %vm493_vm7, %v15311_v12  ;;  %v9555_v12 = vrot.slane %v9553_v11, 4  ;;  %v18252_v11 = vld [vmem:[#allocation4 + $0x20] sm:$0x1]  ;;  %v8777_v63 = vrot.slane %v19635_v2, 4  ;;  %v8786_v2 = vshrl.u32 %v8653_v29, 16 }
 0x490   : >> { %v9562_v6 = vrot.slane %v9560_v56, 4  ;;  %v18250_v62 = vsel %vm16352_vm15, %v13141_v14, %v9560_v56  ;;  %19630 = vst [vmem:[#allocation37_spill] sm:$0xff] %v18252_v11  ;;  %v19632_v56 = vshll.u32 %v18015_v0, 16  ;;  %v8753_v14 = vrot.slane %v19633_v44, 4 }
 0x491   : >> { %v18246_v4 = vsel %vm16352_vm15, %v9555_v12, %v9556_v13  ;;  %19629 = vst [vmem:[#allocation36_spill] sm:$0xff] %v18250_v62  ;;  %v8730_v13 = vor.u32 %v18037_v40, %v18030_v8  ;;  %v18279_v40 = vsel %vm16352_vm15, %v13142_v46, %v9567_v26  ;;  %v18283_v0 = vsel %vm16352_vm15, %v9569_v3, %v9570_v31 }
 0x492   : >> { %19628 = vst [vmem:[#allocation35_spill] sm:$0xff] %v18246_v4  ;;  %v18258_v32 = vsel %vm16352_vm15, %v9562_v6, %v9563_v16  ;;  %v18265_v12 = vrot.slane %v19632_v56, 5  ;;  %v15313_v4 = vld [vmem:[#allocation4 + $0x9c] sm:$0xff]   ;;  %v19634_v16 = vshll.u32 %v18024_v53, 16  ;;  %19636 = vst [vmem:[#allocation39_spill] sm:$0xff] %v18279_v40  ;;  %v8733_v56 = vshll.u32 %v18252_v11, 16 }
 0x493   : >> { %19631 = vst [vmem:[#allocation38_spill] sm:$0xff] %v18258_v32  ;;  %19637 = vst [vmem:[#allocation40_spill] sm:$0xff] %v18283_v0  ;;  %v19638_v44 = vshrl.u32 %v18011_v55, 16  ;;  %v8743_v53 = vrot.slane %v19639_v23, 5  ;;  %v8702_v31 = vsel %vm16090_vm12, %v18026_v15, %v18000_v42  ;;  %v8712_v26 = vsel %vm16090_vm12, %v18043_v1, %v18028_v45  ;;  %v8656_v42 = vld [vmem:[#allocation4 + $0x48] sm:$0xf] }
 0x494   : >> { %v18273_v6 = vrot.slane %v19634_v16, 5  ;;  %v19641_v55 = vshll.u32 %v18022_v58, 16  ;;  %v19642_v3 = vor.u32 %v18008_v61, %v18006_v25  ;;  %v8789_v0 = vshll.u32 %v8653_v29, 16 }
 0x495   : >> { %v8740_v16 = vrot.slane %v19638_v44, 4  ;;  %v8754_v44 = vor.u32 %v8753_v14, %v18265_v12  ;;  %v8731_v15 = vrot.slane %v8730_v13, 4  ;;  %v8795_v45 = vshll.u32 %v18040_v48, 16 }
 0x496   : >> { %14345 = vmatmul.mubr.msk.bf16.gmra.mrb[20].mxu1 %vm493_vm7, %v15312_v22  ;;  %v19640_v22 = vshrl.u32 %v18022_v58, 16  ;;  %v8767_v23 = vrot.slane %v19641_v55, 5  ;;  %v8778_v40 = vor.u32 %v8777_v63, %v18273_v6  ;;  %v8799_v1 = vshrl.u32 %v18040_v48, 16 }
 0x497   : >> { %14348 = vmatprep.mubr.msk.bf16.mxu1 %vm493_vm7, %v15313_v4  ;;  %v8721_v4 = vrot.slane %v19642_v3, 4  ;;  %v8735_v32 = vrot.slane %v8733_v56, 5  ;;  %v8744_v58 = vor.u32 %v8743_v53, %v8740_v16  ;;  %v8757_v55 = vshll.u32 %v18017_v24, 16  ;;  %v15314_v3 = vld [vmem:[#allocation4 + $0xa8] sm:$0xff]  }
 0x498   : >> { %v8764_v46 = vrot.slane %v19640_v22, 4  ;;  %v13091_v22 = vcombine.low %v8702_v31, %v8712_v26  ;;  %v8781_v25 = vshll.u32 %v18033_v49, 16  ;;  %v8810_v61 = vshrl.u32 %v8656_v42, 16 }
 0x499   : >> { %v8813_v14 = vshll.u32 %v8656_v42, 16  ;;  %v8726_v29 = vsel %vm16090_vm12, %v8721_v4, %v18030_v8  ;;  %v8755_v63 = vrot.slane %v8754_v44, 4  ;;  %v8788_v13 = vrot.slane %v8786_v2, 4  ;;  %v8659_v8 = vld [vmem:[#allocation4 + $0x54] sm:$0xf] }
 0x49a   : >> { %v8768_v62 = vor.u32 %v8767_v23, %v8764_v46  ;;  %v8791_v11 = vrot.slane %v8789_v0, 5  ;;  %v8736_v48 = vsel %vm16090_vm12, %v8731_v15, %v8735_v32  ;;  %v8779_v56 = vrot.slane %v8778_v40, 4 }
 0x49b   : >> { %v18320_v16 = vrot.slane %v8795_v45, 5  ;;  %v8801_v24 = vrot.slane %v8799_v1, 4  ;;  %v8745_v49 = vrot.slane %v8744_v58, 4  ;;  %v8759_v53 = vrot.slane %v8757_v55, 5  ;;  %v8662_v55 = vld [vmem:[#allocation4 + $0x60] sm:$0xf] }
 0x49c   : >> { %v8819_v31 = vshll.u32 %v18050_v35, 16  ;;  %v8823_v26 = vshrl.u32 %v18050_v35, 16  ;;  %v8769_v0 = vrot.slane %v8768_v62, 4  ;;  %v8783_v2 = vrot.slane %v8781_v25, 5 }
 0x49d   : >> { %v8812_v46 = vrot.slane %v8810_v61, 4  ;;  %v8815_v23 = vrot.slane %v8813_v14, 5  ;;  %v18326_v32 = vcombine.low %v8726_v29, %v8736_v48  ;;  %v8760_v40 = vsel %vm16090_vm12, %v8755_v63, %v8759_v53  ;;  %v15317_v14 = vld [vmem:[#allocation4 + $0xc0] sm:$0xff]  }
 0x49e   : >> { %14349 = vmatmul.mubr.msk.bf16.gmra.mrb[24].mxu1 %vm493_vm7, %v15314_v3  ;;  %v8792_v4 = vor.u32 %v8791_v11, %v8788_v13  ;;  %v8805_v44 = vshll.u32 %v18048_v34, 16  ;;  %v8784_v42 = vsel %vm16090_vm12, %v8779_v56, %v8783_v2  ;;  %v8802_v35 = vor.u32 %v8801_v24, %v18320_v16 }
 0x49f   : >> { %14352 = vmatprep.mubr.msk.bf16.mxu1 %vm493_vm7, %v15316_v43  ;;  %v8834_v15 = vshrl.u32 %v8659_v8, 16  ;;  %v8837_v45 = vshll.u32 %v8659_v8, 16  ;;  %v18334_v43 = vrot.slane %v8819_v31, 5  ;;  %v8825_v62 = vrot.slane %v8823_v26, 4 }
 0x4a0   : >> { %v8843_v1 = vshll.u32 %v18061_v36, 16  ;;  %v8847_v58 = vshrl.u32 %v18061_v36, 16  ;;  %v8750_v11 = vsel %vm16090_vm12, %v8745_v49, %v18265_v12  ;;  %v8774_v34 = vsel %vm16090_vm12, %v8769_v0, %v18273_v6  ;;  %v8665_v0 = vld [vmem:[#allocation4 + $0x6c] sm:$0xf] }
 0x4a1   : >> { %v8816_v25 = vor.u32 %v8815_v23, %v8812_v46  ;;  %v8829_v61 = vshll.u32 %v18053_v51, 16  ;;  %v13093_v3 = vcombine.low %v8750_v11, %v8760_v40  ;;  %v18345_v29 = vcombine.low %v8774_v34, %v8784_v42  ;;  %v8668_v23 = vld [vmem:[#allocation4 + $0x78] sm:$0xf]  ;;  %v15319_v11 = vld [vmem:[%s17344_s26 + $0xa8] sm:$0xff]  }
 0x4a2   : >> { %v8793_v63 = vrot.slane %v8792_v4, 4  ;;  %v8807_v13 = vrot.slane %v8805_v44, 5  ;;  %v8836_v48 = vrot.slane %v8834_v15, 4  ;;  %v8839_v36 = vrot.slane %v8837_v45, 5 }
 0x4a3   : >> { %v8858_v56 = vshrl.u32 %v8662_v55, 16  ;;  %v8861_v24 = vshll.u32 %v8662_v55, 16  ;;  %v8803_v12 = vrot.slane %v8802_v35, 4  ;;  %v8826_v49 = vor.u32 %v8825_v62, %v18334_v43 }
 0x4a4   : >> { %v18349_v53 = vrot.slane %v8843_v1, 5  ;;  %v8849_v6 = vrot.slane %v8847_v58, 4  ;;  %v8817_v51 = vrot.slane %v8816_v25, 4  ;;  %v8831_v31 = vrot.slane %v8829_v61, 5 }
 0x4a5   : >> { %v8867_v26 = vshll.u32 %v18075_v60, 16  ;;  %v8871_v8 = vshrl.u32 %v18075_v60, 16  ;;  %v8891_v2 = vshll.u32 %v18092_v9, 16  ;;  %v8895_v46 = vshrl.u32 %v18092_v9, 16 }
 0x4a6   : >> { %14353 = vmatmul.mubr.msk.bf16.gmra.mrb[28].mxu1 %vm493_vm7, %v15317_v14  ;;  %v8915_v40 = vshll.u32 %v18100_v30, 16  ;;  %v8919_v4 = vshrl.u32 %v18100_v30, 16  ;;  %v8840_v44 = vor.u32 %v8839_v36, %v8836_v48  ;;  %v8860_v42 = vrot.slane %v8858_v56, 4 }
 0x4a7   : >> { %14364 = vmatprep.mubr.msk.bf16.mxu1 %vm493_vm7, %v13091_v22  ;;  %v8853_v22 = vshll.u32 %v18063_v47, 16  ;;  %v8863_v35 = vrot.slane %v8861_v24, 5  ;;  %v8827_v15 = vrot.slane %v8826_v49, 4  ;;  %v8850_v45 = vor.u32 %v8849_v6, %v18349_v53 }
 0x4a8   : >> { %v8882_v60 = vshrl.u32 %v8665_v0, 16  ;;  %v8885_v62 = vshll.u32 %v8665_v0, 16  ;;  %v18360_v1 = vrot.slane %v8867_v26, 5  ;;  %v8873_v58 = vrot.slane %v8871_v8, 4  ;;  %v15320_v0 = vld [vmem:[%s17344_s26 + $0xb0] sm:$0xff]  }
 0x4a9   : >> { %v8906_v9 = vshrl.u32 %v8668_v23, 16  ;;  %v8909_v55 = vshll.u32 %v8668_v23, 16  ;;  %v18363_v34 = vrot.slane %v8891_v2, 5  ;;  %v8897_v25 = vrot.slane %v8895_v46, 4 }
 0x4aa   : >> { %v18365_v30 = vrot.slane %v8915_v40, 5  ;;  %v8921_v61 = vrot.slane %v8919_v4, 4  ;;  %v8798_v47 = vsel %vm16090_vm12, %v8793_v63, %v18320_v16  ;;  %v8808_v14 = vsel %vm16090_vm12, %v8803_v12, %v8807_v13  ;;  %v8674_v4 = vld [vmem:[#allocation4 + $0x90] sm:$0xf] }
 0x4ab   : >> { %v8841_v48 = vrot.slane %v8840_v44, 4  ;;  %v8864_v36 = vor.u32 %v8863_v35, %v8860_v42  ;;  %v8832_v56 = vsel %vm16090_vm12, %v8827_v15, %v8831_v31  ;;  %v8851_v24 = vrot.slane %v8850_v45, 4 }
 0x4ac   : >> { %v8884_v49 = vrot.slane %v8882_v60, 4  ;;  %v8887_v6 = vrot.slane %v8885_v62, 5  ;;  %v8822_v16 = vsel %vm16090_vm12, %v8817_v51, %v18334_v43  ;;  %v8874_v63 = vor.u32 %v8873_v58, %v18360_v1  ;;  %v15321_v62 = vld [vmem:[%s17344_s26 + $0xb8] sm:$0xff]  }
 0x4ad   : >> { %v8908_v13 = vrot.slane %v8906_v9, 4  ;;  %v8911_v12 = vrot.slane %v8909_v55, 5  ;;  %v8877_v26 = vshll.u32 %v18084_v59, 16  ;;  %v8898_v31 = vor.u32 %v8897_v25, %v18363_v34 }
 0x4ae   : >> { %14365 = vmatmul.mubr.msk.bf16.vlgmr.msra.gmra.mrb[0].mxu1 %vm493_vm7, %v18326_v32  ;;  %v8855_v32 = vrot.slane %v8853_v22, 5  ;;  %v8922_v8 = vor.u32 %v8921_v61, %v18365_v30  ;;  %v13095_v2 = vcombine.low %v8798_v47, %v8808_v14  ;;  %v8846_v43 = vsel %vm16090_vm12, %v8841_v48, %v18349_v53 }
 0x4af   : >> { %14368 = vmatprep.mubr.msk.bf16.mxu1 %vm493_vm7, %v13093_v3  ;;  %14397 = vmatpush3.bf16.msra.mxu1 %v18020_v20  ;;  %v8671_v3 = vld [vmem:[#allocation4 + $0x84] sm:$0xf]  ;;  %v18386_v20 = vcombine.low %v8822_v16, %v8832_v56  ;;  %v8865_v51 = vrot.slane %v8864_v36, 4  ;;  %v8888_v23 = vor.u32 %v8887_v6, %v8884_v49  ;;  %v8901_v59 = vshll.u32 %v18098_v17, 16 }
 0x4b0   : >> { %14398 = vmatprep.subr.bf16.mxu1 %v15319_v11  ;;  %v8856_v46 = vsel %vm16090_vm12, %v8851_v24, %v8855_v32  ;;  %v8925_v40 = vshll.u32 %v18116_v10, 16  ;;  %v8875_v44 = vrot.slane %v8874_v63, 4  ;;  %v8912_v22 = vor.u32 %v8911_v12, %v8908_v13  ;;  %v18414_v24 = vld [vmem:[%s17344_s26 + $0xc0] sm:$0xff]   ;;  %v8677_v32 = vld [vmem:[#allocation4 + $0x9c] sm:$0xf] }
 0x4b1   : >> { %v8930_v42 = vshrl.u32 %v8671_v3, 16  ;;  %v8933_v35 = vshll.u32 %v8671_v3, 16  ;;  %v8879_v15 = vrot.slane %v8877_v26, 5  ;;  %v8899_v45 = vrot.slane %v8898_v31, 4 }
 0x4b2   : >> { %v8923_v60 = vrot.slane %v8922_v8, 4  ;;  %v8939_v53 = vshll.u32 %v18128_v27, 16  ;;  %v13097_v58 = vcombine.low %v8846_v43, %v8856_v46  ;;  %v8943_v9 = vshrl.u32 %v18128_v27, 16 }
 0x4b3   : >> { %14399 = vmatpush3.bf16.msra.mxu1 %v15319_v11  ;;  %v8954_v55 = vshrl.u32 %v8674_v4, 16  ;;  %v8957_v17 = vshll.u32 %v8674_v4, 16  ;;  %v8870_v10 = vsel %vm16090_vm12, %v8865_v51, %v18360_v1  ;;  %v8889_v11 = vrot.slane %v8888_v23, 4 }
 0x4b4   : >> { %14400 = vmatprep.subr.bf16.mxu1 %v15320_v0  ;;  %v8903_v25 = vrot.slane %v8901_v59, 5  ;;  %v8927_v61 = vrot.slane %v8925_v40, 5  ;;  %v8880_v47 = vsel %vm16090_vm12, %v8875_v44, %v8879_v15  ;;  %v8913_v14 = vrot.slane %v8912_v22, 4  ;;  %v8683_v22 = vld [vmem:[#allocation4 + $0xb4] sm:$0xf] }
 0x4b5   : >> { %v8932_v27 = vrot.slane %v8930_v42, 4  ;;  %v8935_v48 = vrot.slane %v8933_v35, 5  ;;  %v18410_v56 = vrot.slane %v8939_v53, 5  ;;  %v8949_v1 = vshll.u32 %v18130_v5, 16 }
 0x4b6   : >> { %14369 = vmatmul.mubr.msk.bf16.gmra.mrb[4].mxu1 %vm493_vm7, %v18345_v29  ;;  %v8904_v29 = vsel %vm16090_vm12, %v8899_v45, %v8903_v25  ;;  %v8928_v36 = vsel %vm16090_vm12, %v8923_v60, %v8927_v61  ;;  %v8945_v49 = vrot.slane %v8943_v9, 4  ;;  %v8956_v6 = vrot.slane %v8954_v55, 4 }
 0x4b7   : >> { %14372 = vmatprep.mubr.msk.bf16.mxu1 %vm493_vm7, %v13095_v2  ;;  %14401 = vmatpush3.bf16.msra.mxu1 %v15320_v0  ;;  %v8959_v16 = vrot.slane %v8957_v17, 5  ;;  %v8963_v63 = vshll.u32 %v18140_v19, 16  ;;  %v8894_v13 = vsel %vm16090_vm12, %v8889_v11, %v18363_v34  ;;  %v8967_v12 = vshrl.u32 %v18140_v19, 16  ;;  %v8680_v34 = vld [vmem:[#allocation4 + $0xa8] sm:$0xf] }
 0x4b8   : >> { %14402 = vmatprep.subr.bf16.mxu1 %v15321_v62  ;;  %v8987_v26 = vshll.u32 %v18162_v50, 16  ;;  %v8991_v31 = vshrl.u32 %v18162_v50, 16  ;;  %v13098_v5 = vcombine.low %v8870_v10, %v8880_v47  ;;  %v13099_v8 = vcombine.low %v8894_v13, %v8904_v29  ;;  %v8686_v10 = vld [vmem:[#allocation4 + $0xc0] sm:$0xf] }
 0x4b9   : >> { %v8918_v0 = vsel %vm16090_vm12, %v8913_v14, %v18365_v30  ;;  %v8936_v3 = vor.u32 %v8935_v48, %v8932_v27  ;;  %v18428_v43 = vrot.slane %v8949_v1, 5  ;;  %v9011_v19 = vshll.u32 %v18180_v21, 16 }
 0x4ba   : >> { %v18426_v2 = vcombine.low %v8918_v0, %v8928_v36  ;;  %v9015_v51 = vshrl.u32 %v18180_v21, 16  ;;  %v8946_v50 = vor.u32 %v8945_v49, %v18410_v56  ;;  %v8960_v46 = vor.u32 %v8959_v16, %v8956_v6 }
 0x4bb   : >> { %14403 = vmatpush3.bf16.msra.mxu1 %v15321_v62  ;;  %v18434_v23 = vrot.slane %v8963_v63, 5  ;;  %v8978_v59 = vshrl.u32 %v8677_v32, 16  ;;  %v8969_v30 = vrot.slane %v8967_v12, 4  ;;  %v8981_v40 = vshll.u32 %v8677_v32, 16 }
 0x4bc   : >> { %14436 = vmatprep.subr.bf16.mxu1 %v18414_v24  ;;  %v18438_v4 = vrot.slane %v8987_v26, 5  ;;  %v8993_v44 = vrot.slane %v8991_v31, 4  ;;  %v9002_v21 = vshrl.u32 %v8680_v34, 16  ;;  %v9005_v42 = vshll.u32 %v8680_v34, 16 }
 0x4bd   : >> { %v9035_v35 = vshll.u32 %v18194_v18, 16  ;;  %v9039_v15 = vshrl.u32 %v18194_v18, 16  ;;  %v8937_v45 = vrot.slane %v8936_v3, 4  ;;  %v8973_v60 = vshll.u32 %v18150_v41, 16 }
 0x4be   : >> { %14373 = vmatmul.mubr.msk.bf16.gmra.mrb[8].mxu1 %vm493_vm7, %v18386_v20  ;;  %v18444_v53 = vrot.slane %v9011_v19, 5  ;;  %v9017_v20 = vrot.slane %v9015_v51, 4  ;;  %v8947_v62 = vrot.slane %v8946_v50, 4  ;;  %v8961_v9 = vrot.slane %v8960_v46, 4 }
 0x4bf   : >> { %14376 = vmatprep.mubr.msk.bf16.mxu1 %vm493_vm7, %v13097_v58  ;;  %v9026_v55 = vshrl.u32 %v8683_v22, 16  ;;  %v9029_v17 = vshll.u32 %v8683_v22, 16  ;;  %v8970_v11 = vor.u32 %v8969_v30, %v18434_v23  ;;  %v8980_v58 = vrot.slane %v8978_v59, 4 }
 0x4c0   : >> { %v8983_v25 = vrot.slane %v8981_v40, 5  ;;  %v8994_v61 = vor.u32 %v8993_v44, %v18438_v4  ;;  %v9004_v47 = vrot.slane %v9002_v21, 4  ;;  %v9007_v14 = vrot.slane %v9005_v42, 5 }
 0x4c1   : >> { %v18448_v18 = vrot.slane %v9035_v35, 5  ;;  %v9041_v27 = vrot.slane %v9039_v15, 4  ;;  %v8975_v41 = vrot.slane %v8973_v60, 5  ;;  %v9018_v48 = vor.u32 %v9017_v20, %v18444_v53 }
 0x4c2   : >> { %v9050_v29 = vshrl.u32 %v8686_v10, 16  ;;  %v9053_v36 = vshll.u32 %v8686_v10, 16  ;;  %v9028_v1 = vrot.slane %v9026_v55, 4  ;;  %v9031_v49 = vrot.slane %v9029_v17, 5 }
 0x4c3   : >> { %v9059_v6 = vshll.u32 %v18213_v28, 16  ;;  %v9063_v16 = vshrl.u32 %v18213_v28, 16  ;;  %v8952_v63 = vsel %vm16090_vm12, %v8947_v62, %v18428_v43  ;;  %v8984_v13 = vor.u32 %v8983_v25, %v8980_v58  ;;  %v18493_v58 = vld [vmem:[#allocation4 + $0x20] sm:$0x1] }
 0x4c4   : >> { %v8997_v12 = vshll.u32 %v18164_v54, 16  ;;  %v9021_v32 = vshll.u32 %v18192_v33, 16  ;;  %v8971_v26 = vrot.slane %v8970_v11, 4  ;;  %v8995_v31 = vrot.slane %v8994_v61, 4  ;;  %v9397_v11 = vld [vmem:[#allocation4 + $0x18] sm:$0xe] }
 0x4c5   : >> { %v9008_v0 = vor.u32 %v9007_v14, %v9004_v47  ;;  %v9042_v3 = vor.u32 %v9041_v27, %v18448_v18  ;;  %v9019_v34 = vrot.slane %v9018_v48, 4  ;;  %v9045_v28 = vshll.u32 %v18203_v38, 16  ;;  %v11038_v47 = vld [vmem:[#allocation4 + $0x18] sm:$0xe]  ;;  %v10301_v27 = vld [vmem:[#allocation4 + $0x60] sm:$0xf] }
 0x4c6   : >> { %14377 = vmatmul.mubr.msk.bf16.gmra.mrb[12].mxu1 %vm493_vm7, %v13098_v5  ;;  %v9052_v5 = vrot.slane %v9050_v29, 4  ;;  %v9055_v19 = vrot.slane %v9053_v36, 5  ;;  %v9032_v51 = vor.u32 %v9031_v49, %v9028_v1  ;;  %v18462_v50 = vrot.slane %v9059_v6, 5  ;;  %v18514_v49 = vld [vmem:[#allocation4 + $0x2c] sm:$0x1]  ;;  %v19644_v6 = vld [vmem:[#allocation37_spill] sm:$0xff] }
 0x4c7   : >> { %14380 = vmatprep.mubr.msk.bf16.mxu1 %vm493_vm7, %v13099_v8  ;;  %v9065_v43 = vrot.slane %v9063_v16, 4  ;;  %v9462_v54 = vrot.slane %v17989_v57, 5  ;;  %v8942_v33 = vsel %vm16090_vm12, %v8937_v45, %v18410_v56  ;;  %v8985_v8 = vrot.slane %v8984_v13, 4  ;;  %v9396_v45 = vld [vmem:[#allocation4 + $0xc] sm:$0xe] }
 0x4c8   : >> { %v8999_v46 = vrot.slane %v8997_v12, 5  ;;  %v9023_v59 = vrot.slane %v9021_v32, 5  ;;  %v13101_v30 = vcombine.low %v8942_v33, %v8952_v63  ;;  %v8976_v40 = vsel %vm16090_vm12, %v8971_v26, %v8975_v41  ;;  %v11039_v32 = vld [vmem:[#allocation4 + $0x24] sm:$0xe] }
 0x4c9   : >> { %v9009_v38 = vrot.slane %v9008_v0, 4  ;;  %v9043_v44 = vrot.slane %v9042_v3, 4  ;;  %v8966_v22 = vsel %vm16090_vm12, %v8961_v9, %v18434_v23  ;;  %v9056_v56 = vor.u32 %v9055_v19, %v9052_v5  ;;  %v18484_v9 = vld [vmem:[#allocation4 + $0x1c] sm:$0xf]  ;;  %v18525_v3 = vld [vmem:[#allocation4 + $0x38] sm:$0x1] }
 0x4ca   : >> { %v9000_v57 = vsel %vm16090_vm12, %v8995_v31, %v8999_v46  ;;  %v9024_v21 = vsel %vm16090_vm12, %v9019_v34, %v9023_v59  ;;  %v9033_v42 = vrot.slane %v9032_v51, 4  ;;  %v9047_v35 = vrot.slane %v9045_v28, 5  ;;  %v11040_v28 = vld [vmem:[#allocation4 + $0x30] sm:$0xe]  ;;  %v18530_v19 = vld [vmem:[#allocation4 + $0x40] sm:$0xf] }
 0x4cb   : >> { %v9066_v15 = vor.u32 %v9065_v43, %v18462_v50  ;;  %v9464_v60 = vrot.slane %v9462_v54, 4  ;;  %v13102_v20 = vcombine.low %v8966_v22, %v8976_v40  ;;  %v8990_v23 = vsel %vm16090_vm12, %v8985_v8, %v18438_v4  ;;  %v18532_v51 = vld [vmem:[#allocation4 + $0x44] sm:$0x1]  ;;  %v18548_v8 = vld [vmem:[#allocation4 + $0x4c] sm:$0xf] }
 0x4cc   : >> { %v9069_v62 = vshll.u32 %v18226_v39, 16  ;;  %v13103_v55 = vcombine.low %v8990_v23, %v9000_v57  ;;  %v9014_v17 = vsel %vm16090_vm12, %v9009_v38, %v18444_v53  ;;  %v9048_v10 = vsel %vm16090_vm12, %v9043_v44, %v9047_v35  ;;  %v11041_v40 = vld [vmem:[#allocation4 + $0x3c] sm:$0xe]  ;;  %v18554_v38 = vld [vmem:[#allocation4 + $0x50] sm:$0x1] }
 0x4cd   : >> { %v18495_v4 = vcombine.low %v9014_v17, %v9024_v21  ;;  %v9057_v39 = vrot.slane %v9056_v56, 4  ;;  %v13127_v25 = vrot.slane %v9396_v45, 9  ;;  %v9469_v61 = vrot.slane %v17998_v37, 5  ;;  %v18556_v44 = vld [vmem:[#allocation4 + $0x58] sm:$0xf] }
 0x4ce   : >> { %14381 = vmatmul.mubr.msk.bf16.gmra.mrb[16].mxu1 %vm493_vm7, %v18426_v2  ;;  %v9465_v2 = vrot.slane %v17996_v52, 5  ;;  %v9038_v14 = vsel %vm16090_vm12, %v9033_v42, %v18448_v18  ;;  %v9067_v53 = vrot.slane %v9066_v15, 4  ;;  %v18505_v52 = vld [vmem:[#allocation4 + $0x28] sm:$0xf]  ;;  %v11104_v48 = vrot.slane %v18484_v9, 5 }
 0x4cf   : >> { %14384 = vmatprep.mubr.msk.bf16.mxu1 %vm493_vm7, %v13101_v30  ;;  %v18508_v29 = vcombine.low %v9038_v14, %v9048_v10  ;;  %v9071_v36 = vrot.slane %v9069_v62, 5  ;;  %v18512_v37 = vsel %vm16352_vm15, %v13127_v25, %v9462_v54  ;;  %v13128_v1 = vrot.slane %v9397_v11, 9  ;;  %v18516_v18 = vld [vmem:[#allocation4 + $0x34] sm:$0xf]  ;;  %v18565_v15 = vld [vmem:[#allocation4 + $0x5c] sm:$0x1] }
 0x4d0   : >> { %v18503_v41 = vsel %vm16352_vm15, %v9464_v60, %v9465_v2  ;;  %v9472_v16 = vrot.slane %v19644_v6, 5  ;;  %v13278_v63 = vrot.slane %v11038_v47, 9  ;;  %v11106_v13 = vrot.slane %v11104_v48, 4  ;;  %v18572_v23 = vld [vmem:[#allocation4 + $0x64] sm:$0xf] }
 0x4d1   : >> { %v11107_v12 = vrot.slane %v18493_v58, 5  ;;  %v9062_v26 = vsel %vm16090_vm12, %v9057_v39, %v18462_v50  ;;  %v9471_v0 = vrot.slane %v9469_v61, 4  ;;  %v11111_v34 = vrot.slane %v18505_v52, 5  ;;  %v11043_v2 = vld [vmem:[#allocation4 + $0x54] sm:$0xe] }
 0x4d2   : >> { %v9072_v5 = vsel %vm16090_vm12, %v9067_v53, %v9071_v36  ;;  %v18536_v43 = vsel %vm16352_vm15, %v13278_v63, %v11104_v48  ;;  %v11118_v54 = vrot.slane %v18516_v18, 5  ;;  %v18546_v33 = vsel %vm16352_vm15, %v13128_v1, %v9469_v61  ;;  %v18586_v11 = vld [vmem:[#allocation4 + $0x68] sm:$0x1]  ;;  %v11044_v14 = vld [vmem:[#allocation4 + $0x60] sm:$0xe] }
 0x4d3   : >> { %v18540_v50 = vsel %vm16352_vm15, %v11106_v13, %v11107_v12  ;;  %v13279_v59 = vrot.slane %v11039_v32, 9  ;;  %v11114_v30 = vrot.slane %v18514_v49, 5  ;;  %v11113_v22 = vrot.slane %v11111_v34, 4  ;;  %v18593_v53 = vld [vmem:[#allocation4 + $0x70] sm:$0xf] }
 0x4d4   : >> { %v13280_v57 = vrot.slane %v11040_v28, 9  ;;  %v11120_v21 = vrot.slane %v11118_v54, 4  ;;  %v11121_v56 = vrot.slane %v18525_v3, 5  ;;  %v18559_v42 = vcombine.low %v9062_v26, %v9072_v5  ;;  %v18609_v26 = vld [vmem:[#allocation4 + $0x7c] sm:$0xf] }
 0x4d5   : >> { %v18563_v35 = vsel %vm16352_vm15, %v9471_v0, %v9472_v16  ;;  %v18569_v45 = vsel %vm16352_vm15, %v13279_v59, %v11111_v34  ;;  %v11125_v60 = vrot.slane %v18530_v19, 5  ;;  %v18576_v62 = vsel %vm16352_vm15, %v11113_v22, %v11114_v30  ;;  %v18601_v16 = vld [vmem:[#allocation4 + $0x74] sm:$0x1]  ;;  %v18616_v59 = vld [vmem:[#allocation4 + $0x80] sm:$0x1] }
 0x4d6   : >> { %14385 = vmatmul.mubr.msk.bf16.gmra.mrb[20].mxu1 %vm493_vm7, %v13102_v20  ;;  %19645 = vst [vmem:[#allocation16_spill] sm:$0xff] %v18569_v45  ;;  %v11042_v20 = vld [vmem:[#allocation4 + $0x48] sm:$0xe]  ;;  %19646 = vst [vmem:[#allocation37_spill] sm:$0xff] %v18576_v62  ;;  %v18584_v17 = vsel %vm16352_vm15, %v11120_v21, %v11121_v56  ;;  %v13281_v10 = vrot.slane %v11041_v40, 9  ;;  %v11128_v47 = vrot.slane %v18532_v51, 5 }
 0x4d7   : >> { %14388 = vmatprep.mubr.msk.bf16.mxu1 %vm493_vm7, %v13103_v55  ;;  %v18580_v55 = vsel %vm16352_vm15, %v13280_v57, %v11118_v54  ;;  %19648 = vst [vmem:[#allocation42_spill] sm:$0xff] %v18584_v17  ;;  %v11127_v61 = vrot.slane %v11125_v60, 4  ;;  %v13282_v36 = vrot.slane %v11042_v20, 9  ;;  %v11132_v1 = vrot.slane %v18548_v8, 5  ;;  %v11045_v54 = vld [vmem:[#allocation4 + $0x6c] sm:$0xe] }
 0x4d8   : >> { %19647 = vst [vmem:[#allocation41_spill] sm:$0xff] %v18580_v55  ;;  %v18597_v48 = vsel %vm16352_vm15, %v13281_v10, %v11125_v60  ;;  %v11139_v6 = vrot.slane %v18556_v44, 5  ;;  %v11135_v13 = vrot.slane %v18554_v38, 5  ;;  %v13283_v12 = vrot.slane %v11043_v2, 9  ;;  %v18618_v30 = vld [vmem:[#allocation4 + $0x88] sm:$0xf] }
 0x4d9   : >> { %19649 = vst [vmem:[#allocation43_spill] sm:$0xff] %v18597_v48  ;;  %v18605_v63 = vsel %vm16352_vm15, %v11127_v61, %v11128_v47  ;;  %v11146_v32 = vrot.slane %v18572_v23, 5  ;;  %v11134_v34 = vrot.slane %v11132_v1, 4  ;;  %v11142_v28 = vrot.slane %v18565_v15, 5  ;;  %v18627_v56 = vld [vmem:[#allocation4 + $0x8c] sm:$0x1] }
 0x4da   : >> { %19650 = vst [vmem:[#allocation44_spill] sm:$0xff] %v18605_v63  ;;  %v13284_v5 = vrot.slane %v11044_v14, 9  ;;  %v18622_v40 = vsel %vm16352_vm15, %v13282_v36, %v11132_v1  ;;  %v11141_v22 = vrot.slane %v11139_v6, 4  ;;  %v11149_v21 = vrot.slane %v18586_v11, 5  ;;  %v11046_v2 = vld [vmem:[#allocation4 + $0x78] sm:$0xe] }
 0x4db   : >> { %19651 = vst [vmem:[#allocation45_spill] sm:$0xff] %v18622_v40  ;;  %v11148_v57 = vrot.slane %v11146_v32, 4  ;;  %v18635_v60 = vsel %vm16352_vm15, %v13283_v12, %v11139_v6  ;;  %v11153_v10 = vrot.slane %v18593_v53, 5  ;;  %v18642_v61 = vld [vmem:[#allocation4 + $0x94] sm:$0xf]  ;;  %v13285_v36 = vrot.slane %v11045_v54, 9 }
 0x4dc   : >> { %19653 = vst [vmem:[#allocation47_spill] sm:$0xff] %v18635_v60  ;;  %v18639_v20 = vsel %vm16352_vm15, %v13284_v5, %v11146_v32  ;;  %v18648_v47 = vsel %vm16352_vm15, %v11141_v22, %v11142_v28  ;;  %v11047_v1 = vld [vmem:[#allocation4 + $0x84] sm:$0xe]  ;;  %v18654_v6 = vld [vmem:[#allocation4 + $0x98] sm:$0x1]  ;;  %v13286_v54 = vrot.slane %v11046_v2, 9 }
 0x4dd   : >> { %19654 = vst [vmem:[#allocation48_spill] sm:$0xff] %v18639_v20  ;;  %19655 = vst [vmem:[#allocation49_spill] sm:$0xff] %v18648_v47  ;;  %v18652_v14 = vsel %vm16352_vm15, %v11148_v57, %v11149_v21  ;;  %v11155_v32 = vrot.slane %v11153_v10, 4  ;;  %v11048_v5 = vld [vmem:[#allocation4 + $0x90] sm:$0xe]  ;;  %v18665_v22 = vsel %vm16352_vm15, %v13285_v36, %v11153_v10  ;;  %v11160_v57 = vrot.slane %v18609_v26, 5 }
 0x4de   : >> { %14389 = vmatmul.mubr.msk.bf16.gmra.mrb[24].mxu1 %vm493_vm7, %v18495_v4  ;;  %v18631_v4 = vsel %vm16352_vm15, %v11134_v34, %v11135_v13  ;;  %19656 = vst [vmem:[#allocation50_spill] sm:$0xff] %v18652_v14  ;;  %v11156_v34 = vrot.slane %v18601_v16, 5  ;;  %v18661_v28 = vld [vmem:[#allocation4 + $0xa0] sm:$0xf]  ;;  %19657 = vst [vmem:[#allocation51_spill] sm:$0xff] %v18665_v22  ;;  %v11167_v21 = vrot.slane %v18618_v30, 5 }
 0x4df   : >> { %14392 = vmatprep.mubr.msk.bf16.mxu1 %vm493_vm7, %v18508_v29  ;;  %19652 = vst [vmem:[#allocation46_spill] sm:$0xff] %v18631_v4  ;;  %v18669_v29 = vld [vmem:[#allocation4 + $0xa4] sm:$0x1]  ;;  %v11163_v13 = vrot.slane %v18616_v59, 5  ;;  %v13287_v0 = vrot.slane %v11047_v1, 9  ;;  %v11174_v25 = vrot.slane %v18642_v61, 5 }
 0x4e0   : >> { %v18673_v12 = vsel %vm16352_vm15, %v11155_v32, %v11156_v34  ;;  %v18677_v39 = vld [vmem:[#allocation4 + $0xac] sm:$0xf]  ;;  %v11162_v2 = vrot.slane %v11160_v57, 4  ;;  %v11170_v36 = vrot.slane %v18627_v56, 5  ;;  %v13288_v46 = vrot.slane %v11048_v5, 9  ;;  %v19723_v7 = vld [vmem:[#allocation43_spill] sm:$0xff] }
 0x4e1   : >> { %19658 = vst [vmem:[#allocation52_spill] sm:$0xff] %v18673_v12  ;;  %v11049_v31 = vld [vmem:[#allocation4 + $0x9c] sm:$0xe]  ;;  %v18682_v14 = vld [vmem:[#allocation4 + $0xb0] sm:$0x1]  ;;  %v18686_v32 = vsel %vm16352_vm15, %v13286_v54, %v11160_v57  ;;  %v11169_v34 = vrot.slane %v11167_v21, 4  ;;  %v18699_v5 = vsel %vm16352_vm15, %v13287_v0, %v11167_v21 }
 0x4e2   : >> { %19659 = vst [vmem:[#allocation53_spill] sm:$0xff] %v18686_v32  ;;  %v11176_v1 = vrot.slane %v11174_v25, 4  ;;  %v11177_v20 = vrot.slane %v18654_v6, 5  ;;  %v18691_v47 = vld [vmem:[#allocation4 + $0xb8] sm:$0xf]  ;;  %v18695_v10 = vsel %vm16352_vm15, %v11162_v2, %v11163_v13  ;;  %19661 = vst [vmem:[#allocation55_spill] sm:$0xff] %v18699_v5  ;;  %v18703_v54 = vsel %vm16352_vm15, %v13288_v46, %v11174_v25 }
 0x4e3   : >> { %19660 = vst [vmem:[#allocation54_spill] sm:$0xff] %v18695_v10  ;;  %19662 = vst [vmem:[#allocation56_spill] sm:$0xff] %v18703_v54  ;;  %v11181_v57 = vrot.slane %v18661_v28, 5  ;;  %v11050_v12 = vld [vmem:[#allocation4 + $0xa8] sm:$0xe]  ;;  %v18718_v21 = vsel %vm16352_vm15, %v11169_v34, %v11170_v36  ;;  %v13289_v25 = vrot.slane %v11049_v31, 9  ;;  %v13153_v36 = vcombine.low %v18546_v33, %v18563_v35 }
 0x4e4   : >> { %v18710_v22 = vld [vmem:[#allocation4 + $0xbc] sm:$0x1]  ;;  %v18712_v13 = vld [vmem:[#allocation4 + $0xc4] sm:$0xf]  ;;  %19664 = vst [vmem:[#allocation57_spill] sm:$0xff] %v18718_v21  ;;  %v18722_v46 = vsel %vm16352_vm15, %v11176_v1, %v11177_v20  ;;  %v11184_v0 = vrot.slane %v18669_v29, 5 }
 0x4e5   : >> { %19665 = vst [vmem:[#allocation58_spill] sm:$0xff] %v18722_v46  ;;  %v18724_v2 = vld [vmem:[#allocation4 + $0xc8] sm:$0x1]  ;;  %v11051_v10 = vld [vmem:[#allocation4 + $0xb4] sm:$0xe]  ;;  %v13290_v34 = vrot.slane %v11050_v12, 9 }
 0x4e6   : >> { %14393 = vmatmul.mubr.msk.bf16.gmra.mrb[28].mxu1 %vm493_vm7, %v18559_v42  ;;  %v19663_v42 = vcombine.low %v18512_v37, %v18503_v41  ;;  %v11188_v20 = vrot.slane %v18677_v39, 5  ;;  %v11195_v31 = vrot.slane %v18691_v47, 5  ;;  %v11052_v1 = vld [vmem:[#allocation4 + $0xc0] sm:$0xe]  ;;  %v18737_v41 = vsel %vm16352_vm15, %v13289_v25, %v11181_v57  ;;  %v15323_v5 = vld [vmem:[%s17344_s26 + $0xc8] sm:$0xff]  }
 0x4e7   : >> { %19666 = vst [vmem:[#allocation59_spill] sm:$0xff] %v18737_v41  ;;  %v11191_v46 = vrot.slane %v18682_v14, 5  ;;  %v11202_v54 = vrot.slane %v18712_v13, 5  ;;  %v13291_v12 = vrot.slane %v11051_v10, 9  ;;  %v11198_v21 = vrot.slane %v18710_v22, 5  ;;  %v15345_v62 = vld [vmem:[#allocation4 + $0xcc] sm:$0xff]  }
 0x4e8   : >> { %14404 = vmatprep.mubr.msk.bf16.mxu1 %vm493_vm7, %v19663_v42  ;;  %v11183_v42 = vrot.slane %v11181_v57, 4  ;;  %v11190_v35 = vrot.slane %v11188_v20, 4  ;;  %v11197_v32 = vrot.slane %v11195_v31, 4  ;;  %v13292_v60 = vrot.slane %v11052_v1, 9  ;;  %v19695_v1 = vld [vmem:[#allocation25_spill] sm:$0xff] }
 0x4e9   : >> { %v11204_v57 = vrot.slane %v11202_v54, 4  ;;  %v11205_v25 = vrot.slane %v18724_v2, 5  ;;  %v18760_v10 = vsel %vm16352_vm15, %v13291_v12, %v11195_v31  ;;  %v19675_v31 = vld [vmem:[#allocation12_spill] sm:$0xff]  ;;  %v19678_v12 = vld [vmem:[#allocation13_spill] sm:$0xff] }
 0x4ea   : >> { %v18741_v37 = vsel %vm16352_vm15, %v11183_v42, %v11184_v0  ;;  %v18752_v0 = vsel %vm16352_vm15, %v13290_v34, %v11188_v20  ;;  %v18756_v42 = vsel %vm16352_vm15, %v11190_v35, %v11191_v46  ;;  %19670 = vst [vmem:[#allocation63_spill] sm:$0xff] %v18760_v10  ;;  %v18767_v33 = vsel %vm16352_vm15, %v11197_v32, %v11198_v21  ;;  %v19674_v20 = vld [vmem:[#allocation15_spill] sm:$0xff]  ;;  %v19686_v32 = vld [vmem:[#allocation20_spill] sm:$0xff] }
 0x4eb   : >> { %19667 = vst [vmem:[#allocation60_spill] sm:$0xff] %v18741_v37  ;;  %19668 = vst [vmem:[#allocation61_spill] sm:$0xff] %v18752_v0  ;;  %v18771_v34 = vsel %vm16352_vm15, %v13292_v60, %v11202_v54  ;;  %v18775_v46 = vsel %vm16352_vm15, %v11204_v57, %v11205_v25  ;;  %v19676_v35 = vcombine.low %v19674_v20, %v19675_v31  ;;  %v15324_v60 = vld [vmem:[%s17344_s26 + $0xd0] sm:$0xff]   ;;  %v15325_v54 = vld [vmem:[%s17344_s26 + $0xd8] sm:$0xff]  }
 0x4ec   : >> { %19669 = vst [vmem:[#allocation62_spill] sm:$0xff] %v18756_v42  ;;  %19671 = vst [vmem:[#allocation64_spill] sm:$0xff] %v18767_v33  ;;  %v19680_v25 = vld [vmem:[#allocation14_spill] sm:$0xff]  ;;  %v10289_v10 = vld [vmem:[#allocation4 + $0x30] sm:$0xf] }
 0x4ed   : >> { %19672 = vst [vmem:[#allocation65_spill] sm:$0xff] %v18771_v34  ;;  %19673 = vst [vmem:[#allocation66_spill] sm:$0xff] %v18775_v46  ;;  %v19681_v20 = vld [vmem:[#allocation18_spill] sm:$0xff]  ;;  %v19696_v46 = vld [vmem:[#allocation27_spill] sm:$0xff]  ;;  %v10369_v34 = vshrl.u32 %v18505_v52, 16  ;;  %v10383_v37 = vshll.u32 %v10289_v10, 16 }
 0x4ee   : >> { %14405 = vmatmul.mubr.msk.bf16.vlgmr.msra.gmra.mrb[0].mxu1 %vm493_vm7, %v13153_v36  ;;  %v19677_v36 = vld [vmem:[#allocation11_spill] sm:$0xff]  ;;  %v19682_v31 = vcombine.low %v19680_v25, %v19681_v20  ;;  %v15340_v42 = vld [vmem:[#allocation4 + $0x9c] sm:$0xff]  }
 0x4ef   : >> { %14408 = vmatprep.mubr.msk.bf16.mxu1 %vm493_vm7, %v19676_v35  ;;  %14437 = vmatpush3.bf16.msra.mxu1 %v18414_v24  ;;  %v19679_v57 = vcombine.low %v19677_v36, %v19678_v12  ;;  %v15328_v24 = vld [vmem:[%s17344_s26 + $0xe0] sm:$0xff]   ;;  %v19683_v35 = vld [vmem:[#allocation17_spill] sm:$0xff]  ;;  %v19690_v25 = vld [vmem:[#allocation23_spill] sm:$0xff]  ;;  %v10385_v4 = vrot.slane %v10383_v37, 5  ;;  %v10417_v37 = vshrl.u32 %v18530_v19, 16 }
 0x4f0   : >> { %14438 = vmatprep.subr.bf16.mxu1 %v15323_v5  ;;  %v19687_v36 = vld [vmem:[#allocation21_spill] sm:$0xff]  ;;  %v10292_v41 = vld [vmem:[#allocation4 + $0x3c] sm:$0xf] }
 0x4f1   : >> { %v19688_v12 = vcombine.low %v19686_v32, %v19687_v36  ;;  %v19701_v36 = vld [vmem:[#allocation30_spill] sm:$0xff] }
 0x4f3   : >> { %14439 = vmatpush3.bf16.msra.mxu1 %v15323_v5  ;;  %v19684_v5 = vld [vmem:[#allocation19_spill] sm:$0xff] }
 0x4f4   : >> { %14440 = vmatprep.subr.bf16.mxu1 %v15324_v60  ;;  %v19685_v21 = vcombine.low %v19683_v35, %v19684_v5  ;;  %v19697_v35 = vcombine.low %v19695_v1, %v19696_v46  ;;  %v19699_v5 = vld [vmem:[#allocation29_spill] sm:$0xff]  ;;  %v19708_v1 = vld [vmem:[#allocation35_spill] sm:$0xff] }
 0x4f6   : >> { %14409 = vmatmul.mubr.msk.bf16.gmra.mrb[4].mxu1 %vm493_vm7, %v19679_v57  ;;  %v19689_v57 = vld [vmem:[#allocation22_spill] sm:$0xff] }
 0x4f7   : >> { %14412 = vmatprep.mubr.msk.bf16.mxu1 %vm493_vm7, %v19682_v31  ;;  %14441 = vmatpush3.bf16.msra.mxu1 %v15324_v60  ;;  %v19691_v20 = vcombine.low %v19689_v57, %v19690_v25  ;;  %v19692_v60 = vld [vmem:[#allocation24_spill] sm:$0xff]  ;;  %v19693_v31 = vld [vmem:[#allocation26_spill] sm:$0xff] }
 0x4f8   : >> { %14442 = vmatprep.subr.bf16.mxu1 %v15325_v54  ;;  %v19704_v25 = vld [vmem:[#allocation32_spill] sm:$0xff] }
 0x4fb   : >> { %14443 = vmatpush3.bf16.msra.mxu1 %v15325_v54  ;;  %v19694_v54 = vcombine.low %v19692_v60, %v19693_v31  ;;  %v19707_v31 = vld [vmem:[#allocation33_spill] sm:$0xff] }
 0x4fc   : >> { %14476 = vmatprep.subr.bf16.mxu1 %v15328_v24  ;;  %v19709_v46 = vcombine.low %v19707_v31, %v19708_v1  ;;  %v15330_v31 = vld [vmem:[#allocation4 + $0x3c] sm:$0xff]  }
 0x4fd   : >> { %v15343_v1 = vld [vmem:[%s17344_s26 + $0xf8] sm:$0xff]  }
 0x4fe   : >> { %14413 = vmatmul.mubr.msk.bf16.gmra.mrb[8].mxu1 %vm493_vm7, %v19685_v21  ;;  %v19698_v21 = vld [vmem:[#allocation28_spill] sm:$0xff] }
 0x4ff   : >> { %14416 = vmatprep.mubr.msk.bf16.mxu1 %vm493_vm7, %v19688_v12  ;;  %v19700_v32 = vcombine.low %v19698_v21, %v19699_v5  ;;  %v19702_v12 = vld [vmem:[#allocation31_spill] sm:$0xff]  ;;  %v15326_v5 = vld [vmem:[#allocation4 + $0x18] sm:$0xff]  }
 0x500   : >> { %v19703_v57 = vcombine.low %v19701_v36, %v19702_v12  ;;  %v19714_v36 = vld [vmem:[#allocation40_spill] sm:$0xff] }
 0x506   : >> { %14417 = vmatmul.mubr.msk.bf16.gmra.mrb[12].mxu1 %vm493_vm7, %v19691_v20  ;;  %v19705_v20 = vld [vmem:[#allocation34_spill] sm:$0xff] }
 0x507   : >> { %14420 = vmatprep.mubr.msk.bf16.mxu1 %vm493_vm7, %v19694_v54  ;;  %v19706_v60 = vcombine.low %v19704_v25, %v19705_v20  ;;  %v19710_v54 = vld [vmem:[#allocation36_spill] sm:$0xff]  ;;  %v15333_v25 = vld [vmem:[%s17344_s26 + $0xe8] sm:$0xff]  }
 0x508   : >> { %v15329_v20 = vld [vmem:[#allocation4 + $0x30] sm:$0xff]  }
 0x50e   : >> { %14421 = vmatmul.mubr.msk.bf16.gmra.mrb[16].mxu1 %vm493_vm7, %v19697_v35  ;;  %v19711_v35 = vld [vmem:[#allocation38_spill] sm:$0xff] }
 0x50f   : >> { %14424 = vmatprep.mubr.msk.bf16.mxu1 %vm493_vm7, %v19700_v32  ;;  %v19712_v21 = vcombine.low %v19710_v54, %v19711_v35  ;;  %v19713_v32 = vld [vmem:[#allocation39_spill] sm:$0xff]  ;;  %v18850_v54 = vld [vmem:[%s17344_s26 + $0x100] sm:$0xff]  }
 0x510   : >> { %v19715_v12 = vcombine.low %v19713_v32, %v19714_v36  ;;  %v15332_v35 = vld [vmem:[#allocation4 + $0x54] sm:$0xff]  }
 0x511   : >> { %v10283_v32 = vld [vmem:[#allocation4 + $0x18] sm:$0xf] }
 0x512   : >> { %v10332_v36 = vshrl.u32 %v10283_v32, 16 }
 0x516   : >> { %14425 = vmatmul.mubr.msk.bf16.gmra.mrb[20].mxu1 %vm493_vm7, %v19703_v57  ;;  %v15327_v57 = vld [vmem:[#allocation4 + $0x24] sm:$0xff]  }
 0x517   : >> { %14428 = vmatprep.mubr.msk.bf16.mxu1 %vm493_vm7, %v19706_v60  ;;  %v15338_v60 = vld [vmem:[%s17344_s26 + $0xf0] sm:$0xff]  }
 0x51e   : >> { %14429 = vmatmul.mubr.msk.bf16.gmra.mrb[24].mxu1 %vm493_vm7, %v19709_v46  ;;  %v15331_v46 = vld [vmem:[#allocation4 + $0x48] sm:$0xff]  }
 0x51f   : >> { %14432 = vmatprep.mubr.msk.bf16.mxu1 %vm493_vm7, %v19712_v21  ;;  %v15335_v21 = vld [vmem:[#allocation4 + $0x6c] sm:$0xff]  }
 0x526   : >> { %14433 = vmatmul.mubr.msk.bf16.gmra.mrb[28].mxu1 %vm493_vm7, %v19715_v12  ;;  %v10335_v12 = vshll.u32 %v10283_v32, 16  ;;  %v10365_v32 = vshll.u32 %v18505_v52, 16 }
 0x527   : >> { %14444 = vmatprep.mubr.msk.bf16.mxu1 %vm493_vm7, %v15326_v5  ;;  %v15336_v5 = vld [vmem:[#allocation4 + $0x78] sm:$0xff]  }
 0x52e   : >> { %14445 = vmatmul.mubr.msk.bf16.vlgmr.msra.gmra.mrb[0].mxu1 %vm493_vm7, %v15327_v57  ;;  %v15337_v57 = vld [vmem:[#allocation4 + $0x84] sm:$0xff]  }
 0x52f   : >> { %14448 = vmatprep.mubr.msk.bf16.mxu1 %vm493_vm7, %v15329_v20  ;;  %14477 = vmatpush3.bf16.msra.mxu1 %v15328_v24  ;;  %v15334_v24 = vld [vmem:[#allocation4 + $0x60] sm:$0xff]   ;;  %v10341_v20 = vshll.u32 %v18484_v9, 16 }
 0x530   : >> { %14478 = vmatprep.subr.bf16.mxu1 %v15333_v25 }
 0x533   : >> { %14479 = vmatpush3.bf16.msra.mxu1 %v15333_v25  ;;  %v15339_v25 = vld [vmem:[#allocation4 + $0x90] sm:$0xff]  }
 0x534   : >> { %14480 = vmatprep.subr.bf16.mxu1 %v15338_v60 }
 0x536   : >> { %14449 = vmatmul.mubr.msk.bf16.gmra.mrb[4].mxu1 %vm493_vm7, %v15330_v31  ;;  %v10286_v31 = vld [vmem:[#allocation4 + $0x24] sm:$0xf] }
 0x537   : >> { %14452 = vmatprep.mubr.msk.bf16.mxu1 %vm493_vm7, %v15331_v46  ;;  %14481 = vmatpush3.bf16.msra.mxu1 %v15338_v60  ;;  %v10345_v60 = vshrl.u32 %v18484_v9, 16  ;;  %v10337_v46 = vrot.slane %v10335_v12, 5 }
 0x538   : >> { %14482 = vmatprep.subr.bf16.mxu1 %v15343_v1 }
 0x53b   : >> { %14483 = vmatpush3.bf16.msra.mxu1 %v15343_v1  ;;  %v10334_v1 = vrot.slane %v10332_v36, 4  ;;  %v15341_v36 = vld [vmem:[#allocation4 + $0xa8] sm:$0xff]  }
 0x53c   : >> { %14516 = vmatprep.subr.bf16.mxu1 %v18850_v54 }
 0x53d   : >> { %v10338_v33 = vor.u32 %v10337_v46, %v10334_v1  ;;  %v10351_v1 = vshll.u32 %v18493_v58, 16  ;;  %v10375_v46 = vshll.u32 %v18514_v49, 16  ;;  %v10404_v58 = vshrl.u32 %v10292_v41, 16  ;;  %v15342_v49 = vld [vmem:[#allocation4 + $0xb4] sm:$0xff]  }
 0x53e   : >> { %14453 = vmatmul.mubr.msk.bf16.gmra.mrb[8].mxu1 %vm493_vm7, %v15332_v35  ;;  %v10356_v35 = vshrl.u32 %v10286_v31, 16 }
 0x53f   : >> { %14456 = vmatprep.mubr.msk.bf16.mxu1 %vm493_vm7, %v15334_v24  ;;  %v10359_v24 = vshll.u32 %v10286_v31, 16  ;;  %v10380_v31 = vshrl.u32 %v10289_v10, 16  ;;  %v10339_v52 = vrot.slane %v10338_v33, 4  ;;  %v10353_v33 = vrot.slane %v10351_v1, 5 }
 0x540   : >> { %v10358_v9 = vrot.slane %v10356_v35, 4 }
 0x541   : >> { %v10361_v0 = vrot.slane %v10359_v24, 5 }
 0x543   : >> { %v10362_v35 = vor.u32 %v10361_v0, %v10358_v9 }
 0x545   : >> { %v10363_v0 = vrot.slane %v10362_v35, 4  ;;  %v18890_v35 = vld [vmem:[#allocation4 + $0xd0] sm:$0xf] }
 0x546   : >> { %14457 = vmatmul.mubr.msk.bf16.gmra.mrb[12].mxu1 %vm493_vm7, %v15335_v21  ;;  %v18861_v21 = vrot.slane %v10341_v20, 5  ;;  %v18869_v20 = vrot.slane %v10365_v32, 5  ;;  %v10382_v32 = vrot.slane %v10380_v31, 4 }
 0x547   : >> { %14460 = vmatprep.mubr.msk.bf16.mxu1 %vm493_vm7, %v15336_v5  ;;  %v10347_v5 = vrot.slane %v10345_v60, 4  ;;  %v10371_v60 = vrot.slane %v10369_v34, 4  ;;  %v10295_v34 = vld [vmem:[#allocation4 + $0x48] sm:$0xf] }
 0x548   : >> { %v10344_v10 = vsel %vm16090_vm12, %v10339_v52, %v18861_v21  ;;  %v10428_v31 = vshrl.u32 %v10295_v34, 16  ;;  %v10431_v40 = vshll.u32 %v10295_v34, 16  ;;  %v10386_v1 = vor.u32 %v10385_v4, %v10382_v32  ;;  %v10298_v4 = vld [vmem:[#allocation4 + $0x54] sm:$0xf] }
 0x549   : >> { %v10348_v12 = vor.u32 %v10347_v5, %v18861_v21  ;;  %v11209_v34 = vrot.slane %v18890_v35, 5 }
 0x54a   : >> { %v10430_v48 = vrot.slane %v10428_v31, 4  ;;  %v10433_v17 = vrot.slane %v10431_v40, 5  ;;  %v10387_v31 = vrot.slane %v10386_v1, 4 }
 0x54b   : >> { %v10349_v5 = vrot.slane %v10348_v12, 4  ;;  %v15344_v12 = vld [vmem:[#allocation4 + $0xc0] sm:$0xff]   ;;  %v11211_v55 = vrot.slane %v11209_v34, 4 }
 0x54d   : >> { %v10354_v21 = vsel %vm16090_vm12, %v10349_v5, %v10353_v33  ;;  %v10419_v33 = vrot.slane %v10417_v37, 4 }
 0x54e   : >> { %14461 = vmatmul.mubr.msk.bf16.gmra.mrb[16].mxu1 %vm493_vm7, %v15337_v57  ;;  %v10389_v57 = vshll.u32 %v18516_v18, 16  ;;  %v13242_v40 = vcombine.low %v10344_v10, %v10354_v21 }
 0x54f   : >> { %14464 = vmatprep.mubr.msk.bf16.mxu1 %vm493_vm7, %v15339_v25  ;;  %v10393_v25 = vshrl.u32 %v18516_v18, 16 }
 0x550   : >> { %v18874_v24 = vrot.slane %v10389_v57, 5  ;;  %v10407_v57 = vshll.u32 %v10292_v41, 16  ;;  %v18892_v41 = vld [vmem:[#allocation4 + $0xd4] sm:$0x1] }
 0x551   : >> { %v10395_v18 = vrot.slane %v10393_v25, 4  ;;  %v10413_v25 = vshll.u32 %v18530_v19, 16  ;;  %v10441_v19 = vshrl.u32 %v18548_v8, 16 }
 0x552   : >> { %v10409_v5 = vrot.slane %v10407_v57, 5  ;;  %v10452_v57 = vshrl.u32 %v10298_v4, 16 }
 0x553   : >> { %v10396_v9 = vor.u32 %v10395_v18, %v18874_v24  ;;  %v11053_v18 = vld [vmem:[#allocation4 + $0xcc] sm:$0xe] }
 0x554   : >> { %v13293_v32 = vrot.slane %v11053_v18, 9 }
 0x555   : >> { %v10397_v63 = vrot.slane %v10396_v9, 4  ;;  %v10443_v9 = vrot.slane %v10441_v19, 4 }
 0x556   : >> { %14465 = vmatmul.mubr.msk.bf16.gmra.mrb[20].mxu1 %vm493_vm7, %v15340_v42  ;;  %v10372_v42 = vor.u32 %v10371_v60, %v18869_v20  ;;  %v10399_v60 = vshll.u32 %v18525_v3, 16  ;;  %v10406_v3 = vrot.slane %v10404_v58, 4  ;;  %v10465_v58 = vshrl.u32 %v18556_v44, 16 }
 0x557   : >> { %14468 = vmatprep.mubr.msk.bf16.mxu1 %vm493_vm7, %v15341_v36  ;;  %v18880_v36 = vrot.slane %v10375_v46, 5  ;;  %v10437_v46 = vshll.u32 %v18548_v8, 16  ;;  %v10461_v8 = vshll.u32 %v18556_v44, 16  ;;  %v18906_v45 = vsel %vm16352_vm15, %v13293_v32, %v11209_v34 }
 0x558   : >> { %v10373_v52 = vrot.slane %v10372_v42, 4  ;;  %v18898_v42 = vrot.slane %v10413_v25, 5  ;;  %v10455_v25 = vshll.u32 %v10298_v4, 16  ;;  %v10401_v18 = vrot.slane %v10399_v60, 5 }
 0x559   : >> { %v10368_v44 = vsel %vm16090_vm12, %v10363_v0, %v18869_v20  ;;  %v10410_v34 = vor.u32 %v10409_v5, %v10406_v3  ;;  %v10423_v4 = vshll.u32 %v18532_v51, 16  ;;  %v18925_v60 = vrot.slane %v10461_v8, 5 }
 0x55a   : >> { %v10378_v19 = vsel %vm16090_vm12, %v10373_v52, %v18880_v36  ;;  %v10420_v10 = vor.u32 %v10419_v33, %v18898_v42  ;;  %v10467_v21 = vrot.slane %v10465_v58, 4  ;;  %v10434_v20 = vor.u32 %v10433_v17, %v10430_v48  ;;  %v10304_v33 = vld [vmem:[#allocation4 + $0x6c] sm:$0xf] }
 0x55b   : >> { %v10454_v36 = vrot.slane %v10452_v57, 4  ;;  %v10457_v52 = vrot.slane %v10455_v25, 5  ;;  %v13243_v1 = vcombine.low %v10368_v44, %v10378_v19  ;;  %v10392_v51 = vsel %vm16090_vm12, %v10387_v31, %v18874_v24 }
 0x55c   : >> { %v10425_v5 = vrot.slane %v10423_v4, 5  ;;  %v10447_v32 = vshll.u32 %v18554_v38, 16  ;;  %v10421_v8 = vrot.slane %v10420_v10, 4  ;;  %v10468_v17 = vor.u32 %v10467_v21, %v18925_v60  ;;  %v10307_v21 = vld [vmem:[#allocation4 + $0x78] sm:$0xf] }
 0x55d   : >> { %v10485_v48 = vshll.u32 %v18572_v23, 16  ;;  %v10489_v58 = vshrl.u32 %v18572_v23, 16  ;;  %v10458_v25 = vor.u32 %v10457_v52, %v10454_v36  ;;  %v10471_v24 = vshll.u32 %v18565_v15, 16 }
 0x55e   : >> { %14469 = vmatmul.mubr.msk.bf16.gmra.mrb[24].mxu1 %vm493_vm7, %v15342_v49  ;;  %v11212_v49 = vrot.slane %v18892_v41, 5  ;;  %v10500_v44 = vshrl.u32 %v10304_v33, 16  ;;  %v10503_v19 = vshll.u32 %v10304_v33, 16  ;;  %v10509_v4 = vshll.u32 %v18593_v53, 16 }
 0x55f   : >> { %14472 = vmatprep.mubr.msk.bf16.mxu1 %vm493_vm7, %v15344_v12  ;;  %v18900_v12 = vrot.slane %v10437_v46, 5  ;;  %v10426_v23 = vsel %vm16090_vm12, %v10421_v8, %v10425_v5  ;;  %v10469_v15 = vrot.slane %v10468_v17, 4  ;;  %v10491_v10 = vrot.slane %v10489_v58, 4 }
 0x560   : >> { %v18910_v37 = vsel %vm16352_vm15, %v11211_v55, %v11212_v49  ;;  %v10402_v55 = vsel %vm16090_vm12, %v10397_v63, %v10401_v18  ;;  %v10479_v63 = vshll.u32 %v10301_v27, 16  ;;  %v10411_v49 = vrot.slane %v10410_v34, 4 }
 0x561   : >> { %v13318_v46 = vcombine.low %v18906_v45, %v18910_v37  ;;  %v10444_v0 = vor.u32 %v10443_v9, %v18900_v12  ;;  %v13244_v3 = vcombine.low %v10392_v51, %v10402_v55  ;;  %v10435_v9 = vrot.slane %v10434_v20, 4 }
 0x562   : >> { %v10481_v18 = vrot.slane %v10479_v63, 5  ;;  %v10416_v38 = vsel %vm16090_vm12, %v10411_v49, %v18898_v42  ;;  %v10449_v34 = vrot.slane %v10447_v32, 5  ;;  %v18946_v55 = vrot.slane %v10485_v48, 5 }
 0x563   : >> { %v10445_v57 = vrot.slane %v10444_v0, 4  ;;  %v10440_v42 = vsel %vm16090_vm12, %v10435_v9, %v18900_v12  ;;  %v10459_v20 = vrot.slane %v10458_v25, 4  ;;  %v10473_v0 = vrot.slane %v10471_v24, 5  ;;  %v15349_v25 = vld [vmem:[%s17344_s26 + $0x118] sm:$0xff]  }
 0x564   : >> { %v10495_v52 = vshll.u32 %v18586_v11, 16  ;;  %v10505_v51 = vrot.slane %v10503_v19, 5  ;;  %v18957_v63 = vrot.slane %v10509_v4, 5  ;;  %v10527_v49 = vshll.u32 %v10307_v21, 16 }
 0x565   : >> { %v10474_v12 = vsel %vm16090_vm12, %v10469_v15, %v10473_v0  ;;  %v10492_v5 = vor.u32 %v10491_v10, %v18946_v55  ;;  %v10533_v32 = vshll.u32 %v18609_v26, 16  ;;  %v10537_v33 = vshrl.u32 %v18609_v26, 16  ;;  %v10313_v26 = vld [vmem:[#allocation4 + $0x90] sm:$0xf] }
 0x566   : >> { %14473 = vmatmul.mubr.msk.bf16.gmra.mrb[28].mxu1 %vm493_vm7, %v15345_v62  ;;  %v10476_v62 = vshrl.u32 %v10301_v27, 16  ;;  %v10513_v27 = vshrl.u32 %v18593_v53, 16  ;;  %v10450_v53 = vsel %vm16090_vm12, %v10445_v57, %v10449_v34  ;;  %v13245_v8 = vcombine.low %v10416_v38, %v10426_v23  ;;  %v10310_v57 = vld [vmem:[#allocation4 + $0x84] sm:$0xf] }
 0x567   : >> { %14484 = vmatprep.mubr.msk.bf16.mxu1 %vm493_vm7, %v13242_v40  ;;  %v15347_v40 = vld [vmem:[%s17344_s26 + $0x108] sm:$0xff]   ;;  %v13246_v11 = vcombine.low %v10440_v42, %v10450_v53  ;;  %v10464_v17 = vsel %vm16090_vm12, %v10459_v20, %v18925_v60  ;;  %v10497_v58 = vrot.slane %v10495_v52, 5  ;;  %v10519_v9 = vshll.u32 %v18601_v16, 16 }
 0x568   : >> { %v10478_v31 = vrot.slane %v10476_v62, 4  ;;  %v15348_v62 = vld [vmem:[%s17344_s26 + $0x110] sm:$0xff]   ;;  %v13247_v24 = vcombine.low %v10464_v17, %v10474_v12  ;;  %v18971_v38 = vrot.slane %v10533_v32, 5  ;;  %v10539_v60 = vrot.slane %v10537_v33, 4  ;;  %s15356_s26 = sshll.u32 (%p1093_p11), %s15425_s25, 4  ;;  %s15357_s26 = int_to_ptr.vmem [resolvable:$false] %s15356_s26 }
 0x569   : >> { %v10548_v34 = vshrl.u32 %v10310_v57, 16  ;;  %v10551_v16 = vshll.u32 %v10310_v57, 16  ;;  %v10557_v4 = vshll.u32 %v18618_v30, 16  ;;  %v10572_v23 = vshrl.u32 %v10313_v26, 16  ;;  %s15358_s6 = scalar_lea.vmem (%p1093_p11), %s15357_s26, 8192  ;;  %p15359_p1 = scmp.lt.s32.totalorder (%p1093_p11), %s19412_s14, %s15357_s26 }
 0x56a   : >> { %v10482_v36 = vor.u32 %v10481_v18, %v10478_v31  ;;  %v10575_v15 = vshll.u32 %v10313_v26, 16  ;;  %v10581_v10 = vshll.u32 %v18642_v61, 16  ;;  %v10521_v20 = vrot.slane %v10519_v9, 5  ;;  %p15360_p2 = scmp.lt.s32.totalorder (%p1093_p11), %s15358_s6, %s15352_s23 }
 0x56b   : >> { %v10609_v26 = vshrl.u32 %v18661_v28, 16 }
 0x56c   : >> { %v10483_v48 = vrot.slane %v10482_v36, 4  ;;  %p15361_p3 = por (%p1093_p11), %p15360_p2, %p15359_p1 }
 0x56e   : >> { %14485 = vmatmul.mubr.msk.bf16.vlgmr.msra.gmra.mrb[0].mxu1 %vm493_vm7, %v13243_v1  ;;  %v10502_v1 = vrot.slane %v10500_v44, 4  ;;  %v10529_v44 = vrot.slane %v10527_v49, 5  ;;  %v10488_v42 = vsel %vm16090_vm12, %v10483_v48, %v18946_v55  ;;  %v10577_v49 = vrot.slane %v10575_v15, 5  ;;  %p15362_p4 = pnand (%p1093_p11), %p15361_p3, %p15355_p0 }
 0x56f   : >> { %14488 = vmatprep.mubr.msk.bf16.mxu1 %vm493_vm7, %v13244_v3  ;;  %14517 = vmatpush3.bf16.msra.mxu1 %v18850_v54  ;;  %v10515_v3 = vrot.slane %v10513_v27, 4  ;;  %v10524_v54 = vshrl.u32 %v10307_v21, 16  ;;  %v10561_v27 = vshrl.u32 %v18618_v30, 16  ;;  %v10585_v21 = vshrl.u32 %v18642_v61, 16 }
 0x570   : >> { %14518 = vmatprep.subr.bf16.mxu1 %v15347_v40  ;;  %v10506_v19 = vor.u32 %v10505_v51, %v10502_v1  ;;  %v10540_v30 = vor.u32 %v10539_v60, %v18971_v38  ;;  %v10543_v1 = vshll.u32 %v18616_v59, 16  ;;  %v10550_v51 = vrot.slane %v10548_v34, 4 }
 0x571   : >> { %v10516_v31 = vor.u32 %v10515_v3, %v18957_v63  ;;  %v10526_v18 = vrot.slane %v10524_v54, 4  ;;  %v18985_v3 = vrot.slane %v10557_v4, 5  ;;  %v10563_v61 = vrot.slane %v10561_v27, 4 }
 0x572   : >> { %v10507_v52 = vrot.slane %v10506_v19, 4  ;;  %v10574_v54 = vrot.slane %v10572_v23, 4  ;;  %v18987_v55 = vrot.slane %v10581_v10, 5  ;;  %v10587_v12 = vrot.slane %v10585_v21, 4 }
 0x573   : >> { %14519 = vmatpush3.bf16.msra.mxu1 %v15347_v40  ;;  %v10493_v40 = vrot.slane %v10492_v5, 4  ;;  %v10517_v53 = vrot.slane %v10516_v31, 4  ;;  %v10530_v0 = vor.u32 %v10529_v44, %v10526_v18  ;;  %v10316_v5 = vld [vmem:[#allocation4 + $0x9c] sm:$0xf]  ;;  %v10564_v48 = vor.u32 %v10563_v61, %v18985_v3 }
 0x574   : >> { %14520 = vmatprep.subr.bf16.mxu1 %v15348_v62  ;;  %v10512_v59 = vsel %vm16090_vm12, %v10507_v52, %v18957_v63  ;;  %v10599_v9 = vshll.u32 %v10316_v5, 16  ;;  %v10578_v31 = vor.u32 %v10577_v49, %v10574_v54  ;;  %v10588_v18 = vor.u32 %v10587_v12, %v18987_v55 }
 0x575   : >> { %v10498_v36 = vsel %vm16090_vm12, %v10493_v40, %v10497_v58  ;;  %v10522_v33 = vsel %vm16090_vm12, %v10517_v53, %v10521_v20  ;;  %v10596_v58 = vshrl.u32 %v10316_v5, 16  ;;  %v10567_v44 = vshll.u32 %v18627_v56, 16  ;;  %v10319_v40 = vld [vmem:[#allocation4 + $0xa8] sm:$0xf] }
 0x576   : >> { %14489 = vmatmul.mubr.msk.bf16.gmra.mrb[4].mxu1 %vm493_vm7, %v13245_v8  ;;  %v13248_v32 = vcombine.low %v10488_v42, %v10498_v36  ;;  %v10531_v8 = vrot.slane %v10530_v0, 4  ;;  %v13249_v57 = vcombine.low %v10512_v59, %v10522_v33  ;;  %v10605_v63 = vshll.u32 %v18661_v28, 16  ;;  %v10325_v33 = vld [vmem:[#allocation4 + $0xc0] sm:$0xf] }
 0x577   : >> { %14492 = vmatprep.mubr.msk.bf16.mxu1 %vm493_vm7, %v13246_v11  ;;  %14521 = vmatpush3.bf16.msra.mxu1 %v15348_v62  ;;  %v10553_v62 = vrot.slane %v10551_v16, 5  ;;  %v10541_v11 = vrot.slane %v10540_v30, 4  ;;  %v10591_v60 = vshll.u32 %v18654_v6, 16  ;;  %v10629_v34 = vshll.u32 %v18677_v39, 16 }
 0x578   : >> { %14522 = vmatprep.subr.bf16.mxu1 %v15349_v25  ;;  %v10633_v16 = vshrl.u32 %v18677_v39, 16  ;;  %v10565_v27 = vrot.slane %v10564_v48, 4  ;;  %v10598_v23 = vrot.slane %v10596_v58, 4  ;;  %v10579_v15 = vrot.slane %v10578_v31, 4  ;;  %v10322_v39 = vld [vmem:[#allocation4 + $0xb4] sm:$0xf] }
 0x579   : >> { %v10554_v17 = vor.u32 %v10553_v62, %v10550_v51  ;;  %v10589_v56 = vrot.slane %v10588_v18, 4  ;;  %v10620_v10 = vshrl.u32 %v10319_v40, 16  ;;  %v10623_v21 = vshll.u32 %v10319_v40, 16  ;;  %v10328_v18 = vld [vmem:[#allocation4 + $0xcc] sm:$0xf] }
 0x57a   : >> { %v10569_v28 = vrot.slane %v10567_v44, 5  ;;  %v19009_v53 = vrot.slane %v10605_v63, 5  ;;  %v10611_v20 = vrot.slane %v10609_v26, 4  ;;  %v10593_v6 = vrot.slane %v10591_v60, 5 }
 0x57b   : >> { %14523 = vmatpush3.bf16.msra.mxu1 %v15349_v25  ;;  %v10545_v25 = vrot.slane %v10543_v1, 5  ;;  %v10555_v4 = vrot.slane %v10554_v17, 4  ;;  %v19012_v0 = vrot.slane %v10629_v34, 5  ;;  %v10635_v36 = vrot.slane %v10633_v16, 4 }
 0x57c   : >> { %v10570_v30 = vsel %vm16090_vm12, %v10565_v27, %v10569_v28  ;;  %v10615_v51 = vshll.u32 %v18669_v29, 16  ;;  %v10584_v62 = vsel %vm16090_vm12, %v10579_v15, %v18987_v55  ;;  %v10594_v61 = vsel %vm16090_vm12, %v10589_v56, %v10593_v6 }
 0x57d   : >> { %v10546_v19 = vsel %vm16090_vm12, %v10541_v11, %v10545_v25  ;;  %v10560_v52 = vsel %vm16090_vm12, %v10555_v4, %v18985_v3  ;;  %v10622_v54 = vrot.slane %v10620_v10, 4  ;;  %v10625_v49 = vrot.slane %v10623_v21, 5 }
 0x57e   : >> { %14493 = vmatmul.mubr.msk.bf16.gmra.mrb[8].mxu1 %vm493_vm7, %v13247_v24  ;;  %v10536_v24 = vsel %vm16090_vm12, %v10531_v8, %v18971_v38  ;;  %v10601_v38 = vrot.slane %v10599_v9, 5  ;;  %v10612_v12 = vor.u32 %v10611_v20, %v19009_v53  ;;  %v10644_v5 = vshrl.u32 %v10322_v39, 16 }
 0x57f   : >> { %14496 = vmatprep.mubr.msk.bf16.mxu1 %vm493_vm7, %v13248_v32  ;;  %v13250_v42 = vcombine.low %v10536_v24, %v10546_v19  ;;  %v10653_v3 = vshll.u32 %v18691_v47, 16  ;;  %v10657_v32 = vshrl.u32 %v18691_v47, 16  ;;  %v10636_v8 = vor.u32 %v10635_v36, %v19012_v0 }
 0x580   : >> { %v10602_v1 = vor.u32 %v10601_v38, %v10598_v23  ;;  %v10647_v29 = vshll.u32 %v10322_v39, 16  ;;  %v10677_v59 = vshll.u32 %v18712_v13, 16  ;;  %v10681_v55 = vshrl.u32 %v18712_v13, 16 }
 0x581   : >> { %v13251_v11 = vcombine.low %v10560_v52, %v10570_v30  ;;  %v13252_v17 = vcombine.low %v10584_v62, %v10594_v61  ;;  %v10617_v58 = vrot.slane %v10615_v51, 5  ;;  %v10626_v9 = vor.u32 %v10625_v49, %v10622_v54 }
 0x582   : >> { %v10603_v48 = vrot.slane %v10602_v1, 4  ;;  %v10668_v25 = vshrl.u32 %v10325_v33, 16  ;;  %v10671_v31 = vshll.u32 %v10325_v33, 16  ;;  %v10613_v24 = vrot.slane %v10612_v12, 4 }
 0x583   : >> { %v10646_v47 = vrot.slane %v10644_v5, 4  ;;  %v10655_v44 = vrot.slane %v10653_v3, 5  ;;  %v10659_v63 = vrot.slane %v10657_v32, 4  ;;  %v10637_v26 = vrot.slane %v10636_v8, 4 }
 0x584   : >> { %v10649_v40 = vrot.slane %v10647_v29, 5  ;;  %v10679_v19 = vrot.slane %v10677_v59, 5  ;;  %v10683_v13 = vrot.slane %v10681_v55, 4  ;;  %v10692_v60 = vshrl.u32 %v10328_v18, 16 }
 0x585   : >> { %v10695_v34 = vshll.u32 %v10328_v18, 16  ;;  %v10701_v16 = vshll.u32 %v18890_v35, 16  ;;  %v10627_v4 = vrot.slane %v10626_v9, 4  ;;  %v10670_v23 = vrot.slane %v10668_v25, 4  ;;  %v19718_v25 = vld [vmem:[#allocation37_spill] sm:$0xff] }
 0x586   : >> { %14497 = vmatmul.mubr.msk.bf16.gmra.mrb[12].mxu1 %vm493_vm7, %v13249_v57  ;;  %v10639_v57 = vshll.u32 %v18682_v14, 16  ;;  %v10705_v14 = vshrl.u32 %v18890_v35, 16  ;;  %v10673_v38 = vrot.slane %v10671_v31, 5  ;;  %v10608_v15 = vsel %vm16090_vm12, %v10603_v48, %v19009_v53  ;;  %v19720_v18 = vld [vmem:[#allocation41_spill] sm:$0xff] }
 0x587   : >> { %14500 = vmatprep.mubr.msk.bf16.mxu1 %vm493_vm7, %v13250_v42  ;;  %v10618_v56 = vsel %vm16090_vm12, %v10613_v24, %v10617_v58  ;;  %v10660_v10 = vor.u32 %v10659_v63, %v10655_v44  ;;  %v10650_v42 = vor.u32 %v10649_v40, %v10646_v47  ;;  %v10663_v28 = vshll.u32 %v18710_v22, 16  ;;  %v19721_v24 = vld [vmem:[#allocation42_spill] sm:$0xff]  ;;  %v19729_v40 = vld [vmem:[#allocation47_spill] sm:$0xff] }
 0x588   : >> { %v10641_v27 = vrot.slane %v10639_v57, 5  ;;  %v10684_v20 = vor.u32 %v10683_v13, %v10679_v19  ;;  %v10694_v35 = vrot.slane %v10692_v60, 4  ;;  %v10697_v6 = vrot.slane %v10695_v34, 5  ;;  %v19717_v57 = vld [vmem:[#allocation16_spill] sm:$0xff]  ;;  %v19733_v34 = vld [vmem:[#allocation50_spill] sm:$0xff] }
 0x589   : >> { %v10703_v36 = vrot.slane %v10701_v16, 5  ;;  %v10707_v39 = vrot.slane %v10705_v14, 4  ;;  %v13253_v52 = vcombine.low %v10608_v15, %v10618_v56  ;;  %v10632_v53 = vsel %vm16090_vm12, %v10627_v4, %v19012_v0  ;;  %v19732_v60 = vld [vmem:[#allocation48_spill] sm:$0xff]  ;;  %v19735_v14 = vld [vmem:[#allocation51_spill] sm:$0xff] }
 0x58a   : >> { %v10642_v21 = vsel %vm16090_vm12, %v10637_v26, %v10641_v27  ;;  %v10674_v30 = vor.u32 %v10673_v38, %v10670_v23  ;;  %v10687_v1 = vshll.u32 %v18724_v2, 16  ;;  %v10661_v62 = vrot.slane %v10660_v10, 4  ;;  %v19726_v26 = vld [vmem:[#allocation45_spill] sm:$0xff]  ;;  %v19736_v4 = vld [vmem:[#allocation52_spill] sm:$0xff]  ;;  %v19739_v38 = vld [vmem:[#allocation54_spill] sm:$0xff] }
 0x58b   : >> { %v13254_v51 = vcombine.low %v10632_v53, %v10642_v21  ;;  %v10665_v61 = vrot.slane %v10663_v28, 5  ;;  %v10685_v54 = vrot.slane %v10684_v20, 4  ;;  %v10651_v22 = vrot.slane %v10650_v42, 4  ;;  %v19738_v23 = vld [vmem:[#allocation53_spill] sm:$0xff]  ;;  %v19741_v56 = vld [vmem:[#allocation55_spill] sm:$0xff]  ;;  %v19744_v42 = vld [vmem:[#allocation56_spill] sm:$0xff] }
 0x58c   : >> { %v10698_v49 = vor.u32 %v10697_v6, %v10694_v35  ;;  %v10708_v12 = vor.u32 %v10707_v39, %v10703_v36  ;;  %v10711_v5 = vshll.u32 %v18892_v41, 16  ;;  %v10675_v3 = vrot.slane %v10674_v30, 4  ;;  %v19742_v10 = vld [vmem:[#allocation57_spill] sm:$0xff]  ;;  %v19745_v28 = vld [vmem:[#allocation58_spill] sm:$0xff]  ;;  %v19747_v35 = vld [vmem:[#allocation59_spill] sm:$0xff] }
 0x58d   : >> { %v10689_v32 = vrot.slane %v10687_v1, 5  ;;  %v10666_v0 = vsel %vm16090_vm12, %v10661_v62, %v10665_v61  ;;  %v10656_v33 = vsel %vm16090_vm12, %v10651_v22, %v10655_v44  ;;  %v19716_v9 = vcombine.low %v18536_v43, %v18540_v50  ;;  %v19724_v44 = vld [vmem:[#allocation44_spill] sm:$0xff]  ;;  %v19727_v43 = vld [vmem:[#allocation46_spill] sm:$0xff]  ;;  %v19750_v39 = vld [vmem:[#allocation61_spill] sm:$0xff] }
 0x58e   : >> { %14501 = vmatmul.mubr.msk.bf16.gmra.mrb[16].mxu1 %vm493_vm7, %v13251_v11  ;;  %v10699_v8 = vrot.slane %v10698_v49, 4  ;;  %v10709_v29 = vrot.slane %v10708_v12, 4  ;;  %v10713_v59 = vrot.slane %v10711_v5, 5  ;;  %v13255_v55 = vcombine.low %v10656_v33, %v10666_v0  ;;  %v19748_v6 = vld [vmem:[#allocation60_spill] sm:$0xff]  ;;  %v19753_v30 = vld [vmem:[#allocation63_spill] sm:$0xff]  ;;  %v19756_v62 = vld [vmem:[#allocation65_spill] sm:$0xff] }
 0x58f   : >> { %14504 = vmatprep.mubr.msk.bf16.mxu1 %vm493_vm7, %v13252_v17  ;;  %v10690_v2 = vsel %vm16090_vm12, %v10685_v54, %v10689_v32  ;;  %v10680_v11 = vsel %vm16090_vm12, %v10675_v3, %v10679_v19  ;;  %v19719_v31 = vcombine.low %v19717_v57, %v19718_v25  ;;  %v19722_v47 = vcombine.low %v19720_v18, %v19721_v24  ;;  %v19730_v19 = vld [vmem:[#allocation49_spill] sm:$0xff]  ;;  %v19754_v1 = vld [vmem:[#allocation64_spill] sm:$0xff]  ;;  %v19757_v61 = vld [vmem:[#allocation66_spill] sm:$0xff] }
 0x590   : >> { %v13256_v17 = vcombine.low %v10680_v11, %v10690_v2  ;;  %v10704_v41 = vsel %vm16090_vm12, %v10699_v8, %v10703_v36  ;;  %v10714_v48 = vsel %vm16090_vm12, %v10709_v29, %v10713_v59  ;;  %v19725_v63 = vcombine.low %v19723_v7, %v19724_v44  ;;  %v19135_v22 = vld [vmem:[%s6605_s11] ss:$0 sm:$0xff]  ;;  %v11539_v12 = vld [vmem:[#allocation2 + $0x10] sm:$0xff]  ;;  %v11540_v33 = vld [vmem:[#allocation2 + $0x18] sm:$0xff] }
 0x591   : >> { %v13257_v58 = vcombine.low %v10704_v41, %v10714_v48  ;;  %v19728_v50 = vcombine.low %v19726_v26, %v19727_v43  ;;  %v19731_v13 = vcombine.low %v19729_v40, %v19730_v19  ;;  %v19734_v16 = vcombine.low %v19732_v60, %v19733_v34  ;;  %v11537_v32 = vld [vmem:[#allocation2] sm:$0xff]  ;;  %v11543_v24 = vld [vmem:[#allocation2 + $0x30] sm:$0xff] }
 0x592   : >> { %v19737_v27 = vcombine.low %v19735_v14, %v19736_v4  ;;  %v19740_v15 = vcombine.low %v19738_v23, %v19739_v38  ;;  %v19743_v21 = vcombine.low %v19741_v56, %v19742_v10  ;;  %v19746_v20 = vcombine.low %v19744_v42, %v19745_v28  ;;  %v11541_v43 = vld [vmem:[#allocation2 + $0x20] sm:$0xff]  ;;  %v12049_v4 = vld [vmem:[#allocation3 + $0xc] sm:$0xf] }
 0x593   : >> { %v19749_v36 = vcombine.low %v19747_v35, %v19748_v6  ;;  %v19758_v54 = vcombine.low %v19756_v62, %v19757_v61  ;;  %v12060_v10 = vld [vmem:[#allocation3 + $0x20] sm:$0x1] }
 0x596   : >> { %14505 = vmatmul.mubr.msk.bf16.gmra.mrb[20].mxu1 %vm493_vm7, %v13253_v52  ;;  %v19751_v52 = vld [vmem:[#allocation62_spill] sm:$0xff] }
 0x597   : >> { %14508 = vmatprep.mubr.msk.bf16.mxu1 %vm493_vm7, %v13254_v51  ;;  %v19752_v53 = vcombine.low %v19750_v39, %v19751_v52  ;;  %v19755_v51 = vcombine.low %v19753_v30, %v19754_v1 }
 0x59e   : >> { %14509 = vmatmul.mubr.msk.bf16.gmra.mrb[24].mxu1 %vm493_vm7, %v13255_v55 }
 0x59f   : >> { %14512 = vmatprep.mubr.msk.bf16.mxu1 %vm493_vm7, %v13256_v17 }
 0x5a6   : >> { %14513 = vmatmul.mubr.msk.bf16.gmra.mrb[28].mxu1 %vm493_vm7, %v13257_v58 }
 0x5a7   : >> { %14524 = vmatprep.mubr.msk.bf16.mxu1 %vm493_vm7, %v19716_v9 }
 0x5ae   : >> { %14525 = vmatmul.mubr.msk.bf16.vlgmr.msra.gmra.mrb[0].mxu1 %vm493_vm7, %v19719_v31 }
 0x5af   : >> { %14528 = vmatprep.mubr.msk.bf16.mxu1 %vm493_vm7, %v19722_v47 }
 0x5b6   : >> { %14529 = vmatmul.mubr.msk.bf16.gmra.mrb[4].mxu1 %vm493_vm7, %v19725_v63 }
 0x5b7   : >> { %14532 = vmatprep.mubr.msk.bf16.mxu1 %vm493_vm7, %v19728_v50  ;;  %v12056_v50 = vld [vmem:[#allocation3 + $0x18] sm:$0xf] }
 0x5be   : >> { %14533 = vmatmul.mubr.msk.bf16.gmra.mrb[8].mxu1 %vm493_vm7, %v19731_v13 }
 0x5bf   : >> { %14536 = vmatprep.mubr.msk.bf16.mxu1 %vm493_vm7, %v19734_v16 }
 0x5c6   : >> { %14537 = vmatmul.mubr.msk.bf16.gmra.mrb[12].mxu1 %vm493_vm7, %v19737_v27 }
 0x5c7   : >> { %14540 = vmatprep.mubr.msk.bf16.mxu1 %vm493_vm7, %v19740_v15 }
 0x5ce   : >> { %14541 = vmatmul.mubr.msk.bf16.gmra.mrb[16].mxu1 %vm493_vm7, %v19743_v21 }
 0x5cf   : >> { %14544 = vmatprep.mubr.msk.bf16.mxu1 %vm493_vm7, %v19746_v20 }
 0x5d6   : >> { %14545 = vmatmul.mubr.msk.bf16.gmra.mrb[20].mxu1 %vm493_vm7, %v19749_v36  ;;  %v12053_v36 = vld [vmem:[#allocation3 + $0x14] sm:$0x1] }
 0x5d7   : >> { %14548 = vmatprep.mubr.msk.bf16.mxu1 %vm493_vm7, %v19752_v53 }
 0x5de   : >> { %14549 = vmatmul.mubr.msk.bf16.gmra.mrb[24].mxu1 %vm493_vm7, %v19755_v51 }
 0x5df   : >> { %14552 = vmatprep.mubr.msk.bf16.mxu1 %vm493_vm7, %v19758_v54 }
 0x5e6   : >> { %14553 = vmatmul.mubr.msk.bf16.gmra.mrb[28].mxu1 %vm493_vm7, %v13318_v46  ;;  %v11538_v46 = vld [vmem:[#allocation2 + $0x8] sm:$0xff] }
 0x681   : >> { %v14526_v49 = vpop.f32.mrb[0].mxu1 }
 0x682   : >> { %v14588_v5 = vadd.f32 %v14526_v49, %v19135_v22  ;;  %v11378_v3 = vpop.f32.mrb[1].mxu1 }
 0x683   : >> { %v14589_v0 = vadd.f32 %v19135_v22, %v11378_v3  ;;  %v14527_v2 = vpop.f32.mrb[2].mxu1 }
 0x684   : >> { %v11571_v8 = vadd.f32 %v14588_v5, %v11539_v12  ;;  %v14590_v45 = vadd.f32 %v14527_v2, %v19135_v22  ;;  %v11381_v37 = vpop.f32.mrb[3].mxu1  ;;  %v11542_v2 = vld [vmem:[#allocation2 + $0x28] sm:$0xff] }
 0x685   : >> { %v11569_v29 = vadd.f32 %v14589_v0, %v11537_v32  ;;  %v14591_v59 = vadd.f32 %v19135_v22, %v11381_v37  ;;  %v11544_v0 = vld [vmem:[#allocation2 + $0x38] sm:$0xff] }
 0x686   : >> { %11603 = vst.msk [vmem:[#allocation2 + $0x10] sm:$0xff] %vm493_vm7, %v11571_v8  ;;  %v13445_v55 = vpack.c.bf16 %v11571_v8, %v11571_v8  ;;  %v11572_v11 = vadd.f32 %v14590_v45, %v11540_v33 }
 0x687   : >> { %11601 = vst.msk [vmem:[#allocation2] sm:$0xff] %vm493_vm7, %v11569_v29  ;;  %v13443_v17 = vpack.c.bf16 %v11569_v29, %v11569_v29  ;;  %v11570_v41 = vadd.f32 %v14591_v59, %v11538_v46  ;;  %v11547_v29 = vld [vmem:[#allocation2 + $0x50] sm:$0xff] }
 0x688   : >> { %v11747_v48 = vshrl.u32 %v13445_v55, 16  ;;  %11604 = vst.msk [vmem:[#allocation2 + $0x18] sm:$0xff] %vm493_vm7, %v11572_v11  ;;  %v13446_v58 = vpack.c.bf16 %v11572_v11, %v11572_v11  ;;  %v11750_v9 = vshll.u32 %v13445_v55, 16  ;;  %v11545_v55 = vld [vmem:[#allocation2 + $0x40] sm:$0xff]  ;;  %v12070_v11 = vld [vmem:[#allocation3 + $0x30] sm:$0xf] }
 0x689   : >> { %v11730_v57 = vshrl.u32 %v13443_v17, 16  ;;  %v11733_v25 = vshll.u32 %v13443_v17, 16  ;;  %11602 = vst.msk [vmem:[#allocation2 + $0x8] sm:$0xff] %vm493_vm7, %v11570_v41  ;;  %v13444_v31 = vpack.c.bf16 %v11570_v41, %v11570_v41  ;;  %v14530_v18 = vpop.f32.mrb[4].mxu1 }
 0x68a   : >> { %v11749_v47 = vrot.slane %v11747_v48, 7  ;;  %v11755_v7 = vshrl.u32 %v13446_v58, 16  ;;  %v11758_v44 = vshll.u32 %v13446_v58, 16  ;;  %v14592_v63 = vadd.f32 %v14530_v18, %v19135_v22  ;;  %v11394_v26 = vpop.f32.mrb[5].mxu1 }
 0x68b   : >> { %v11732_v40 = vrot.slane %v11730_v57, 7  ;;  %v11738_v19 = vshrl.u32 %v13444_v31, 16  ;;  %v11741_v13 = vshll.u32 %v13444_v31, 16  ;;  %v14593_v60 = vadd.f32 %v19135_v22, %v11394_v26  ;;  %v14531_v34 = vpop.f32.mrb[6].mxu1 }
 0x68c   : >> { %v11752_v16 = vor.u32 %v11750_v9, %v11749_v47  ;;  %v11753_v14 = vrot.slane %v11749_v47, 4  ;;  %v11757_v27 = vrot.slane %v11755_v7, 7  ;;  %v11575_v23 = vadd.f32 %v14592_v63, %v11543_v24  ;;  %v11397_v38 = vpop.f32.mrb[7].mxu1 }
 0x68d   : >> { %v11735_v15 = vor.u32 %v11733_v25, %v11732_v40  ;;  %v11736_v56 = vrot.slane %v11732_v40, 4  ;;  %v11740_v21 = vrot.slane %v11738_v19, 7  ;;  %v11573_v42 = vadd.f32 %v14593_v60, %v11541_v43  ;;  %v12063_v25 = vld [vmem:[#allocation3 + $0x24] sm:$0xf] }
 0x68e   : >> { %v12057_v20 = vsel %vm15685_vm8, %v11752_v16, %v12056_v50  ;;  %v11760_v35 = vor.u32 %v11758_v44, %v11757_v27  ;;  %v11762_v6 = vrot.slane %v11757_v27, 4  ;;  %11607 = vst.msk [vmem:[#allocation2 + $0x30] sm:$0xff] %vm493_vm7, %v11575_v23  ;;  %v13449_v39 = vpack.c.bf16 %v11575_v23, %v11575_v23 }
 0x68f   : >> { %12058 = vst [vmem:[#allocation3 + $0x18] sm:$0xf] %v12057_v20  ;;  %v12050_v52 = vsel %vm15685_vm8, %v11735_v15, %v12049_v4  ;;  %v11743_v53 = vor.u32 %v11741_v13, %v11740_v21  ;;  %v11745_v30 = vrot.slane %v11740_v21, 4  ;;  %11605 = vst.msk [vmem:[#allocation2 + $0x20] sm:$0xff] %vm493_vm7, %v11573_v42  ;;  %v13447_v1 = vpack.c.bf16 %v11573_v42, %v11573_v42  ;;  %v12074_v15 = vld [vmem:[#allocation3 + $0x38] sm:$0x1] }
 0x690   : >> { %12051 = vst [vmem:[#allocation3 + $0xc] sm:$0xf] %v12050_v52  ;;  %v11761_v62 = vsel %vm15695_vm9, %v11753_v14, %v11760_v35  ;;  %v12061_v54 = vsel %vm15522_vm3, %v11762_v6, %v12060_v10  ;;  %v11781_v49 = vshrl.u32 %v13449_v39, 16  ;;  %v11784_v3 = vshll.u32 %v13449_v39, 16  ;;  %v11546_v14 = vld [vmem:[#allocation2 + $0x48] sm:$0xff] }
 0x691   : >> { %12059 = vst.msk [vmem:[#allocation3 + $0x1c] sm:$0xf] %vm224_vm0, %v11761_v62  ;;  %12062 = vst [vmem:[#allocation3 + $0x20] sm:$0x1] %v12061_v54  ;;  %v11744_v12 = vsel %vm15695_vm9, %v11736_v56, %v11743_v53  ;;  %v12054_v5 = vsel %vm15522_vm3, %v11745_v30, %v12053_v36  ;;  %v11764_v32 = vshrl.u32 %v13447_v1, 16  ;;  %v14534_v33 = vpop.f32.mrb[8].mxu1  ;;  %v14594_v45 = vadd.f32 %v14531_v34, %v19135_v22 }
 0x692   : >> { %12052 = vst.msk [vmem:[#allocation3 + $0x10] sm:$0xf] %vm224_vm0, %v11744_v12  ;;  %12055 = vst [vmem:[#allocation3 + $0x14] sm:$0x1] %v12054_v5  ;;  %v19163_v8 = vrot.slane %v11781_v49, 7  ;;  %v14595_v37 = vadd.f32 %v19135_v22, %v11397_v38  ;;  %v14596_v46 = vadd.f32 %v14534_v33, %v19135_v22  ;;  %v11410_v59 = vpop.f32.mrb[9].mxu1 }
 0x693   : >> { %v19168_v17 = vrot.slane %v11764_v32, 7  ;;  %v11767_v41 = vshll.u32 %v13447_v1, 16  ;;  %v14597_v48 = vadd.f32 %v19135_v22, %v11410_v59  ;;  %v14535_v58 = vpop.f32.mrb[10].mxu1  ;;  %v11576_v31 = vadd.f32 %v14594_v45, %v11544_v0  ;;  %v11548_v34 = vld [vmem:[#allocation2 + $0x58] sm:$0xff]  ;;  %v12067_v36 = vld [vmem:[#allocation3 + $0x2c] sm:$0x1] }
 0x694   : >> { %v11786_v9 = vor.u32 %v11784_v3, %v19163_v8  ;;  %v11787_v57 = vrot.slane %v19163_v8, 4  ;;  %v11574_v18 = vadd.f32 %v14595_v37, %v11542_v2  ;;  %v11413_v24 = vpop.f32.mrb[11].mxu1  ;;  %v11579_v44 = vadd.f32 %v14596_v46, %v11547_v29  ;;  %v12084_v1 = vld [vmem:[#allocation3 + $0x48] sm:$0xf]  ;;  %v12077_v2 = vld [vmem:[#allocation3 + $0x3c] sm:$0xf] }
 0x695   : >> { %v11769_v47 = vor.u32 %v11767_v41, %v19168_v17  ;;  %v11770_v7 = vrot.slane %v19168_v17, 4  ;;  %v11577_v63 = vadd.f32 %v14597_v48, %v11545_v55  ;;  %11608 = vst.msk [vmem:[#allocation2 + $0x38] sm:$0xff] %vm493_vm7, %v11576_v31  ;;  %v13450_v43 = vpack.c.bf16 %v11576_v31, %v11576_v31  ;;  %v11551_v29 = vld [vmem:[#allocation2 + $0x70] sm:$0xff]  ;;  %v11549_v59 = vld [vmem:[#allocation2 + $0x60] sm:$0xff]  ;;  %v11550_v31 = vld [vmem:[#allocation2 + $0x68] sm:$0xff] }
 0x696   : >> { %v12071_v26 = vsel %vm15685_vm8, %v11786_v9, %v12070_v11  ;;  %11606 = vst.msk [vmem:[#allocation2 + $0x28] sm:$0xff] %vm493_vm7, %v11574_v18  ;;  %v13448_v50 = vpack.c.bf16 %v11574_v18, %v11574_v18  ;;  %v14598_v40 = vadd.f32 %v14535_v58, %v19135_v22  ;;  %11611 = vst.msk [vmem:[#allocation2 + $0x50] sm:$0xff] %vm493_vm7, %v11579_v44  ;;  %v12165_v28 = vld [vmem:[#allocation2 + $0x20] sm:$0xff] (%p1093_p11)  ;;  %v12167_v61 = vld [vmem:[#allocation2 + $0x30] sm:$0xff] (%p1093_p11) }
 0x697   : >> { %12072 = vst [vmem:[#allocation3 + $0x30] sm:$0xf] %v12071_v26  ;;  %v12064_v19 = vsel %vm15685_vm8, %v11769_v47, %v12063_v25  ;;  %v13453_v13 = vpack.c.bf16 %v11579_v44, %v11579_v44  ;;  %11609 = vst.msk [vmem:[#allocation2 + $0x40] sm:$0xff] %vm493_vm7, %v11577_v63  ;;  %v13451_v60 = vpack.c.bf16 %v11577_v63, %v11577_v63  ;;  %v11789_v4 = vshrl.u32 %v13450_v43, 16  ;;  %v11552_v25 = vld [vmem:[#allocation2 + $0x78] sm:$0xff] }
 0x698   : >> { %v14599_v16 = vadd.f32 %v19135_v22, %v11413_v24  ;;  %12065 = vst [vmem:[#allocation3 + $0x24] sm:$0xf] %v12064_v19  ;;  %v11792_v27 = vshll.u32 %v13450_v43, 16  ;;  %v11772_v23 = vshrl.u32 %v13448_v50, 16  ;;  %v11775_v38 = vshll.u32 %v13448_v50, 16  ;;  %12197 = vst.msk [vmem:[%s16029_s12 + $0x20] sm:$0xff] (%p1093_p11), %vm493_vm7, %v12165_v28 }
 0x699   : >> { %v11815_v56 = vshrl.u32 %v13453_v13, 16  ;;  %v11818_v10 = vshll.u32 %v13453_v13, 16  ;;  %v11798_v21 = vshrl.u32 %v13451_v60, 16  ;;  %v11801_v42 = vshll.u32 %v13451_v60, 16  ;;  %v14538_v20 = vpop.f32.mrb[12].mxu1  ;;  %12199 = vst.msk [vmem:[%s16029_s12 + $0x30] sm:$0xff] (%p1093_p11), %vm493_vm7, %v12167_v61 }
 0x69a   : >> { %v11791_v35 = vrot.slane %v11789_v4, 7  ;;  %v11774_v6 = vrot.slane %v11772_v23, 7  ;;  %v11580_v39 = vadd.f32 %v14598_v40, %v11548_v34  ;;  %v11578_v52 = vadd.f32 %v14599_v16, %v11546_v14  ;;  %v11426_v53 = vpop.f32.mrb[13].mxu1  ;;  %v12088_v40 = vld [vmem:[#allocation3 + $0x50] sm:$0x1] }
 0x69b   : >> { %v19185_v30 = vrot.slane %v11815_v56, 7  ;;  %v19187_v62 = vrot.slane %v11798_v21, 7  ;;  %v14600_v54 = vadd.f32 %v14538_v20, %v19135_v22  ;;  %v14601_v49 = vadd.f32 %v19135_v22, %v11426_v53  ;;  %v14539_v12 = vpop.f32.mrb[14].mxu1  ;;  %v12098_v53 = vld [vmem:[#allocation3 + $0x60] sm:$0xf] }
 0x69c   : >> { %v11794_v5 = vor.u32 %v11792_v27, %v11791_v35  ;;  %v11796_v3 = vrot.slane %v11791_v35, 4  ;;  %v11777_v32 = vor.u32 %v11775_v38, %v11774_v6  ;;  %v11779_v0 = vrot.slane %v11774_v6, 4  ;;  %11612 = vst.msk [vmem:[#allocation2 + $0x58] sm:$0xff] %vm493_vm7, %v11580_v39  ;;  %11610 = vst.msk [vmem:[#allocation2 + $0x48] sm:$0xff] %vm493_vm7, %v11578_v52  ;;  %v11429_v33 = vpop.f32.mrb[15].mxu1 }
 0x69d   : >> { %v11820_v8 = vor.u32 %v11818_v10, %v19185_v30  ;;  %v11821_v45 = vrot.slane %v19185_v30, 4  ;;  %v11803_v37 = vor.u32 %v11801_v42, %v19187_v62  ;;  %v11804_v46 = vrot.slane %v19187_v62, 4  ;;  %v12081_v27 = vld [vmem:[#allocation3 + $0x44] sm:$0x1]  ;;  %v12166_v51 = vld [vmem:[#allocation2 + $0x28] sm:$0xff] (%p1093_p11) }
 0x69e   : >> { %v11795_v55 = vsel %vm15695_vm9, %v11787_v57, %v11794_v5  ;;  %v12075_v11 = vsel %vm15522_vm3, %v11796_v3, %v12074_v15  ;;  %v11778_v17 = vsel %vm15695_vm9, %v11770_v7, %v11777_v32  ;;  %v12068_v41 = vsel %vm15522_vm3, %v11779_v0, %v12067_v36  ;;  %v12091_v3 = vld [vmem:[#allocation3 + $0x54] sm:$0xf]  ;;  %v11553_v0 = vld [vmem:[#allocation2 + $0x80] sm:$0xff]  ;;  %12198 = vst.msk [vmem:[%s16029_s12 + $0x28] sm:$0xff] (%p1093_p11), %vm493_vm7, %v12166_v51 }
 0x69f   : >> { %12073 = vst.msk [vmem:[#allocation3 + $0x34] sm:$0xf] %vm224_vm0, %v11795_v55  ;;  %12076 = vst [vmem:[#allocation3 + $0x38] sm:$0x1] %v12075_v11  ;;  %v12085_v48 = vsel %vm15685_vm8, %v11820_v8, %v12084_v1  ;;  %v12078_v58 = vsel %vm15685_vm8, %v11803_v37, %v12077_v2  ;;  %v13454_v9 = vpack.c.bf16 %v11580_v39, %v11580_v39  ;;  %v11555_v32 = vld [vmem:[#allocation2 + $0x90] sm:$0xff] }
 0x6a0   : >> { %12066 = vst.msk [vmem:[#allocation3 + $0x28] sm:$0xf] %vm224_vm0, %v11778_v17  ;;  %12069 = vst [vmem:[#allocation3 + $0x2c] sm:$0x1] %v12068_v41  ;;  %v13452_v57 = vpack.c.bf16 %v11578_v52, %v11578_v52  ;;  %v11583_v18 = vadd.f32 %v14600_v54, %v11551_v29  ;;  %v11581_v24 = vadd.f32 %v14601_v49, %v11549_v59 }
 0x6a1   : >> { %12086 = vst [vmem:[#allocation3 + $0x48] sm:$0xf] %v12085_v48  ;;  %12079 = vst [vmem:[#allocation3 + $0x3c] sm:$0xf] %v12078_v58  ;;  %v14602_v47 = vadd.f32 %v14539_v12, %v19135_v22  ;;  %v14603_v7 = vadd.f32 %v19135_v22, %v11429_v33  ;;  %v11823_v44 = vshrl.u32 %v13454_v9, 16  ;;  %v11826_v63 = vshll.u32 %v13454_v9, 16 }
 0x6a2   : >> { %v11806_v26 = vshrl.u32 %v13452_v57, 16  ;;  %v11809_v43 = vshll.u32 %v13452_v57, 16  ;;  %v14542_v50 = vpop.f32.mrb[16].mxu1  ;;  %11615 = vst.msk [vmem:[#allocation2 + $0x70] sm:$0xff] %vm493_vm7, %v11583_v18  ;;  %v13457_v19 = vpack.c.bf16 %v11583_v18, %v11583_v18  ;;  %11613 = vst.msk [vmem:[#allocation2 + $0x60] sm:$0xff] %vm493_vm7, %v11581_v24  ;;  %v13455_v13 = vpack.c.bf16 %v11581_v24, %v11581_v24 }
 0x6a3   : >> { %v11584_v60 = vadd.f32 %v14602_v47, %v11552_v25  ;;  %v11582_v34 = vadd.f32 %v14603_v7, %v11550_v31  ;;  %v11442_v16 = vpop.f32.mrb[17].mxu1  ;;  %v11825_v14 = vrot.slane %v11823_v44, 7  ;;  %v14604_v23 = vadd.f32 %v14542_v50, %v19135_v22  ;;  %v12102_v24 = vld [vmem:[#allocation3 + $0x68] sm:$0x1]  ;;  %v12095_v47 = vld [vmem:[#allocation3 + $0x5c] sm:$0x1] }
 0x6a4   : >> { %v11808_v4 = vrot.slane %v11806_v26, 7  ;;  %v14605_v38 = vadd.f32 %v19135_v22, %v11442_v16  ;;  %v14543_v15 = vpop.f32.mrb[18].mxu1  ;;  %v11849_v56 = vshrl.u32 %v13457_v19, 16  ;;  %v11852_v10 = vshll.u32 %v13457_v19, 16 }
 0x6a5   : >> { %v11832_v21 = vshrl.u32 %v13455_v13, 16  ;;  %v11835_v42 = vshll.u32 %v13455_v13, 16  ;;  %11616 = vst.msk [vmem:[#allocation2 + $0x78] sm:$0xff] %vm493_vm7, %v11584_v60  ;;  %11614 = vst.msk [vmem:[#allocation2 + $0x68] sm:$0xff] %vm493_vm7, %v11582_v34  ;;  %v11445_v20 = vpop.f32.mrb[19].mxu1  ;;  %v11828_v35 = vor.u32 %v11826_v63, %v11825_v14  ;;  %v11830_v6 = vrot.slane %v11825_v14, 4 }
 0x6a6   : >> { %v11811_v36 = vor.u32 %v11809_v43, %v11808_v4  ;;  %v11813_v39 = vrot.slane %v11808_v4, 4  ;;  %v11851_v52 = vrot.slane %v11849_v56, 7  ;;  %v13458_v1 = vpack.c.bf16 %v11584_v60, %v11584_v60  ;;  %v11556_v60 = vld [vmem:[#allocation2 + $0x98] sm:$0xff] }
 0x6a7   : >> { %v11834_v30 = vrot.slane %v11832_v21, 7  ;;  %v13456_v62 = vpack.c.bf16 %v11582_v34, %v11582_v34  ;;  %v11829_v54 = vsel %vm15695_vm9, %v11821_v45, %v11828_v35  ;;  %v12089_v49 = vsel %vm15522_vm3, %v11830_v6, %v12088_v40  ;;  %v11554_v34 = vld [vmem:[#allocation2 + $0x88] sm:$0xff] }
 0x6a8   : >> { %v11812_v12 = vsel %vm15695_vm9, %v11804_v46, %v11811_v36  ;;  %v12082_v5 = vsel %vm15522_vm3, %v11813_v39, %v12081_v27  ;;  %12087 = vst.msk [vmem:[#allocation3 + $0x4c] sm:$0xf] %vm224_vm0, %v11829_v54  ;;  %12090 = vst [vmem:[#allocation3 + $0x50] sm:$0x1] %v12089_v49  ;;  %v11854_v2 = vor.u32 %v11852_v10, %v11851_v52  ;;  %v11855_v33 = vrot.slane %v11851_v52, 4  ;;  %v11558_v54 = vld [vmem:[#allocation2 + $0xa8] sm:$0xff] }
 0x6a9   : >> { %12080 = vst.msk [vmem:[#allocation3 + $0x40] sm:$0xf] %vm224_vm0, %v11812_v12  ;;  %12083 = vst [vmem:[#allocation3 + $0x44] sm:$0x1] %v12082_v5  ;;  %v11837_v8 = vor.u32 %v11835_v42, %v11834_v30  ;;  %v11838_v45 = vrot.slane %v11834_v30, 4  ;;  %v11857_v37 = vshrl.u32 %v13458_v1, 16  ;;  %v11587_v41 = vadd.f32 %v14604_v23, %v11555_v32 }
 0x6aa   : >> { %v11860_v29 = vshll.u32 %v13458_v1, 16  ;;  %v11840_v59 = vshrl.u32 %v13456_v62, 16  ;;  %v11843_v46 = vshll.u32 %v13456_v62, 16  ;;  %v14546_v55 = vpop.f32.mrb[20].mxu1  ;;  %v12099_v11 = vsel %vm15685_vm8, %v11854_v2, %v12098_v53  ;;  %v11559_v23 = vld [vmem:[#allocation2 + $0xb0] sm:$0xff]  ;;  %v11560_v1 = vld [vmem:[#allocation2 + $0xb8] sm:$0xff] }
 0x6ab   : >> { %v12092_v17 = vsel %vm15685_vm8, %v11837_v8, %v12091_v3  ;;  %v11585_v48 = vadd.f32 %v14605_v38, %v11553_v0  ;;  %v11458_v58 = vpop.f32.mrb[21].mxu1  ;;  %12100 = vst [vmem:[#allocation3 + $0x60] sm:$0xf] %v12099_v11  ;;  %v11859_v9 = vrot.slane %v11857_v37, 7  ;;  %v14606_v25 = vadd.f32 %v14543_v15, %v19135_v22  ;;  %11619 = vst.msk [vmem:[#allocation2 + $0x90] sm:$0xff] %vm493_vm7, %v11587_v41  ;;  %v11557_v38 = vld [vmem:[#allocation2 + $0xa0] sm:$0xff] }
 0x6ac   : >> { %12093 = vst [vmem:[#allocation3 + $0x54] sm:$0xf] %v12092_v17  ;;  %v11842_v57 = vrot.slane %v11840_v59, 7  ;;  %v14607_v31 = vadd.f32 %v19135_v22, %v11445_v20  ;;  %v14547_v18 = vpop.f32.mrb[22].mxu1  ;;  %v13461_v7 = vpack.c.bf16 %v11587_v41, %v11587_v41  ;;  %v14608_v63 = vadd.f32 %v14546_v55, %v19135_v22  ;;  %v12112_v20 = vld [vmem:[#allocation3 + $0x78] sm:$0xf] }
 0x6ad   : >> { %11617 = vst.msk [vmem:[#allocation2 + $0x80] sm:$0xff] %vm493_vm7, %v11585_v48  ;;  %v13459_v44 = vpack.c.bf16 %v11585_v48, %v11585_v48  ;;  %v14609_v26 = vadd.f32 %v19135_v22, %v11458_v58  ;;  %v11461_v43 = vpop.f32.mrb[23].mxu1  ;;  %v11862_v50 = vor.u32 %v11860_v29, %v11859_v9  ;;  %v11864_v40 = vrot.slane %v11859_v9, 4  ;;  %v12105_v39 = vld [vmem:[#allocation3 + $0x6c] sm:$0xf] }
 0x6ae   : >> { %v11845_v19 = vor.u32 %v11843_v46, %v11842_v57  ;;  %v11847_v13 = vrot.slane %v11842_v57, 4  ;;  %v11883_v16 = vshrl.u32 %v13461_v7, 16  ;;  %v11886_v14 = vshll.u32 %v13461_v7, 16 }
 0x6af   : >> { %v11866_v4 = vshrl.u32 %v13459_v44, 16  ;;  %v11869_v27 = vshll.u32 %v13459_v44, 16  ;;  %v11863_v15 = vsel %vm15695_vm9, %v11855_v33, %v11862_v50  ;;  %v12103_v56 = vsel %vm15522_vm3, %v11864_v40, %v12102_v24  ;;  %v12116_v24 = vld [vmem:[#allocation3 + $0x80] sm:$0x1] }
 0x6b0   : >> { %v11846_v10 = vsel %vm15695_vm9, %v11838_v45, %v11845_v19  ;;  %v12096_v21 = vsel %vm15522_vm3, %v11847_v13, %v12095_v47  ;;  %12101 = vst.msk [vmem:[#allocation3 + $0x64] sm:$0xf] %vm224_vm0, %v11863_v15  ;;  %12104 = vst [vmem:[#allocation3 + $0x68] sm:$0x1] %v12103_v56  ;;  %v19249_v42 = vrot.slane %v11883_v16, 7  ;;  %v11588_v6 = vadd.f32 %v14606_v25, %v11556_v60  ;;  %v11563_v56 = vld [vmem:[#allocation2 + $0xd0] sm:$0xff] }
 0x6b1   : >> { %12094 = vst.msk [vmem:[#allocation3 + $0x58] sm:$0xf] %vm224_vm0, %v11846_v10  ;;  %12097 = vst [vmem:[#allocation3 + $0x5c] sm:$0x1] %v12096_v21  ;;  %v19251_v35 = vrot.slane %v11866_v4, 7  ;;  %v11586_v36 = vadd.f32 %v14607_v31, %v11554_v34  ;;  %v11591_v52 = vadd.f32 %v14608_v63, %v11559_v23  ;;  %v11589_v53 = vadd.f32 %v14609_v26, %v11557_v38  ;;  %v14550_v49 = vpop.f32.mrb[24].mxu1 }
 0x6b2   : >> { %v14610_v30 = vadd.f32 %v14547_v18, %v19135_v22  ;;  %v14611_v62 = vadd.f32 %v19135_v22, %v11461_v43  ;;  %v11888_v12 = vor.u32 %v11886_v14, %v19249_v42  ;;  %v11889_v5 = vrot.slane %v19249_v42, 4  ;;  %11620 = vst.msk [vmem:[#allocation2 + $0x98] sm:$0xff] %vm493_vm7, %v11588_v6  ;;  %v11474_v0 = vpop.f32.mrb[25].mxu1  ;;  %v12109_v63 = vld [vmem:[#allocation3 + $0x74] sm:$0x1]  ;;  %v11561_v10 = vld [vmem:[#allocation2 + $0xc0] sm:$0xff] }
 0x6b3   : >> { %v11871_v3 = vor.u32 %v11869_v27, %v19251_v35  ;;  %v11872_v32 = vrot.slane %v19251_v35, 4  ;;  %11618 = vst.msk [vmem:[#allocation2 + $0x88] sm:$0xff] %vm493_vm7, %v11586_v36  ;;  %v13462_v2 = vpack.c.bf16 %v11588_v6, %v11588_v6  ;;  %v13460_v33 = vpack.c.bf16 %v11586_v36, %v11586_v36  ;;  %11623 = vst.msk [vmem:[#allocation2 + $0xb0] sm:$0xff] %vm493_vm7, %v11591_v52  ;;  %v19263_v37 = vpop.f32.mrb[26].mxu1  ;;  %v12126_v43 = vld [vmem:[#allocation3 + $0x90] sm:$0xf] }
 0x6b4   : >> { %v13465_v8 = vpack.c.bf16 %v11591_v52, %v11591_v52  ;;  %11621 = vst.msk [vmem:[#allocation2 + $0xa0] sm:$0xff] %vm493_vm7, %v11589_v53  ;;  %v13463_v45 = vpack.c.bf16 %v11589_v53, %v11589_v53  ;;  %v12113_v29 = vsel %vm15685_vm8, %v11888_v12, %v12112_v20  ;;  %v11592_v46 = vadd.f32 %v14610_v30, %v11560_v1  ;;  %v11477_v11 = vpop.f32.mrb[27].mxu1  ;;  %v12119_v14 = vld [vmem:[#allocation3 + $0x84] sm:$0xf] }
 0x6b5   : >> { %v12106_v59 = vsel %vm15685_vm8, %v11871_v3, %v12105_v39  ;;  %v11590_v55 = vadd.f32 %v14611_v62, %v11558_v54  ;;  %12114 = vst [vmem:[#allocation3 + $0x78] sm:$0xf] %v12113_v29  ;;  %v11891_v17 = vshrl.u32 %v13462_v2, 16  ;;  %v11894_v41 = vshll.u32 %v13462_v2, 16  ;;  %v11562_v3 = vld [vmem:[#allocation2 + $0xc8] sm:$0xff] }
 0x6b6   : >> { %12107 = vst [vmem:[#allocation3 + $0x6c] sm:$0xf] %v12106_v59  ;;  %v11874_v48 = vshrl.u32 %v13460_v33, 16  ;;  %v11877_v58 = vshll.u32 %v13460_v33, 16  ;;  %v11917_v9 = vshrl.u32 %v13465_v8, 16  ;;  %v11920_v57 = vshll.u32 %v13465_v8, 16 }
 0x6b7   : >> { %v11900_v25 = vshrl.u32 %v13463_v45, 16  ;;  %v11903_v31 = vshll.u32 %v13463_v45, 16  ;;  %11624 = vst.msk [vmem:[#allocation2 + $0xb8] sm:$0xff] %vm493_vm7, %v11592_v46  ;;  %11622 = vst.msk [vmem:[#allocation2 + $0xa8] sm:$0xff] %vm493_vm7, %v11590_v55  ;;  %v11893_v18 = vrot.slane %v11891_v17, 7  ;;  %v13466_v7 = vpack.c.bf16 %v11592_v46, %v11592_v46 }
 0x6b8   : >> { %v11876_v47 = vrot.slane %v11874_v48, 7  ;;  %v13464_v44 = vpack.c.bf16 %v11590_v55, %v11590_v55  ;;  %v19271_v26 = vrot.slane %v11917_v9, 7  ;;  %v14612_v40 = vadd.f32 %v14550_v49, %v19135_v22  ;;  %v12130_v8 = vld [vmem:[#allocation3 + $0x98] sm:$0x1] }
 0x6b9   : >> { %v19273_v50 = vrot.slane %v11900_v25, 7  ;;  %v14613_v19 = vadd.f32 %v19135_v22, %v11474_v0  ;;  %v11896_v13 = vor.u32 %v11894_v41, %v11893_v18  ;;  %v11898_v60 = vrot.slane %v11893_v18, 4  ;;  %v14554_v4 = vpop.f32.mrb[28].mxu1  ;;  %v12123_v41 = vld [vmem:[#allocation3 + $0x8c] sm:$0x1]  ;;  %v11567_v25 = vld [vmem:[#allocation2 + $0xf0] sm:$0xff] }
 0x6ba   : >> { %v11879_v34 = vor.u32 %v11877_v58, %v11876_v47  ;;  %v11881_v16 = vrot.slane %v11876_v47, 4  ;;  %v11922_v27 = vor.u32 %v11920_v57, %v19271_v26  ;;  %v11923_v23 = vrot.slane %v19271_v26, 4  ;;  %v11490_v21 = vpop.f32.mrb[29].mxu1 }
 0x6bb   : >> { %v11905_v38 = vor.u32 %v11903_v31, %v19273_v50  ;;  %v11906_v15 = vrot.slane %v19273_v50, 4  ;;  %v11897_v42 = vsel %vm15695_vm9, %v11889_v5, %v11896_v13  ;;  %v12117_v20 = vsel %vm15522_vm3, %v11898_v60, %v12116_v24  ;;  %v19289_v36 = vpop.f32.mrb[30].mxu1  ;;  %v11564_v5 = vld [vmem:[#allocation2 + $0xd8] sm:$0xff]  ;;  %v11565_v31 = vld [vmem:[#allocation2 + $0xe0] sm:$0xff]  ;;  %v12140_v50 = vld [vmem:[#allocation3 + $0xa8] sm:$0xf] }
 0x6bc   : >> { %v11880_v35 = vsel %vm15695_vm9, %v11872_v32, %v11879_v34  ;;  %v12110_v6 = vsel %vm15522_vm3, %v11881_v16, %v12109_v63  ;;  %12115 = vst.msk [vmem:[#allocation3 + $0x7c] sm:$0xf] %vm224_vm0, %v11897_v42  ;;  %12118 = vst [vmem:[#allocation3 + $0x80] sm:$0x1] %v12117_v20  ;;  %v12127_v39 = vsel %vm15685_vm8, %v11922_v27, %v12126_v43  ;;  %v11925_v53 = vshrl.u32 %v13466_v7, 16  ;;  %v19297_v1 = vpop.f32.mrb[31].mxu1 }
 0x6bd   : >> { %12108 = vst.msk [vmem:[#allocation3 + $0x70] sm:$0xf] %vm224_vm0, %v11880_v35  ;;  %12111 = vst [vmem:[#allocation3 + $0x74] sm:$0x1] %v12110_v6  ;;  %v12120_v52 = vsel %vm15685_vm8, %v11905_v38, %v12119_v14  ;;  %v11928_v30 = vshll.u32 %v13466_v7, 16  ;;  %v11908_v62 = vshrl.u32 %v13464_v44, 16  ;;  %v11595_v49 = vadd.f32 %v14612_v40, %v11563_v56 }
 0x6be   : >> { %12128 = vst [vmem:[#allocation3 + $0x90] sm:$0xf] %v12127_v39  ;;  %12121 = vst [vmem:[#allocation3 + $0x84] sm:$0xf] %v12120_v52  ;;  %v11911_v54 = vshll.u32 %v13464_v44, 16  ;;  %v11593_v12 = vadd.f32 %v14613_v19, %v11561_v10  ;;  %v11927_v32 = vrot.slane %v11925_v53, 7  ;;  %v14614_v0 = vadd.f32 %v19263_v37, %v19135_v22 }
 0x6bf   : >> { %v14615_v2 = vadd.f32 %v19135_v22, %v11477_v11  ;;  %v14616_v33 = vadd.f32 %v14554_v4, %v19135_v22  ;;  %v11910_v45 = vrot.slane %v11908_v62, 7  ;;  %11627 = vst.msk [vmem:[#allocation2 + $0xd0] sm:$0xff] %vm493_vm7, %v11595_v49  ;;  %v13469_v29 = vpack.c.bf16 %v11595_v49, %v11595_v49  ;;  %v12133_v14 = vld [vmem:[#allocation3 + $0x9c] sm:$0xf]  ;;  %v12144_v6 = vld [vmem:[#allocation3 + $0xb0] sm:$0x1] }
 0x6c0   : >> { %11625 = vst.msk [vmem:[#allocation2 + $0xc0] sm:$0xff] %vm493_vm7, %v11593_v12  ;;  %v13467_v59 = vpack.c.bf16 %v11593_v12, %v11593_v12  ;;  %v14617_v46 = vadd.f32 %v19135_v22, %v11490_v21  ;;  %v11930_v55 = vor.u32 %v11928_v30, %v11927_v32  ;;  %v11932_v17 = vrot.slane %v11927_v32, 4  ;;  %v11568_v53 = vld [vmem:[#allocation2 + $0xf8] sm:$0xff]  ;;  %v12137_v49 = vld [vmem:[#allocation3 + $0xa4] sm:$0x1] }
 0x6c1   : >> { %v11596_v48 = vadd.f32 %v14614_v0, %v11564_v5  ;;  %v11594_v58 = vadd.f32 %v14615_v2, %v11562_v3  ;;  %v11913_v37 = vor.u32 %v11911_v54, %v11910_v45  ;;  %v11915_v9 = vrot.slane %v11910_v45, 4  ;;  %v11566_v3 = vld [vmem:[#allocation2 + $0xe8] sm:$0xff] }
 0x6c2   : >> { %v11951_v11 = vshrl.u32 %v13469_v29, 16  ;;  %v11954_v57 = vshll.u32 %v13469_v29, 16  ;;  %v11931_v18 = vsel %vm15695_vm9, %v11923_v23, %v11930_v55  ;;  %v12131_v24 = vsel %vm15522_vm3, %v11932_v17, %v12130_v8 }
 0x6c3   : >> { %v11934_v47 = vshrl.u32 %v13467_v59, 16  ;;  %v11937_v7 = vshll.u32 %v13467_v59, 16  ;;  %11628 = vst.msk [vmem:[#allocation2 + $0xd8] sm:$0xff] %vm493_vm7, %v11596_v48  ;;  %11626 = vst.msk [vmem:[#allocation2 + $0xc8] sm:$0xff] %vm493_vm7, %v11594_v58  ;;  %v11914_v44 = vsel %vm15695_vm9, %v11906_v15, %v11913_v37  ;;  %v12124_v63 = vsel %vm15522_vm3, %v11915_v9, %v12123_v41  ;;  %v12154_v59 = vld [vmem:[#allocation3 + $0xc0] sm:$0xf] }
 0x6c4   : >> { %12129 = vst.msk [vmem:[#allocation3 + $0x94] sm:$0xf] %vm224_vm0, %v11931_v18  ;;  %12132 = vst [vmem:[#allocation3 + $0x98] sm:$0x1] %v12131_v24  ;;  %v11953_v26 = vrot.slane %v11951_v11, 7  ;;  %v13470_v43 = vpack.c.bf16 %v11596_v48, %v11596_v48  ;;  %v13468_v19 = vpack.c.bf16 %v11594_v58, %v11594_v58  ;;  %v11599_v13 = vadd.f32 %v14616_v33, %v11567_v25 }
 0x6c5   : >> { %12122 = vst.msk [vmem:[#allocation3 + $0x88] sm:$0xf] %vm224_vm0, %v11914_v44  ;;  %12125 = vst [vmem:[#allocation3 + $0x8c] sm:$0x1] %v12124_v63  ;;  %v11936_v40 = vrot.slane %v11934_v47, 7  ;;  %v11597_v60 = vadd.f32 %v14617_v46, %v11565_v31  ;;  %v14618_v52 = vadd.f32 %v19289_v36, %v19135_v22  ;;  %v14619_v30 = vadd.f32 %v19135_v22, %v19297_v1 }
 0x6c6   : >> { %v11956_v34 = vor.u32 %v11954_v57, %v11953_v26  ;;  %v11957_v16 = vrot.slane %v11953_v26, 4  ;;  %v11959_v4 = vshrl.u32 %v13470_v43, 16  ;;  %v11962_v27 = vshll.u32 %v13470_v43, 16  ;;  %11631 = vst.msk [vmem:[#allocation2 + $0xf0] sm:$0xff] %vm493_vm7, %v11599_v13  ;;  %v12147_v41 = vld [vmem:[#allocation3 + $0xb4] sm:$0xf] }
 0x6c7   : >> { %v11939_v23 = vor.u32 %v11937_v7, %v11936_v40  ;;  %v11940_v38 = vrot.slane %v11936_v40, 4  ;;  %v11942_v15 = vshrl.u32 %v13468_v19, 16  ;;  %v11945_v56 = vshll.u32 %v13468_v19, 16  ;;  %11629 = vst.msk [vmem:[#allocation2 + $0xe0] sm:$0xff] %vm493_vm7, %v11597_v60  ;;  %v12158_v24 = vld [vmem:[#allocation3 + $0xc8] sm:$0x1] }
 0x6c8   : >> { %v12141_v10 = vsel %vm15685_vm8, %v11956_v34, %v12140_v50  ;;  %v11961_v21 = vrot.slane %v11959_v4, 7  ;;  %v13473_v42 = vpack.c.bf16 %v11599_v13, %v11599_v13  ;;  %v13471_v20 = vpack.c.bf16 %v11597_v60, %v11597_v60  ;;  %v12151_v43 = vld [vmem:[#allocation3 + $0xbc] sm:$0x1]  ;;  %v12162_v4 = vld [vmem:[#allocation2 + $0x8] sm:$0xff] (%p1093_p11) }
 0x6c9   : >> { %12142 = vst [vmem:[#allocation3 + $0xa8] sm:$0xf] %v12141_v10  ;;  %v12134_v35 = vsel %vm15685_vm8, %v11939_v23, %v12133_v14  ;;  %v11944_v39 = vrot.slane %v11942_v15, 7  ;;  %v11600_v29 = vadd.f32 %v14618_v52, %v11568_v53  ;;  %v11598_v55 = vadd.f32 %v14619_v30, %v11566_v3  ;;  %v12161_v14 = vld [vmem:[#allocation2] sm:$0xff] (%p1093_p11)  ;;  %12194 = vst.msk [vmem:[%s16029_s12 + $0x8] sm:$0xff] (%p1093_p11), %vm493_vm7, %v12162_v4  ;;  %v12164_v23 = vld [vmem:[#allocation2 + $0x18] sm:$0xff] (%p1093_p11) }
 0x6ca   : >> { %12135 = vst [vmem:[#allocation3 + $0x9c] sm:$0xf] %v12134_v35  ;;  %v11964_v62 = vor.u32 %v11962_v27, %v11961_v21  ;;  %v11966_v54 = vrot.slane %v11961_v21, 4  ;;  %v11985_v12 = vshrl.u32 %v13473_v42, 16  ;;  %v11988_v5 = vshll.u32 %v13473_v42, 16  ;;  %v12163_v27 = vld [vmem:[#allocation2 + $0x10] sm:$0xff] (%p1093_p11) }
 0x6cb   : >> { %v11947_v32 = vor.u32 %v11945_v56, %v11944_v39  ;;  %v11949_v0 = vrot.slane %v11944_v39, 4  ;;  %v11968_v2 = vshrl.u32 %v13471_v20, 16  ;;  %v11971_v33 = vshll.u32 %v13471_v20, 16  ;;  %11632 = vst.msk [vmem:[#allocation2 + $0xf8] sm:$0xff] %vm493_vm7, %v11600_v29  ;;  %11630 = vst.msk [vmem:[#allocation2 + $0xe8] sm:$0xff] %vm493_vm7, %v11598_v55  ;;  %v12169_v15 = vld [vmem:[#allocation2 + $0x40] sm:$0xff] (%p1093_p11) }
 0x6cc   : >> { %v11965_v8 = vsel %vm15695_vm9, %v11957_v16, %v11964_v62  ;;  %v12145_v36 = vsel %vm15522_vm3, %v11966_v54, %v12144_v6  ;;  %v11987_v45 = vrot.slane %v11985_v12, 7  ;;  %v13474_v48 = vpack.c.bf16 %v11600_v29, %v11600_v29  ;;  %12193 = vst.msk [vmem:[%s16029_s12] sm:$0xff] (%p1093_p11), %vm493_vm7, %v12161_v14  ;;  %12195 = vst.msk [vmem:[%s16029_s12 + $0x10] sm:$0xff] (%p1093_p11), %vm493_vm7, %v12163_v27  ;;  %v12170_v56 = vld [vmem:[#allocation2 + $0x48] sm:$0xff] (%p1093_p11)  ;;  %v12171_v10 = vld [vmem:[#allocation2 + $0x50] sm:$0xff] (%p1093_p11) }
 0x6cd   : >> { %12143 = vst.msk [vmem:[#allocation3 + $0xac] sm:$0xf] %vm224_vm0, %v11965_v8  ;;  %12146 = vst [vmem:[#allocation3 + $0xb0] sm:$0x1] %v12145_v36  ;;  %v11948_v22 = vsel %vm15695_vm9, %v11940_v38, %v11947_v32  ;;  %v12138_v1 = vsel %vm15522_vm3, %v11949_v0, %v12137_v49  ;;  %v11970_v46 = vrot.slane %v11968_v2, 7  ;;  %v13472_v37 = vpack.c.bf16 %v11598_v55, %v11598_v55  ;;  %v12168_v38 = vld [vmem:[#allocation2 + $0x38] sm:$0xff] (%p1093_p11) }
 0x6ce   : >> { %12136 = vst.msk [vmem:[#allocation3 + $0xa0] sm:$0xf] %vm224_vm0, %v11948_v22  ;;  %12139 = vst [vmem:[#allocation3 + $0xa4] sm:$0x1] %v12138_v1  ;;  %v11990_v17 = vor.u32 %v11988_v5, %v11987_v45  ;;  %v11993_v11 = vshrl.u32 %v13474_v48, 16  ;;  %v11996_v18 = vshll.u32 %v13474_v48, 16 }
 0x6cf   : >> { %v11973_v58 = vor.u32 %v11971_v33, %v11970_v46  ;;  %v11976_v25 = vshrl.u32 %v13472_v37, 16  ;;  %v11979_v7 = vshll.u32 %v13472_v37, 16  ;;  %v11991_v44 = vrot.slane %v11987_v45, 4  ;;  %12196 = vst.msk [vmem:[%s16029_s12 + $0x18] sm:$0xff] (%p1093_p11), %vm493_vm7, %v12164_v23  ;;  %12200 = vst.msk [vmem:[%s16029_s12 + $0x38] sm:$0xff] (%p1093_p11), %vm493_vm7, %v12168_v38  ;;  %v12172_v21 = vld [vmem:[#allocation2 + $0x58] sm:$0xff] (%p1093_p11) }
 0x6d0   : >> { %v12155_v9 = vsel %vm15685_vm8, %v11990_v17, %v12154_v59  ;;  %v11995_v31 = vrot.slane %v11993_v11, 7  ;;  %v11974_v50 = vrot.slane %v11970_v46, 4  ;;  %1095 = sbr.rel (!%p1093_p11) target bundleno = 160 (0xa0), region = 108  ;;  %12201 = vst.msk [vmem:[%s16029_s12 + $0x40] sm:$0xff] (%p1093_p11), %vm493_vm7, %v12169_v15  ;;  %12202 = vst.msk [vmem:[%s16029_s12 + $0x48] sm:$0xff] (%p1093_p11), %vm493_vm7, %v12170_v56  ;;  %v12173_v42 = vld [vmem:[#allocation2 + $0x60] sm:$0xff] (%p1093_p11) }
 0x6d1   : >> { %12156 = vst [vmem:[#allocation3 + $0xc0] sm:$0xf] %v12155_v9  ;;  %v12148_v57 = vsel %vm15685_vm8, %v11973_v58, %v12147_v41  ;;  %v11978_v47 = vrot.slane %v11976_v25, 7  ;;  %12203 = vst.msk [vmem:[%s16029_s12 + $0x50] sm:$0xff] (%p1093_p11), %vm493_vm7, %v12171_v10  ;;  %v12174_v20 = vld [vmem:[#allocation2 + $0x68] sm:$0xff] (%p1093_p11)  ;;  %v12175_v35 = vld [vmem:[#allocation2 + $0x70] sm:$0xff] (%p1093_p11) }
 0x6d2   : >> { %12149 = vst [vmem:[#allocation3 + $0xb4] sm:$0xf] %v12148_v57  ;;  %v11998_v63 = vor.u32 %v11996_v18, %v11995_v31  ;;  %v12000_v26 = vrot.slane %v11995_v31, 4  ;;  %12204 = vst.msk [vmem:[%s16029_s12 + $0x58] sm:$0xff] (%p1093_p11), %vm493_vm7, %v12172_v21  ;;  %v12176_v6 = vld [vmem:[#allocation2 + $0x78] sm:$0xff] (%p1093_p11)  ;;  %v12177_v39 = vld [vmem:[#allocation2 + $0x80] sm:$0xff] (%p1093_p11) }
 0x6d3   : >> { %v11981_v40 = vor.u32 %v11979_v7, %v11978_v47  ;;  %v11983_v19 = vrot.slane %v11978_v47, 4  ;;  %12205 = vst.msk [vmem:[%s16029_s12 + $0x60] sm:$0xff] (%p1093_p11), %vm493_vm7, %v12173_v42  ;;  %12206 = vst.msk [vmem:[%s16029_s12 + $0x68] sm:$0xff] (%p1093_p11), %vm493_vm7, %v12174_v20  ;;  %v12178_v52 = vld [vmem:[#allocation2 + $0x88] sm:$0xff] (%p1093_p11)  ;;  %v12179_v53 = vld [vmem:[#allocation2 + $0x90] sm:$0xff] (%p1093_p11) }
 0x6d4   : >> { %v11999_v13 = vsel %vm15695_vm9, %v11991_v44, %v11998_v63  ;;  %v12159_v60 = vsel %vm15522_vm3, %v12000_v26, %v12158_v24  ;;  %12207 = vst.msk [vmem:[%s16029_s12 + $0x70] sm:$0xff] (%p1093_p11), %vm493_vm7, %v12175_v35  ;;  %12208 = vst.msk [vmem:[%s16029_s12 + $0x78] sm:$0xff] (%p1093_p11), %vm493_vm7, %v12176_v6  ;;  %v12180_v30 = vld [vmem:[#allocation2 + $0x98] sm:$0xff] (%p1093_p11)  ;;  %v12181_v62 = vld [vmem:[#allocation2 + $0xa0] sm:$0xff] (%p1093_p11) }
 0x6d5   : >> { %12157 = vst.msk [vmem:[#allocation3 + $0xc4] sm:$0xf] %vm224_vm0, %v11999_v13  ;;  %12160 = vst [vmem:[#allocation3 + $0xc8] sm:$0x1] %v12159_v60  ;;  %v11982_v34 = vsel %vm15695_vm9, %v11974_v50, %v11981_v40  ;;  %v12152_v16 = vsel %vm15522_vm3, %v11983_v19, %v12151_v43  ;;  %v12182_v54 = vld [vmem:[#allocation2 + $0xa8] sm:$0xff] (%p1093_p11)  ;;  %v12183_v49 = vld [vmem:[#allocation2 + $0xb0] sm:$0xff] (%p1093_p11) }
 0x6d6   : >> { %12150 = vst.msk [vmem:[#allocation3 + $0xb8] sm:$0xf] %vm224_vm0, %v11982_v34  ;;  %12153 = vst [vmem:[#allocation3 + $0xbc] sm:$0x1] %v12152_v16  ;;  %v12184_v12 = vld [vmem:[#allocation2 + $0xb8] sm:$0xff] (%p1093_p11)  ;;  %v12185_v5 = vld [vmem:[#allocation2 + $0xc0] sm:$0xff] (%p1093_p11) }
 0x6d7   : > { %12209 = vst.msk [vmem:[%s16029_s12 + $0x80] sm:$0xff] %vm493_vm7, %v12177_v39  ;;  %12210 = vst.msk [vmem:[%s16029_s12 + $0x88] sm:$0xff] %vm493_vm7, %v12178_v52  ;;  %v12186_v3 = vld [vmem:[#allocation2 + $0xc8] sm:$0xff]  ;;  %v12187_v32 = vld [vmem:[#allocation2 + $0xd0] sm:$0xff] }
 0x6d8   : > { %12211 = vst.msk [vmem:[%s16029_s12 + $0x90] sm:$0xff] %vm493_vm7, %v12179_v53  ;;  %12212 = vst.msk [vmem:[%s16029_s12 + $0x98] sm:$0xff] %vm493_vm7, %v12180_v30  ;;  %v12188_v0 = vld [vmem:[#allocation2 + $0xd8] sm:$0xff]  ;;  %v12189_v2 = vld [vmem:[#allocation2 + $0xe0] sm:$0xff] }
 0x6d9   : > { %12213 = vst.msk [vmem:[%s16029_s12 + $0xa0] sm:$0xff] %vm493_vm7, %v12181_v62  ;;  %12214 = vst.msk [vmem:[%s16029_s12 + $0xa8] sm:$0xff] %vm493_vm7, %v12182_v54  ;;  %v12190_v33 = vld [vmem:[#allocation2 + $0xe8] sm:$0xff]  ;;  %v12191_v8 = vld [vmem:[#allocation2 + $0xf0] sm:$0xff] }
 0x6da   : > { %12215 = vst.msk [vmem:[%s16029_s12 + $0xb0] sm:$0xff] %vm493_vm7, %v12183_v49  ;;  %12216 = vst.msk [vmem:[%s16029_s12 + $0xb8] sm:$0xff] %vm493_vm7, %v12184_v12  ;;  %v12192_v36 = vld [vmem:[#allocation2 + $0xf8] sm:$0xff] }
 0x6db   : > { %12217 = vst.msk [vmem:[%s16029_s12 + $0xc0] sm:$0xff] %vm493_vm7, %v12185_v5  ;;  %12218 = vst.msk [vmem:[%s16029_s12 + $0xc8] sm:$0xff] %vm493_vm7, %v12186_v3 }
 0x6dc   : > { %12219 = vst.msk [vmem:[%s16029_s12 + $0xd0] sm:$0xff] %vm493_vm7, %v12187_v32  ;;  %12220 = vst.msk [vmem:[%s16029_s12 + $0xd8] sm:$0xff] %vm493_vm7, %v12188_v0 }
 0x6dd   : > { %12221 = vst.msk [vmem:[%s16029_s12 + $0xe0] sm:$0xff] %vm493_vm7, %v12189_v2  ;;  %12222 = vst.msk [vmem:[%s16029_s12 + $0xe8] sm:$0xff] %vm493_vm7, %v12190_v33 }
 0x6de   : > { %12223 = vst.msk [vmem:[%s16029_s12 + $0xf0] sm:$0xff] %vm493_vm7, %v12191_v8  ;;  %12224 = vst.msk [vmem:[%s16029_s12 + $0xf8] sm:$0xff] %vm493_vm7, %v12192_v36 }
 0x6df   : > { %15365 = shalt.err (!%p15362_p4)
}
 0x6e0   : > { %s15366_s30 = scalar_lea.hbm %s19410_s16, 4096  ;;  %s15370_s8 = scalar_lea.hbm %s19478_s5, 8192 }
 0x6e1   : > { %p15367_p7 = scmp.ne.s32.totalorder %s19410_s16, %s15366_s30  ;;  %p15371_p10 = scmp.lt.u32.totalorder %s19410_s16, %s19478_s5 }
 0x6e2   : > { %p15372_p11 = scmp.lt.u32.totalorder %s15370_s8, %s15366_s30  ;;  %p15374_p13 = scmp.lt.u32.totalorder %s15366_s30, %s19410_s16 }
 0x6e3   : > { %p15368_p8 = pnand %p15367_p7, %p15496_p5 }
 0x6e4   : > { %p15373_p12 = por %p15372_p11, %p15371_p10 }
 0x6e5   : > { %p15369_p9 = pneg %p15368_p8 }
 0x6e6   : > { %p15375_p0 = por %p15374_p13, %p15373_p12 }
 0x6e8   : > { %p15376_p1 = pnand %p15375_p0, %p15369_p9 }
 0x6ea   : > { %15379 = shalt.err (!%p15376_p1)
}
 0x6eb   : > { %s15426_s11 = smov 128   ;;  %s15427_s13 = smov 8  }
 0x6ec   : > { %15132 = dma.vmem_to_hbm [thread:$0]  (%p15496_p5), %s19412_s14, 4096, %s19410_s16, %s19432_s17, %s15426_s11, %s15426_s11, %s15427_s13  }
 0x6ed PF: > { %p15138_p2 = scmp.ge.s32.totalorder %s15418_s21, 2  ;;  %s12254_s22 = sand.u32 1, %s15406_s18  }
 0x6ee   : > { %s12255_s15 = scalar_lea.sflag [#allocation6], %s12254_s22 }
 0x6ef   : > { %p15135_p3 = pnand %p15138_p2, %p15500_p6 }
 0x6f1   : > { %15401 = dma.done.wait (!%p15135_p3), %s12255_s15, 4096  }
 0x6f2   : > { %15403 = vsyncadd (!%p15135_p3), %s12255_s15, 4294963200  ;;  %p15_p4 = scmp.ge.s32.totalorder %s15483_s24, 4   ;;  %s19762_s18 = smov %s15410_s19 }
 0x6f3   : > { %s19763_s19 = smov %s15414_s20  ;;  %s19764_s20 = smov %s15494_s27 }
 0x6f4   : > { %s19765_s21 = smov %s15483_s24  ;;  %17 = sbr.rel (!%p15_p4) target bundleno = 3 (0x3), region = 119 }
 0x6fb   :  { %12260 = vsyncpa [#allocation6], 1 }
 0x6fc   :  { %12262 = vsyncpa [#allocation6 + $0x1], 1 }

</bundles_post_ra>
